<compile_context>
chip_gen: v6e
topology: v6e:2x2x1
jax: 0.10.0
libtpu: 0.0.40
codegen_flags: <defaults>
</compile_context>

<pallas_src>
import functools

import numpy as np
import jax
import jax.numpy as jnp
from jax.experimental import pallas as pl
from jax.experimental.pallas import tpu as pltpu


def _round_up(x, m):
    return ((x + m - 1) // m) * m


# ----------------------------------------------------------------------------
# Pallas kernel: Bt windows (R = Bt * Np rows) per grid step.
# ----------------------------------------------------------------------------
def _window_attention_kernel(x_ref, wqkv_ref, bqkv_ref, bias_ref,
                             wproj_ref, bproj_ref, o_ref, attn_scratch,
                             *, num_heads, head_dim, tokens, scale):
    R, C = x_ref.shape                      # R = Bt * Np rows, C channels
    H, P, N = num_heads, head_dim, tokens   # N is the padded token count
    Bt = R // N

    # --- QKV projection: one big MXU matmul over all Bt windows -------------
    x = x_ref[...]                                              # bf16 (R, C)
    qkv = jnp.dot(x, wqkv_ref[...],
                  preferred_element_type=jnp.float32)           # f32 (R, 3C)
    qkv = (qkv + bqkv_ref[...]).astype(jnp.bfloat16)            # bf16 from here on
    qkv = qkv.reshape(Bt, N, 3 * C)                             # N % 16 == 0 -> free

    bias = bias_ref[...]                                        # f32 (H, N, N), resident

    # --- per-head attention, batched over the Bt windows ---------------------
    for h in range(H):                      # short static unroll (keep unrolled)
        q = qkv[:, :, h * P:(h + 1) * P]                        # (Bt, N, P) bf16
        k = qkv[:, :, C + h * P:C + (h + 1) * P]                # (Bt, N, P) bf16
        v = qkv[:, :, 2 * C + h * P:2 * C + (h + 1) * P]        # (Bt, N, P) bf16

        logits = jnp.einsum('bnp,bmp->bnm', q, k,
                            preferred_element_type=jnp.float32)  # f32 (Bt, N, N)
        logits = logits * scale + bias[h]                        # scale fused in bias add

        # numerically-stabilized f32 softmax; reciprocal on the EUP
        logits = logits - jnp.max(logits, axis=-1, keepdims=True)
        probs = jnp.exp(logits)
        probs = probs * pl.reciprocal(jnp.sum(probs, axis=-1, keepdims=True),
                                      approx=True)

        head_out = jnp.einsum('bnm,bmp->bnp', probs.astype(jnp.bfloat16), v,
                              preferred_element_type=jnp.float32)  # (Bt, N, P)
        attn_scratch[:, :, h * P:(h + 1) * P] = head_out.astype(jnp.bfloat16)

    out = attn_scratch[...].reshape(R, C)                        # bf16 (R, C)

    # --- output projection ----------------------------------------------------
    o = jnp.dot(out, wproj_ref[...], preferred_element_type=jnp.float32)
    o_ref[...] = (o + bproj_ref[...]).astype(o_ref.dtype)


# ----------------------------------------------------------------------------
# Wrapper
# ----------------------------------------------------------------------------
def _pick_window_tile(num_windows, tokens, max_rows=1024):
    """Pick Bt (windows per grid step).  Preference order:
       (1) at least 2 grid steps (v7x has 2 TensorCores),
       (2) an even number of grid steps,
       (3) R = Bt*tokens a multiple of 256 (v6e/v7x MXU), then of 128,
       (4) the largest R that fits."""
    cands = [d for d in range(1, num_windows + 1)
             if num_windows % d == 0 and d * tokens <= max_rows]
    if not cands:
        cands = [1]

    def score(d):
        rows = d * tokens
        steps = num_windows // d
        return (steps >= 2,
                steps >= 2 and steps % 2 == 0,
                rows % 256 == 0,
                rows % 128 == 0,
                rows)

    return max(cands, key=score)


def window_attention(x, wqkv_t, bqkv, rel_bias, wproj_t, bproj,
                     *, num_heads, scale, max_rows_per_step=1024,
                     out_dtype=jnp.bfloat16):
    """x: (B_, N, C); wqkv_t: (C, 3C); bqkv: (3C,); rel_bias: (H, N, N);
    wproj_t: (C, C); bproj: (C,).  Returns (B_, N, C) in out_dtype."""
    B_, N, C = x.shape
    P = C // num_heads

    # Pad tokens per window to a bf16 sublane multiple (16) so in-kernel
    # reshapes / logits are tile aligned.  Padded key columns get -1e9 bias.
    Np = max(16, _round_up(N, 16))
    pad = Np - N

    bias_p = rel_bias.astype(jnp.float32)
    x_p = x
    if pad:
        x_p = jnp.pad(x, ((0, 0), (0, pad), (0, 0)))
        bias_p = jnp.pad(bias_p, ((0, 0), (0, pad), (0, pad)),
                         constant_values=-1e9)

    Bt = _pick_window_tile(B_, Np, max_rows_per_step)
    R = Bt * Np
    grid = (B_ // Bt,)

    # bf16 operands for the MXU (f32 accumulation inside the kernel); biases
    # and the relative-position bias stay f32 for the softmax path.
    x2d = x_p.reshape(B_ * Np, C).astype(jnp.bfloat16)
    wqkv_bf = wqkv_t.astype(jnp.bfloat16)
    wproj_bf = wproj_t.astype(jnp.bfloat16)
    bqkv_f32 = bqkv.reshape(1, 3 * C).astype(jnp.float32)
    bproj_f32 = bproj.reshape(1, C).astype(jnp.float32)

    kernel = functools.partial(_window_attention_kernel,
                               num_heads=num_heads, head_dim=P,
                               tokens=Np, scale=scale)

    # Rough cost model so XLA schedules neighbours sensibly.
    flops = 8 * B_ * Np * C * C + 4 * B_ * Np * Np * C
    transcendentals = B_ * num_heads * Np * Np
    out_bytes = B_ * Np * C * jnp.dtype(out_dtype).itemsize
    bytes_accessed = int(x2d.size * 2 + out_bytes
                         + (wqkv_bf.size + wproj_bf.size) * 2
                         + (bqkv_f32.size + bproj_f32.size + bias_p.size) * 4)

    # VMEM budget: double-buffered x/out blocks + (possibly double-buffered)
    # resident weights/bias + bf16 scratch + headroom for f32 intermediates.
    # Capped at 40 MiB so the same tiling is safe on v7x's 64 MiB per TC.
    elem_out = jnp.dtype(out_dtype).itemsize
    block_bytes = 2 * R * C * 2 + 2 * R * C * elem_out
    resident = 2 * ((wqkv_bf.size + wproj_bf.size) * 2
                    + (bqkv_f32.size + bproj_f32.size + bias_p.size) * 4)
    interm = R * 3 * C * (4 + 2) + Bt * num_heads * Np * Np * 4 + R * C * 2
    vmem_limit = int(min(40 * 1024 * 1024,
                         max(8 * 1024 * 1024,
                             block_bytes + resident + 2 * interm)))

    def build(single_buffer_weights):
        def const_spec(shape):
            zeros = (0,) * len(shape)
            if single_buffer_weights:
                return pl.BlockSpec(shape, lambda *_: zeros,
                                    pipeline_mode=pl.Buffered(1))
            return pl.BlockSpec(shape, lambda *_: zeros)

        return pl.pallas_call(
            kernel,
            out_shape=jax.ShapeDtypeStruct((B_ * Np, C), out_dtype),
            grid_spec=pltpu.PrefetchScalarGridSpec(
                num_scalar_prefetch=0,
                grid=grid,
                in_specs=[
                    pl.BlockSpec((R, C), lambda b: (b, 0)),    # x rows
                    const_spec((C, 3 * C)),                    # qkv W^T (resident)
                    const_spec((1, 3 * C)),                    # qkv bias
                    const_spec((num_heads, Np, Np)),           # rel-pos bias (masked pad)
                    const_spec((C, C)),                        # proj W^T
                    const_spec((1, C)),                        # proj bias
                ],
                out_specs=pl.BlockSpec((R, C), lambda b: (b, 0)),
                scratch_shapes=[pltpu.VMEM((Bt, Np, C), jnp.bfloat16)],
            ),
            compiler_params=pltpu.CompilerParams(
                dimension_semantics=("parallel",),
                vmem_limit_bytes=vmem_limit),
            cost_estimate=pl.CostEstimate(flops=int(flops),
                                          transcendentals=int(transcendentals),
                                          bytes_accessed=bytes_accessed),
        )

    args = (x2d, wqkv_bf, bqkv_f32, bias_p, wproj_bf, bproj_f32)
    try:
        out2d = jax.block_until_ready(build(True)(*args))
    except Exception:
        # pl.Buffered(1) on constant-index operands is a VMEM-only optimisation;
        # fall back to default buffering if this Pallas build rejects it.
        out2d = build(False)(*args)

    out = out2d.reshape(B_, Np, C)
    if pad:
        out = out[:, :N, :]
    return out


# ----------------------------------------------------------------------------
# Relative position index (exactly as in the PyTorch __init__)
# ----------------------------------------------------------------------------
def make_relative_position_index(window_size):
    Wh, Ww = window_size
    coords_h = np.arange(Wh)
    coords_w = np.arange(Ww)
    coords = np.stack(np.meshgrid(coords_h, coords_w, indexing="ij"))   # (2, Wh, Ww)
    coords_flatten = coords.reshape(2, -1)                              # (2, N)
    relative_coords = coords_flatten[:, :, None] - coords_flatten[:, None, :]
    relative_coords = relative_coords.transpose(1, 2, 0).copy()         # (N, N, 2)
    relative_coords[:, :, 0] += Wh - 1
    relative_coords[:, :, 1] += Ww - 1
    relative_coords[:, :, 0] *= 2 * Ww - 1
    return relative_coords.sum(-1)                                      # (N, N)


# ----------------------------------------------------------------------------
# Pure-JAX f32 reference (mirrors the PyTorch forward with mask=None)
# ----------------------------------------------------------------------------
def reference_forward(x, wqkv_t, bqkv, rel_bias, wproj_t, bproj,
                      *, num_heads, scale):
    B_, N, C = x.shape
    P = C // num_heads
    qkv = x @ wqkv_t + bqkv                                    # (B, N, 3C)
    qkv = qkv.reshape(B_, N, 3, num_heads, P).transpose(2, 0, 3, 1, 4)
    q, k, v = qkv[0], qkv[1], qkv[2]                           # (B, H, N, P)
    attn = (q * scale) @ jnp.swapaxes(k, -2, -1)               # (B, H, N, N)
    attn = attn + rel_bias[None]
    attn = jax.nn.softmax(attn, axis=-1)
    out = attn @ v                                             # (B, H, N, P)
    out = out.transpose(0, 2, 1, 3).reshape(B_, N, C)
    return out @ wproj_t + bproj


# ----------------------------------------------------------------------------
if __name__ == "__main__":
    # Swin-T stage-1 window attention, small batch: exercises the N=49 -> 64
    # token padding / key-masking path.
    dim = 96
    window_size = (7, 7)
    num_heads = 3
    head_dim = dim // num_heads
    scale = head_dim ** (-0.5)
    N = window_size[0] * window_size[1]        # 49 tokens per window
    B_ = 8                                     # batch * num_windows

    key = jax.random.PRNGKey(0)
    k_x, k_tab, k_wqkv, k_bqkv, k_wp, k_bp = jax.random.split(key, 6)

    x = jax.random.normal(k_x, (B_, N, dim), dtype=jnp.float32)

    num_rel = (2 * window_size[0] - 1) * (2 * window_size[1] - 1)
    rel_table = 0.02 * jax.random.truncated_normal(
        k_tab, -2.0, 2.0, (num_rel, num_heads), dtype=jnp.float32)

    # nn.Linear(dim, 3*dim): weight (3C, C); we pass W^T so kernel does x @ W^T.
    wqkv = 0.05 * jax.random.normal(k_wqkv, (3 * dim, dim), dtype=jnp.float32)
    bqkv = 0.05 * jax.random.normal(k_bqkv, (3 * dim,), dtype=jnp.float32)
    wproj = 0.05 * jax.random.normal(k_wp, (dim, dim), dtype=jnp.float32)
    bproj = 0.05 * jax.random.normal(k_bp, (dim,), dtype=jnp.float32)

    wqkv_t = wqkv.T                               # (C, 3C)
    wproj_t = wproj.T                             # (C, C)

    # Gather relative position bias -> (H, N, N) in plain JAX (glue).
    rel_index = jnp.asarray(make_relative_position_index(window_size))   # (N, N)
    rel_bias = rel_table[rel_index.reshape(-1)].reshape(N, N, num_heads)
    rel_bias = jnp.transpose(rel_bias, (2, 0, 1))                        # (H, N, N)

    out = window_attention(x, wqkv_t, bqkv, rel_bias, wproj_t, bproj,
                           num_heads=num_heads, scale=scale)
    out = jax.block_until_ready(out)

    ref = reference_forward(x, wqkv_t, bqkv, rel_bias, wproj_t, bproj,
                            num_heads=num_heads, scale=scale)
    ref = jax.block_until_ready(ref)

    # Tolerance reflects bf16 MXU operands / bf16 output (f32 accumulation,
    # f32 softmax, approximate EUP reciprocal).
    out_f32 = np.asarray(out.astype(jnp.float32))
    np.testing.assert_allclose(out_f32, np.asarray(ref), rtol=5e-2, atol=2e-2)
    print("KERNEL_OK")
</pallas_src>

<mosaic_0001>
module attributes {stable_mosaic.version = 11 : i64} {
  func.func @_window_attention_kernel(%arg0: i32, %arg1: memref<256x96xbf16, #tpu.memory_space<vmem>>, %arg2: memref<96x288xbf16, #tpu.memory_space<vmem>>, %arg3: memref<1x288xf32, #tpu.memory_space<vmem>>, %arg4: memref<3x64x64xf32, #tpu.memory_space<vmem>>, %arg5: memref<96x96xbf16, #tpu.memory_space<vmem>>, %arg6: memref<1x96xf32, #tpu.memory_space<vmem>>, %arg7: memref<256x96xbf16, #tpu.memory_space<vmem>>, %arg8: memref<4x64x96xbf16, #tpu.memory_space<vmem>>) attributes {dimension_semantics = [#tpu.dimension_semantics<parallel>], iteration_bounds = array<i64: 2>, scalar_prefetch = 0 : i64, scratch_operands = 1 : i64, tpu.core_type = #tpu.core_type<tc>, window_params = [{transform_indices = @transform_0, window_bounds = array<i64: 256, 96>}, {pipeline_mode = #tpu.pipeline_mode<synchronous>, transform_indices = @transform_1, window_bounds = array<i64: 96, 288>}, {pipeline_mode = #tpu.pipeline_mode<synchronous>, transform_indices = @transform_2, window_bounds = array<i64: 1, 288>}, {pipeline_mode = #tpu.pipeline_mode<synchronous>, transform_indices = @transform_3, window_bounds = array<i64: 3, 64, 64>}, {pipeline_mode = #tpu.pipeline_mode<synchronous>, transform_indices = @transform_4, window_bounds = array<i64: 96, 96>}, {pipeline_mode = #tpu.pipeline_mode<synchronous>, transform_indices = @transform_5, window_bounds = array<i64: 1, 96>}, {transform_indices = @transform_6, window_bounds = array<i64: 256, 96>}]} {
    %c0 = arith.constant 0 : index
    %c0_0 = arith.constant 0 : index
    %0 = vector.load %arg1[%c0, %c0_0] : memref<256x96xbf16, #tpu.memory_space<vmem>>, vector<256x96xbf16>
    %c0_1 = arith.constant 0 : index
    %c0_2 = arith.constant 0 : index
    %1 = vector.load %arg2[%c0_1, %c0_2] : memref<96x288xbf16, #tpu.memory_space<vmem>>, vector<96x288xbf16>
    %cst = arith.constant dense<0.000000e+00> : vector<256x288xf32>
    %2 = tpu.matmul %0, %1, %cst {dimension_numbers = #tpu.dot_dimension_numbers<[1], [0], [0], [1], [0, 0, 1, 1], [], []>} : vector<256x96xbf16>, vector<96x288xbf16>, vector<256x288xf32> -> vector<256x288xf32>
    %c0_3 = arith.constant 0 : index
    %c0_4 = arith.constant 0 : index
    %3 = vector.load %arg3[%c0_3, %c0_4] : memref<1x288xf32, #tpu.memory_space<vmem>>, vector<1x288xf32>
    %4 = vector.broadcast %3 : vector<1x288xf32> to vector<256x288xf32>
    %5 = arith.addf %2, %4 : vector<256x288xf32>
    %6 = arith.truncf %5 : vector<256x288xf32> to vector<256x288xbf16>
    %7 = vector.shape_cast %6 : vector<256x288xbf16> to vector<4x64x288xbf16>
    %c0_5 = arith.constant 0 : index
    %c0_6 = arith.constant 0 : index
    %c0_7 = arith.constant 0 : index
    %8 = vector.load %arg4[%c0_5, %c0_6, %c0_7] : memref<3x64x64xf32, #tpu.memory_space<vmem>>, vector<3x64x64xf32>
    %9 = vector.extract_strided_slice %7 {offsets = [0, 0, 0], sizes = [4, 64, 32], strides = [1, 1, 1]} : vector<4x64x288xbf16> to vector<4x64x32xbf16>
    %10 = vector.extract_strided_slice %7 {offsets = [0, 0, 96], sizes = [4, 64, 32], strides = [1, 1, 1]} : vector<4x64x288xbf16> to vector<4x64x32xbf16>
    %11 = vector.extract_strided_slice %7 {offsets = [0, 0, 192], sizes = [4, 64, 32], strides = [1, 1, 1]} : vector<4x64x288xbf16> to vector<4x64x32xbf16>
    "tpu.trace_start"() <{level = 10 : i32, message = "bnp,bmp->bnm"}> : () -> ()
    %cst_8 = arith.constant dense<0.000000e+00> : vector<4x64x64xf32>
    %12 = tpu.matmul %9, %10, %cst_8 {dimension_numbers = #tpu.dot_dimension_numbers<[2], [2], [1], [1], [0, 0, 0, 1, 1, 1], [0], [0]>} : vector<4x64x32xbf16>, vector<4x64x32xbf16>, vector<4x64x64xf32> -> vector<4x64x64xf32>
    "tpu.trace_stop"() : () -> ()
    %cst_9 = arith.constant 0.176776692 : f32
    %13 = vector.broadcast %cst_9 : f32 to vector<4x64x64xf32>
    %14 = arith.mulf %12, %13 : vector<4x64x64xf32>
    %15 = vector.extract_strided_slice %8 {offsets = [0, 0, 0], sizes = [1, 64, 64], strides = [1, 1, 1]} : vector<3x64x64xf32> to vector<1x64x64xf32>
    %16 = vector.shape_cast %15 : vector<1x64x64xf32> to vector<64x64xf32>
    %17 = vector.shape_cast %16 : vector<64x64xf32> to vector<1x64x64xf32>
    %18 = vector.broadcast %17 : vector<1x64x64xf32> to vector<4x64x64xf32>
    %19 = arith.addf %14, %18 : vector<4x64x64xf32>
    %cst_10 = arith.constant dense<0xFF800000> : vector<4x64xf32>
    %20 = vector.multi_reduction <maximumf>, %19, %cst_10 [2] : vector<4x64x64xf32> to vector<4x64xf32>
    %21 = vector.shape_cast %20 : vector<4x64xf32> to vector<4x64x1xf32>
    %22 = vector.broadcast %21 : vector<4x64x1xf32> to vector<4x64x64xf32>
    %23 = arith.subf %19, %22 : vector<4x64x64xf32>
    %24 = math.exp %23 : vector<4x64x64xf32>
    %cst_11 = arith.constant dense<0.000000e+00> : vector<4x64xf32>
    %25 = vector.multi_reduction <add>, %24, %cst_11 [2] : vector<4x64x64xf32> to vector<4x64xf32>
    %26 = vector.shape_cast %25 : vector<4x64xf32> to vector<4x64x1xf32>
    %27 = tpu.reciprocal %26 {approx = true} : vector<4x64x1xf32> -> vector<4x64x1xf32>
    %28 = vector.broadcast %27 : vector<4x64x1xf32> to vector<4x64x64xf32>
    %29 = arith.mulf %24, %28 : vector<4x64x64xf32>
    %30 = arith.truncf %29 : vector<4x64x64xf32> to vector<4x64x64xbf16>
    "tpu.trace_start"() <{level = 10 : i32, message = "bnm,bmp->bnp"}> : () -> ()
    %cst_12 = arith.constant dense<0.000000e+00> : vector<4x64x32xf32>
    %31 = tpu.matmul %30, %11, %cst_12 {dimension_numbers = #tpu.dot_dimension_numbers<[2], [1], [1], [2], [0, 0, 0, 1, 1, 2], [0], [0]>} : vector<4x64x64xbf16>, vector<4x64x32xbf16>, vector<4x64x32xf32> -> vector<4x64x32xf32>
    "tpu.trace_stop"() : () -> ()
    %32 = arith.truncf %31 : vector<4x64x32xf32> to vector<4x64x32xbf16>
    %c0_13 = arith.constant 0 : index
    %c0_14 = arith.constant 0 : index
    %c0_15 = arith.constant 0 : index
    %33 = vector.load %arg8[%c0_13, %c0_14, %c0_15] : memref<4x64x96xbf16, #tpu.memory_space<vmem>>, vector<4x64x32xbf16>
    tpu.vector_store %arg8[%c0_13, %c0_14, %c0_15], %32 {strides = array<i32>} : memref<4x64x96xbf16, #tpu.memory_space<vmem>>, vector<4x64x32xbf16>,
    %34 = vector.extract_strided_slice %7 {offsets = [0, 0, 32], sizes = [4, 64, 32], strides = [1, 1, 1]} : vector<4x64x288xbf16> to vector<4x64x32xbf16>
    %35 = vector.extract_strided_slice %7 {offsets = [0, 0, 128], sizes = [4, 64, 32], strides = [1, 1, 1]} : vector<4x64x288xbf16> to vector<4x64x32xbf16>
    %36 = vector.extract_strided_slice %7 {offsets = [0, 0, 224], sizes = [4, 64, 32], strides = [1, 1, 1]} : vector<4x64x288xbf16> to vector<4x64x32xbf16>
    "tpu.trace_start"() <{level = 10 : i32, message = "bnp,bmp->bnm"}> : () -> ()
    %cst_16 = arith.constant dense<0.000000e+00> : vector<4x64x64xf32>
    %37 = tpu.matmul %34, %35, %cst_16 {dimension_numbers = #tpu.dot_dimension_numbers<[2], [2], [1], [1], [0, 0, 0, 1, 1, 1], [0], [0]>} : vector<4x64x32xbf16>, vector<4x64x32xbf16>, vector<4x64x64xf32> -> vector<4x64x64xf32>
    "tpu.trace_stop"() : () -> ()
    %cst_17 = arith.constant 0.176776692 : f32
    %38 = vector.broadcast %cst_17 : f32 to vector<4x64x64xf32>
    %39 = arith.mulf %37, %38 : vector<4x64x64xf32>
    %40 = vector.extract_strided_slice %8 {offsets = [1, 0, 0], sizes = [1, 64, 64], strides = [1, 1, 1]} : vector<3x64x64xf32> to vector<1x64x64xf32>
    %41 = vector.shape_cast %40 : vector<1x64x64xf32> to vector<64x64xf32>
    %42 = vector.shape_cast %41 : vector<64x64xf32> to vector<1x64x64xf32>
    %43 = vector.broadcast %42 : vector<1x64x64xf32> to vector<4x64x64xf32>
    %44 = arith.addf %39, %43 : vector<4x64x64xf32>
    %cst_18 = arith.constant dense<0xFF800000> : vector<4x64xf32>
    %45 = vector.multi_reduction <maximumf>, %44, %cst_18 [2] : vector<4x64x64xf32> to vector<4x64xf32>
    %46 = vector.shape_cast %45 : vector<4x64xf32> to vector<4x64x1xf32>
    %47 = vector.broadcast %46 : vector<4x64x1xf32> to vector<4x64x64xf32>
    %48 = arith.subf %44, %47 : vector<4x64x64xf32>
    %49 = math.exp %48 : vector<4x64x64xf32>
    %cst_19 = arith.constant dense<0.000000e+00> : vector<4x64xf32>
    %50 = vector.multi_reduction <add>, %49, %cst_19 [2] : vector<4x64x64xf32> to vector<4x64xf32>
    %51 = vector.shape_cast %50 : vector<4x64xf32> to vector<4x64x1xf32>
    %52 = tpu.reciprocal %51 {approx = true} : vector<4x64x1xf32> -> vector<4x64x1xf32>
    %53 = vector.broadcast %52 : vector<4x64x1xf32> to vector<4x64x64xf32>
    %54 = arith.mulf %49, %53 : vector<4x64x64xf32>
    %55 = arith.truncf %54 : vector<4x64x64xf32> to vector<4x64x64xbf16>
    "tpu.trace_start"() <{level = 10 : i32, message = "bnm,bmp->bnp"}> : () -> ()
    %cst_20 = arith.constant dense<0.000000e+00> : vector<4x64x32xf32>
    %56 = tpu.matmul %55, %36, %cst_20 {dimension_numbers = #tpu.dot_dimension_numbers<[2], [1], [1], [2], [0, 0, 0, 1, 1, 2], [0], [0]>} : vector<4x64x64xbf16>, vector<4x64x32xbf16>, vector<4x64x32xf32> -> vector<4x64x32xf32>
    "tpu.trace_stop"() : () -> ()
    %57 = arith.truncf %56 : vector<4x64x32xf32> to vector<4x64x32xbf16>
    %c0_21 = arith.constant 0 : index
    %c0_22 = arith.constant 0 : index
    %c32 = arith.constant 32 : index
    %58 = vector.load %arg8[%c0_21, %c0_22, %c32] : memref<4x64x96xbf16, #tpu.memory_space<vmem>>, vector<4x64x32xbf16>
    tpu.vector_store %arg8[%c0_21, %c0_22, %c32], %57 {strides = array<i32>} : memref<4x64x96xbf16, #tpu.memory_space<vmem>>, vector<4x64x32xbf16>,
    %59 = vector.extract_strided_slice %7 {offsets = [0, 0, 64], sizes = [4, 64, 32], strides = [1, 1, 1]} : vector<4x64x288xbf16> to vector<4x64x32xbf16>
    %60 = vector.extract_strided_slice %7 {offsets = [0, 0, 160], sizes = [4, 64, 32], strides = [1, 1, 1]} : vector<4x64x288xbf16> to vector<4x64x32xbf16>
    %61 = vector.extract_strided_slice %7 {offsets = [0, 0, 256], sizes = [4, 64, 32], strides = [1, 1, 1]} : vector<4x64x288xbf16> to vector<4x64x32xbf16>
    "tpu.trace_start"() <{level = 10 : i32, message = "bnp,bmp->bnm"}> : () -> ()
    %cst_23 = arith.constant dense<0.000000e+00> : vector<4x64x64xf32>
    %62 = tpu.matmul %59, %60, %cst_23 {dimension_numbers = #tpu.dot_dimension_numbers<[2], [2], [1], [1], [0, 0, 0, 1, 1, 1], [0], [0]>} : vector<4x64x32xbf16>, vector<4x64x32xbf16>, vector<4x64x64xf32> -> vector<4x64x64xf32>
    "tpu.trace_stop"() : () -> ()
    %cst_24 = arith.constant 0.176776692 : f32
    %63 = vector.broadcast %cst_24 : f32 to vector<4x64x64xf32>
    %64 = arith.mulf %62, %63 : vector<4x64x64xf32>
    %65 = vector.extract_strided_slice %8 {offsets = [2, 0, 0], sizes = [1, 64, 64], strides = [1, 1, 1]} : vector<3x64x64xf32> to vector<1x64x64xf32>
    %66 = vector.shape_cast %65 : vector<1x64x64xf32> to vector<64x64xf32>
    %67 = vector.shape_cast %66 : vector<64x64xf32> to vector<1x64x64xf32>
    %68 = vector.broadcast %67 : vector<1x64x64xf32> to vector<4x64x64xf32>
    %69 = arith.addf %64, %68 : vector<4x64x64xf32>
    %cst_25 = arith.constant dense<0xFF800000> : vector<4x64xf32>
    %70 = vector.multi_reduction <maximumf>, %69, %cst_25 [2] : vector<4x64x64xf32> to vector<4x64xf32>
    %71 = vector.shape_cast %70 : vector<4x64xf32> to vector<4x64x1xf32>
    %72 = vector.broadcast %71 : vector<4x64x1xf32> to vector<4x64x64xf32>
    %73 = arith.subf %69, %72 : vector<4x64x64xf32>
    %74 = math.exp %73 : vector<4x64x64xf32>
    %cst_26 = arith.constant dense<0.000000e+00> : vector<4x64xf32>
    %75 = vector.multi_reduction <add>, %74, %cst_26 [2] : vector<4x64x64xf32> to vector<4x64xf32>
    %76 = vector.shape_cast %75 : vector<4x64xf32> to vector<4x64x1xf32>
    %77 = tpu.reciprocal %76 {approx = true} : vector<4x64x1xf32> -> vector<4x64x1xf32>
    %78 = vector.broadcast %77 : vector<4x64x1xf32> to vector<4x64x64xf32>
    %79 = arith.mulf %74, %78 : vector<4x64x64xf32>
    %80 = arith.truncf %79 : vector<4x64x64xf32> to vector<4x64x64xbf16>
    "tpu.trace_start"() <{level = 10 : i32, message = "bnm,bmp->bnp"}> : () -> ()
    %cst_27 = arith.constant dense<0.000000e+00> : vector<4x64x32xf32>
    %81 = tpu.matmul %80, %61, %cst_27 {dimension_numbers = #tpu.dot_dimension_numbers<[2], [1], [1], [2], [0, 0, 0, 1, 1, 2], [0], [0]>} : vector<4x64x64xbf16>, vector<4x64x32xbf16>, vector<4x64x32xf32> -> vector<4x64x32xf32>
    "tpu.trace_stop"() : () -> ()
    %82 = arith.truncf %81 : vector<4x64x32xf32> to vector<4x64x32xbf16>
    %c0_28 = arith.constant 0 : index
    %c0_29 = arith.constant 0 : index
    %c64 = arith.constant 64 : index
    %83 = vector.load %arg8[%c0_28, %c0_29, %c64] : memref<4x64x96xbf16, #tpu.memory_space<vmem>>, vector<4x64x32xbf16>
    tpu.vector_store %arg8[%c0_28, %c0_29, %c64], %82 {strides = array<i32>} : memref<4x64x96xbf16, #tpu.memory_space<vmem>>, vector<4x64x32xbf16>,
    %c0_30 = arith.constant 0 : index
    %c0_31 = arith.constant 0 : index
    %c0_32 = arith.constant 0 : index
    %84 = vector.load %arg8[%c0_30, %c0_31, %c0_32] : memref<4x64x96xbf16, #tpu.memory_space<vmem>>, vector<4x64x96xbf16>
    %85 = vector.shape_cast %84 : vector<4x64x96xbf16> to vector<256x96xbf16>
    %c0_33 = arith.constant 0 : index
    %c0_34 = arith.constant 0 : index
    %86 = vector.load %arg5[%c0_33, %c0_34] : memref<96x96xbf16, #tpu.memory_space<vmem>>, vector<96x96xbf16>
    %cst_35 = arith.constant dense<0.000000e+00> : vector<256x96xf32>
    %87 = tpu.matmul %85, %86, %cst_35 {dimension_numbers = #tpu.dot_dimension_numbers<[1], [0], [0], [1], [0, 0, 1, 1], [], []>} : vector<256x96xbf16>, vector<96x96xbf16>, vector<256x96xf32> -> vector<256x96xf32>
    %c0_36 = arith.constant 0 : index
    %c0_37 = arith.constant 0 : index
    %88 = vector.load %arg6[%c0_36, %c0_37] : memref<1x96xf32, #tpu.memory_space<vmem>>, vector<1x96xf32>
    %89 = vector.broadcast %88 : vector<1x96xf32> to vector<256x96xf32>
    %90 = arith.addf %87, %89 : vector<256x96xf32>
    %91 = arith.truncf %90 : vector<256x96xf32> to vector<256x96xbf16>
    %c0_38 = arith.constant 0 : index
    %c0_39 = arith.constant 0 : index
    %92 = vector.load %arg7[%c0_38, %c0_39] : memref<256x96xbf16, #tpu.memory_space<vmem>>, vector<256x96xbf16>
    tpu.vector_store %arg7[%c0_38, %c0_39], %91 {strides = array<i32>} : memref<256x96xbf16, #tpu.memory_space<vmem>>, vector<256x96xbf16>,
    return
  }
  func.func @transform_0(%arg0: i32) -> (i32, i32) {
    %c0_i32 = arith.constant 0 : i32
    %c0_i32_0 = arith.constant 0 : i32
    return %arg0, %c0_i32 : i32, i32
  }
  func.func @transform_1(%arg0: i32) -> (i32, i32) {
    %c0_i32 = arith.constant 0 : i32
    %c0_i32_0 = arith.constant 0 : i32
    %c0_i32_1 = arith.constant 0 : i32
    return %c0_i32, %c0_i32_0 : i32, i32
  }
  func.func @transform_2(%arg0: i32) -> (i32, i32) {
    %c0_i32 = arith.constant 0 : i32
    %c0_i32_0 = arith.constant 0 : i32
    %c0_i32_1 = arith.constant 0 : i32
    return %c0_i32, %c0_i32_0 : i32, i32
  }
  func.func @transform_3(%arg0: i32) -> (i32, i32, i32) {
    %c0_i32 = arith.constant 0 : i32
    %c0_i32_0 = arith.constant 0 : i32
    %c0_i32_1 = arith.constant 0 : i32
    %c0_i32_2 = arith.constant 0 : i32
    return %c0_i32, %c0_i32_0, %c0_i32_1 : i32, i32, i32
  }
  func.func @transform_4(%arg0: i32) -> (i32, i32) {
    %c0_i32 = arith.constant 0 : i32
    %c0_i32_0 = arith.constant 0 : i32
    %c0_i32_1 = arith.constant 0 : i32
    return %c0_i32, %c0_i32_0 : i32, i32
  }
  func.func @transform_5(%arg0: i32) -> (i32, i32) {
    %c0_i32 = arith.constant 0 : i32
    %c0_i32_0 = arith.constant 0 : i32
    %c0_i32_1 = arith.constant 0 : i32
    return %c0_i32, %c0_i32_0 : i32, i32
  }
  func.func @transform_6(%arg0: i32) -> (i32, i32) {
    %c0_i32 = arith.constant 0 : i32
    %c0_i32_0 = arith.constant 0 : i32
    return %arg0, %c0_i32 : i32, i32
  }
}

module attributes {stable_mosaic.version = 11 : i64} {
  func.func @_window_attention_kernel(%arg0: i32, %arg1: memref<256x96xbf16, #tpu.memory_space<vmem>>, %arg2: memref<96x288xbf16, #tpu.memory_space<vmem>>, %arg3: memref<1x288xf32, #tpu.memory_space<vmem>>, %arg4: memref<3x64x64xf32, #tpu.memory_space<vmem>>, %arg5: memref<96x96xbf16, #tpu.memory_space<vmem>>, %arg6: memref<1x96xf32, #tpu.memory_space<vmem>>, %arg7: memref<256x96xbf16, #tpu.memory_space<vmem>>, %arg8: memref<4x64x96xbf16, #tpu.memory_space<vmem>>) attributes {dimension_semantics = [#tpu.dimension_semantics<parallel>], iteration_bounds = array<i64: 2>, scalar_prefetch = 0 : i64, scratch_operands = 1 : i64, tpu.core_type = #tpu.core_type<tc>, window_params = [{transform_indices = @transform_0, window_bounds = array<i64: 256, 96>}, {pipeline_mode = #tpu.pipeline_mode<synchronous>, transform_indices = @transform_1, window_bounds = array<i64: 96, 288>}, {pipeline_mode = #tpu.pipeline_mode<synchronous>, transform_indices = @transform_2, window_bounds = array<i64: 1, 288>}, {pipeline_mode = #tpu.pipeline_mode<synchronous>, transform_indices = @transform_3, window_bounds = array<i64: 3, 64, 64>}, {pipeline_mode = #tpu.pipeline_mode<synchronous>, transform_indices = @transform_4, window_bounds = array<i64: 96, 96>}, {pipeline_mode = #tpu.pipeline_mode<synchronous>, transform_indices = @transform_5, window_bounds = array<i64: 1, 96>}, {transform_indices = @transform_6, window_bounds = array<i64: 256, 96>}]} {
    %c0 = arith.constant 0 : index
    %c0_0 = arith.constant 0 : index
    %0 = vector.load %arg1[%c0, %c0_0] : memref<256x96xbf16, #tpu.memory_space<vmem>>, vector<256x96xbf16>
    %c0_1 = arith.constant 0 : index
    %c0_2 = arith.constant 0 : index
    %1 = vector.load %arg2[%c0_1, %c0_2] : memref<96x288xbf16, #tpu.memory_space<vmem>>, vector<96x288xbf16>
    %cst = arith.constant dense<0.000000e+00> : vector<256x288xf32>
    %2 = tpu.matmul %0, %1, %cst {dimension_numbers = #tpu.dot_dimension_numbers<[1], [0], [0], [1], [0, 0, 1, 1], [], []>} : vector<256x96xbf16>, vector<96x288xbf16>, vector<256x288xf32> -> vector<256x288xf32>
    %c0_3 = arith.constant 0 : index
    %c0_4 = arith.constant 0 : index
    %3 = vector.load %arg3[%c0_3, %c0_4] : memref<1x288xf32, #tpu.memory_space<vmem>>, vector<1x288xf32>
    %4 = vector.broadcast %3 : vector<1x288xf32> to vector<256x288xf32>
    %5 = arith.addf %2, %4 : vector<256x288xf32>
    %6 = arith.truncf %5 : vector<256x288xf32> to vector<256x288xbf16>
    %7 = vector.shape_cast %6 : vector<256x288xbf16> to vector<4x64x288xbf16>
    %c0_5 = arith.constant 0 : index
    %c0_6 = arith.constant 0 : index
    %c0_7 = arith.constant 0 : index
    %8 = vector.load %arg4[%c0_5, %c0_6, %c0_7] : memref<3x64x64xf32, #tpu.memory_space<vmem>>, vector<3x64x64xf32>
    %9 = vector.extract_strided_slice %7 {offsets = [0, 0, 0], sizes = [4, 64, 32], strides = [1, 1, 1]} : vector<4x64x288xbf16> to vector<4x64x32xbf16>
    %10 = vector.extract_strided_slice %7 {offsets = [0, 0, 96], sizes = [4, 64, 32], strides = [1, 1, 1]} : vector<4x64x288xbf16> to vector<4x64x32xbf16>
    %11 = vector.extract_strided_slice %7 {offsets = [0, 0, 192], sizes = [4, 64, 32], strides = [1, 1, 1]} : vector<4x64x288xbf16> to vector<4x64x32xbf16>
    "tpu.trace_start"() <{level = 10 : i32, message = "bnp,bmp->bnm"}> : () -> ()
    %cst_8 = arith.constant dense<0.000000e+00> : vector<4x64x64xf32>
    %12 = tpu.matmul %9, %10, %cst_8 {dimension_numbers = #tpu.dot_dimension_numbers<[2], [2], [1], [1], [0, 0, 0, 1, 1, 1], [0], [0]>} : vector<4x64x32xbf16>, vector<4x64x32xbf16>, vector<4x64x64xf32> -> vector<4x64x64xf32>
    "tpu.trace_stop"() : () -> ()
    %cst_9 = arith.constant 0.176776692 : f32
    %13 = vector.broadcast %cst_9 : f32 to vector<4x64x64xf32>
    %14 = arith.mulf %12, %13 : vector<4x64x64xf32>
    %15 = vector.extract_strided_slice %8 {offsets = [0, 0, 0], sizes = [1, 64, 64], strides = [1, 1, 1]} : vector<3x64x64xf32> to vector<1x64x64xf32>
    %16 = vector.shape_cast %15 : vector<1x64x64xf32> to vector<64x64xf32>
    %17 = vector.shape_cast %16 : vector<64x64xf32> to vector<1x64x64xf32>
    %18 = vector.broadcast %17 : vector<1x64x64xf32> to vector<4x64x64xf32>
    %19 = arith.addf %14, %18 : vector<4x64x64xf32>
    %cst_10 = arith.constant dense<0xFF800000> : vector<4x64xf32>
    %20 = vector.multi_reduction <maximumf>, %19, %cst_10 [2] : vector<4x64x64xf32> to vector<4x64xf32>
    %21 = vector.shape_cast %20 : vector<4x64xf32> to vector<4x64x1xf32>
    %22 = vector.broadcast %21 : vector<4x64x1xf32> to vector<4x64x64xf32>
    %23 = arith.subf %19, %22 : vector<4x64x64xf32>
    %24 = math.exp %23 : vector<4x64x64xf32>
    %cst_11 = arith.constant dense<0.000000e+00> : vector<4x64xf32>
    %25 = vector.multi_reduction <add>, %24, %cst_11 [2] : vector<4x64x64xf32> to vector<4x64xf32>
    %26 = vector.shape_cast %25 : vector<4x64xf32> to vector<4x64x1xf32>
    %27 = tpu.reciprocal %26 {approx = true} : vector<4x64x1xf32> -> vector<4x64x1xf32>
    %28 = vector.broadcast %27 : vector<4x64x1xf32> to vector<4x64x64xf32>
    %29 = arith.mulf %24, %28 : vector<4x64x64xf32>
    %30 = arith.truncf %29 : vector<4x64x64xf32> to vector<4x64x64xbf16>
    "tpu.trace_start"() <{level = 10 : i32, message = "bnm,bmp->bnp"}> : () -> ()
    %cst_12 = arith.constant dense<0.000000e+00> : vector<4x64x32xf32>
    %31 = tpu.matmul %30, %11, %cst_12 {dimension_numbers = #tpu.dot_dimension_numbers<[2], [1], [1], [2], [0, 0, 0, 1, 1, 2], [0], [0]>} : vector<4x64x64xbf16>, vector<4x64x32xbf16>, vector<4x64x32xf32> -> vector<4x64x32xf32>
    "tpu.trace_stop"() : () -> ()
    %32 = arith.truncf %31 : vector<4x64x32xf32> to vector<4x64x32xbf16>
    %c0_13 = arith.constant 0 : index
    %c0_14 = arith.constant 0 : index
    %c0_15 = arith.constant 0 : index
    %33 = vector.load %arg8[%c0_13, %c0_14, %c0_15] : memref<4x64x96xbf16, #tpu.memory_space<vmem>>, vector<4x64x32xbf16>
    tpu.vector_store %arg8[%c0_13, %c0_14, %c0_15], %32 {strides = array<i32>} : memref<4x64x96xbf16, #tpu.memory_space<vmem>>, vector<4x64x32xbf16>,
    %34 = vector.extract_strided_slice %7 {offsets = [0, 0, 32], sizes = [4, 64, 32], strides = [1, 1, 1]} : vector<4x64x288xbf16> to vector<4x64x32xbf16>
    %35 = vector.extract_strided_slice %7 {offsets = [0, 0, 128], sizes = [4, 64, 32], strides = [1, 1, 1]} : vector<4x64x288xbf16> to vector<4x64x32xbf16>
    %36 = vector.extract_strided_slice %7 {offsets = [0, 0, 224], sizes = [4, 64, 32], strides = [1, 1, 1]} : vector<4x64x288xbf16> to vector<4x64x32xbf16>
    "tpu.trace_start"() <{level = 10 : i32, message = "bnp,bmp->bnm"}> : () -> ()
    %cst_16 = arith.constant dense<0.000000e+00> : vector<4x64x64xf32>
    %37 = tpu.matmul %34, %35, %cst_16 {dimension_numbers = #tpu.dot_dimension_numbers<[2], [2], [1], [1], [0, 0, 0, 1, 1, 1], [0], [0]>} : vector<4x64x32xbf16>, vector<4x64x32xbf16>, vector<4x64x64xf32> -> vector<4x64x64xf32>
    "tpu.trace_stop"() : () -> ()
    %cst_17 = arith.constant 0.176776692 : f32
    %38 = vector.broadcast %cst_17 : f32 to vector<4x64x64xf32>
    %39 = arith.mulf %37, %38 : vector<4x64x64xf32>
    %40 = vector.extract_strided_slice %8 {offsets = [1, 0, 0], sizes = [1, 64, 64], strides = [1, 1, 1]} : vector<3x64x64xf32> to vector<1x64x64xf32>
    %41 = vector.shape_cast %40 : vector<1x64x64xf32> to vector<64x64xf32>
    %42 = vector.shape_cast %41 : vector<64x64xf32> to vector<1x64x64xf32>
    %43 = vector.broadcast %42 : vector<1x64x64xf32> to vector<4x64x64xf32>
    %44 = arith.addf %39, %43 : vector<4x64x64xf32>
    %cst_18 = arith.constant dense<0xFF800000> : vector<4x64xf32>
    %45 = vector.multi_reduction <maximumf>, %44, %cst_18 [2] : vector<4x64x64xf32> to vector<4x64xf32>
    %46 = vector.shape_cast %45 : vector<4x64xf32> to vector<4x64x1xf32>
    %47 = vector.broadcast %46 : vector<4x64x1xf32> to vector<4x64x64xf32>
    %48 = arith.subf %44, %47 : vector<4x64x64xf32>
    %49 = math.exp %48 : vector<4x64x64xf32>
    %cst_19 = arith.constant dense<0.000000e+00> : vector<4x64xf32>
    %50 = vector.multi_reduction <add>, %49, %cst_19 [2] : vector<4x64x64xf32> to vector<4x64xf32>
    %51 = vector.shape_cast %50 : vector<4x64xf32> to vector<4x64x1xf32>
    %52 = tpu.reciprocal %51 {approx = true} : vector<4x64x1xf32> -> vector<4x64x1xf32>
    %53 = vector.broadcast %52 : vector<4x64x1xf32> to vector<4x64x64xf32>
    %54 = arith.mulf %49, %53 : vector<4x64x64xf32>
    %55 = arith.truncf %54 : vector<4x64x64xf32> to vector<4x64x64xbf16>
    "tpu.trace_start"() <{level = 10 : i32, message = "bnm,bmp->bnp"}> : () -> ()
    %cst_20 = arith.constant dense<0.000000e+00> : vector<4x64x32xf32>
    %56 = tpu.matmul %55, %36, %cst_20 {dimension_numbers = #tpu.dot_dimension_numbers<[2], [1], [1], [2], [0, 0, 0, 1, 1, 2], [0], [0]>} : vector<4x64x64xbf16>, vector<4x64x32xbf16>, vector<4x64x32xf32> -> vector<4x64x32xf32>
    "tpu.trace_stop"() : () -> ()
    %57 = arith.truncf %56 : vector<4x64x32xf32> to vector<4x64x32xbf16>
    %c0_21 = arith.constant 0 : index
    %c0_22 = arith.constant 0 : index
    %c32 = arith.constant 32 : index
    %58 = vector.load %arg8[%c0_21, %c0_22, %c32] : memref<4x64x96xbf16, #tpu.memory_space<vmem>>, vector<4x64x32xbf16>
    tpu.vector_store %arg8[%c0_21, %c0_22, %c32], %57 {strides = array<i32>} : memref<4x64x96xbf16, #tpu.memory_space<vmem>>, vector<4x64x32xbf16>,
    %59 = vector.extract_strided_slice %7 {offsets = [0, 0, 64], sizes = [4, 64, 32], strides = [1, 1, 1]} : vector<4x64x288xbf16> to vector<4x64x32xbf16>
    %60 = vector.extract_strided_slice %7 {offsets = [0, 0, 160], sizes = [4, 64, 32], strides = [1, 1, 1]} : vector<4x64x288xbf16> to vector<4x64x32xbf16>
    %61 = vector.extract_strided_slice %7 {offsets = [0, 0, 256], sizes = [4, 64, 32], strides = [1, 1, 1]} : vector<4x64x288xbf16> to vector<4x64x32xbf16>
    "tpu.trace_start"() <{level = 10 : i32, message = "bnp,bmp->bnm"}> : () -> ()
    %cst_23 = arith.constant dense<0.000000e+00> : vector<4x64x64xf32>
    %62 = tpu.matmul %59, %60, %cst_23 {dimension_numbers = #tpu.dot_dimension_numbers<[2], [2], [1], [1], [0, 0, 0, 1, 1, 1], [0], [0]>} : vector<4x64x32xbf16>, vector<4x64x32xbf16>, vector<4x64x64xf32> -> vector<4x64x64xf32>
    "tpu.trace_stop"() : () -> ()
    %cst_24 = arith.constant 0.176776692 : f32
    %63 = vector.broadcast %cst_24 : f32 to vector<4x64x64xf32>
    %64 = arith.mulf %62, %63 : vector<4x64x64xf32>
    %65 = vector.extract_strided_slice %8 {offsets = [2, 0, 0], sizes = [1, 64, 64], strides = [1, 1, 1]} : vector<3x64x64xf32> to vector<1x64x64xf32>
    %66 = vector.shape_cast %65 : vector<1x64x64xf32> to vector<64x64xf32>
    %67 = vector.shape_cast %66 : vector<64x64xf32> to vector<1x64x64xf32>
    %68 = vector.broadcast %67 : vector<1x64x64xf32> to vector<4x64x64xf32>
    %69 = arith.addf %64, %68 : vector<4x64x64xf32>
    %cst_25 = arith.constant dense<0xFF800000> : vector<4x64xf32>
    %70 = vector.multi_reduction <maximumf>, %69, %cst_25 [2] : vector<4x64x64xf32> to vector<4x64xf32>
    %71 = vector.shape_cast %70 : vector<4x64xf32> to vector<4x64x1xf32>
    %72 = vector.broadcast %71 : vector<4x64x1xf32> to vector<4x64x64xf32>
    %73 = arith.subf %69, %72 : vector<4x64x64xf32>
    %74 = math.exp %73 : vector<4x64x64xf32>
    %cst_26 = arith.constant dense<0.000000e+00> : vector<4x64xf32>
    %75 = vector.multi_reduction <add>, %74, %cst_26 [2] : vector<4x64x64xf32> to vector<4x64xf32>
    %76 = vector.shape_cast %75 : vector<4x64xf32> to vector<4x64x1xf32>
    %77 = tpu.reciprocal %76 {approx = true} : vector<4x64x1xf32> -> vector<4x64x1xf32>
    %78 = vector.broadcast %77 : vector<4x64x1xf32> to vector<4x64x64xf32>
    %79 = arith.mulf %74, %78 : vector<4x64x64xf32>
    %80 = arith.truncf %79 : vector<4x64x64xf32> to vector<4x64x64xbf16>
    "tpu.trace_start"() <{level = 10 : i32, message = "bnm,bmp->bnp"}> : () -> ()
    %cst_27 = arith.constant dense<0.000000e+00> : vector<4x64x32xf32>
    %81 = tpu.matmul %80, %61, %cst_27 {dimension_numbers = #tpu.dot_dimension_numbers<[2], [1], [1], [2], [0, 0, 0, 1, 1, 2], [0], [0]>} : vector<4x64x64xbf16>, vector<4x64x32xbf16>, vector<4x64x32xf32> -> vector<4x64x32xf32>
    "tpu.trace_stop"() : () -> ()
    %82 = arith.truncf %81 : vector<4x64x32xf32> to vector<4x64x32xbf16>
    %c0_28 = arith.constant 0 : index
    %c0_29 = arith.constant 0 : index
    %c64 = arith.constant 64 : index
    %83 = vector.load %arg8[%c0_28, %c0_29, %c64] : memref<4x64x96xbf16, #tpu.memory_space<vmem>>, vector<4x64x32xbf16>
    tpu.vector_store %arg8[%c0_28, %c0_29, %c64], %82 {strides = array<i32>} : memref<4x64x96xbf16, #tpu.memory_space<vmem>>, vector<4x64x32xbf16>,
    %c0_30 = arith.constant 0 : index
    %c0_31 = arith.constant 0 : index
    %c0_32 = arith.constant 0 : index
    %84 = vector.load %arg8[%c0_30, %c0_31, %c0_32] : memref<4x64x96xbf16, #tpu.memory_space<vmem>>, vector<4x64x96xbf16>
    %85 = vector.shape_cast %84 : vector<4x64x96xbf16> to vector<256x96xbf16>
    %c0_33 = arith.constant 0 : index
    %c0_34 = arith.constant 0 : index
    %86 = vector.load %arg5[%c0_33, %c0_34] : memref<96x96xbf16, #tpu.memory_space<vmem>>, vector<96x96xbf16>
    %cst_35 = arith.constant dense<0.000000e+00> : vector<256x96xf32>
    %87 = tpu.matmul %85, %86, %cst_35 {dimension_numbers = #tpu.dot_dimension_numbers<[1], [0], [0], [1], [0, 0, 1, 1], [], []>} : vector<256x96xbf16>, vector<96x96xbf16>, vector<256x96xf32> -> vector<256x96xf32>
    %c0_36 = arith.constant 0 : index
    %c0_37 = arith.constant 0 : index
    %88 = vector.load %arg6[%c0_36, %c0_37] : memref<1x96xf32, #tpu.memory_space<vmem>>, vector<1x96xf32>
    %89 = vector.broadcast %88 : vector<1x96xf32> to vector<256x96xf32>
    %90 = arith.addf %87, %89 : vector<256x96xf32>
    %91 = arith.truncf %90 : vector<256x96xf32> to vector<256x96xbf16>
    %c0_38 = arith.constant 0 : index
    %c0_39 = arith.constant 0 : index
    %92 = vector.load %arg7[%c0_38, %c0_39] : memref<256x96xbf16, #tpu.memory_space<vmem>>, vector<256x96xbf16>
    tpu.vector_store %arg7[%c0_38, %c0_39], %91 {strides = array<i32>} : memref<256x96xbf16, #tpu.memory_space<vmem>>, vector<256x96xbf16>,
    return
  }
  func.func @transform_0(%arg0: i32) -> (i32, i32) {
    %c0_i32 = arith.constant 0 : i32
    %c0_i32_0 = arith.constant 0 : i32
    return %arg0, %c0_i32 : i32, i32
  }
  func.func @transform_1(%arg0: i32) -> (i32, i32) {
    %c0_i32 = arith.constant 0 : i32
    %c0_i32_0 = arith.constant 0 : i32
    %c0_i32_1 = arith.constant 0 : i32
    return %c0_i32, %c0_i32_0 : i32, i32
  }
  func.func @transform_2(%arg0: i32) -> (i32, i32) {
    %c0_i32 = arith.constant 0 : i32
    %c0_i32_0 = arith.constant 0 : i32
    %c0_i32_1 = arith.constant 0 : i32
    return %c0_i32, %c0_i32_0 : i32, i32
  }
  func.func @transform_3(%arg0: i32) -> (i32, i32, i32) {
    %c0_i32 = arith.constant 0 : i32
    %c0_i32_0 = arith.constant 0 : i32
    %c0_i32_1 = arith.constant 0 : i32
    %c0_i32_2 = arith.constant 0 : i32
    return %c0_i32, %c0_i32_0, %c0_i32_1 : i32, i32, i32
  }
  func.func @transform_4(%arg0: i32) -> (i32, i32) {
    %c0_i32 = arith.constant 0 : i32
    %c0_i32_0 = arith.constant 0 : i32
    %c0_i32_1 = arith.constant 0 : i32
    return %c0_i32, %c0_i32_0 : i32, i32
  }
  func.func @transform_5(%arg0: i32) -> (i32, i32) {
    %c0_i32 = arith.constant 0 : i32
    %c0_i32_0 = arith.constant 0 : i32
    %c0_i32_1 = arith.constant 0 : i32
    return %c0_i32, %c0_i32_0 : i32, i32
  }
  func.func @transform_6(%arg0: i32) -> (i32, i32) {
    %c0_i32 = arith.constant 0 : i32
    %c0_i32_0 = arith.constant 0 : i32
    return %arg0, %c0_i32 : i32, i32
  }
}

</mosaic_0001>

<bundles_post_ra>
// kernel: tpu_custom_call.1
= control target key start
LH: loop header
LB: loop body
LE: loop exit
PB: predicated region body
PF: predicated region fallthrough
CT: control target
= control target key end

     0   :  { %s7471_s21 = smov 0   ;;  %s10066_s0 = inlined_call_operand.vmem [shape: bf16[512,96], index: 0, kind: input, shape index: {}]   ;;  %s10067_s1 = inlined_call_operand.vmem [shape: bf16[96,288], index: 1, kind: input, shape index: {}]   ;;  %s10068_s2 = inlined_call_operand.vmem [shape: f32[1,288], index: 2, kind: input, shape index: {}]   ;;  %s10069_s3 = inlined_call_operand.vmem [shape: f32[3,64,64], index: 3, kind: input, shape index: {}]   ;;  %s10070_s4 = inlined_call_operand.vmem [shape: bf16[96,96], index: 4, kind: input, shape index: {}]   ;;  %s10071_s5 = inlined_call_operand.vmem [shape: f32[1,96], index: 5, kind: input, shape index: {}]   ;;  %s10072_s6 = inlined_call_operand.vmem [shape: bf16[512,96], index: 6, kind: output, shape index: {}]  }
   0x1 LB: > { %s5730_s22 = sadd.s32 4294967295, %s7430_s21   ;;  %p5734_p0 = scmp.ge.s32.totalorder %s7430_s21, 1  ;;  %s7430_s21 = sphi %s7471_s21, %s16_s21  }
   0x2   : > { %p213_p1 = scmp.lt.s32.totalorder %s7430_s21, 3 }
   0x4   : > { %p214_p2 = pnand %p5734_p0, %p213_p1 }
   0x6   : > { %217 = sbr.rel (%p214_p2) target bundleno = 2898 (0xb52), region = 44 }
   0xb   : > { %v6978_v0 = vld [vmem:[%s10067_s1 + $0x7c] ss:$12 sps:$4 sm:$0xff]   ;;  %s5735_s25 = sshll.u32 %s5730_s22, 5  ;;  %v6980_v1 = vld [vmem:[%s10067_s1 + $0x78] ss:$12 sps:$4 sm:$0xff]   ;;  %v7432_v2 = vmov 0   ;;  %v314_v35 = vlaneseq }
   0xc   : > { %586 = vmatprep.mubr.bf16.mxu0 %v7432_v2  ;;  %p244_p3 = scmp.lt.s32.totalorder %s5735_s25, 63  ;;  %706 = vmatprep.mubr.bf16.mxu1 %v7432_v2  ;;  %v6981_v3 = vld [vmem:[%s10067_s1 + $0x64] ss:$12 sps:$4 sm:$0xff]   ;;  %v6983_v4 = vld [vmem:[%s10067_s1 + $0x60] ss:$12 sps:$4 sm:$0xff]   ;;  %vm505_vm0 = vcmask 785408  }
   0xd   : > { %558 = vmatprep.subr.bf16.mxu0 %v6978_v0  ;;  %6906 = vmatprep.subr.bf16.mxu1 %v6978_v0  ;;  %v6984_v5 = vld [vmem:[%s10067_s1 + $0x4c] ss:$12 sps:$4 sm:$0xff]   ;;  %v6986_v6 = vld [vmem:[%s10067_s1 + $0x48] ss:$12 sps:$4 sm:$0xff]   ;;  %v6989_v8 = vld [vmem:[%s10067_s1 + $0x30] ss:$12 sps:$4 sm:$0xff]  }
   0xe   : > { %559 = vmatpush1.bf16.msra.mxu0 %v6980_v1  ;;  %s10298_s25 = smov (!%p244_p3, %s5735_s25), 63  ;;  %6912 = vmatpush1.bf16.msra.mxu1 %v6980_v1  ;;  %v6987_v7 = vld [vmem:[%s10067_s1 + $0x34] ss:$12 sps:$4 sm:$0xff]   ;;  %v6990_v9 = vld [vmem:[%s10067_s1 + $0x1c] ss:$12 sps:$4 sm:$0xff]   ;;  %v7615_v36 = vshrl.u32 %v314_v35, 7 }
   0xf   : > { %560 = vmatprep.subr.bf16.mxu0 %v6981_v3  ;;  %6907 = vmatprep.subr.bf16.mxu1 %v6981_v3  ;;  %s5736_s10 = sshll.u32 %s10298_s25, 2  ;;  %v6992_v10 = vld [vmem:[%s10067_s1 + $0x18] ss:$12 sps:$4 sm:$0xff]   ;;  %v6995_v12 = vld [vmem:[%s10067_s1] ss:$12 sps:$4 sm:$0xff]   ;;  %vm992_vm1 = vcmask 261120  }
  0x10   : > { %s7507_s15 = scalar_lea.vmem %s10066_s0, %s5736_s10  ;;  %v6993_v11 = vld [vmem:[%s10067_s1 + $0x4] ss:$12 sps:$4 sm:$0xff]   ;;  %v7012_v15 = vld [vmem:[%s10067_s1 + $0x80] ss:$12 sps:$4 sm:$0xff]   ;;  %v7013_v16 = vld [vmem:[%s10067_s1 + $0x68] ss:$12 sps:$4 sm:$0xff]   ;;  %s9966_s7 = scalar_lea.vmem %s10072_s6, %s5736_s10 }
  0x11   : > { %v6996_v13 = vld [vmem:[%s7507_s15] sm:$0xff]   ;;  %v6997_v17 = vld [vmem:[%s7507_s15 + $0x8] sm:$0xff]   ;;  %v7014_v19 = vld [vmem:[%s10067_s1 + $0x50] ss:$12 sps:$4 sm:$0xff]   ;;  %v316_v37 = vsub.s32 0, %v7615_v36  ;;  %s7433_s22 = smov 32  }
  0x12   : > { %561 = vmatpush1.bf16.msra.mxu0 %v6983_v4  ;;  %6913 = vmatpush1.bf16.msra.mxu1 %v6983_v4  ;;  %v7529_v14 = vld [vmem:[%s7507_s15 + $0x60] sm:$0xff]   ;;  %v7544_v18 = vld [vmem:[%s7507_s15 + $0x68] sm:$0xff]   ;;  %v6998_v21 = vld [vmem:[%s7507_s15 + $0x10] sm:$0xff]   ;;  %s7434_s23 = smov 64   ;;  %vm1449_vm2 = vcmask 523264   ;;  %s7435_s19 = smov 96  }
  0x13   : > { %562 = vmatprep.subr.bf16.mxu0 %v6984_v5  ;;  %6908 = vmatprep.subr.bf16.mxu1 %v6984_v5  ;;  %v7015_v20 = vld [vmem:[%s10067_s1 + $0x38] ss:$12 sps:$4 sm:$0xff]   ;;  %v7010_v22 = vld [vmem:[%s7507_s15 + $0x70] sm:$0xff]   ;;  %v7016_v23 = vld [vmem:[%s10067_s1 + $0x20] ss:$12 sps:$4 sm:$0xff]   ;;  %vm2318_vm3 = vcmask 257024  }
  0x14   : > { %v7017_v24 = vld [vmem:[%s10067_s1 + $0x8] ss:$12 sps:$4 sm:$0xff]   ;;  %v6999_v25 = vld [vmem:[%s7507_s15 + $0x18] sm:$0xff]   ;;  %v7000_v27 = vld [vmem:[%s7507_s15 + $0x20] sm:$0xff]   ;;  %vm3719_vm4 = vcmask 519424   ;;  %vm5104_vm5 = vcmask 781824  }
  0x15   : > { %v7011_v26 = vld [vmem:[%s7507_s15 + $0x78] sm:$0xff]   ;;  %v7001_v28 = vld [vmem:[%s7507_s15 + $0x28] sm:$0xff]   ;;  %v7002_v29 = vld [vmem:[%s7507_s15 + $0x30] sm:$0xff]   ;;  %vm5641_vm6 = vcmask 781312  }
  0x16   : > { %563 = vmatpush1.bf16.msra.mxu0 %v6986_v6  ;;  %6914 = vmatpush1.bf16.msra.mxu1 %v6986_v6  ;;  %v7003_v30 = vld [vmem:[%s7507_s15 + $0x38] sm:$0xff]   ;;  %v7004_v31 = vld [vmem:[%s7507_s15 + $0x40] sm:$0xff]   ;;  %v7005_v32 = vld [vmem:[%s7507_s15 + $0x48] sm:$0xff]  }
  0x17   : > { %564 = vmatprep.subr.bf16.mxu0 %v6987_v7  ;;  %6909 = vmatprep.subr.bf16.mxu1 %v6987_v7  ;;  %v7007_v33 = vld [vmem:[%s7507_s15 + $0x50] sm:$0xff]   ;;  %v7009_v34 = vld [vmem:[%s7507_s15 + $0x58] sm:$0xff]   ;;  %v7621_v38 = vld [vmem:[%s10068_s2] sm:$0x7] }
  0x18   : > { %v7624_v40 = vrot.slane %v7621_v38, %v316_v37 }
  0x1a   : > { %565 = vmatpush1.bf16.msra.mxu0 %v6989_v8  ;;  %6915 = vmatpush1.bf16.msra.mxu1 %v6989_v8 }
  0x1b   : > { %566 = vmatprep.subr.bf16.mxu0 %v6990_v9  ;;  %6910 = vmatprep.subr.bf16.mxu1 %v6990_v9 }
  0x1e   : > { %567 = vmatpush1.bf16.msra.mxu0 %v6992_v10  ;;  %6916 = vmatpush1.bf16.msra.mxu1 %v6992_v10 }
  0x1f   : > { %568 = vmatprep.subr.bf16.mxu0 %v6993_v11  ;;  %6911 = vmatprep.subr.bf16.mxu1 %v6993_v11 }
  0x22   : > { %569 = vmatpush1.bf16.msra.mxu0 %v6995_v12  ;;  %6917 = vmatpush1.bf16.msra.mxu1 %v6995_v12 }
  0x23   : > { %6434 = vmatprep.subr.bf16.mxu1 %v7012_v15 }
  0x25   : > { %5773 = vmatmul.mubr.msk.bf16.vlgmr.msra.gmra.mxu0 %vm505_vm0, %v6996_v13  ;;  %5785 = vmatmul.mubr.msk.bf16.vlgmr.msra.gmra.mxu1 %vm505_vm0, %v7529_v14 }
  0x26   : > { %596 = vmatprep.mubr.bf16.mxu0 %v7432_v2  ;;  %716 = vmatprep.mubr.bf16.mxu1 %v7432_v2 }
  0x27   : > { %6435 = vmatpush3.bf16.msra.mxu1 %v7012_v15 }
  0x28   : > { %6436 = vmatprep.subr.bf16.mxu1 %v7013_v16 }
  0x2b   : > { %6437 = vmatpush3.bf16.msra.mxu1 %v7013_v16 }
  0x2c   : > { %6438 = vmatprep.subr.bf16.mxu1 %v7014_v19 }
  0x2d   : > { %5774 = vmatmul.mubr.msk.bf16.gmra.mxu0 %vm505_vm0, %v6997_v17  ;;  %5786 = vmatmul.mubr.msk.bf16.gmra.mxu1 %vm505_vm0, %v7544_v18 }
  0x2e   : > { %606 = vmatprep.mubr.bf16.mxu0 %v7432_v2  ;;  %726 = vmatprep.mubr.bf16.mxu1 %v7432_v2 }
  0x2f   : > { %6439 = vmatpush3.bf16.msra.mxu1 %v7014_v19 }
  0x30   : > { %6440 = vmatprep.subr.bf16.mxu1 %v7015_v20 }
  0x33   : > { %6441 = vmatpush3.bf16.msra.mxu1 %v7015_v20 }
  0x34   : > { %6442 = vmatprep.subr.bf16.mxu1 %v7016_v23 }
  0x35   : > { %5775 = vmatmul.mubr.msk.bf16.gmra.mxu0 %vm505_vm0, %v6998_v21  ;;  %5787 = vmatmul.mubr.msk.bf16.gmra.mxu1 %vm505_vm0, %v7010_v22 }
  0x36   : > { %616 = vmatprep.mubr.bf16.mxu0 %v7432_v2  ;;  %736 = vmatprep.mubr.bf16.mxu1 %v7432_v2 }
  0x37   : > { %6443 = vmatpush3.bf16.msra.mxu1 %v7016_v23 }
  0x38   : > { %6444 = vmatprep.subr.bf16.mxu1 %v7017_v24 }
  0x3b   : > { %6445 = vmatpush3.bf16.msra.mxu1 %v7017_v24 }
  0x3d   : > { %5776 = vmatmul.mubr.msk.bf16.gmra.mxu0 %vm505_vm0, %v6999_v25  ;;  %5788 = vmatmul.mubr.msk.bf16.gmra.mxu1 %vm505_vm0, %v7011_v26 }
  0x3e   : > { %626 = vmatprep.mubr.bf16.mxu0 %v7432_v2  ;;  %6446 = vmatprep.mubr.msk.bf16.mxu1 %vm505_vm0, %v6996_v13 }
  0x45   : > { %5777 = vmatmul.mubr.msk.bf16.gmra.mxu0 %vm505_vm0, %v7000_v27  ;;  %6447 = vmatmul.mubr.msk.bf16.vlgmr.msra.gmra.mxu1 %vm505_vm0, %v6997_v17 }
  0x46   : > { %636 = vmatprep.mubr.bf16.mxu0 %v7432_v2  ;;  %6450 = vmatprep.mubr.msk.bf16.mxu1 %vm505_vm0, %v6998_v21 }
  0x4d   : > { %5778 = vmatmul.mubr.msk.bf16.gmra.mxu0 %vm505_vm0, %v7001_v28  ;;  %6451 = vmatmul.mubr.msk.bf16.gmra.mxu1 %vm505_vm0, %v6999_v25 }
  0x4e   : > { %646 = vmatprep.mubr.bf16.mxu0 %v7432_v2  ;;  %6454 = vmatprep.mubr.msk.bf16.mxu1 %vm505_vm0, %v7000_v27 }
  0x55   : > { %5779 = vmatmul.mubr.msk.bf16.gmra.mxu0 %vm505_vm0, %v7002_v29  ;;  %6455 = vmatmul.mubr.msk.bf16.gmra.mxu1 %vm505_vm0, %v7001_v28 }
  0x56   : > { %656 = vmatprep.mubr.bf16.mxu0 %v7432_v2  ;;  %6458 = vmatprep.mubr.msk.bf16.mxu1 %vm505_vm0, %v7002_v29 }
  0x5d   : > { %5780 = vmatmul.mubr.msk.bf16.gmra.mxu0 %vm505_vm0, %v7003_v30  ;;  %6459 = vmatmul.mubr.msk.bf16.gmra.mxu1 %vm505_vm0, %v7003_v30 }
  0x5e   : > { %666 = vmatprep.mubr.bf16.mxu0 %v7432_v2  ;;  %6462 = vmatprep.mubr.msk.bf16.mxu1 %vm505_vm0, %v7004_v31 }
  0x65   : > { %5781 = vmatmul.mubr.msk.bf16.gmra.mxu0 %vm505_vm0, %v7004_v31  ;;  %6463 = vmatmul.mubr.msk.bf16.gmra.mxu1 %vm505_vm0, %v7005_v32 }
  0x66   : > { %676 = vmatprep.mubr.bf16.mxu0 %v7432_v2  ;;  %6466 = vmatprep.mubr.msk.bf16.mxu1 %vm505_vm0, %v7007_v33 }
  0x6d   : > { %5782 = vmatmul.mubr.msk.bf16.gmra.mxu0 %vm505_vm0, %v7005_v32  ;;  %6467 = vmatmul.mubr.msk.bf16.gmra.mxu1 %vm505_vm0, %v7009_v34 }
  0x6e   : > { %686 = vmatprep.mubr.bf16.mxu0 %v7432_v2  ;;  %6470 = vmatprep.mubr.msk.bf16.mxu1 %vm505_vm0, %v7529_v14 }
  0x75   : > { %5783 = vmatmul.mubr.msk.bf16.gmra.mxu0 %vm505_vm0, %v7007_v33  ;;  %6471 = vmatmul.mubr.msk.bf16.gmra.mxu1 %vm505_vm0, %v7544_v18 }
  0x76   : > { %696 = vmatprep.mubr.bf16.mxu0 %v7432_v2  ;;  %6474 = vmatprep.mubr.msk.bf16.mxu1 %vm505_vm0, %v7010_v22 }
  0x7d   : > { %5784 = vmatmul.mubr.msk.bf16.gmra.mxu0 %vm505_vm0, %v7009_v34  ;;  %6475 = vmatmul.mubr.msk.bf16.gmra.mxu1 %vm505_vm0, %v7011_v26 }
  0xe5   : > { %v588_v39 = vpop.f32.mrf.mxu0  ;;  %v7674_v10 = vpop.f32.mrf.mxu1 }
  0xe6   : > { %v589_v43 = vadd.f32 %v588_v39, %v7624_v40 }
  0xe7   : > { %v7626_v41 = vpop.f32.mrf.mxu0  ;;  %v7678_v13 = vpop.f32.mrf.mxu1 }
  0xe9   : > { %v592_v42 = vpop.f32.mrf.mxu0  ;;  %v7682_v16 = vpop.f32.mrf.mxu1 }
  0xea   : > { %v593_v44 = vadd.f32 %v592_v42, %v7624_v40 }
  0xeb   : > { %v7630_v45 = vpop.f32.mrf.mxu0  ;;  %v7688_v21 = vpop.f32.mrf.mxu1 }
  0xec   : > { %v7632_v46 = vpack.c.bf16 %v593_v44, %v589_v43 }
  0xed   : > { %v598_v47 = vpop.f32.mrf.mxu0  ;;  %v718_v25 = vpop.f32.mrf.mxu1 }
  0xee   : > { %6486 = vmatprep.mubr.msk.bf16.mxu1 %vm992_vm1, %v7632_v46  ;;  %v599_v50 = vadd.f32 %v598_v47, %v7624_v40 }
  0xef   : > { %v7636_v48 = vpop.f32.mrf.mxu0  ;;  %v7700_v30 = vpop.f32.mrf.mxu1 }
  0xf1   : > { %v602_v49 = vpop.f32.mrf.mxu0  ;;  %v722_v37 = vpop.f32.mrf.mxu1 }
  0xf2   : > { %v603_v51 = vadd.f32 %v602_v49, %v7624_v40 }
  0xf3   : > { %v7640_v52 = vpop.f32.mrf.mxu0 }
  0xf4   : > { %v7642_v53 = vpack.c.bf16 %v603_v51, %v599_v50  ;;  %v7720_v51 = vpop.f32.mrf.mxu1 }
  0xf5   : > { %v608_v54 = vpop.f32.mrf.mxu0 }
  0xf6   : > { %986 = vrot.lane.b32.xlu1 %v7642_v53, %s7433_s22  ;;  %v609_v3 = vadd.f32 %v608_v54, %v7624_v40 }
  0xf7   : > { %v7646_v55 = vpop.f32.mrf.mxu0 }
  0xf9   : > { %v612_v56 = vpop.f32.mrf.mxu0 }
  0xfa   : > { %984 = vrot.lane.b32.xlu1 %v7632_v46, %s7433_s22  ;;  %v613_v0 = vadd.f32 %v612_v56, %v7624_v40 }
  0xfb   : > { %v7650_v57 = vpop.f32.mrf.mxu0 }
  0xfc   : > { %v7666_v5 = vpack.c.bf16 %v613_v0, %v609_v3 }
  0xfd   : > { %v618_v58 = vpop.f32.mrf.mxu0 }
  0xfe   : > { %v619_v61 = vadd.f32 %v618_v58, %v7624_v40 }
  0xff   : > { %v7652_v59 = vpop.f32.mrf.mxu0 }
 0x101   : > { %v622_v60 = vpop.f32.mrf.mxu0 }
 0x102   : > { %v623_v62 = vadd.f32 %v622_v60, %v7624_v40 }
 0x103   : > { %v7656_v63 = vpop.f32.mrf.mxu0 }
 0x104   : > { %v7659_v1 = vpack.c.bf16 %v623_v62, %v619_v61  ;;  %v728_v61 = vpop.f32.mrf.mxu1 }
 0x105   : > { %v628_v2 = vpop.f32.mrf.mxu0 }
 0x106   : > { %10147 = vst [vmem:[#allocation3_spill] sm:$0xff] %v7659_v1  ;;  %990 = vrot.lane.b32.xlu0 %v7659_v1, %s7433_s22  ;;  %v629_v44 = vadd.f32 %v628_v2, %v7624_v40 }
 0x107   : > { %v7664_v4 = vpop.f32.mrf.mxu0 }
 0x109   : > { %v632_v6 = vpop.f32.mrf.mxu0 }
 0x10a   : > { %988 = vrot.lane.b32.xlu0 %v7666_v5, %s7433_s22  ;;  %v633_v39 = vadd.f32 %v632_v6, %v7624_v40  ;;  %v7736_v6 = vpop.f32.mrf.mxu1 }
 0x10b   : > { %v7670_v7 = vpop.f32.mrf.mxu0 }
 0x10c   : > { %v7722_v54 = vpack.c.bf16 %v633_v39, %v629_v44 }
 0x10d   : > { %v638_v8 = vpop.f32.mrf.mxu0 }
 0x10e   : > { %v639_v34 = vadd.f32 %v638_v8, %v7624_v40  ;;  %10151 = vst [vmem:[#allocation7_spill] sm:$0xff] %v7722_v54 }
 0x10f   : > { %v7672_v9 = vpop.f32.mrf.mxu0 }
 0x111   : > { %v642_v11 = vpop.f32.mrf.mxu0 }
 0x112   : > { %v643_v31 = vadd.f32 %v642_v11, %v7624_v40 }
 0x113   : > { %v7676_v12 = vpop.f32.mrf.mxu0 }
 0x114   : > { %v7711_v42 = vpack.c.bf16 %v643_v31, %v639_v34 }
 0x115   : > { %v648_v14 = vpop.f32.mrf.mxu0 }
 0x116   : > { %v649_v18 = vadd.f32 %v648_v14, %v7624_v40  ;;  %10150 = vst [vmem:[#allocation6_spill] sm:$0xff] %v7711_v42  ;;  %v320_v14 = vsub.s32 1, %v7615_v36 }
 0x117   : > { %v7680_v15 = vpop.f32.mrf.mxu0 }
 0x119   : > { %v652_v17 = vpop.f32.mrf.mxu0 }
 0x11a   : > { %v653_v19 = vadd.f32 %v652_v17, %v7624_v40 }
 0x11b   : > { %v7686_v20 = vpop.f32.mrf.mxu0 }
 0x11c   : > { %v7690_v22 = vpack.c.bf16 %v653_v19, %v649_v18  ;;  %v732_v18 = vpop.f32.mrf.mxu1  ;;  %v719_v19 = vadd.f32 %v718_v25, %v7624_v40 }
 0x11d   : > { %v658_v23 = vpop.f32.mrf.mxu0 }
 0x11e   : > { %10148 = vst [vmem:[#allocation4_spill] sm:$0xff] %v7690_v22  ;;  %1090 = vrot.lane.b32.xlu1 %v7690_v22, %s7433_s22  ;;  %v659_v27 = vadd.f32 %v658_v23, %v7624_v40  ;;  %v723_v23 = vadd.f32 %v722_v37, %v7624_v40  ;;  %v7750_v31 = vpop.f32.mrf.mxu1 }
 0x11f   : > { %v7694_v24 = vpop.f32.mrf.mxu0 }
 0x120   : > { %v7754_v34 = vpack.c.bf16 %v723_v23, %v719_v19 }
 0x121   : > { %v662_v26 = vpop.f32.mrf.mxu0 }
 0x122   : > { %v663_v28 = vadd.f32 %v662_v26, %v7624_v40  ;;  %10154 = vst [vmem:[#allocation10_spill] sm:$0xff] %v7754_v34 }
 0x123   : > { %v7698_v29 = vpop.f32.mrf.mxu0 }
 0x124   : > { %v7703_v32 = vpack.c.bf16 %v663_v28, %v659_v27  ;;  %v7746_v27 = vrot.slane %v7621_v38, %v320_v14 }
 0x125   : > { %v668_v33 = vpop.f32.mrf.mxu0 }
 0x126   : > { %10149 = vst [vmem:[#allocation5_spill] sm:$0xff] %v7703_v32  ;;  %1092 = vrot.lane.b32.xlu0 %v7703_v32, %s7433_s22  ;;  %v669_v47 = vadd.f32 %v668_v33, %v7624_v40  ;;  %v615_v33 = vadd.f32 %v7650_v57, %v7746_v27  ;;  %v611_v25 = vadd.f32 %v7646_v55, %v7746_v27 }
 0x127   : > { %v7708_v35 = vpop.f32.mrf.mxu0  ;;  %v605_v44 = vadd.f32 %v7640_v52, %v7746_v27  ;;  %v601_v57 = vadd.f32 %v7636_v48, %v7746_v27  ;;  %v655_v52 = vadd.f32 %v7686_v20, %v7746_v27  ;;  %v651_v48 = vadd.f32 %v7680_v15, %v7746_v27 }
 0x129   : > { %v672_v43 = vpop.f32.mrf.mxu0 }
 0x12a   : > { %v673_v49 = vadd.f32 %v672_v43, %v7624_v40  ;;  %1088 = vrot.lane.b32.xlu0 %v7711_v42, %s7433_s22  ;;  %v738_v43 = vpop.f32.mrf.mxu1 }
 0x12b   : > { %v7718_v50 = vpop.f32.mrf.mxu0  ;;  %v739_v23 = vadd.f32 %v738_v43, %v7624_v40  ;;  %v645_v43 = vadd.f32 %v7676_v12, %v7746_v27  ;;  %v713_v12 = vadd.f32 %v7682_v16, %v7624_v40 }
 0x12c   : > { %v7724_v56 = vpack.c.bf16 %v673_v49, %v669_v47  ;;  %v7764_v47 = vpack.c.bf16 %v615_v33, %v611_v25  ;;  %v740_v55 = vpop.f32.mrf.mxu1 }
 0x12d   : > { %v678_v58 = vpop.f32.mrf.mxu0  ;;  %v741_v16 = vadd.f32 %v740_v55, %v7746_v27  ;;  %v591_v55 = vadd.f32 %v7626_v41, %v7746_v27 }
 0x12e   : > { %10152 = vst [vmem:[#allocation8_spill] sm:$0xff] %v7724_v56  ;;  %6518 = vmatprep.mubr.msk.bf16.mxu0 %vm992_vm1, %v7724_v56  ;;  %1086 = vrot.lane.b32.xlu0 %v7722_v54, %s7433_s22  ;;  %v679_v0 = vadd.f32 %v678_v58, %v7624_v40  ;;  %10155 = vst [vmem:[#allocation11_spill] sm:$0xff] %v7764_v47  ;;  %v742_v33 = vpop.f32.mrf.mxu1 }
 0x12f   : > { %v7730_v60 = vpop.f32.mrf.mxu0  ;;  %v743_v25 = vadd.f32 %v742_v33, %v7624_v40 }
 0x130   : > { %v681_v33 = vadd.f32 %v7730_v60, %v7746_v27 }
 0x131   : > { %v682_v62 = vpop.f32.mrf.mxu0 }
 0x132   : > { %v683_v2 = vadd.f32 %v682_v62, %v7624_v40 }
 0x133   : > { %v7734_v3 = vpop.f32.mrf.mxu0 }
 0x134   : > { %v7738_v8 = vpack.c.bf16 %v683_v2, %v679_v0  ;;  %v7772_v0 = vpack.c.bf16 %v605_v44, %v601_v57  ;;  %v685_v41 = vadd.f32 %v7734_v3, %v7746_v27 }
 0x135   : > { %v688_v11 = vpop.f32.mrf.mxu0 }
 0x136   : > { %10153 = vst [vmem:[#allocation9_spill] sm:$0xff] %v7738_v8  ;;  %1189 = vrot.lane.b32.xlu0 %v7738_v8, %s7433_s22  ;;  %10156 = vst [vmem:[#allocation12_spill] sm:$0xff] %v7772_v0  ;;  %v689_v19 = vadd.f32 %v688_v11, %v7624_v40  ;;  %v729_v11 = vadd.f32 %v728_v61, %v7624_v40  ;;  %v709_v61 = vadd.f32 %v7674_v10, %v7624_v40 }
 0x137   : > { %v690_v17 = vpop.f32.mrf.mxu0 }
 0x138   : > { %v691_v15 = vadd.f32 %v690_v17, %v7746_v27  ;;  %v641_v17 = vadd.f32 %v7672_v9, %v7746_v27  ;;  %v744_v9 = vpop.f32.mrf.mxu1  ;;  %v7828_v10 = vpack.c.bf16 %v713_v12, %v709_v61 }
 0x139   : > { %v692_v26 = vpop.f32.mrf.mxu0 }
 0x13a   : > { %1187 = vrot.lane.b32.xlu0 %v7724_v56, %s7433_s22  ;;  %v693_v2 = vadd.f32 %v692_v26, %v7624_v40  ;;  %v7818_v57 = vpack.c.bf16 %v645_v43, %v641_v17  ;;  %10164 = vst [vmem:[#allocation20_spill] sm:$0xff] %v7828_v10 }
 0x13b   : > { %v694_v28 = vpop.f32.mrf.mxu0 }
 0x13c   : > { %v7789_v20 = vpack.c.bf16 %v693_v2, %v689_v19  ;;  %v695_v26 = vadd.f32 %v694_v28, %v7746_v27  ;;  %v7804_v28 = vpack.c.bf16 %v743_v25, %v739_v23  ;;  %10162 = vst [vmem:[#allocation18_spill] sm:$0xff] %v7818_v57  ;;  %v595_v2 = vadd.f32 %v7630_v45, %v7746_v27 }
 0x13d   : > { %v698_v39 = vpop.f32.mrf.mxu0  ;;  %v665_v19 = vadd.f32 %v7698_v29, %v7746_v27  ;;  %v661_v45 = vadd.f32 %v7694_v24, %v7746_v27  ;;  %v675_v29 = vadd.f32 %v7718_v50, %v7746_v27  ;;  %v671_v25 = vadd.f32 %v7708_v35, %v7746_v27 }
 0x13e   : > { %1290 = vrot.lane.b32.xlu0 %v7754_v34, %s7433_s22  ;;  %v699_v58 = vadd.f32 %v698_v39, %v7624_v40  ;;  %v7787_v39 = vpack.c.bf16 %v655_v52, %v651_v48  ;;  %10159 = vst [vmem:[#allocation15_spill] sm:$0xff] %v7789_v20  ;;  %v7801_v44 = vpack.c.bf16 %v695_v26, %v691_v15  ;;  %10161 = vst [vmem:[#allocation17_spill] sm:$0xff] %v7804_v28 }
 0x13f   : > { %v7760_v37 = vpop.f32.mrf.mxu0  ;;  %v745_v52 = vadd.f32 %v744_v9, %v7746_v27  ;;  %v7862_v23 = vpack.c.bf16 %v665_v19, %v661_v45  ;;  %v7872_v26 = vpack.c.bf16 %v685_v41, %v681_v33  ;;  %v7878_v15 = vpack.c.bf16 %v675_v29, %v671_v25 }
 0x140   : > { %10158 = vst [vmem:[#allocation14_spill] sm:$0xff] %v7787_v39  ;;  %10160 = vst [vmem:[#allocation16_spill] sm:$0xff] %v7801_v44  ;;  %v701_v60 = vadd.f32 %v7760_v37, %v7746_v27  ;;  %v324_v35 = vsub.s32 2, %v7615_v36 }
 0x141   : > { %v702_v49 = vpop.f32.mrf.mxu0  ;;  %10168 = vst [vmem:[#allocation24_spill] sm:$0xff] %v7862_v23  ;;  %10169 = vst [vmem:[#allocation25_spill] sm:$0xff] %v7872_v26 }
 0x142   : > { %v703_v62 = vadd.f32 %v702_v49, %v7624_v40  ;;  %1826 = vrot.lane.b32.xlu0 %v7764_v47, %s7434_s23  ;;  %v733_v49 = vadd.f32 %v732_v18, %v7624_v40  ;;  %v635_v18 = vadd.f32 %v7670_v7, %v7746_v27  ;;  %v625_v40 = vadd.f32 %v7656_v63, %v7746_v27 }
 0x143   : > { %v7846_v63 = vpack.c.bf16 %v745_v52, %v741_v16  ;;  %v704_v24 = vpop.f32.mrf.mxu0  ;;  %10170 = vst [vmem:[#allocation26_spill] sm:$0xff] %v7878_v15  ;;  %v7891_v43 = vrot.slane %v7621_v38, %v324_v35 }
 0x144   : > { %v7777_v14 = vpack.c.bf16 %v703_v62, %v699_v58  ;;  %v7820_v58 = vpack.c.bf16 %v733_v49, %v729_v11  ;;  %v631_v62 = vadd.f32 %v7664_v4, %v7746_v27  ;;  %v621_v4 = vadd.f32 %v7652_v59, %v7746_v27  ;;  %v6448_v11 = vpop.f32.mrf.mxu1 }
 0x145   : > { %10166 = vst [vmem:[#allocation22_spill] sm:$0xff] %v7846_v63  ;;  %v7854_v59 = vpack.c.bf16 %v595_v2, %v591_v55  ;;  %v705_v3 = vadd.f32 %v704_v24, %v7746_v27  ;;  %10172 = vst [vmem:[#allocation28_spill] sm:$0xff] %v7891_v43  ;;  %v790_v17 = vadd.f32 %v6448_v11, %v7891_v43 }
 0x146   : > { %10157 = vst [vmem:[#allocation13_spill] sm:$0xff] %v7777_v14  ;;  %1824 = vrot.lane.b32.xlu0 %v7772_v0, %s7434_s23  ;;  %1193 = vrot.lane.b32.xlu1 %v7777_v14, %s7433_s22  ;;  %10163 = vst [vmem:[#allocation19_spill] sm:$0xff] %v7820_v58  ;;  %v7832_v7 = vpack.c.bf16 %v635_v18, %v631_v62  ;;  %v7844_v48 = vpack.c.bf16 %v625_v40, %v621_v4  ;;  %v7893_v49 = vpop.f32.mrf.mxu1 }
 0x147   : > { %10167 = vst [vmem:[#allocation23_spill] sm:$0xff] %v7854_v59  ;;  %v7885_v50 = vpack.c.bf16 %v705_v3, %v701_v60  ;;  %10173 = vst [vmem:[#allocation29_spill] sm:$0xff] %v7893_v49  ;;  %v8078_v49 = vld [vmem:[%s10069_s3 + $0x38] sm:$0xff] }
 0x148   : > { %10165 = vst [vmem:[#allocation21_spill] sm:$0xff] %v7832_v7  ;;  %v6449_v61 = vpop.f32.mrf.mxu1 }
 0x149   : > { %10171 = vst [vmem:[#allocation27_spill] sm:$0xff] %v7885_v50  ;;  %v793_v37 = vadd.f32 %v6449_v61, %v7891_v43 }
 0x14a   : > { %1919 = vrot.lane.b32.xlu0 %v7787_v39, %s7434_s23  ;;  %1191 = vrot.lane.b32.xlu1 %v7789_v20, %s7433_s22  ;;  %v7897_v12 = vpop.f32.mrf.mxu1 }
 0x14b   : > { %10174 = vst [vmem:[#allocation30_spill] sm:$0xff] %v7897_v12  ;;  %v7899_v18 = vpack.c.bf16 %v793_v37, %v790_v17 }
 0x14c   : > { %v6452_v9 = vpop.f32.mrf.mxu1 }
 0x14d   : > { %10175 = vst [vmem:[#allocation31_spill] sm:$0xff] %v7899_v18  ;;  %v806_v38 = vadd.f32 %v6452_v9, %v7891_v43 }
 0x14e   : > { %2012 = vrot.lane.b32.xlu0 %v7801_v44, %s7434_s23  ;;  %1294 = vrot.lane.b32.xlu1 %v7804_v28, %s7433_s22  ;;  %v7903_v40 = vpop.f32.mrf.mxu1 }
 0x14f   : > { %10176 = vst [vmem:[#allocation32_spill] sm:$0xff] %v7903_v40 }
 0x150   : > { %v6453_v16 = vpop.f32.mrf.mxu1 }
 0x151   : > { %v809_v4 = vadd.f32 %v6453_v16, %v7891_v43 }
 0x152   : > { %1917 = vrot.lane.b32.xlu0 %v7818_v57, %s7434_s23  ;;  %1292 = vrot.lane.b32.xlu1 %v7820_v58, %s7433_s22  ;;  %v7908_v2 = vpop.f32.mrf.mxu1 }
 0x153   : > { %10177 = vst [vmem:[#allocation33_spill] sm:$0xff] %v7908_v2  ;;  %v7910_v55 = vpack.c.bf16 %v809_v4, %v806_v38 }
 0x154   : > { %v6456_v19 = vpop.f32.mrf.mxu1 }
 0x155   : > { %10178 = vst [vmem:[#allocation34_spill] sm:$0xff] %v7910_v55  ;;  %v822_v29 = vadd.f32 %v6456_v19, %v7891_v43 }
 0x156   : > { %1915 = vrot.lane.b32.xlu0 %v7832_v7, %s7434_s23  ;;  %1288 = vrot.lane.b32.xlu1 %v7828_v10, %s7433_s22  ;;  %v7913_v41 = vpop.f32.mrf.mxu1 }
 0x157   : > { %10179 = vst [vmem:[#allocation35_spill] sm:$0xff] %v7913_v41  ;;  %v8050_v41 = vld [vmem:[%s10069_s3 + $0x8] sm:$0xff] }
 0x158   : > { %v6457_v24 = vpop.f32.mrf.mxu1 }
 0x159   : > { %v825_v25 = vadd.f32 %v6457_v24, %v7891_v43 }
 0x15a   : > { %1828 = vrot.lane.b32.xlu1 %v7844_v48, %s7434_s23  ;;  %2107 = vrot.lane.b32.xlu0 %v7846_v63, %s7434_s23  ;;  %v7918_v3 = vpop.f32.mrf.mxu1 }
 0x15b   : > { %10180 = vst [vmem:[#allocation36_spill] sm:$0xff] %v7918_v3  ;;  %v7920_v60 = vpack.c.bf16 %v825_v25, %v822_v29 }
 0x15c   : > { %v6460_v35 = vpop.f32.mrf.mxu1 }
 0x15d   : > { %10181 = vst [vmem:[#allocation37_spill] sm:$0xff] %v7920_v60  ;;  %v838_v37 = vadd.f32 %v6460_v35, %v7891_v43 }
 0x15e   : > { %1822 = vrot.lane.b32.xlu1 %v7854_v59, %s7434_s23  ;;  %v7923_v17 = vpop.f32.mrf.mxu1 }
 0x15f   : > { %10182 = vst [vmem:[#allocation38_spill] sm:$0xff] %v7923_v17 }
 0x160   : > { %v6461_v9 = vpop.f32.mrf.mxu1 }
 0x162   : > { %1921 = vrot.lane.b32.xlu1 %v7862_v23, %s7434_s23 }
 0x166   : > { %2010 = vrot.lane.b32.xlu1 %v7872_v26, %s7434_s23 }
 0x168   : > { %v987_v33 = vpop.permute.xlu1 %986 }
 0x169   : > { %v1009_v11 = vsel %vm992_vm1, %v987_v33, 0 }
 0x16a   : > { %2008 = vrot.lane.b32.xlu1 %v7878_v15, %s7434_s23 }
 0x16c   : > { %v985_v61 = vpop.permute.xlu1 %984 }
 0x16d   : > { %v1006_v4 = vsel %vm992_vm1, %v985_v61, 0 }
 0x16e   : > { %2014 = vrot.lane.b32.xlu1 %v7885_v50, %s7434_s23 }
 0x178   : > { %v991_v62 = vpop.permute.xlu0 %990 }
 0x179   : > { %6918 = vmatprep.subr.msk.bf16.mxu1 %vm992_vm1, %v991_v62  ;;  %v1015_v36 = vsel %vm992_vm1, %v991_v62, 0  ;;  %v841_v62 = vadd.f32 %v6461_v9, %v7891_v43 }
 0x17a   : > { %6479 = vmatpush3.bf16.xpose.msra.mxu1 %v1015_v36  ;;  %v7928_v36 = vpop.f32.mrf.mxu1 }
 0x17b   : > { %10183 = vst [vmem:[#allocation39_spill] sm:$0xff] %v7928_v36  ;;  %v7930_v38 = vpack.c.bf16 %v841_v62, %v838_v37  ;;  %v8060_v36 = vld [vmem:[%s10069_s3 + $0x30] sm:$0xff] }
 0x17c   : > { %v989_v52 = vpop.permute.xlu0 %988  ;;  %v6464_v16 = vpop.f32.mrf.mxu1 }
 0x17d   : > { %6919 = vmatprep.subr.msk.bf16.mxu1 %vm992_vm1, %v989_v52  ;;  %v1012_v45 = vsel %vm992_vm1, %v989_v52, 0  ;;  %10184 = vst [vmem:[#allocation40_spill] sm:$0xff] %v7930_v38  ;;  %v854_v52 = vadd.f32 %v6464_v16, %v7891_v43 }
 0x17e   : > { %v845_v19 = vpop.f32.mrf.mxu1 }
 0x182   : > { %6481 = vmatpush3.bf16.xpose.msra.mxu1 %v1012_v45  ;;  %v846_v45 = vadd.f32 %v845_v19, %v7891_v43 }
 0x183   : > { %6920 = vmatprep.subr.msk.bf16.mxu1 %vm992_vm1, %v987_v33  ;;  %v6465_v33 = vpop.f32.mrf.mxu1 }
 0x184   : > { %v857_v29 = vadd.f32 %v6465_v33, %v7891_v43 }
 0x185   : > { %v848_v24 = vpop.f32.mrf.mxu1 }
 0x186   : > { %v7936_v25 = vpack.c.bf16 %v857_v29, %v854_v52  ;;  %v849_v35 = vadd.f32 %v848_v24, %v7891_v43 }
 0x188   : > { %10185 = vst [vmem:[#allocation41_spill] sm:$0xff] %v7936_v25  ;;  %v7939_v9 = vpack.c.bf16 %v849_v35, %v846_v45 }
 0x18a   : > { %6483 = vmatpush3.bf16.xpose.msra.mxu1 %v1009_v11  ;;  %v6468_v11 = vpop.f32.mrf.mxu1  ;;  %10186 = vst [vmem:[#allocation42_spill] sm:$0xff] %v7939_v9 }
 0x18b   : > { %6921 = vmatprep.subr.msk.bf16.mxu1 %vm992_vm1, %v985_v61  ;;  %v870_v52 = vadd.f32 %v6468_v11, %v7891_v43 }
 0x18c   : > { %v861_v62 = vpop.f32.mrf.mxu1 }
 0x18e   : > { %v6469_v19 = vpop.f32.mrf.mxu1 }
 0x18f   : > { %v873_v45 = vadd.f32 %v6469_v19, %v7891_v43 }
 0x190   : > { %v1091_v16 = vpop.permute.xlu1 %1090  ;;  %v864_v33 = vpop.f32.mrf.mxu1 }
 0x191   : > { %v7951_v29 = vpack.c.bf16 %v873_v45, %v870_v52  ;;  %v865_v24 = vadd.f32 %v864_v33, %v7891_v43  ;;  %v1113_v11 = vsel %vm992_vm1, %v1091_v16, 0 }
 0x192   : > { %6485 = vmatpush3.bf16.xpose.msra.mxu1 %v1006_v4  ;;  %v862_v4 = vadd.f32 %v861_v62, %v7891_v43  ;;  %v6472_v35 = vpop.f32.mrf.mxu1 }
 0x193   : > { %10187 = vst [vmem:[#allocation43_spill] sm:$0xff] %v7951_v29  ;;  %v886_v9 = vadd.f32 %v6472_v35, %v7891_v43 }
 0x198   : > { %v1093_v37 = vpop.permute.xlu0 %1092 }
 0x199   : > { %6487 = vmatmul.mubr.msk.bf16.vlgmr.msra.gmra.mxu1 %vm992_vm1, %v7642_v53  ;;  %6922 = vmatprep.subr.msk.bf16.mxu1 %vm992_vm1, %v1093_v37  ;;  %v1116_v61 = vsel %vm992_vm1, %v1093_v37, 0  ;;  %v7954_v37 = vpack.c.bf16 %v865_v24, %v862_v4 }
 0x19a   : > { %6490 = vmatprep.mubr.msk.bf16.mxu1 %vm992_vm1, %v7666_v5  ;;  %6495 = vmatpush3.bf16.xpose.msra.mxu1 %v1116_v61  ;;  %v877_v61 = vpop.f32.mrf.mxu1 }
 0x19b   : > { %6923 = vmatprep.subr.msk.bf16.mxu1 %vm992_vm1, %v1091_v16  ;;  %10188 = vst [vmem:[#allocation44_spill] sm:$0xff] %v7954_v37  ;;  %v878_v52 = vadd.f32 %v877_v61, %v7891_v43 }
 0x19c   : > { %v1089_v62 = vpop.permute.xlu0 %1088  ;;  %v6473_v19 = vpop.f32.mrf.mxu1 }
 0x19d   : > { %v889_v4 = vadd.f32 %v6473_v19, %v7891_v43 }
 0x19e   : > { %v880_v45 = vpop.f32.mrf.mxu1 }
 0x19f   : > { %v7965_v33 = vpack.c.bf16 %v889_v4, %v886_v9  ;;  %v881_v24 = vadd.f32 %v880_v45, %v7891_v43 }
 0x1a0   : > { %v6476_v35 = vpop.f32.mrf.mxu1  ;;  %v1087_v37 = vpop.permute.xlu0 %1086 }
 0x1a1   : > { %6491 = vmatmul.mubr.msk.bf16.gmra.mxu1 %vm992_vm1, %v7659_v1  ;;  %10189 = vst [vmem:[#allocation45_spill] sm:$0xff] %v7965_v33  ;;  %v7968_v16 = vpack.c.bf16 %v881_v24, %v878_v52  ;;  %v902_v61 = vadd.f32 %v6476_v35, %v7891_v43 }
 0x1a2   : > { %6497 = vmatpush3.bf16.xpose.msra.mxu1 %v1113_v11  ;;  %6502 = vmatprep.mubr.msk.bf16.mxu1 %vm992_vm1, %v7722_v54  ;;  %v1110_v11 = vsel %vm992_vm1, %v1089_v62, 0  ;;  %v893_v25 = vpop.f32.mrf.mxu1 }
 0x1a3   : > { %6924 = vmatprep.subr.msk.bf16.mxu1 %vm992_vm1, %v1089_v62  ;;  %10190 = vst [vmem:[#allocation46_spill] sm:$0xff] %v7968_v16  ;;  %v894_v60 = vadd.f32 %v893_v25, %v7891_v43  ;;  %v1107_v62 = vsel %vm992_vm1, %v1087_v37, 0 }
 0x1a4   : > { %v6477_v19 = vpop.f32.mrf.mxu1 }
 0x1a5   : > { %v905_v9 = vadd.f32 %v6477_v19, %v7891_v43 }
 0x1a6   : > { %v896_v4 = vpop.f32.mrf.mxu1 }
 0x1a7   : > { %v7975_v33 = vpack.c.bf16 %v905_v9, %v902_v61  ;;  %v897_v52 = vadd.f32 %v896_v4, %v7891_v43 }
 0x1a8   : > { %v1190_v24 = vpop.permute.xlu0 %1189 }
 0x1a9   : > { %10191 = vst [vmem:[#allocation47_spill] sm:$0xff] %v7975_v33  ;;  %v7978_v45 = vpack.c.bf16 %v897_v52, %v894_v60 }
 0x1aa   : > { %6499 = vmatpush3.bf16.xpose.msra.mxu1 %v1110_v11 }
 0x1ab   : > { %6925 = vmatprep.subr.msk.bf16.mxu1 %vm992_vm1, %v1087_v37  ;;  %10192 = vst [vmem:[#allocation48_spill] sm:$0xff] %v7978_v45 }
 0x1ac   : > { %v1188_v60 = vpop.permute.xlu0 %1187 }
 0x1b0   : > { %v1291_v9 = vpop.permute.xlu0 %1290 }
 0x1b1   : > { %v1312_v16 = vsel %vm992_vm1, %v1291_v9, 0 }
 0x1b2   : > { %6501 = vmatpush3.bf16.xpose.msra.mxu1 %v1107_v62  ;;  %v1211_v62 = vsel %vm992_vm1, %v1190_v24, 0 }
 0x1b8   : > { %v1194_v11 = vpop.permute.xlu1 %1193 }
 0x1b9   : > { %6503 = vmatmul.mubr.msk.bf16.vlgmr.msra.gmra.mxu1 %vm992_vm1, %v7711_v42  ;;  %6926 = vmatprep.subr.msk.bf16.mxu0 %vm992_vm1, %v1194_v11  ;;  %v1217_v25 = vsel %vm992_vm1, %v1194_v11, 0 }
 0x1ba   : > { %6506 = vmatprep.mubr.msk.bf16.mxu1 %vm992_vm1, %v7690_v22  ;;  %6511 = vmatpush3.bf16.xpose.msra.mxu0 %v1217_v25  ;;  %v1827_v25 = vpop.permute.xlu0 %1826 }
 0x1bc   : > { %v1192_v35 = vpop.permute.xlu1 %1191 }
 0x1bd   : > { %6927 = vmatprep.subr.msk.bf16.mxu0 %vm992_vm1, %v1192_v35  ;;  %v1214_v37 = vsel %vm992_vm1, %v1192_v35, 0 }
 0x1c0   : > { %v1295_v61 = vpop.permute.xlu1 %1294 }
 0x1c1   : > { %6507 = vmatmul.mubr.msk.bf16.gmra.mxu1 %vm992_vm1, %v7703_v32  ;;  %6930 = vmatprep.subr.msk.bf16.mxu1 %vm992_vm1, %v1295_v61  ;;  %v1318_v19 = vsel %vm992_vm1, %v1295_v61, 0  ;;  %v1825_v61 = vpop.permute.xlu0 %1824 }
 0x1c2   : > { %6513 = vmatpush3.bf16.xpose.msra.mxu0 %v1214_v37  ;;  %6527 = vmatpush3.bf16.xpose.msra.mxu1 %v1318_v19  ;;  %v1208_v19 = vsel %vm992_vm1, %v1188_v60, 0 }
 0x1c3   : > { %6534 = vmatprep.mubr.msk.bf16.mxu1 %vm992_vm1, %v7828_v10  ;;  %6928 = vmatprep.subr.msk.bf16.mxu0 %vm992_vm1, %v1190_v24 }
 0x1c4   : > { %v1293_v4 = vpop.permute.xlu1 %1292 }
 0x1c5   : > { %6931 = vmatprep.subr.msk.bf16.mxu1 %vm992_vm1, %v1293_v4  ;;  %v1315_v11 = vsel %vm992_vm1, %v1293_v4, 0  ;;  %v1920_v4 = vpop.permute.xlu0 %1919 }
 0x1c8   : > { %v1289_v52 = vpop.permute.xlu1 %1288 }
 0x1ca   : > { %6515 = vmatpush3.bf16.xpose.msra.mxu0 %v1211_v62  ;;  %6529 = vmatpush3.bf16.xpose.msra.mxu1 %v1315_v11  ;;  %v1309_v62 = vsel %vm992_vm1, %v1289_v52, 0 }
 0x1cb   : > { %6929 = vmatprep.subr.msk.bf16.mxu0 %vm992_vm1, %v1188_v60  ;;  %6932 = vmatprep.subr.msk.bf16.mxu1 %vm992_vm1, %v1291_v9  ;;  %v8011_v60 = vpop.permute.xlu0 %2012 }
 0x1cc   : > { %v1829_v35 = vpop.permute.xlu1 %1828 }
 0x1cf   : > { %v1918_v9 = vpop.permute.xlu0 %1917 }
 0x1d0   : > { %v1823_v37 = vpop.permute.xlu1 %1822 }
 0x1d2   : > { %6517 = vmatpush3.bf16.xpose.msra.mxu0 %v1208_v19  ;;  %6531 = vmatpush3.bf16.xpose.msra.mxu1 %v1312_v16  ;;  %v8032_v19 = vld [vmem:[%s10069_s3 + $0x10] sm:$0xff] }
 0x1d3   : > { %6542 = vmatprep.subr.bf16.mxu0 %v1829_v35  ;;  %6933 = vmatprep.subr.msk.bf16.mxu1 %vm992_vm1, %v1289_v52 }
 0x1d4   : > { %v1922_v24 = vpop.permute.xlu1 %1921 }
 0x1d8   : > { %v8009_v11 = vpop.permute.xlu1 %2010 }
 0x1d9   : > { %6519 = vmatmul.mubr.msk.bf16.vlgmr.msra.gmra.mxu0 %vm992_vm1, %v7738_v8 }
 0x1da   : > { %6522 = vmatprep.mubr.msk.bf16.mxu0 %vm992_vm1, %v7789_v20  ;;  %6533 = vmatpush3.bf16.xpose.msra.mxu1 %v1309_v62 }
 0x1db   : > { %6543 = vmatpush3.bf16.msra.mxu0 %v1829_v35  ;;  %6558 = vmatprep.subr.bf16.mxu1 %v1922_v24 }
 0x1dc   : > { %6544 = vmatprep.subr.bf16.mxu0 %v1827_v25  ;;  %v8013_v16 = vpop.permute.xlu1 %2008 }
 0x1df   : > { %6545 = vmatpush3.bf16.msra.mxu0 %v1827_v25  ;;  %v1916_v25 = vpop.permute.xlu0 %1915 }
 0x1e0   : > { %6546 = vmatprep.subr.bf16.mxu0 %v1825_v61  ;;  %v8021_v52 = vpop.permute.xlu1 %2014 }
 0x1e1   : > { %6523 = vmatmul.mubr.msk.bf16.gmra.mxu0 %vm992_vm1, %v7777_v14  ;;  %6535 = vmatmul.mubr.msk.bf16.vlgmr.msra.gmra.mxu1 %vm992_vm1, %v7754_v34 }
 0x1e2   : > { %6538 = vmatprep.mubr.msk.bf16.mxu1 %vm992_vm1, %v7820_v58  ;;  %6559 = vmatpush3.bf16.msra.mxu1 %v1922_v24 }
 0x1e3   : > { %6547 = vmatpush3.bf16.msra.mxu0 %v1825_v61  ;;  %6560 = vmatprep.subr.bf16.mxu1 %v1920_v4  ;;  %v8026_v35 = vpop.permute.xlu0 %2107 }
 0x1e4   : > { %6548 = vmatprep.subr.bf16.mxu0 %v1823_v37  ;;  %10193 = vst [vmem:[#allocation49_spill] sm:$0xff] %v8026_v35 }
 0x1e6   : > { %6561 = vmatpush3.bf16.msra.mxu1 %v1920_v4  ;;  %v8037_v4 = vld [vmem:[%s10069_s3] sm:$0xff] }
 0x1e7   : > { %6549 = vmatpush3.bf16.msra.mxu0 %v1823_v37  ;;  %6562 = vmatprep.subr.bf16.mxu1 %v1918_v9 }
 0x1e8   : > { %6574 = vmatprep.subr.bf16.mxu0 %v8021_v52 }
 0x1e9   : > { %6539 = vmatmul.mubr.msk.bf16.gmra.mxu1 %vm992_vm1, %v7804_v28 }
 0x1ea   : > { %6563 = vmatpush3.bf16.msra.mxu1 %v1918_v9 }
 0x1eb   : > { %6564 = vmatprep.subr.bf16.mxu1 %v1916_v25 }
 0x1ee   : > { %6565 = vmatpush3.bf16.msra.mxu1 %v1916_v25 }
 0x1ef   : > { %6590 = vmatprep.subr.bf16.mxu1 %v8026_v35 }
 0x259   : > { %v6488_v61 = vpop.f32.mrf.mxu1 }
 0x25a   : > { %v1387_v37 = vmul.f32 0.17677669, %v6488_v61 }
 0x25b   : > { %v1051_v24 = vpop.f32.mrf.mxu1 }
 0x25c   : > { %v1385_v62 = vmul.f32 0.17677669, %v1051_v24  ;;  %v8040_v9 = vadd.f32 %v1387_v37, %v8032_v19  ;;  %v8055_v37 = vld [vmem:[%s10069_s3 + $0x18] sm:$0xff] }
 0x25d   : > { %v6489_v25 = vpop.f32.mrf.mxu1 }
 0x25e   : > { %v1388_v45 = vmul.f32 0.17677669, %v6489_v25  ;;  %v1456_v33 = vsel %vm1449_vm2, %v8040_v9, -inf  ;;  %v8045_v3 = vadd.f32 %v1385_v62, %v8037_v4 }
 0x25f   : > { %1457 = vmax.xlane.f32.xlu0 %v1456_v33  ;;  %v1054_v61 = vpop.f32.mrf.mxu1 }
 0x260   : > { %v1386_v24 = vmul.f32 0.17677669, %v1054_v61  ;;  %v1450_v33 = vsel %vm1449_vm2, %v8045_v3, -inf  ;;  %v8068_v38 = vadd.f32 %v1388_v45, %v8055_v37  ;;  %v8083_v45 = vld [vmem:[%s10069_s3 + $0x20] sm:$0xff] }
 0x261   : > { %v6492_v25 = vpop.f32.mrf.mxu1 }
 0x262   : > { %v1391_v62 = vmul.f32 0.17677669, %v6492_v25  ;;  %v8065_v17 = vadd.f32 %v1386_v24, %v8050_v41 }
 0x263   : > { %1451 = vmax.xlane.f32.xlu0 %v1450_v33  ;;  %v1067_v29 = vpop.f32.mrf.mxu1 }
 0x264   : > { %v1389_v18 = vmul.f32 0.17677669, %v1067_v29  ;;  %v1453_v61 = vsel %vm1449_vm2, %v8065_v17, -inf  ;;  %v8073_v12 = vadd.f32 %v1391_v62, %v8060_v36  ;;  %v1459_v29 = vsel %vm1449_vm2, %v8068_v38, -inf  ;;  %v8090_v62 = vld [vmem:[%s10069_s3 + $0x28] sm:$0xff] }
 0x265   : > { %1454 = vmax.xlane.f32.xlu1 %v1453_v61  ;;  %v6493_v25 = vpop.f32.mrf.mxu1 }
 0x266   : > { %v1392_v24 = vmul.f32 0.17677669, %v6493_v25  ;;  %v1468_v2 = vsel %vm1449_vm2, %v8073_v12, -inf  ;;  %v8098_v43 = vadd.f32 %v1389_v18, %v8083_v45 }
 0x267   : > { %1460 = vmax.xlane.f32.xlu0 %v1459_v29  ;;  %v1070_v33 = vpop.f32.mrf.mxu1 }
 0x268   : > { %v1390_v61 = vmul.f32 0.17677669, %v1070_v33  ;;  %v8095_v40 = vadd.f32 %v1392_v24, %v8078_v49  ;;  %v1462_v33 = vsel %vm1449_vm2, %v8098_v43, -inf }
 0x269   : > { %1469 = vmax.xlane.f32.xlu1 %v1468_v2 }
 0x26a   : > { %v1471_v25 = vsel %vm1449_vm2, %v8095_v40, -inf  ;;  %v8103_v29 = vadd.f32 %v1390_v61, %v8090_v62 }
 0x26b   : > { %1472 = vmax.xlane.f32.xlu0 %v1471_v25 }
 0x26c   : > { %v1465_v55 = vsel %vm1449_vm2, %v8103_v29, -inf }
 0x26d   : > { %1463 = vmax.xlane.f32.xlu1 %v1462_v33 }
 0x26f   : > { %1466 = vmax.xlane.f32.xlu0 %v1465_v55 }
 0x279   : > { %v6504_v24 = vpop.f32.mrf.mxu1 }
 0x27a   : > { %v1395_v7 = vmul.f32 0.17677669, %v6504_v24 }
 0x27b   : > { %v1152_v18 = vpop.f32.mrf.mxu1 }
 0x27c   : > { %v1393_v26 = vmul.f32 0.17677669, %v1152_v18  ;;  %v8110_v2 = vadd.f32 %v1395_v7, %v8032_v19 }
 0x27d   : > { %v6505_v57 = vpop.f32.mrf.mxu1 }
 0x27e   : > { %v1396_v39 = vmul.f32 0.17677669, %v6505_v57  ;;  %v1480_v61 = vsel %vm1449_vm2, %v8110_v2, -inf  ;;  %v8115_v25 = vadd.f32 %v1393_v26, %v8037_v4 }
 0x27f   : > { %1481 = vmax.xlane.f32.xlu1 %v1480_v61  ;;  %v1155_v33 = vpop.f32.mrf.mxu1 }
 0x280   : > { %v1394_v63 = vmul.f32 0.17677669, %v1155_v33  ;;  %v8118_v55 = vadd.f32 %v1396_v39, %v8055_v37  ;;  %v1474_v7 = vsel %vm1449_vm2, %v8115_v25, -inf }
 0x281   : > { %v6508_v24 = vpop.f32.mrf.mxu1 }
 0x282   : > { %v1399_v23 = vmul.f32 0.17677669, %v6508_v24  ;;  %v1483_v57 = vsel %vm1449_vm2, %v8118_v55, -inf  ;;  %v8125_v18 = vadd.f32 %v1394_v63, %v8050_v41 }
 0x283   : > { %1475 = vmax.xlane.f32.xlu1 %v1474_v7  ;;  %1484 = vmax.xlane.f32.xlu0 %v1483_v57  ;;  %v1168_v26 = vpop.f32.mrf.mxu1 }
 0x284   : > { %v1397_v61 = vmul.f32 0.17677669, %v1168_v26  ;;  %v8128_v33 = vadd.f32 %v1399_v23, %v8060_v36  ;;  %v1477_v24 = vsel %vm1449_vm2, %v8125_v18, -inf }
 0x285   : > { %v6509_v39 = vpop.f32.mrf.mxu1 }
 0x286   : > { %v1400_v15 = vmul.f32 0.17677669, %v6509_v39  ;;  %v1492_v59 = vsel %vm1449_vm2, %v8128_v33, -inf  ;;  %v8135_v44 = vadd.f32 %v1397_v61, %v8083_v45 }
 0x287   : > { %1478 = vmax.xlane.f32.xlu0 %v1477_v24  ;;  %1493 = vmax.xlane.f32.xlu1 %v1492_v59  ;;  %v1171_v63 = vpop.f32.mrf.mxu1 }
 0x288   : > { %v1398_v7 = vmul.f32 0.17677669, %v1171_v63  ;;  %v8138_v57 = vadd.f32 %v1400_v15, %v8078_v49  ;;  %v1486_v23 = vsel %vm1449_vm2, %v8135_v44, -inf }
 0x28a   : > { %v1495_v26 = vsel %vm1449_vm2, %v8138_v57, -inf  ;;  %v8145_v39 = vadd.f32 %v1398_v7, %v8090_v62 }
 0x28b   : > { %1487 = vmax.xlane.f32.xlu1 %v1486_v23  ;;  %1496 = vmax.xlane.f32.xlu0 %v1495_v26 }
 0x28c   : > { %v1489_v61 = vsel %vm1449_vm2, %v8145_v39, -inf }
 0x28f   : > { %1490 = vmax.xlane.f32.xlu0 %v1489_v61 }
 0x299   : > { %v6520_v59 = vpop.f32.mrf.mxu0 }
 0x29a   : > { %v1403_v24 = vmul.f32 0.17677669, %v6520_v59 }
 0x29b   : > { %v1253_v63 = vpop.f32.mrf.mxu0 }
 0x29c   : > { %v8150_v15 = vadd.f32 %v1403_v24, %v8032_v19  ;;  %v1401_v26 = vmul.f32 0.17677669, %v1253_v63 }
 0x29d   : > { %v6521_v50 = vpop.f32.mrf.mxu0 }
 0x29e   : > { %v1404_v28 = vmul.f32 0.17677669, %v6521_v50  ;;  %v1504_v0 = vsel %vm1449_vm2, %v8150_v15, -inf }
 0x29f   : > { %v1256_v14 = vpop.f32.mrf.mxu0  ;;  %1505 = vmax.xlane.f32.xlu1 %v1504_v0 }
 0x2a0   : > { %v8155_v7 = vadd.f32 %v1404_v28, %v8055_v37  ;;  %v1402_v50 = vmul.f32 0.17677669, %v1256_v14  ;;  %v8165_v28 = vadd.f32 %v1401_v26, %v8037_v4 }
 0x2a1   : > { %v6536_v23 = vpop.f32.mrf.mxu1  ;;  %v6524_v59 = vpop.f32.mrf.mxu0 }
 0x2a2   : > { %v1411_v47 = vmul.f32 0.17677669, %v6536_v23  ;;  %v1507_v61 = vsel %vm1449_vm2, %v8155_v7, -inf }
 0x2a3   : > { %1508 = vmax.xlane.f32.xlu0 %v1507_v61  ;;  %v1354_v24 = vpop.f32.mrf.mxu1  ;;  %v1269_v63 = vpop.f32.mrf.mxu0  ;;  %v1407_v61 = vmul.f32 0.17677669, %v6524_v59 }
 0x2a4   : > { %v8160_v34 = vadd.f32 %v1411_v47, %v8032_v19  ;;  %v1409_v32 = vmul.f32 0.17677669, %v1354_v24  ;;  %v8171_v47 = vadd.f32 %v1402_v50, %v8050_v41 }
 0x2a5   : > { %v6537_v58 = vpop.f32.mrf.mxu1  ;;  %v6525_v24 = vpop.f32.mrf.mxu0  ;;  %v8183_v59 = vadd.f32 %v1407_v61, %v8060_v36 }
 0x2a6   : > { %v1412_v35 = vmul.f32 0.17677669, %v6537_v58  ;;  %v1528_v0 = vsel %vm1449_vm2, %v8160_v34, -inf  ;;  %v1498_v58 = vsel %vm1449_vm2, %v8165_v28, -inf  ;;  %v8178_v26 = vadd.f32 %v1409_v32, %v8037_v4 }
 0x2a7   : > { %1529 = vmax.xlane.f32.xlu1 %v1528_v0  ;;  %v1357_v23 = vpop.f32.mrf.mxu1  ;;  %v1408_v50 = vmul.f32 0.17677669, %v6525_v24  ;;  %v1405_v4 = vmul.f32 0.17677669, %v1269_v63 }
 0x2a8   : > { %v8168_v20 = vadd.f32 %v1412_v35, %v8055_v37  ;;  %v1410_v14 = vmul.f32 0.17677669, %v1357_v23  ;;  %v1501_v37 = vsel %vm1449_vm2, %v8171_v47, -inf  ;;  %v1522_v23 = vsel %vm1449_vm2, %v8178_v26, -inf }
 0x2a9   : > { %v6540_v8 = vpop.f32.mrf.mxu1 }
 0x2aa   : > { %v1531_v19 = vsel %vm1449_vm2, %v8168_v20, -inf  ;;  %v1415_v0 = vmul.f32 0.17677669, %v6540_v8  ;;  %v8188_v10 = vadd.f32 %v1410_v14, %v8050_v41  ;;  %v8195_v8 = vadd.f32 %v1408_v50, %v8078_v49 }
 0x2ab   : > { %1499 = vmax.xlane.f32.xlu1 %v1498_v58  ;;  %1532 = vmax.xlane.f32.xlu0 %v1531_v19  ;;  %v1370_v35 = vpop.f32.mrf.mxu1  ;;  %v1516_v58 = vsel %vm1449_vm2, %v8183_v59, -inf  ;;  %v1272_v19 = vpop.f32.mrf.mxu0  ;;  %v8201_v14 = vadd.f32 %v1405_v4, %v8083_v45 }
 0x2ac   : > { %v1525_v61 = vsel %vm1449_vm2, %v8188_v10, -inf  ;;  %v8198_v24 = vadd.f32 %v1415_v0, %v8060_v36  ;;  %v1406_v41 = vmul.f32 0.17677669, %v1272_v19  ;;  %v1413_v63 = vmul.f32 0.17677669, %v1370_v35 }
 0x2ad   : > { %v6541_v32 = vpop.f32.mrf.mxu1  ;;  %v1510_v36 = vsel %vm1449_vm2, %v8201_v14, -inf }
 0x2ae   : > { %v1416_v1 = vmul.f32 0.17677669, %v6541_v32  ;;  %v8215_v35 = vadd.f32 %v1413_v63, %v8083_v45 }
 0x2af   : > { %1523 = vmax.xlane.f32.xlu1 %v1522_v23  ;;  %1502 = vmax.xlane.f32.xlu0 %v1501_v37  ;;  %v1519_v37 = vsel %vm1449_vm2, %v8195_v8, -inf  ;;  %v1540_v23 = vsel %vm1449_vm2, %v8198_v24, -inf  ;;  %v1373_v50 = vpop.f32.mrf.mxu1 }
 0x2b0   : > { %v8208_v32 = vadd.f32 %v1416_v1, %v8078_v49  ;;  %v1414_v0 = vmul.f32 0.17677669, %v1373_v50  ;;  %v1534_v1 = vsel %vm1449_vm2, %v8215_v35, -inf }
 0x2b2   : > { %v1543_v4 = vsel %vm1449_vm2, %v8208_v32, -inf  ;;  %v8225_v19 = vadd.f32 %v1414_v0, %v8090_v62 }
 0x2b3   : > { %1517 = vmax.xlane.f32.xlu1 %v1516_v58  ;;  %1526 = vmax.xlane.f32.xlu0 %v1525_v61  ;;  %v8218_v58 = vadd.f32 %v1406_v41, %v8090_v62 }
 0x2b4   : > { %v1537_v45 = vsel %vm1449_vm2, %v8225_v19, -inf }
 0x2b5   : > { %v1513_v49 = vsel %vm1449_vm2, %v8218_v58, -inf }
 0x2b7   : > { %1520 = vmax.xlane.f32.xlu0 %v1519_v37  ;;  %1541 = vmax.xlane.f32.xlu1 %v1540_v23 }
 0x2bb   : > { %1511 = vmax.xlane.f32.xlu1 %v1510_v36  ;;  %1544 = vmax.xlane.f32.xlu0 %v1543_v4 }
 0x2bf   : > { %1535 = vmax.xlane.f32.xlu1 %v1534_v1  ;;  %1514 = vmax.xlane.f32.xlu0 %v1513_v49 }
 0x2c3   : > { %1538 = vmax.xlane.f32.xlu0 %v1537_v45 }
 0x2e8   : > { %v1458_v61 = vpop.xlane.xlu0 %1457 }
 0x2e9   : > { %v1548_v41 = vsub.f32 %v8040_v9, %v1458_v61 }
 0x2eb   : > { %v1582_v63 = vmul.f32 1.442695, %v1548_v41 }
 0x2ec   : > { %v1452_v37 = vpop.xlane.xlu0 %1451 }
 0x2ed   : > { %7040 = vpow2.f32 %v1582_v63  ;;  %v1546_v23 = vsub.f32 %v8045_v3, %v1452_v37 }
 0x2ee   : > { %v1455_v50 = vpop.xlane.xlu1 %1454 }
 0x2ef   : > { %v1578_v36 = vmul.f32 1.442695, %v1546_v23  ;;  %v1547_v4 = vsub.f32 %v8065_v17, %v1455_v50 }
 0x2f0   : > { %v1461_v62 = vpop.xlane.xlu0 %1460 }
 0x2f1   : > { %7042 = vpow2.f32 %v1578_v36  ;;  %v1549_v0 = vsub.f32 %v8068_v38, %v1461_v62  ;;  %v1580_v1 = vmul.f32 1.442695, %v1547_v4 }
 0x2f2   : > { %v1470_v49 = vpop.xlane.xlu1 %1469 }
 0x2f3   : > { %v1584_v22 = vmul.f32 1.442695, %v1549_v0  ;;  %v1552_v45 = vsub.f32 %v8073_v12, %v1470_v49 }
 0x2f4   : > { %v1473_v42 = vpop.xlane.xlu0 %1472 }
 0x2f5   : > { %7044 = vpow2.f32 %v1584_v22  ;;  %v1590_v9 = vmul.f32 1.442695, %v1552_v45  ;;  %v1553_v61 = vsub.f32 %v8095_v40, %v1473_v42 }
 0x2f6   : > { %7046 = vpow2.f32 %v1580_v1  ;;  %v1464_v3 = vpop.xlane.xlu1 %1463 }
 0x2f7   : > { %7048 = vpow2.f32 %v1590_v9  ;;  %v1592_v41 = vmul.f32 1.442695, %v1553_v61  ;;  %v1550_v17 = vsub.f32 %v8098_v43, %v1464_v3 }
 0x2f8   : > { %v1467_v63 = vpop.xlane.xlu0 %1466 }
 0x2f9   : > { %v1586_v37 = vmul.f32 1.442695, %v1550_v17  ;;  %v1551_v38 = vsub.f32 %v8103_v29, %v1467_v63  ;;  %7050 = vpow2.f32 %v1592_v41 }
 0x2fa   : > { %v8237_v23 = vpop.eup %7040 }
 0x2fb   : > { %7052 = vpow2.f32 %v1586_v37  ;;  %v1588_v12 = vmul.f32 1.442695, %v1551_v38  ;;  %v1648_v22 = vsel %vm1449_vm2, %v8237_v23, 0.0 }
 0x2fc   : > { %1649 = vadd.xlane.f32.xlu1 %v1648_v22 }
 0x2fd   : > { %7054 = vpow2.f32 %v1588_v12 }
 0x2fe   : > { %v8241_v42 = vpop.eup %7042 }
 0x2ff   : > { %v1642_v40 = vsel %vm1449_vm2, %v8241_v42, 0.0 }
 0x300   : > { %1643 = vadd.xlane.f32.xlu1 %v1642_v40 }
 0x302   : > { %v8245_v43 = vpop.eup %7044 }
 0x303   : > { %v8247_v50 = vpop.eup %7046  ;;  %v1651_v29 = vsel %vm1449_vm2, %v8245_v43, 0.0 }
 0x304   : > { %v8251_v36 = vpop.eup %7048  ;;  %1652 = vadd.xlane.f32.xlu0 %v1651_v29  ;;  %v1645_v0 = vsel %vm1449_vm2, %v8247_v50, 0.0 }
 0x305   : > { %v1660_v4 = vsel %vm1449_vm2, %v8251_v36, 0.0 }
 0x306   : > { %1661 = vadd.xlane.f32.xlu1 %v1660_v4  ;;  %v8255_v62 = vpop.eup %7050 }
 0x307   : > { %v1663_v3 = vsel %vm1449_vm2, %v8255_v62, 0.0 }
 0x308   : > { %v8259_v1 = vpop.eup %7052  ;;  %v1482_v49 = vpop.xlane.xlu1 %1481  ;;  %1646 = vadd.xlane.f32.xlu0 %v1645_v0 }
 0x309   : > { %v1556_v45 = vsub.f32 %v8110_v2, %v1482_v49  ;;  %v1654_v9 = vsel %vm1449_vm2, %v8259_v1, 0.0 }
 0x30a   : > { %1655 = vadd.xlane.f32.xlu1 %v1654_v9  ;;  %v8266_v41 = vpop.eup %7054 }
 0x30b   : > { %v1598_v61 = vmul.f32 1.442695, %v1556_v45  ;;  %v1657_v22 = vsel %vm1449_vm2, %v8266_v41, 0.0 }
 0x30c   : > { %v1476_v17 = vpop.xlane.xlu1 %1475  ;;  %v1485_v63 = vpop.xlane.xlu0 %1484  ;;  %1664 = vadd.xlane.f32.xlu0 %v1663_v3 }
 0x30d   : > { %7056 = vpow2.f32 %v1598_v61  ;;  %v1554_v37 = vsub.f32 %v8115_v25, %v1476_v17  ;;  %v1557_v38 = vsub.f32 %v8118_v55, %v1485_v63 }
 0x30f   : > { %v1594_v12 = vmul.f32 1.442695, %v1554_v37  ;;  %v1600_v2 = vmul.f32 1.442695, %v1557_v38 }
 0x310   : > { %v1479_v40 = vpop.xlane.xlu0 %1478  ;;  %v1494_v29 = vpop.xlane.xlu1 %1493  ;;  %1658 = vadd.xlane.f32.xlu0 %v1657_v22 }
 0x311   : > { %7058 = vpow2.f32 %v1594_v12  ;;  %v1555_v4 = vsub.f32 %v8125_v18, %v1479_v40  ;;  %v1560_v0 = vsub.f32 %v8128_v33, %v1494_v29 }
 0x312   : > { %7060 = vpow2.f32 %v1600_v2 }
 0x313   : > { %v1596_v49 = vmul.f32 1.442695, %v1555_v4  ;;  %v1606_v45 = vmul.f32 1.442695, %v1560_v0 }
 0x314   : > { %v1488_v9 = vpop.xlane.xlu1 %1487  ;;  %v1497_v25 = vpop.xlane.xlu0 %1496 }
 0x315   : > { %v1558_v55 = vsub.f32 %v8135_v44, %v1488_v9  ;;  %v1561_v61 = vsub.f32 %v8138_v57, %v1497_v25  ;;  %7062 = vpow2.f32 %v1606_v45 }
 0x316   : > { %7064 = vpow2.f32 %v1596_v49 }
 0x317   : > { %v1602_v3 = vmul.f32 1.442695, %v1558_v55  ;;  %v1608_v17 = vmul.f32 1.442695, %v1561_v61 }
 0x318   : > { %v1491_v63 = vpop.xlane.xlu0 %1490 }
 0x319   : > { %7066 = vpow2.f32 %v1602_v3  ;;  %v1559_v37 = vsub.f32 %v8145_v39, %v1491_v63 }
 0x31a   : > { %v8277_v18 = vpop.eup %7056  ;;  %7068 = vpow2.f32 %v1608_v17 }
 0x31b   : > { %v1604_v33 = vmul.f32 1.442695, %v1559_v37  ;;  %v1672_v38 = vsel %vm1449_vm2, %v8277_v18, 0.0 }
 0x31c   : > { %1673 = vadd.xlane.f32.xlu1 %v1672_v38 }
 0x31d   : > { %7070 = vpow2.f32 %v1604_v33 }
 0x31e   : > { %v8281_v44 = vpop.eup %7058 }
 0x31f   : > { %v1666_v57 = vsel %vm1449_vm2, %v8281_v44, 0.0  ;;  %v8285_v12 = vpop.eup %7060 }
 0x320   : > { %1667 = vadd.xlane.f32.xlu0 %v1666_v57  ;;  %v1675_v39 = vsel %vm1449_vm2, %v8285_v12, 0.0 }
 0x322   : > { %v8287_v2 = vpop.eup %7062 }
 0x323   : > { %v8291_v22 = vpop.eup %7064  ;;  %v1684_v40 = vsel %vm1449_vm2, %v8287_v2, 0.0 }
 0x324   : > { %1676 = vadd.xlane.f32.xlu0 %v1675_v39  ;;  %1685 = vadd.xlane.f32.xlu1 %v1684_v40  ;;  %v1669_v0 = vsel %vm1449_vm2, %v8291_v22, 0.0 }
 0x326   : > { %v8295_v29 = vpop.eup %7066 }
 0x327   : > { %v1678_v4 = vsel %vm1449_vm2, %v8295_v29, 0.0  ;;  %v8301_v45 = vpop.eup %7068 }
 0x328   : > { %v1506_v49 = vpop.xlane.xlu1 %1505  ;;  %1670 = vadd.xlane.f32.xlu0 %v1669_v0  ;;  %1679 = vadd.xlane.f32.xlu1 %v1678_v4  ;;  %v1687_v3 = vsel %vm1449_vm2, %v8301_v45, 0.0  ;;  %v721_v4 = vadd.f32 %v7700_v30, %v7746_v27  ;;  %v725_v0 = vadd.f32 %v7720_v51, %v7746_v27 }
 0x329   : > { %v1564_v9 = vsub.f32 %v8150_v15, %v1506_v49 }
 0x32a   : > { %v8304_v25 = vpop.eup %7070 }
 0x32b   : > { %v1614_v55 = vmul.f32 1.442695, %v1564_v9  ;;  %v1681_v61 = vsel %vm1449_vm2, %v8304_v25, 0.0 }
 0x32c   : > { %1682 = vadd.xlane.f32.xlu0 %v1681_v61  ;;  %1688 = vadd.xlane.f32.xlu1 %v1687_v3  ;;  %v1509_v37 = vpop.xlane.xlu0 %1508  ;;  %v8323_v3 = vpack.c.bf16 %v725_v0, %v721_v4 }
 0x32d   : > { %7072 = vpow2.f32 %v1614_v55  ;;  %v1565_v39 = vsub.f32 %v8155_v7, %v1509_v37 }
 0x32e   : > { %10194 = vst [vmem:[#allocation50_spill] sm:$0xff] %v8323_v3 }
 0x32f   : > { %v1616_v55 = vmul.f32 1.442695, %v1565_v39 }
 0x330   : > { %v1530_v17 = vpop.xlane.xlu1 %1529 }
 0x331   : > { %v1572_v63 = vsub.f32 %v8160_v34, %v1530_v17 }
 0x333   : > { %v1630_v33 = vmul.f32 1.442695, %v1572_v63 }
 0x334   : > { %v1500_v38 = vpop.xlane.xlu1 %1499  ;;  %v1533_v57 = vpop.xlane.xlu0 %1532 }
 0x335   : > { %7074 = vpow2.f32 %v1630_v33  ;;  %v1562_v15 = vsub.f32 %v8165_v28, %v1500_v38  ;;  %v1573_v61 = vsub.f32 %v8168_v20, %v1533_v57 }
 0x337   : > { %v1610_v40 = vmul.f32 1.442695, %v1562_v15  ;;  %v1632_v30 = vmul.f32 1.442695, %v1573_v61 }
 0x338   : > { %v1524_v49 = vpop.xlane.xlu1 %1523  ;;  %v1503_v17 = vpop.xlane.xlu0 %1502 }
 0x339   : > { %7076 = vpow2.f32 %v1610_v40  ;;  %v1570_v34 = vsub.f32 %v8178_v26, %v1524_v49  ;;  %v1563_v51 = vsub.f32 %v8171_v47, %v1503_v17  ;;  %v735_v17 = vadd.f32 %v7750_v31, %v7746_v27 }
 0x33a   : > { %v8318_v9 = vpop.eup %7072 }
 0x33b   : > { %v1626_v28 = vmul.f32 1.442695, %v1570_v34  ;;  %v1696_v7 = vsel %vm1449_vm2, %v8318_v9, 0.0  ;;  %v1612_v20 = vmul.f32 1.442695, %v1563_v51  ;;  %v711_v51 = vadd.f32 %v7678_v13, %v7746_v27 }
 0x33c   : > { %1697 = vadd.xlane.f32.xlu0 %v1696_v7  ;;  %v1527_v33 = vpop.xlane.xlu0 %1526  ;;  %v731_v7 = vadd.f32 %v7736_v6, %v7746_v27 }
 0x33d   : > { %7078 = vpow2.f32 %v1626_v28  ;;  %2103 = vrot.lane.b32.xlu1 %v8323_v3, %s7434_s23  ;;  %v1571_v15 = vsub.f32 %v8188_v10, %v1527_v33  ;;  %v1518_v28 = vpop.xlane.xlu1 %1517 }
 0x33e   : > { %7080 = vpow2.f32 %v1616_v55  ;;  %v1568_v31 = vsub.f32 %v8183_v59, %v1518_v28 }
 0x33f   : > { %7082 = vpow2.f32 %v1632_v30  ;;  %v1628_v40 = vmul.f32 1.442695, %v1571_v15  ;;  %v8361_v30 = vpack.c.bf16 %v735_v17, %v731_v7 }
 0x340   : > { %7084 = vpow2.f32 %v1612_v20  ;;  %v715_v20 = vadd.f32 %v7688_v21, %v7746_v27 }
 0x341   : > { %7086 = vpow2.f32 %v1628_v40  ;;  %v1542_v33 = vpop.xlane.xlu1 %1541 }
 0x342   : > { %v8328_v26 = vpop.eup %7074  ;;  %v1576_v28 = vsub.f32 %v8198_v24, %v1542_v33 }
 0x343   : > { %v1720_v63 = vsel %vm1449_vm2, %v8328_v26, 0.0 }
 0x344   : > { %1721 = vadd.xlane.f32.xlu0 %v1720_v63  ;;  %v1521_v63 = vpop.xlane.xlu0 %1520 }
 0x345   : > { %v1512_v15 = vpop.xlane.xlu1 %1511 }
 0x346   : > { %v8332_v37 = vpop.eup %7076  ;;  %v1566_v13 = vsub.f32 %v8201_v14, %v1512_v15 }
 0x347   : > { %v1690_v38 = vsel %vm1449_vm2, %v8332_v37, 0.0 }
 0x348   : > { %1691 = vadd.xlane.f32.xlu0 %v1690_v38  ;;  %v8369_v38 = vpack.c.bf16 %v715_v20, %v711_v51  ;;  %v1545_v6 = vpop.xlane.xlu0 %1544  ;;  %v1618_v21 = vmul.f32 1.442695, %v1566_v13 }
 0x349   : > { %v1536_v40 = vpop.xlane.xlu1 %1535  ;;  %v1577_v20 = vsub.f32 %v8208_v32, %v1545_v6 }
 0x34a   : > { %v8337_v57 = vpop.eup %7078  ;;  %10195 = vst [vmem:[#allocation51_spill] sm:$0xff] %v8369_v38  ;;  %v1574_v27 = vsub.f32 %v8215_v35, %v1536_v40  ;;  %v1638_v35 = vmul.f32 1.442695, %v1576_v28 }
 0x34b   : > { %v1714_v47 = vsel %vm1449_vm2, %v8337_v57, 0.0  ;;  %v8341_v39 = vpop.eup %7080 }
 0x34c   : > { %1715 = vadd.xlane.f32.xlu0 %v1714_v47  ;;  %v1699_v4 = vsel %vm1449_vm2, %v8341_v39, 0.0  ;;  %v8345_v0 = vpop.eup %7082  ;;  %v1622_v47 = vmul.f32 1.442695, %v1568_v31  ;;  %v1634_v7 = vmul.f32 1.442695, %v1574_v27 }
 0x34d   : > { %v1723_v49 = vsel %vm1449_vm2, %v8345_v0, 0.0  ;;  %v8349_v10 = vpop.eup %7084  ;;  %v1640_v31 = vmul.f32 1.442695, %v1577_v20 }
 0x34e   : > { %v1693_v34 = vsel %vm1449_vm2, %v8349_v10, 0.0  ;;  %v8353_v55 = vpop.eup %7086  ;;  %7088 = vpow2.f32 %v1622_v47 }
 0x34f   : > { %v1717_v61 = vsel %vm1449_vm2, %v8353_v55, 0.0  ;;  %7090 = vpow2.f32 %v1618_v21 }
 0x350   : > { %1700 = vadd.xlane.f32.xlu0 %v1699_v4  ;;  %v1515_v4 = vpop.xlane.xlu0 %1514  ;;  %7092 = vpow2.f32 %v1634_v7 }
 0x354   : > { %1724 = vadd.xlane.f32.xlu0 %v1723_v49  ;;  %v1567_v49 = vsub.f32 %v8218_v58, %v1515_v4 }
 0x356   : > { %v1620_v17 = vmul.f32 1.442695, %v1567_v49 }
 0x358   : > { %1694 = vadd.xlane.f32.xlu0 %v1693_v34  ;;  %v1539_v34 = vpop.xlane.xlu0 %1538  ;;  %7094 = vpow2.f32 %v1620_v17 }
 0x359   : > { %v1575_v51 = vsub.f32 %v8225_v19, %v1539_v34 }
 0x35b   : > { %v1636_v15 = vmul.f32 1.442695, %v1575_v51  ;;  %v8381_v58 = vpop.eup %7088 }
 0x35c   : > { %v1708_v19 = vsel %vm1449_vm2, %v8381_v58, 0.0 }
 0x361   : > { %1718 = vadd.xlane.f32.xlu1 %v1717_v61  ;;  %v1569_v61 = vsub.f32 %v8195_v8, %v1521_v63  ;;  %v8385_v63 = vpop.eup %7090 }
 0x362   : > { %v1702_v33 = vsel %vm1449_vm2, %v8385_v63, 0.0  ;;  %v8389_v6 = vpop.eup %7092 }
 0x363   : > { %v1624_v59 = vmul.f32 1.442695, %v1569_v61  ;;  %v1726_v40 = vsel %vm1449_vm2, %v8389_v6, 0.0 }
 0x365   : > { %7096 = vpow2.f32 %v1624_v59  ;;  %v8391_v13 = vpop.eup %7094 }
 0x366   : > { %7098 = vpow2.f32 %v1636_v15  ;;  %v1705_v49 = vsel %vm1449_vm2, %v8391_v13, 0.0 }
 0x367   : > { %7100 = vpow2.f32 %v1638_v35 }
 0x368   : > { %7102 = vpow2.f32 %v1640_v31 }
 0x36e   : > { %2105 = vrot.lane.b32.xlu0 %v8361_v30, %s7434_s23 }
 0x372   : > { %2101 = vrot.lane.b32.xlu1 %v8369_v38, %s7434_s23  ;;  %v8395_v4 = vpop.eup %7096 }
 0x373   : > { %v8399_v34 = vpop.eup %7098  ;;  %v1711_v61 = vsel %vm1449_vm2, %v8395_v4, 0.0 }
 0x374   : > { %v8403_v7 = vpop.eup %7100  ;;  %v1729_v51 = vsel %vm1449_vm2, %v8399_v34, 0.0 }
 0x375   : > { %v8407_v59 = vpop.eup %7102 }
 0x385   : > { %v1650_v14 = vpop.xlane.xlu1 %1649 }
 0x389   : > { %v1644_v8 = vpop.xlane.xlu1 %1643 }
 0x38d   : > { %1709 = vadd.xlane.f32.xlu0 %v1708_v19  ;;  %v1653_v24 = vpop.xlane.xlu0 %1652 }
 0x38e   : > { %7104 = vrcp.f32 %v1653_v24 }
 0x38f   : > { %v1662_v32 = vpop.xlane.xlu1 %1661  ;;  %7106 = vrcp.f32 %v1644_v8  ;;  %v1735_v8 = vsel %vm1449_vm2, %v8407_v59, 0.0 }
 0x390   : > { %7108 = vrcp.f32 %v1650_v14  ;;  %v1732_v14 = vsel %vm1449_vm2, %v8403_v7, 0.0 }
 0x391   : > { %1703 = vadd.xlane.f32.xlu0 %v1702_v33  ;;  %v1647_v47 = vpop.xlane.xlu0 %1646 }
 0x392   : > { %7110 = vrcp.f32 %v1647_v47 }
 0x393   : > { %v1656_v21 = vpop.xlane.xlu1 %1655 }
 0x395   : > { %1727 = vadd.xlane.f32.xlu0 %v1726_v40  ;;  %v1665_v27 = vpop.xlane.xlu0 %1664 }
 0x396   : > { %7112 = vrcp.f32 %v1665_v27  ;;  %1706 = vadd.xlane.f32.xlu1 %v1705_v49 }
 0x397   : > { %7114 = vrcp.f32 %v1656_v21 }
 0x398   : > { %7116 = vrcp.f32 %v1662_v32 }
 0x399   : > { %1712 = vadd.xlane.f32.xlu0 %v1711_v61  ;;  %v1659_v17 = vpop.xlane.xlu0 %1658 }
 0x39a   : > { %7118 = vrcp.f32 %v1659_v17  ;;  %1730 = vadd.xlane.f32.xlu1 %v1729_v51 }
 0x39b   : > { %v7105_v28 = vpop.eup %7104 }
 0x39c   : > { %v7107_v20 = vpop.eup %7106  ;;  %v1773_v31 = vmul.f32 %v7105_v28, %v8245_v43 }
 0x39d   : > { %1733 = vadd.xlane.f32.xlu0 %v1732_v14  ;;  %v7109_v15 = vpop.eup %7108  ;;  %v1770_v19 = vmul.f32 %v7107_v20, %v8241_v42  ;;  %v10197_v14 = vld [vmem:[#allocation4_spill] sm:$0xff] }
 0x39e   : > { %v1772_v32 = vmul.f32 %v7109_v15, %v8237_v23 }
 0x39f   : > { %v7111_v35 = vpop.eup %7110 }
 0x3a0   : > { %v1771_v24 = vmul.f32 %v7111_v35, %v8247_v50  ;;  %v1803_v47 = vpack.c.bf16 %v1773_v31, %v1772_v32 }
 0x3a1   : > { %1736 = vadd.xlane.f32.xlu0 %v1735_v8  ;;  %v10198_v8 = vld [vmem:[#allocation3_spill] sm:$0xff] }
 0x3a2   : > { %v1802_v33 = vpack.c.bf16 %v1771_v24, %v1770_v19  ;;  %v10199_v19 = vld [vmem:[#allocation20_spill] sm:$0xff] }
 0x3a3   : > { %v7113_v40 = vpop.eup %7112 }
 0x3a4   : > { %6550 = vmatprep.mubr.msk.bf16.mxu0 %vm1449_vm2, %v1802_v33  ;;  %v7115_v21 = vpop.eup %7114  ;;  %v1777_v42 = vmul.f32 %v7113_v40, %v8255_v62 }
 0x3a5   : > { %6551 = vmatmul.mubr.msk.bf16.vlgmr.msra.gmra.mxu0 %vm1449_vm2, %v1803_v47  ;;  %v7117_v27 = vpop.eup %7116  ;;  %v1774_v50 = vmul.f32 %v7115_v21, %v8259_v1  ;;  %v1674_v17 = vpop.xlane.xlu1 %1673 }
 0x3a6   : > { %6575 = vmatpush3.bf16.msra.mxu0 %v8021_v52  ;;  %v1776_v61 = vmul.f32 %v7117_v27, %v8251_v36  ;;  %v10200_v27 = vld [vmem:[#allocation9_spill] sm:$0xff] }
 0x3a7   : > { %v7119_v43 = vpop.eup %7118  ;;  %6576 = vmatprep.subr.bf16.mxu0 %v8011_v60 }
 0x3a8   : > { %v1775_v23 = vmul.f32 %v7119_v43, %v8266_v41  ;;  %v1805_v28 = vpack.c.bf16 %v1777_v42, %v1776_v61  ;;  %v10201_v42 = vld [vmem:[#allocation15_spill] sm:$0xff] }
 0x3a9   : > { %v1668_v49 = vpop.xlane.xlu0 %1667 }
 0x3aa   : > { %6577 = vmatpush3.bf16.msra.mxu0 %v8011_v60  ;;  %v1804_v51 = vpack.c.bf16 %v1775_v23, %v1774_v50 }
 0x3ab   : > { %6578 = vmatprep.subr.bf16.mxu0 %v8009_v11  ;;  %2353 = vrot.lane.b32.xlu1 %v7642_v53, %s7435_s19 }
 0x3ac   : > { %6554 = vmatprep.mubr.msk.bf16.mxu0 %vm1449_vm2, %v1804_v51 }
 0x3ad   : > { %6555 = vmatmul.mubr.msk.bf16.gmra.mxu0 %vm1449_vm2, %v1805_v28  ;;  %v1677_v52 = vpop.xlane.xlu0 %1676  ;;  %v1686_v62 = vpop.xlane.xlu1 %1685 }
 0x3ae   : > { %6579 = vmatpush3.bf16.msra.mxu0 %v8009_v11  ;;  %7120 = vrcp.f32 %v1677_v52  ;;  %v10206_v52 = vld [vmem:[#allocation11_spill] sm:$0xff] }
 0x3af   : > { %6580 = vmatprep.subr.bf16.mxu0 %v8013_v16  ;;  %7122 = vrcp.f32 %v1668_v49  ;;  %2448 = vrot.lane.b32.xlu1 %v7722_v54, %s7435_s19  ;;  %v10203_v49 = vld [vmem:[#allocation5_spill] sm:$0xff] }
 0x3b0   : > { %7124 = vrcp.f32 %v1674_v17  ;;  %v10204_v17 = vld [vmem:[#allocation19_spill] sm:$0xff] }
 0x3b1   : > { %v1671_v60 = vpop.xlane.xlu0 %1670  ;;  %v1680_v36 = vpop.xlane.xlu1 %1679 }
 0x3b2   : > { %6581 = vmatpush3.bf16.msra.mxu0 %v8013_v16  ;;  %7126 = vrcp.f32 %v1671_v60  ;;  %v10196_v16 = vld [vmem:[#allocation6_spill] sm:$0xff]  ;;  %v10208_v60 = vld [vmem:[#allocation12_spill] sm:$0xff] }
 0x3b3   : > { %6934 = vmatprep.subr.msk.bf16.mxu0 %vm992_vm1, %v7844_v48  ;;  %7128 = vrcp.f32 %v1680_v36  ;;  %2355 = vrot.lane.b32.xlu1 %v7666_v5, %s7435_s19 }
 0x3b5   : > { %v1683_v11 = vpop.xlane.xlu0 %1682  ;;  %v1689_v1 = vpop.xlane.xlu1 %1688 }
 0x3b6   : > { %7130 = vrcp.f32 %v1683_v11  ;;  %v10209_v11 = vld [vmem:[#allocation17_spill] sm:$0xff] }
 0x3b7   : > { %7132 = vrcp.f32 %v1689_v1  ;;  %2351 = vrot.lane.b32.xlu0 %v7632_v46, %s7435_s19  ;;  %2545 = vrot.lane.b32.xlu1 %v7724_v56, %s7435_s19 }
 0x3b8   : > { %7134 = vrcp.f32 %v1686_v62 }
 0x3bb   : > { %2450 = vrot.lane.b32.xlu0 %v10196_v16, %s7435_s19  ;;  %v7121_v41 = vpop.eup %7120  ;;  %2452 = vrot.lane.b32.xlu1 %v10197_v14, %s7435_s19 }
 0x3bc   : > { %v7123_v20 = vpop.eup %7122  ;;  %v1781_v31 = vmul.f32 %v7121_v41, %v8285_v12  ;;  %v10211_v41 = vld [vmem:[#allocation16_spill] sm:$0xff] }
 0x3bd   : > { %v7125_v15 = vpop.eup %7124  ;;  %v1778_v24 = vmul.f32 %v7123_v20, %v8281_v44 }
 0x3be   : > { %v1780_v47 = vmul.f32 %v7125_v15, %v8277_v18  ;;  %v10202_v18 = vld [vmem:[#allocation49_spill] sm:$0xff]  ;;  %v10212_v15 = vld [vmem:[#allocation23_spill] sm:$0xff] }
 0x3bf   : > { %v7127_v35 = vpop.eup %7126  ;;  %2357 = vrot.lane.b32.xlu0 %v10198_v8, %s7435_s19  ;;  %2642 = vrot.lane.b32.xlu1 %v10199_v19, %s7435_s19 }
 0x3c0   : > { %v1779_v32 = vmul.f32 %v7127_v35, %v8291_v22  ;;  %v7129_v33 = vpop.eup %7128  ;;  %v1807_v43 = vpack.c.bf16 %v1781_v31, %v1780_v47  ;;  %v10213_v35 = vld [vmem:[#allocation26_spill] sm:$0xff] }
 0x3c1   : > { %v1782_v50 = vmul.f32 %v7129_v33, %v8295_v29  ;;  %v10216_v47 = vld [vmem:[#allocation14_spill] sm:$0xff] }
 0x3c2   : > { %v1806_v40 = vpack.c.bf16 %v1779_v32, %v1778_v24  ;;  %v10214_v24 = vld [vmem:[#allocation24_spill] sm:$0xff]  ;;  %v10215_v32 = vld [vmem:[#allocation22_spill] sm:$0xff] }
 0x3c3   : > { %v7131_v21 = vpop.eup %7130  ;;  %2547 = vrot.lane.b32.xlu0 %v10200_v27, %s7435_s19  ;;  %2549 = vrot.lane.b32.xlu1 %v10201_v42, %s7435_s19 }
 0x3c4   : > { %v7133_v12 = vpop.eup %7132  ;;  %6566 = vmatprep.mubr.msk.bf16.mxu1 %vm1449_vm2, %v1806_v40  ;;  %v1783_v44 = vmul.f32 %v7131_v21, %v8304_v25  ;;  %v10205_v25 = vld [vmem:[#allocation10_spill] sm:$0xff]  ;;  %v2104_v21 = vpop.permute.xlu1 %2103 }
 0x3c5   : > { %6567 = vmatmul.mubr.msk.bf16.vlgmr.msra.gmra.mxu1 %vm1449_vm2, %v1807_v43  ;;  %v7135_v22 = vpop.eup %7134  ;;  %v1785_v61 = vmul.f32 %v7133_v12, %v8301_v45  ;;  %v1698_v51 = vpop.xlane.xlu0 %1697  ;;  %v10207_v45 = vld [vmem:[#allocation13_spill] sm:$0xff]  ;;  %v10217_v43 = vld [vmem:[#allocation18_spill] sm:$0xff] }
 0x3c6   : > { %6591 = vmatpush3.bf16.msra.mxu1 %v10202_v18  ;;  %v1808_v23 = vpack.c.bf16 %v1783_v44, %v1782_v50  ;;  %v1784_v29 = vmul.f32 %v7135_v22, %v8287_v2  ;;  %v10210_v2 = vld [vmem:[#allocation27_spill] sm:$0xff]  ;;  %v10218_v50 = vld [vmem:[#allocation25_spill] sm:$0xff] }
 0x3c7   : > { %2454 = vrot.lane.b32.xlu0 %v10203_v49, %s7435_s19  ;;  %2646 = vrot.lane.b32.xlu1 %v10204_v17, %s7435_s19 }
 0x3c8   : > { %6570 = vmatprep.mubr.msk.bf16.mxu1 %vm1449_vm2, %v1808_v23  ;;  %v1809_v28 = vpack.c.bf16 %v1785_v61, %v1784_v29  ;;  %v10219_v29 = vld [vmem:[#allocation21_spill] sm:$0xff] }
 0x3cb   : > { %2644 = vrot.lane.b32.xlu0 %v10205_v25, %s7435_s19  ;;  %3175 = vrot.lane.b32.xlu1 %v10206_v52, %s7433_s22 }
 0x3cd   : > { %6571 = vmatmul.mubr.msk.bf16.gmra.mxu1 %vm1449_vm2, %v1809_v28  ;;  %v1722_v62 = vpop.xlane.xlu0 %1721 }
 0x3cf   : > { %2551 = vrot.lane.b32.xlu0 %v10207_v45, %s7435_s19  ;;  %3173 = vrot.lane.b32.xlu1 %v10208_v60, %s7433_s22 }
 0x3d1   : > { %v1692_v36 = vpop.xlane.xlu0 %1691 }
 0x3d3   : > { %2648 = vrot.lane.b32.xlu0 %v10209_v11, %s7435_s19  ;;  %3355 = vrot.lane.b32.xlu1 %v10210_v2, %s7433_s22 }
 0x3d5   : > { %v1716_v1 = vpop.xlane.xlu0 %1715 }
 0x3d7   : > { %3177 = vrot.lane.b32.xlu0 %v7844_v48, %s7433_s22  ;;  %3353 = vrot.lane.b32.xlu1 %v10211_v41, %s7433_s22 }
 0x3d9   : > { %v1701_v20 = vpop.xlane.xlu0 %1700 }
 0x3da   : > { %7136 = vrcp.f32 %v1701_v20 }
 0x3db   : > { %3171 = vrot.lane.b32.xlu0 %v10212_v15, %s7433_s22  ;;  %3349 = vrot.lane.b32.xlu1 %v10213_v35, %s7433_s22  ;;  %7138 = vrcp.f32 %v1692_v36 }
 0x3dc   : > { %7140 = vrcp.f32 %v1698_v51 }
 0x3dd   : > { %v1725_v31 = vpop.xlane.xlu0 %1724 }
 0x3df   : > { %3266 = vrot.lane.b32.xlu0 %v10214_v24, %s7433_s22  ;;  %3444 = vrot.lane.b32.xlu1 %v10215_v32, %s7433_s22 }
 0x3e1   : > { %v1695_v33 = vpop.xlane.xlu0 %1694 }
 0x3e2   : > { %7142 = vrcp.f32 %v1695_v33 }
 0x3e3   : > { %3264 = vrot.lane.b32.xlu0 %v10216_v47, %s7433_s22  ;;  %3442 = vrot.lane.b32.xlu1 %v8361_v30, %s7433_s22  ;;  %7144 = vrcp.f32 %v1725_v31 }
 0x3e4   : > { %7146 = vrcp.f32 %v1716_v1 }
 0x3e5   : > { %v2106_v40 = vpop.permute.xlu0 %2105  ;;  %7148 = vrcp.f32 %v1722_v62 }
 0x3e6   : > { %6592 = vmatprep.subr.bf16.mxu1 %v2106_v40 }
 0x3e7   : > { %3262 = vrot.lane.b32.xlu0 %v10217_v43, %s7433_s22  ;;  %6593 = vmatpush3.bf16.msra.mxu1 %v2106_v40  ;;  %v7137_v44 = vpop.eup %7136 }
 0x3e8   : > { %3764 = vrot.lane.b32.xlu1 %v10206_v52, %s7435_s19  ;;  %6594 = vmatprep.subr.bf16.mxu1 %v2104_v21  ;;  %v7139_v22 = vpop.eup %7138  ;;  %v1789_v61 = vmul.f32 %v7137_v44, %v8341_v39  ;;  %v2378_v44 = vsel %vm992_vm1, %v10206_v52, 0 }
 0x3e9   : > { %v7141_v18 = vpop.eup %7140  ;;  %v1786_v28 = vmul.f32 %v7139_v22, %v8332_v37  ;;  %v2381_v37 = vsel %vm992_vm1, %v7844_v48, 0 }
 0x3ea   : > { %v1719_v12 = vpop.xlane.xlu1 %1718  ;;  %v1788_v36 = vmul.f32 %v7141_v18, %v8318_v9 }
 0x3eb   : > { %3351 = vrot.lane.b32.xlu0 %v10218_v50, %s7433_s22  ;;  %6595 = vmatpush3.bf16.msra.mxu1 %v2104_v21  ;;  %7150 = vrcp.f32 %v1719_v12 }
 0x3ec   : > { %3438 = vrot.lane.b32.xlu1 %v8369_v38, %s7433_s22  ;;  %v1811_v39 = vpack.c.bf16 %v1789_v61, %v1788_v36 }
 0x3ee   : > { %v2102_v51 = vpop.permute.xlu1 %2101 }
 0x3ef   : > { %v7143_v23 = vpop.eup %7142  ;;  %3260 = vrot.lane.b32.xlu0 %v10219_v29, %s7433_s22  ;;  %6596 = vmatprep.subr.bf16.mxu1 %v2102_v51 }
 0x3f0   : > { %v1787_v62 = vmul.f32 %v7143_v23, %v8349_v10  ;;  %6597 = vmatpush3.bf16.msra.mxu1 %v2102_v51  ;;  %v7145_v20 = vpop.eup %7144  ;;  %v2469_v23 = vsel %vm992_vm1, %v10219_v29, 0 }
 0x3f1   : > { %6938 = vmatprep.subr.msk.bf16.mxu1 %vm992_vm1, %v10214_v24  ;;  %v7147_v10 = vpop.eup %7146  ;;  %v1797_v33 = vmul.f32 %v7145_v20, %v8345_v0  ;;  %v2475_v0 = vsel %vm992_vm1, %v10216_v47, 0 }
 0x3f2   : > { %v1810_v1 = vpack.c.bf16 %v1787_v62, %v1786_v28  ;;  %v7149_v9 = vpop.eup %7148  ;;  %v1794_v40 = vmul.f32 %v7147_v10, %v8337_v57  ;;  %v2478_v57 = vsel %vm992_vm1, %v10214_v24, 0 }
 0x3f3   : > { %3766 = vrot.lane.b32.xlu0 %v7844_v48, %s7435_s19  ;;  %v1796_v12 = vmul.f32 %v7149_v9, %v8328_v26  ;;  %v2375_v26 = vsel %vm992_vm1, %v10208_v60, 0 }
 0x3f4   : > { %6582 = vmatprep.mubr.msk.bf16.mxu0 %vm1449_vm2, %v1810_v1 }
 0x3f5   : > { %6583 = vmatmul.mubr.msk.bf16.vlgmr.msra.gmra.mxu0 %vm1449_vm2, %v1811_v39  ;;  %v1815_v22 = vpack.c.bf16 %v1797_v33, %v1796_v12 }
 0x3f6   : > { %6607 = vmatpush3.bf16.xpose.msra.mxu0 %v2381_v37 }
 0x3f7   : > { %6935 = vmatprep.subr.msk.bf16.mxu0 %vm992_vm1, %v10206_v52  ;;  %3440 = vrot.lane.b32.xlu0 %v8323_v3, %s7433_s22  ;;  %v2472_v52 = vsel %vm992_vm1, %v10217_v43, 0 }
 0x3f8   : > { %v7151_v31 = vpop.eup %7150 }
 0x3f9   : > { %v1795_v21 = vmul.f32 %v7151_v31, %v8353_v55  ;;  %v2372_v55 = vsel %vm992_vm1, %v10212_v15, 0 }
 0x3fb   : > { %v1814_v48 = vpack.c.bf16 %v1795_v21, %v1794_v40 }
 0x3fd   : > { %6598 = vmatprep.mubr.msk.bf16.mxu1 %vm1449_vm2, %v1814_v48 }
 0x3fe   : > { %6609 = vmatpush3.bf16.xpose.msra.mxu0 %v2378_v44  ;;  %6599 = vmatmul.mubr.msk.bf16.vlgmr.msra.gmra.mxu1 %vm1449_vm2, %v1815_v22 }
 0x3ff   : > { %6936 = vmatprep.subr.msk.bf16.mxu0 %vm992_vm1, %v10208_v60  ;;  %6623 = vmatpush3.bf16.xpose.msra.mxu1 %v2478_v57 }
 0x400   : > { %6939 = vmatprep.subr.msk.bf16.mxu1 %vm992_vm1, %v10216_v47 }
 0x406   : > { %6611 = vmatpush3.bf16.xpose.msra.mxu0 %v2375_v26 }
 0x407   : > { %6937 = vmatprep.subr.msk.bf16.mxu0 %vm992_vm1, %v10212_v15  ;;  %6625 = vmatpush3.bf16.xpose.msra.mxu1 %v2475_v0 }
 0x408   : > { %6940 = vmatprep.subr.msk.bf16.mxu1 %vm992_vm1, %v10217_v43 }
 0x40e   : > { %6613 = vmatpush3.bf16.xpose.msra.mxu0 %v2372_v55 }
 0x40f   : > { %6942 = vmatprep.subr.msk.bf16.mxu0 %vm992_vm1, %v10210_v2  ;;  %6627 = vmatpush3.bf16.xpose.msra.mxu1 %v2472_v52 }
 0x410   : > { %6941 = vmatprep.subr.msk.bf16.mxu1 %vm992_vm1, %v10219_v29 }
 0x416   : > { %v1710_v18 = vpop.xlane.xlu0 %1709 }
 0x417   : > { %6629 = vmatpush3.bf16.xpose.msra.mxu1 %v2469_v23 }
 0x418   : > { %6946 = vmatprep.subr.msk.bf16.mxu1 %vm992_vm1, %v10215_v32 }
 0x41a   : > { %v1704_v61 = vpop.xlane.xlu0 %1703 }
 0x41b   : > { %7152 = vrcp.f32 %v1704_v61 }
 0x41c   : > { %7154 = vrcp.f32 %v1710_v18 }
 0x41e   : > { %v1728_v51 = vpop.xlane.xlu0 %1727 }
 0x41f   : > { %v1707_v28 = vpop.xlane.xlu1 %1706 }
 0x420   : > { %7156 = vrcp.f32 %v1707_v28 }
 0x421   : > { %7158 = vrcp.f32 %v1728_v51 }
 0x422   : > { %v1713_v62 = vpop.xlane.xlu0 %1712 }
 0x423   : > { %7160 = vrcp.f32 %v1713_v62  ;;  %v1731_v36 = vpop.xlane.xlu1 %1730 }
 0x424   : > { %7162 = vrcp.f32 %v1731_v36 }
 0x426   : > { %v1734_v1 = vpop.xlane.xlu0 %1733 }
 0x427   : > { %v2354_v39 = vpop.permute.xlu1 %2353  ;;  %7164 = vrcp.f32 %v1734_v1 }
 0x428   : > { %v7153_v20 = vpop.eup %7152 }
 0x429   : > { %v7155_v9 = vpop.eup %7154  ;;  %v1790_v21 = vmul.f32 %v7153_v20, %v8385_v63 }
 0x42a   : > { %v1737_v37 = vpop.xlane.xlu0 %1736  ;;  %v1792_v57 = vmul.f32 %v7155_v9, %v8381_v58 }
 0x42b   : > { %7166 = vrcp.f32 %v1737_v37  ;;  %v2449_v10 = vpop.permute.xlu1 %2448  ;;  %v2672_v37 = vsel %vm992_vm1, %v10215_v32, 0 }
 0x42d   : > { %v7157_v31 = vpop.eup %7156 }
 0x42e   : > { %v2352_v33 = vpop.permute.xlu0 %2351  ;;  %v7159_v40 = vpop.eup %7158  ;;  %v1791_v12 = vmul.f32 %v7157_v31, %v8391_v13  ;;  %v2569_v31 = vsel %vm992_vm1, %v10218_v50, 0 }
 0x42f   : > { %v2356_v44 = vpop.permute.xlu1 %2355  ;;  %v1798_v18 = vmul.f32 %v7159_v40, %v8389_v6 }
 0x430   : > { %v7161_v48 = vpop.eup %7160  ;;  %v1812_v22 = vpack.c.bf16 %v1791_v12, %v1790_v21 }
 0x431   : > { %v1793_v26 = vmul.f32 %v7161_v48, %v8395_v4  ;;  %v7163_v0 = vpop.eup %7162 }
 0x432   : > { %v2451_v55 = vpop.permute.xlu0 %2450  ;;  %6586 = vmatprep.mubr.msk.bf16.mxu0 %vm1449_vm2, %v1812_v22  ;;  %v1799_v23 = vmul.f32 %v7163_v0, %v8399_v34  ;;  %v2575_v34 = vsel %vm992_vm1, %v10210_v2, 0  ;;  %v2666_v22 = vsel %vm992_vm1, %v8323_v3, 0 }
 0x433   : > { %v1813_v52 = vpack.c.bf16 %v1793_v26, %v1792_v57  ;;  %v2546_v61 = vpop.permute.xlu1 %2545 }
 0x434   : > { %v1816_v63 = vpack.c.bf16 %v1799_v23, %v1798_v18  ;;  %v7165_v13 = vpop.eup %7164 }
 0x435   : > { %6587 = vmatmul.mubr.msk.bf16.gmra.mxu0 %vm1449_vm2, %v1813_v52  ;;  %v1800_v4 = vmul.f32 %v7165_v13, %v8403_v7 }
 0x436   : > { %6614 = vmatprep.mubr.msk.bf16.mxu0 %vm992_vm1, %v2352_v33  ;;  %v2358_v51 = vpop.permute.xlu0 %2357  ;;  %6602 = vmatprep.mubr.msk.bf16.mxu1 %vm1449_vm2, %v1816_v63  ;;  %v2669_v33 = vsel %vm992_vm1, %v8361_v30, 0 }
 0x437   : > { %v2453_v6 = vpop.permute.xlu1 %2452 }
 0x438   : > { %v7167_v58 = vpop.eup %7166 }
 0x439   : > { %v1801_v28 = vmul.f32 %v7167_v58, %v8407_v59 }
 0x43a   : > { %v2548_v62 = vpop.permute.xlu0 %2547 }
 0x43b   : > { %v1817_v36 = vpack.c.bf16 %v1801_v28, %v1800_v4  ;;  %v2643_v7 = vpop.permute.xlu1 %2642 }
 0x43d   : > { %6603 = vmatmul.mubr.msk.bf16.gmra.mxu1 %vm1449_vm2, %v1817_v36  ;;  %6615 = vmatmul.mubr.msk.bf16.vlgmr.msra.gmra.mxu0 %vm992_vm1, %v2354_v39  ;;  %v2572_v39 = vsel %vm992_vm1, %v10211_v41, 0 }
 0x43e   : > { %6639 = vmatpush3.bf16.xpose.msra.mxu0 %v2575_v34  ;;  %6618 = vmatprep.mubr.msk.bf16.mxu0 %vm992_vm1, %v2356_v44  ;;  %v2455_v1 = vpop.permute.xlu0 %2454  ;;  %v2566_v44 = vsel %vm992_vm1, %v10213_v35, 0 }
 0x43f   : > { %6630 = vmatprep.mubr.msk.bf16.mxu1 %vm992_vm1, %v2449_v10  ;;  %6943 = vmatprep.subr.msk.bf16.mxu0 %vm992_vm1, %v10211_v41  ;;  %v2550_v10 = vpop.permute.xlu1 %2549 }
 0x442   : > { %v2645_v59 = vpop.permute.xlu0 %2644 }
 0x443   : > { %v2647_v40 = vpop.permute.xlu1 %2646 }
 0x445   : > { %6619 = vmatmul.mubr.msk.bf16.gmra.mxu0 %vm992_vm1, %v2358_v51  ;;  %6631 = vmatmul.mubr.msk.bf16.vlgmr.msra.gmra.mxu1 %vm992_vm1, %v2451_v55  ;;  %v2663_v55 = vsel %vm992_vm1, %v8369_v38, 0 }
 0x446   : > { %6641 = vmatpush3.bf16.xpose.msra.mxu0 %v2572_v39  ;;  %6655 = vmatpush3.bf16.xpose.msra.mxu1 %v2672_v37  ;;  %v2552_v20 = vpop.permute.xlu0 %2551 }
 0x447   : > { %6634 = vmatprep.mubr.msk.bf16.mxu1 %vm992_vm1, %v2453_v6  ;;  %6944 = vmatprep.subr.msk.bf16.mxu0 %vm992_vm1, %v10218_v50  ;;  %v3176_v48 = vpop.permute.xlu1 %3175 }
 0x448   : > { %6646 = vmatprep.mubr.msk.bf16.mxu0 %vm992_vm1, %v2546_v61  ;;  %6947 = vmatprep.subr.msk.bf16.mxu1 %vm992_vm1, %v8361_v30 }
 0x44a   : > { %v2649_v9 = vpop.permute.xlu0 %2648 }
 0x44b   : > { %v3174_v26 = vpop.permute.xlu1 %3173 }
 0x44d   : > { %6635 = vmatmul.mubr.msk.bf16.gmra.mxu1 %vm992_vm1, %v2455_v1 }
 0x44e   : > { %6643 = vmatpush3.bf16.xpose.msra.mxu0 %v2569_v31  ;;  %6657 = vmatpush3.bf16.xpose.msra.mxu1 %v2669_v33  ;;  %v3178_v21 = vpop.permute.xlu0 %3177 }
 0x44f   : > { %6945 = vmatprep.subr.msk.bf16.mxu0 %vm992_vm1, %v10213_v35  ;;  %6948 = vmatprep.subr.msk.bf16.mxu1 %vm992_vm1, %v8323_v3  ;;  %v8613_v52 = vpop.permute.xlu1 %3355 }
 0x450   : > { %6662 = vmatprep.mubr.msk.bf16.mxu1 %vm992_vm1, %v2643_v7 }
 0x452   : > { %v3172_v12 = vpop.permute.xlu0 %3171 }
 0x453   : > { %v8617_v63 = vpop.permute.xlu1 %3353 }
 0x456   : > { %6645 = vmatpush3.bf16.xpose.msra.mxu0 %v2566_v44  ;;  %6659 = vmatpush3.bf16.xpose.msra.mxu1 %v2666_v22  ;;  %v3267_v57 = vpop.permute.xlu0 %3266 }
 0x457   : > { %6949 = vmatprep.subr.msk.bf16.mxu1 %vm992_vm1, %v8369_v38  ;;  %6670 = vmatprep.subr.bf16.mxu0 %v3178_v21  ;;  %v8624_v36 = vpop.permute.xlu1 %3349 }
 0x458   : > { %10221 = vst [vmem:[#allocation3_spill] sm:$0xff] %v8624_v36 }
 0x45a   : > { %v3265_v0 = vpop.permute.xlu0 %3264 }
 0x45d   : > { %6647 = vmatmul.mubr.msk.bf16.vlgmr.msra.gmra.mxu0 %vm992_vm1, %v2548_v62 }
 0x45e   : > { %6650 = vmatprep.mubr.msk.bf16.mxu0 %vm992_vm1, %v2550_v10  ;;  %6661 = vmatpush3.bf16.xpose.msra.mxu1 %v2663_v55  ;;  %v3263_v18 = vpop.permute.xlu0 %3262 }
 0x45f   : > { %6671 = vmatpush3.bf16.msra.mxu0 %v3178_v21  ;;  %6686 = vmatprep.subr.bf16.mxu1 %v3267_v57 }
 0x460   : > { %6672 = vmatprep.subr.bf16.mxu0 %v3176_v48 }
 0x462   : > { %v8620_v51 = vpop.permute.xlu0 %3351 }
 0x463   : > { %6673 = vmatpush3.bf16.msra.mxu0 %v3176_v48  ;;  %10220 = vst [vmem:[#allocation6_spill] sm:$0xff] %v8620_v51 }
 0x464   : > { %6674 = vmatprep.subr.bf16.mxu0 %v3174_v26 }
 0x465   : > { %6651 = vmatmul.mubr.msk.bf16.gmra.mxu0 %vm992_vm1, %v2552_v20  ;;  %6663 = vmatmul.mubr.msk.bf16.vlgmr.msra.gmra.mxu1 %vm992_vm1, %v2645_v59  ;;  %v6552_v23 = vpop.f32.mrf.mxu0  ;;  %v8631_v20 = vpop.permute.xlu1 %3444 }
 0x466   : > { %v6072_v13 = vpack.c.bf16 %v6552_v23, %v6552_v23  ;;  %6666 = vmatprep.mubr.msk.bf16.mxu1 %vm992_vm1, %v2647_v40  ;;  %6687 = vmatpush3.bf16.msra.mxu1 %v3267_v57  ;;  %v3261_v1 = vpop.permute.xlu0 %3260 }
 0x467   : > { %6675 = vmatpush3.bf16.msra.mxu0 %v3174_v26  ;;  %6688 = vmatprep.subr.bf16.mxu1 %v3265_v0  ;;  %v1880_v61 = vpop.f32.mrf.mxu0 }
 0x468   : > { %2321 = vst.msk [vmem:[#allocation2 + $0x8] sm:$0xf] %vm2318_vm3, %v6072_v13  ;;  %6676 = vmatprep.subr.bf16.mxu0 %v3172_v12  ;;  %v6070_v58 = vpack.c.bf16 %v1880_v61, %v1880_v61 }
 0x469   : > { %v6553_v4 = vpop.f32.mrf.mxu0 }
 0x46a   : > { %2319 = vst.msk [vmem:[#allocation2] sm:$0xf] %vm2318_vm3, %v6070_v58  ;;  %v6073_v28 = vpack.c.bf16 %v6553_v4, %v6553_v4  ;;  %6689 = vmatpush3.bf16.msra.mxu1 %v3265_v0 }
 0x46b   : > { %6677 = vmatpush3.bf16.msra.mxu0 %v3172_v12  ;;  %6690 = vmatprep.subr.bf16.mxu1 %v3263_v18  ;;  %v1883_v62 = vpop.f32.mrf.mxu0 }
 0x46c   : > { %2322 = vst.msk [vmem:[#allocation2 + $0xc] sm:$0xf] %vm2318_vm3, %v6073_v28  ;;  %6702 = vmatprep.subr.bf16.mxu0 %v8613_v52  ;;  %v6071_v6 = vpack.c.bf16 %v1883_v62, %v1883_v62 }
 0x46d   : > { %6667 = vmatmul.mubr.msk.bf16.gmra.mxu1 %vm992_vm1, %v2649_v9  ;;  %v6556_v34 = vpop.f32.mrf.mxu0 }
 0x46e   : > { %2320 = vst.msk [vmem:[#allocation2 + $0x4] sm:$0xf] %vm2318_vm3, %v6071_v6  ;;  %v6076_v7 = vpack.c.bf16 %v6556_v34, %v6556_v34  ;;  %6691 = vmatpush3.bf16.msra.mxu1 %v3263_v18 }
 0x46f   : > { %6692 = vmatprep.subr.bf16.mxu1 %v3261_v1  ;;  %v1896_v59 = vpop.f32.mrf.mxu0 }
 0x470   : > { %2325 = vst.msk [vmem:[#allocation2 + $0x18] sm:$0xf] %vm2318_vm3, %v6076_v7  ;;  %v6074_v39 = vpack.c.bf16 %v1896_v59, %v1896_v59 }
 0x471   : > { %v6557_v37 = vpop.f32.mrf.mxu0 }
 0x472   : > { %2323 = vst.msk [vmem:[#allocation2 + $0x10] sm:$0xf] %vm2318_vm3, %v6074_v39  ;;  %v6077_v10 = vpack.c.bf16 %v6557_v37, %v6557_v37  ;;  %6693 = vmatpush3.bf16.msra.mxu1 %v3261_v1 }
 0x473   : > { %6718 = vmatprep.subr.bf16.mxu1 %v8631_v20  ;;  %v1899_v9 = vpop.f32.mrf.mxu0 }
 0x474   : > { %2326 = vst.msk [vmem:[#allocation2 + $0x1c] sm:$0xf] %vm2318_vm3, %v6077_v10  ;;  %v6075_v31 = vpack.c.bf16 %v1899_v9, %v1899_v9 }
 0x476   : > { %2324 = vst.msk [vmem:[#allocation2 + $0x14] sm:$0xf] %vm2318_vm3, %v6075_v31 }
 0x485   : > { %v6568_v33 = vpop.f32.mrf.mxu1 }
 0x486   : > { %v6080_v40 = vpack.c.bf16 %v6568_v33, %v6568_v33 }
 0x487   : > { %v1973_v21 = vpop.f32.mrf.mxu1 }
 0x488   : > { %2329 = vst.msk [vmem:[#allocation2 + $0x28] sm:$0xf] %vm2318_vm3, %v6080_v40  ;;  %v6078_v12 = vpack.c.bf16 %v1973_v21, %v1973_v21 }
 0x489   : > { %v6569_v48 = vpop.f32.mrf.mxu1 }
 0x48a   : > { %2327 = vst.msk [vmem:[#allocation2 + $0x20] sm:$0xf] %vm2318_vm3, %v6078_v12  ;;  %v6081_v44 = vpack.c.bf16 %v6569_v48, %v6569_v48 }
 0x48b   : > { %v1976_v22 = vpop.f32.mrf.mxu1 }
 0x48c   : > { %2330 = vst.msk [vmem:[#allocation2 + $0x2c] sm:$0xf] %vm2318_vm3, %v6081_v44  ;;  %v6079_v57 = vpack.c.bf16 %v1976_v22, %v1976_v22 }
 0x48d   : > { %v6572_v26 = vpop.f32.mrf.mxu1 }
 0x48e   : > { %2328 = vst.msk [vmem:[#allocation2 + $0x24] sm:$0xf] %vm2318_vm3, %v6079_v57  ;;  %v6084_v0 = vpack.c.bf16 %v6572_v26, %v6572_v26 }
 0x48f   : > { %v1989_v55 = vpop.f32.mrf.mxu1 }
 0x490   : > { %2333 = vst.msk [vmem:[#allocation2 + $0x38] sm:$0xf] %vm2318_vm3, %v6084_v0  ;;  %v6082_v18 = vpack.c.bf16 %v1989_v55, %v1989_v55 }
 0x491   : > { %v6573_v23 = vpop.f32.mrf.mxu1 }
 0x492   : > { %2331 = vst.msk [vmem:[#allocation2 + $0x30] sm:$0xf] %vm2318_vm3, %v6082_v18  ;;  %v6085_v13 = vpack.c.bf16 %v6573_v23, %v6573_v23  ;;  %v8659_v23 = vld [vmem:[%s10069_s3 + $0x50] sm:$0xff] }
 0x493   : > { %v1992_v61 = vpop.f32.mrf.mxu1 }
 0x494   : > { %2334 = vst.msk [vmem:[#allocation2 + $0x3c] sm:$0xf] %vm2318_vm3, %v6085_v13  ;;  %v6083_v58 = vpack.c.bf16 %v1992_v61, %v1992_v61 }
 0x496   : > { %2332 = vst.msk [vmem:[#allocation2 + $0x34] sm:$0xf] %vm2318_vm3, %v6083_v58 }
 0x4b5   : > { %v6584_v4 = vpop.f32.mrf.mxu0 }
 0x4b6   : > { %v6088_v28 = vpack.c.bf16 %v6584_v4, %v6584_v4 }
 0x4b7   : > { %v2066_v62 = vpop.f32.mrf.mxu0 }
 0x4b8   : > { %2337 = vst.msk [vmem:[#allocation2 + $0x48] sm:$0xf] %vm2318_vm3, %v6088_v28  ;;  %v6086_v6 = vpack.c.bf16 %v2066_v62, %v2066_v62  ;;  %v8665_v28 = vld [vmem:[%s10069_s3 + $0x40] sm:$0xff] }
 0x4b9   : > { %v6585_v34 = vpop.f32.mrf.mxu0 }
 0x4ba   : > { %2335 = vst.msk [vmem:[#allocation2 + $0x40] sm:$0xf] %vm2318_vm3, %v6086_v6  ;;  %v6089_v1 = vpack.c.bf16 %v6585_v34, %v6585_v34 }
 0x4bb   : > { %v2069_v7 = vpop.f32.mrf.mxu0 }
 0x4bc   : > { %2338 = vst.msk [vmem:[#allocation2 + $0x4c] sm:$0xf] %vm2318_vm3, %v6089_v1  ;;  %v6087_v59 = vpack.c.bf16 %v2069_v7, %v2069_v7 }
 0x4be   : > { %2336 = vst.msk [vmem:[#allocation2 + $0x44] sm:$0xf] %vm2318_vm3, %v6087_v59  ;;  %v6600_v39 = vpop.f32.mrf.mxu1  ;;  %v8674_v59 = vld [vmem:[%s10069_s3 + $0x58] sm:$0xff] }
 0x4bf   : > { %v6096_v37 = vpack.c.bf16 %v6600_v39, %v6600_v39 }
 0x4c0   : > { %v2159_v10 = vpop.f32.mrf.mxu1 }
 0x4c1   : > { %2345 = vst.msk [vmem:[#allocation2 + $0x68] sm:$0xf] %vm2318_vm3, %v6096_v37  ;;  %v6094_v9 = vpack.c.bf16 %v2159_v10, %v2159_v10 }
 0x4c2   : > { %v6601_v31 = vpop.f32.mrf.mxu1 }
 0x4c3   : > { %2343 = vst.msk [vmem:[#allocation2 + $0x60] sm:$0xf] %vm2318_vm3, %v6094_v9  ;;  %v6097_v33 = vpack.c.bf16 %v6601_v31, %v6601_v31 }
 0x4c4   : > { %v2162_v40 = vpop.f32.mrf.mxu1 }
 0x4c5   : > { %2346 = vst.msk [vmem:[#allocation2 + $0x6c] sm:$0xf] %vm2318_vm3, %v6097_v33  ;;  %v6095_v21 = vpack.c.bf16 %v2162_v40, %v2162_v40 }
 0x4c7   : > { %2344 = vst.msk [vmem:[#allocation2 + $0x64] sm:$0xf] %vm2318_vm3, %v6095_v21 }
 0x4f5   : > { %v6588_v12 = vpop.f32.mrf.mxu0 }
 0x4f6   : > { %v6092_v48 = vpack.c.bf16 %v6588_v12, %v6588_v12 }
 0x4f7   : > { %v2082_v44 = vpop.f32.mrf.mxu0 }
 0x4f8   : > { %2341 = vst.msk [vmem:[#allocation2 + $0x58] sm:$0xf] %vm2318_vm3, %v6092_v48  ;;  %v6090_v22 = vpack.c.bf16 %v2082_v44, %v2082_v44 }
 0x4f9   : > { %v6589_v57 = vpop.f32.mrf.mxu0 }
 0x4fa   : > { %2339 = vst.msk [vmem:[#allocation2 + $0x50] sm:$0xf] %vm2318_vm3, %v6090_v22  ;;  %v6093_v26 = vpack.c.bf16 %v6589_v57, %v6589_v57 }
 0x4fb   : > { %v2085_v0 = vpop.f32.mrf.mxu0 }
 0x4fc   : > { %2342 = vst.msk [vmem:[#allocation2 + $0x5c] sm:$0xf] %vm2318_vm3, %v6093_v26  ;;  %v6091_v55 = vpack.c.bf16 %v2085_v0, %v2085_v0 }
 0x4fd   : > { %v6604_v18 = vpop.f32.mrf.mxu1  ;;  %v6616_v13 = vpop.f32.mrf.mxu0 }
 0x4fe   : > { %2340 = vst.msk [vmem:[#allocation2 + $0x54] sm:$0xf] %vm2318_vm3, %v6091_v55  ;;  %v6100_v61 = vpack.c.bf16 %v6604_v18, %v6604_v18  ;;  %v2741_v58 = vmul.f32 0.17677669, %v6616_v13 }
 0x4ff   : > { %v2175_v4 = vpop.f32.mrf.mxu1  ;;  %v2417_v62 = vpop.f32.mrf.mxu0 }
 0x500   : > { %2349 = vst.msk [vmem:[#allocation2 + $0x78] sm:$0xf] %vm2318_vm3, %v6100_v61  ;;  %v8669_v6 = vadd.f32 %v2741_v58, %v8659_v23  ;;  %v6098_v34 = vpack.c.bf16 %v2175_v4, %v2175_v4  ;;  %v2739_v1 = vmul.f32 0.17677669, %v2417_v62 }
 0x501   : > { %v6605_v7 = vpop.f32.mrf.mxu1  ;;  %v6617_v39 = vpop.f32.mrf.mxu0 }
 0x502   : > { %2347 = vst.msk [vmem:[#allocation2 + $0x70] sm:$0xf] %vm2318_vm3, %v6098_v34  ;;  %v8678_v37 = vadd.f32 %v2739_v1, %v8665_v28  ;;  %v6101_v10 = vpack.c.bf16 %v6605_v7, %v6605_v7  ;;  %v2742_v9 = vmul.f32 0.17677669, %v6617_v39  ;;  %v2809_v31 = vsel %vm1449_vm2, %v8669_v6, -inf  ;;  %v8702_v39 = vld [vmem:[%s10069_s3 + $0x48] sm:$0xff] }
 0x503   : > { %v2178_v33 = vpop.f32.mrf.mxu1  ;;  %2810 = vmax.xlane.f32.xlu0 %v2809_v31  ;;  %v2420_v40 = vpop.f32.mrf.mxu0 }
 0x504   : > { %2350 = vst.msk [vmem:[#allocation2 + $0x7c] sm:$0xf] %vm2318_vm3, %v6101_v10  ;;  %v8684_v21 = vadd.f32 %v2742_v9, %v8674_v59  ;;  %v6099_v12 = vpack.c.bf16 %v2178_v33, %v2178_v33  ;;  %v2803_v48 = vsel %vm1449_vm2, %v8678_v37, -inf  ;;  %v2740_v4 = vmul.f32 0.17677669, %v2420_v40 }
 0x505   : > { %2804 = vmax.xlane.f32.xlu1 %v2803_v48  ;;  %v6620_v44 = vpop.f32.mrf.mxu0  ;;  %v6632_v22 = vpop.f32.mrf.mxu1 }
 0x506   : > { %2348 = vst.msk [vmem:[#allocation2 + $0x74] sm:$0xf] %vm2318_vm3, %v6099_v12  ;;  %v2749_v57 = vmul.f32 0.17677669, %v6632_v22  ;;  %v2812_v13 = vsel %vm1449_vm2, %v8684_v21, -inf  ;;  %v8713_v48 = vadd.f32 %v2740_v4, %v8702_v39 }
 0x507   : > { %v2433_v26 = vpop.f32.mrf.mxu0  ;;  %v2514_v0 = vpop.f32.mrf.mxu1  ;;  %v2745_v22 = vmul.f32 0.17677669, %v6620_v44 }
 0x508   : > { %v8690_v55 = vadd.f32 %v2749_v57, %v8659_v23  ;;  %v2747_v18 = vmul.f32 0.17677669, %v2514_v0  ;;  %v8718_v57 = vld [vmem:[%s10069_s3 + $0x78] sm:$0xff] }
 0x509   : > { %2813 = vmax.xlane.f32.xlu1 %v2812_v13  ;;  %v6633_v61 = vpop.f32.mrf.mxu1  ;;  %v6621_v34 = vpop.f32.mrf.mxu0  ;;  %v8725_v13 = vld [vmem:[%s10069_s3 + $0x70] sm:$0xff] }
 0x50a   : > { %v2750_v58 = vmul.f32 0.17677669, %v6633_v61  ;;  %v8695_v62 = vadd.f32 %v2747_v18, %v8665_v28  ;;  %v2833_v1 = vsel %vm1449_vm2, %v8690_v55, -inf  ;;  %v2746_v33 = vmul.f32 0.17677669, %v6621_v34 }
 0x50b   : > { %v2517_v7 = vpop.f32.mrf.mxu1  ;;  %2834 = vmax.xlane.f32.xlu0 %v2833_v1  ;;  %v8733_v34 = vadd.f32 %v2745_v22, %v8725_v13  ;;  %v2436_v1 = vpop.f32.mrf.mxu0  ;;  %v8745_v22 = vld [vmem:[%s10069_s3 + $0x68] sm:$0xff] }
 0x50c   : > { %v8705_v10 = vadd.f32 %v2750_v58, %v8674_v59  ;;  %v2748_v9 = vmul.f32 0.17677669, %v2517_v7  ;;  %v2827_v0 = vsel %vm1449_vm2, %v8695_v62, -inf  ;;  %v8728_v58 = vadd.f32 %v2746_v33, %v8718_v57 }
 0x50d   : > { %v6636_v31 = vpop.f32.mrf.mxu1 }
 0x50e   : > { %v8708_v40 = vadd.f32 %v2748_v9, %v8702_v39  ;;  %v2836_v12 = vsel %vm1449_vm2, %v8705_v10, -inf  ;;  %v2753_v7 = vmul.f32 0.17677669, %v6636_v31  ;;  %v2806_v9 = vsel %vm1449_vm2, %v8713_v48, -inf }
 0x50f   : > { %2837 = vmax.xlane.f32.xlu1 %v2836_v12  ;;  %v2530_v18 = vpop.f32.mrf.mxu1  ;;  %2828 = vmax.xlane.f32.xlu0 %v2827_v0  ;;  %v2744_v12 = vmul.f32 0.17677669, %v2436_v1  ;;  %v2824_v33 = vsel %vm1449_vm2, %v8728_v58, -inf }
 0x510   : > { %v2830_v4 = vsel %vm1449_vm2, %v8708_v40, -inf  ;;  %v8748_v31 = vadd.f32 %v2753_v7, %v8725_v13  ;;  %v2751_v19 = vmul.f32 0.17677669, %v2530_v18 }
 0x511   : > { %v6637_v61 = vpop.f32.mrf.mxu1 }
 0x512   : > { %v2754_v44 = vmul.f32 0.17677669, %v6637_v61  ;;  %v2743_v61 = vmul.f32 0.17677669, %v2433_v26  ;;  %v8758_v26 = vadd.f32 %v2744_v12, %v8745_v22 }
 0x513   : > { %2831 = vmax.xlane.f32.xlu1 %v2830_v4  ;;  %2807 = vmax.xlane.f32.xlu0 %v2806_v9  ;;  %v2533_v17 = vpop.f32.mrf.mxu1  ;;  %v2821_v4 = vsel %vm1449_vm2, %v8733_v34, -inf }
 0x514   : > { %v8738_v0 = vadd.f32 %v2754_v44, %v8718_v57  ;;  %v8755_v44 = vld [vmem:[%s10069_s3 + $0x60] sm:$0xff]  ;;  %v2752_v1 = vmul.f32 0.17677669, %v2533_v17  ;;  %v2818_v12 = vsel %vm1449_vm2, %v8758_v26, -inf }
 0x515   : > { %v8763_v7 = vadd.f32 %v2743_v61, %v8755_v44  ;;  %v8773_v17 = vadd.f32 %v2751_v19, %v8755_v44 }
 0x516   : > { %v2848_v9 = vsel %vm1449_vm2, %v8738_v0, -inf  ;;  %v8768_v3 = vadd.f32 %v2752_v1, %v8745_v22 }
 0x517   : > { %2825 = vmax.xlane.f32.xlu1 %v2824_v33  ;;  %2822 = vmax.xlane.f32.xlu0 %v2821_v4  ;;  %v2845_v33 = vsel %vm1449_vm2, %v8748_v31, -inf  ;;  %v2815_v18 = vsel %vm1449_vm2, %v8763_v7, -inf  ;;  %v2839_v35 = vsel %vm1449_vm2, %v8773_v17, -inf }
 0x51b   : > { %2849 = vmax.xlane.f32.xlu1 %v2848_v9  ;;  %2846 = vmax.xlane.f32.xlu0 %v2845_v33  ;;  %v2842_v33 = vsel %vm1449_vm2, %v8768_v3, -inf }
 0x51d   : > { %v6648_v45 = vpop.f32.mrf.mxu0 }
 0x51e   : > { %v2757_v4 = vmul.f32 0.17677669, %v6648_v45 }
 0x51f   : > { %v2611_v56 = vpop.f32.mrf.mxu0  ;;  %2819 = vmax.xlane.f32.xlu1 %v2818_v12  ;;  %2816 = vmax.xlane.f32.xlu0 %v2815_v18 }
 0x520   : > { %v8780_v1 = vadd.f32 %v2757_v4, %v8659_v23  ;;  %v2755_v18 = vmul.f32 0.17677669, %v2611_v56 }
 0x521   : > { %v6649_v61 = vpop.f32.mrf.mxu0 }
 0x522   : > { %v2758_v9 = vmul.f32 0.17677669, %v6649_v61  ;;  %v2857_v4 = vsel %vm1449_vm2, %v8780_v1, -inf }
 0x523   : > { %2843 = vmax.xlane.f32.xlu1 %v2842_v33  ;;  %2840 = vmax.xlane.f32.xlu0 %v2839_v35  ;;  %v2614_v61 = vpop.f32.mrf.mxu0  ;;  %v8795_v35 = vadd.f32 %v2755_v18, %v8665_v28 }
 0x524   : > { %v8785_v19 = vadd.f32 %v2758_v9, %v8674_v59  ;;  %v2756_v9 = vmul.f32 0.17677669, %v2614_v61 }
 0x525   : > { %v6664_v45 = vpop.f32.mrf.mxu1  ;;  %v6652_v25 = vpop.f32.mrf.mxu0 }
 0x526   : > { %v2765_v14 = vmul.f32 0.17677669, %v6664_v45  ;;  %v2860_v12 = vsel %vm1449_vm2, %v8785_v19, -inf  ;;  %v2761_v61 = vmul.f32 0.17677669, %v6652_v25 }
 0x527   : > { %v2708_v50 = vpop.f32.mrf.mxu1  ;;  %2861 = vmax.xlane.f32.xlu1 %v2860_v12  ;;  %2858 = vmax.xlane.f32.xlu0 %v2857_v4 }
 0x528   : > { %v8792_v11 = vadd.f32 %v2765_v14, %v8659_v23  ;;  %v2763_v45 = vmul.f32 0.17677669, %v2708_v50  ;;  %v8803_v14 = vadd.f32 %v2756_v9, %v8702_v39  ;;  %v2851_v50 = vsel %vm1449_vm2, %v8795_v35, -inf }
 0x529   : > { %v6665_v33 = vpop.f32.mrf.mxu1 }
 0x52a   : > { %v2766_v54 = vmul.f32 0.17677669, %v6665_v33  ;;  %v2881_v56 = vsel %vm1449_vm2, %v8792_v11, -inf  ;;  %v8808_v18 = vadd.f32 %v2763_v45, %v8665_v28  ;;  %v2627_v28 = vpop.f32.mrf.mxu0 }
 0x52b   : > { %v2711_v36 = vpop.f32.mrf.mxu1  ;;  %2882 = vmax.xlane.f32.xlu0 %v2881_v56  ;;  %v2759_v45 = vmul.f32 0.17677669, %v2627_v28 }
 0x52c   : > { %v8800_v51 = vadd.f32 %v2766_v54, %v8674_v59  ;;  %v2764_v23 = vmul.f32 0.17677669, %v2711_v36  ;;  %v2854_v59 = vsel %vm1449_vm2, %v8803_v14, -inf  ;;  %v8818_v36 = vadd.f32 %v2761_v61, %v8725_v13 }
 0x52d   : > { %v6668_v4 = vpop.f32.mrf.mxu1  ;;  %v2875_v25 = vsel %vm1449_vm2, %v8808_v18, -inf }
 0x52e   : > { %v2884_v12 = vsel %vm1449_vm2, %v8800_v51, -inf  ;;  %v8813_v54 = vadd.f32 %v2764_v23, %v8702_v39  ;;  %v2769_v33 = vmul.f32 0.17677669, %v6668_v4  ;;  %v2869_v56 = vsel %vm1449_vm2, %v8818_v36, -inf }
 0x52f   : > { %2885 = vmax.xlane.f32.xlu1 %v2884_v12  ;;  %2852 = vmax.xlane.f32.xlu0 %v2851_v50  ;;  %v2724_v23 = vpop.f32.mrf.mxu1  ;;  %v8830_v12 = vadd.f32 %v2759_v45, %v8755_v44 }
 0x530   : > { %v2878_v9 = vsel %vm1449_vm2, %v8813_v54, -inf  ;;  %v8825_v39 = vadd.f32 %v2769_v33, %v8725_v13  ;;  %v2767_v61 = vmul.f32 0.17677669, %v2724_v23  ;;  %v6653_v33 = vpop.f32.mrf.mxu0 }
 0x531   : > { %v2863_v13 = vsel %vm1449_vm2, %v8830_v12, -inf }
 0x532   : > { %v2893_v50 = vsel %vm1449_vm2, %v8825_v39, -inf  ;;  %v8835_v4 = vadd.f32 %v2767_v61, %v8755_v44  ;;  %v2762_v44 = vmul.f32 0.17677669, %v6653_v33  ;;  %v2630_v45 = vpop.f32.mrf.mxu0  ;;  %v8867_v33 = vpop.permute.xlu1 %3442 }
 0x533   : > { %2855 = vmax.xlane.f32.xlu1 %v2854_v59  ;;  %2876 = vmax.xlane.f32.xlu0 %v2875_v25  ;;  %v6669_v25 = vpop.f32.mrf.mxu1  ;;  %10222 = vst [vmem:[#allocation9_spill] sm:$0xff] %v8867_v33 }
 0x534   : > { %v2887_v59 = vsel %vm1449_vm2, %v8835_v4, -inf  ;;  %v8848_v28 = vadd.f32 %v2762_v44, %v8718_v57  ;;  %v8869_v44 = vpop.permute.xlu0 %3766 }
 0x535   : > { %v2727_v61 = vpop.f32.mrf.mxu1  ;;  %10223 = vst [vmem:[#allocation15_spill] sm:$0xff] %v8869_v44 }
 0x537   : > { %2879 = vmax.xlane.f32.xlu1 %v2878_v9  ;;  %2870 = vmax.xlane.f32.xlu0 %v2869_v56  ;;  %v2770_v9 = vmul.f32 0.17677669, %v6669_v25  ;;  %v2760_v56 = vmul.f32 0.17677669, %v2630_v45  ;;  %v8871_v25 = vpop.permute.xlu1 %3764 }
 0x538   : > { %10224 = vst [vmem:[#allocation49_spill] sm:$0xff] %v8871_v25 }
 0x539   : > { %v8851_v23 = vadd.f32 %v2770_v9, %v8718_v57  ;;  %v8873_v9 = vpop.permute.xlu0 %3440 }
 0x53a   : > { %10225 = vst [vmem:[#allocation5_spill] sm:$0xff] %v8873_v9 }
 0x53b   : > { %2894 = vmax.xlane.f32.xlu0 %v2893_v50  ;;  %v2896_v50 = vsel %vm1449_vm2, %v8851_v23, -inf  ;;  %v8875_v45 = vpop.permute.xlu1 %3438 }
 0x53c   : > { %10226 = vst [vmem:[#allocation11_spill] sm:$0xff] %v8875_v45 }
 0x53f   : > { %2864 = vmax.xlane.f32.xlu0 %v2863_v13 }
 0x543   : > { %2888 = vmax.xlane.f32.xlu0 %v2887_v59 }
 0x548   : > { %3871 = vrot.lane.b32.xlu1 %v10214_v24, %s7435_s19  ;;  %v2872_v24 = vsel %vm1449_vm2, %v8848_v28, -inf }
 0x54c   : > { %3760 = vrot.lane.b32.xlu1 %v10212_v15, %s7435_s19  ;;  %v8856_v15 = vadd.f32 %v2760_v56, %v8745_v22 }
 0x54e   : > { %v2866_v57 = vsel %vm1449_vm2, %v8856_v15, -inf }
 0x559   : > { %3762 = vrot.lane.b32.xlu0 %v10208_v60, %s7435_s19  ;;  %v2768_v60 = vmul.f32 0.17677669, %v2727_v61 }
 0x55b   : > { %v8861_v13 = vadd.f32 %v2768_v60, %v8745_v22 }
 0x55d   : > { %v2890_v59 = vsel %vm1449_vm2, %v8861_v13, -inf }
 0x570   : > { %2873 = vmax.xlane.f32.xlu1 %v2872_v24 }
 0x574   : > { %2897 = vmax.xlane.f32.xlu1 %v2896_v50 }
 0x578   : > { %2867 = vmax.xlane.f32.xlu1 %v2866_v57 }
 0x57c   : > { %2891 = vmax.xlane.f32.xlu1 %v2890_v59 }
 0x58c   : > { %v2811_v22 = vpop.xlane.xlu0 %2810 }
 0x58d   : > { %v2901_v56 = vsub.f32 %v8669_v6, %v2811_v22 }
 0x58e   : > { %v2805_v24 = vpop.xlane.xlu1 %2804 }
 0x58f   : > { %v2935_v61 = vmul.f32 1.442695, %v2901_v56  ;;  %v2899_v60 = vsub.f32 %v8678_v37, %v2805_v24 }
 0x591   : > { %7168 = vpow2.f32 %v2935_v61  ;;  %v2931_v50 = vmul.f32 1.442695, %v2899_v60 }
 0x592   : > { %v2814_v57 = vpop.xlane.xlu1 %2813 }
 0x593   : > { %7170 = vpow2.f32 %v2931_v50  ;;  %v2902_v25 = vsub.f32 %v8684_v21, %v2814_v57 }
 0x594   : > { %v2835_v59 = vpop.xlane.xlu0 %2834 }
 0x595   : > { %v2909_v44 = vsub.f32 %v8690_v55, %v2835_v59  ;;  %v2937_v56 = vmul.f32 1.442695, %v2902_v25 }
 0x597   : > { %v2951_v33 = vmul.f32 1.442695, %v2909_v44 }
 0x598   : > { %v2838_v9 = vpop.xlane.xlu1 %2837  ;;  %v2829_v38 = vpop.xlane.xlu0 %2828 }
 0x599   : > { %v2910_v45 = vsub.f32 %v8705_v10, %v2838_v9  ;;  %7172 = vpow2.f32 %v2951_v33  ;;  %v2907_v6 = vsub.f32 %v8695_v62, %v2829_v38 }
 0x59b   : > { %v2953_v22 = vmul.f32 1.442695, %v2910_v45  ;;  %v2947_v37 = vmul.f32 1.442695, %v2907_v6 }
 0x59c   : > { %v2832_v24 = vpop.xlane.xlu1 %2831  ;;  %v2808_v61 = vpop.xlane.xlu0 %2807 }
 0x59d   : > { %7174 = vpow2.f32 %v2953_v22  ;;  %v2900_v55 = vsub.f32 %v8713_v48, %v2808_v61  ;;  %v2908_v10 = vsub.f32 %v8708_v40, %v2832_v24 }
 0x59e   : > { %v8883_v60 = vpop.eup %7168  ;;  %7176 = vpow2.f32 %v2947_v37 }
 0x59f   : > { %v3001_v21 = vsel %vm1449_vm2, %v8883_v60, 0.0  ;;  %7178 = vpow2.f32 %v2937_v56  ;;  %v2933_v38 = vmul.f32 1.442695, %v2900_v55  ;;  %v2949_v45 = vmul.f32 1.442695, %v2908_v10 }
 0x5a0   : > { %v8888_v44 = vpop.eup %7170  ;;  %v2826_v62 = vpop.xlane.xlu1 %2825  ;;  %3002 = vadd.xlane.f32.xlu0 %v3001_v21 }
 0x5a1   : > { %v2823_v33 = vpop.xlane.xlu0 %2822  ;;  %v2995_v9 = vsel %vm1449_vm2, %v8888_v44, 0.0  ;;  %7180 = vpow2.f32 %v2933_v38 }
 0x5a2   : > { %v2905_v25 = vsub.f32 %v8733_v34, %v2823_v33 }
 0x5a4   : > { %v2943_v48 = vmul.f32 1.442695, %v2905_v25  ;;  %v2850_v50 = vpop.xlane.xlu1 %2849  ;;  %2996 = vadd.xlane.f32.xlu0 %v2995_v9 }
 0x5a5   : > { %v2847_v57 = vpop.xlane.xlu0 %2846  ;;  %v2914_v40 = vsub.f32 %v8738_v0, %v2850_v50 }
 0x5a6   : > { %7182 = vpow2.f32 %v2943_v48  ;;  %v2913_v59 = vsub.f32 %v8748_v31, %v2847_v57  ;;  %v8895_v6 = vpop.eup %7172  ;;  %v2906_v31 = vsub.f32 %v8728_v58, %v2826_v62 }
 0x5a7   : > { %7184 = vpow2.f32 %v2949_v45  ;;  %v3025_v34 = vsel %vm1449_vm2, %v8895_v6, 0.0  ;;  %v2961_v21 = vmul.f32 1.442695, %v2914_v40 }
 0x5a8   : > { %v2959_v22 = vmul.f32 1.442695, %v2913_v59  ;;  %v2820_v56 = vpop.xlane.xlu1 %2819  ;;  %3026 = vadd.xlane.f32.xlu1 %v3025_v34  ;;  %v2945_v58 = vmul.f32 1.442695, %v2906_v31 }
 0x5a9   : > { %v2817_v37 = vpop.xlane.xlu0 %2816  ;;  %v2904_v62 = vsub.f32 %v8758_v26, %v2820_v56 }
 0x5aa   : > { %v8900_v24 = vpop.eup %7174  ;;  %7186 = vpow2.f32 %v2959_v22  ;;  %v2903_v61 = vsub.f32 %v8763_v7, %v2817_v37 }
 0x5ab   : > { %v8903_v55 = vpop.eup %7176  ;;  %v3028_v0 = vsel %vm1449_vm2, %v8900_v24, 0.0  ;;  %v2941_v22 = vmul.f32 1.442695, %v2904_v62 }
 0x5ac   : > { %v2939_v10 = vmul.f32 1.442695, %v2903_v61  ;;  %v2844_v38 = vpop.xlane.xlu1 %2843  ;;  %3029 = vadd.xlane.f32.xlu0 %v3028_v0  ;;  %v3019_v33 = vsel %vm1449_vm2, %v8903_v55, 0.0  ;;  %v8910_v25 = vpop.eup %7178 }
 0x5ad   : > { %v2912_v9 = vsub.f32 %v8768_v3, %v2844_v38  ;;  %3020 = vadd.xlane.f32.xlu1 %v3019_v33  ;;  %v2841_v7 = vpop.xlane.xlu0 %2840  ;;  %v3004_v57 = vsel %vm1449_vm2, %v8910_v25, 0.0 }
 0x5ae   : > { %7188 = vpow2.f32 %v2939_v10  ;;  %v2911_v45 = vsub.f32 %v8773_v17, %v2841_v7  ;;  %v8917_v59 = vpop.eup %7180 }
 0x5af   : > { %7190 = vpow2.f32 %v2961_v21  ;;  %v2957_v48 = vmul.f32 1.442695, %v2912_v9  ;;  %v2998_v26 = vsel %vm1449_vm2, %v8917_v59, 0.0 }
 0x5b0   : > { %v2955_v50 = vmul.f32 1.442695, %v2911_v45  ;;  %v2862_v17 = vpop.xlane.xlu1 %2861 }
 0x5b1   : > { %3005 = vadd.xlane.f32.xlu1 %v3004_v57  ;;  %v2859_v40 = vpop.xlane.xlu0 %2858 }
 0x5b2   : > { %7192 = vpow2.f32 %v2955_v50  ;;  %v2917_v34 = vsub.f32 %v8780_v1, %v2859_v40 }
 0x5b3   : > { %v8919_v3 = vpop.eup %7182  ;;  %7194 = vpow2.f32 %v2945_v58 }
 0x5b4   : > { %7196 = vpow2.f32 %v2957_v48  ;;  %v3013_v56 = vsel %vm1449_vm2, %v8919_v3, 0.0  ;;  %v8926_v37 = vpop.eup %7184  ;;  %v2967_v0 = vmul.f32 1.442695, %v2917_v34 }
 0x5b5   : > { %2999 = vadd.xlane.f32.xlu1 %v2998_v26  ;;  %3014 = vadd.xlane.f32.xlu0 %v3013_v56  ;;  %v2883_v61 = vpop.xlane.xlu0 %2882  ;;  %7198 = vpow2.f32 %v2941_v22  ;;  %v3022_v1 = vsel %vm1449_vm2, %v8926_v37, 0.0 }
 0x5b6   : > { %v2925_v31 = vsub.f32 %v8792_v11, %v2883_v61  ;;  %v2918_v11 = vsub.f32 %v8785_v19, %v2862_v17 }
 0x5b7   : > { %v8929_v21 = vpop.eup %7186 }
 0x5b8   : > { %v2983_v10 = vmul.f32 1.442695, %v2925_v31  ;;  %v2886_v38 = vpop.xlane.xlu1 %2885  ;;  %v3037_v33 = vsel %vm1449_vm2, %v8929_v21, 0.0 }
 0x5b9   : > { %3023 = vadd.xlane.f32.xlu1 %v3022_v1  ;;  %3038 = vadd.xlane.f32.xlu0 %v3037_v33  ;;  %v2853_v9 = vpop.xlane.xlu0 %2852  ;;  %v2926_v62 = vsub.f32 %v8800_v51, %v2886_v38 }
 0x5ba   : > { %7200 = vpow2.f32 %v2983_v10  ;;  %v2915_v7 = vsub.f32 %v8795_v35, %v2853_v9  ;;  %v2969_v35 = vmul.f32 1.442695, %v2918_v11 }
 0x5bb   : > { %v8936_v45 = vpop.eup %7188  ;;  %7202 = vpow2.f32 %v2967_v0  ;;  %v2985_v51 = vmul.f32 1.442695, %v2926_v62 }
 0x5bc   : > { %v8939_v58 = vpop.eup %7190  ;;  %v2963_v48 = vmul.f32 1.442695, %v2915_v7  ;;  %v2856_v50 = vpop.xlane.xlu1 %2855  ;;  %v3007_v57 = vsel %vm1449_vm2, %v8936_v45, 0.0 }
 0x5bd   : > { %3008 = vadd.xlane.f32.xlu0 %v3007_v57  ;;  %v2877_v40 = vpop.xlane.xlu0 %2876  ;;  %v2916_v26 = vsub.f32 %v8803_v14, %v2856_v50  ;;  %v3040_v19 = vsel %vm1449_vm2, %v8939_v58, 0.0 }
 0x5be   : > { %v2923_v22 = vsub.f32 %v8808_v18, %v2877_v40  ;;  %7204 = vpow2.f32 %v2963_v48 }
 0x5bf   : > { %v8945_v34 = vpop.eup %7192  ;;  %v2965_v10 = vmul.f32 1.442695, %v2916_v26 }
 0x5c0   : > { %v8950_v17 = vpop.eup %7194  ;;  %v2979_v56 = vmul.f32 1.442695, %v2923_v22  ;;  %v2880_v61 = vpop.xlane.xlu1 %2879  ;;  %v3031_v31 = vsel %vm1449_vm2, %v8945_v34, 0.0 }
 0x5c1   : > { %v8954_v0 = vpop.eup %7196  ;;  %3041 = vadd.xlane.f32.xlu0 %v3040_v19  ;;  %3032 = vadd.xlane.f32.xlu1 %v3031_v31  ;;  %v2871_v18 = vpop.xlane.xlu0 %2870  ;;  %v2924_v38 = vsub.f32 %v8813_v54, %v2880_v61  ;;  %v3016_v7 = vsel %vm1449_vm2, %v8950_v17, 0.0 }
 0x5c2   : > { %7206 = vpow2.f32 %v2979_v56  ;;  %v2921_v14 = vsub.f32 %v8818_v36, %v2871_v18  ;;  %v8958_v1 = vpop.eup %7198  ;;  %v3034_v9 = vsel %vm1449_vm2, %v8954_v0, 0.0 }
 0x5c3   : > { %7208 = vpow2.f32 %v2969_v35  ;;  %v2981_v48 = vmul.f32 1.442695, %v2924_v38  ;;  %v3010_v50 = vsel %vm1449_vm2, %v8958_v1, 0.0 }
 0x5c4   : > { %7210 = vpow2.f32 %v2985_v51  ;;  %v2975_v33 = vmul.f32 1.442695, %v2921_v14 }
 0x5c5   : > { %3035 = vadd.xlane.f32.xlu0 %v3034_v9  ;;  %3017 = vadd.xlane.f32.xlu1 %v3016_v7  ;;  %v2895_v11 = vpop.xlane.xlu0 %2894  ;;  %7212 = vpow2.f32 %v2965_v10 }
 0x5c6   : > { %v2929_v62 = vsub.f32 %v8825_v39, %v2895_v11  ;;  %7214 = vpow2.f32 %v2975_v33 }
 0x5c7   : > { %v8965_v36 = vpop.eup %7200  ;;  %7216 = vpow2.f32 %v2981_v48 }
 0x5c8   : > { %v2991_v54 = vmul.f32 1.442695, %v2929_v62  ;;  %v3073_v57 = vsel %vm1449_vm2, %v8965_v36, 0.0  ;;  %v8971_v40 = vpop.eup %7202 }
 0x5c9   : > { %3011 = vadd.xlane.f32.xlu1 %v3010_v50  ;;  %3074 = vadd.xlane.f32.xlu0 %v3073_v57  ;;  %v2865_v22 = vpop.xlane.xlu0 %2864  ;;  %v3049_v26 = vsel %vm1449_vm2, %v8971_v40, 0.0 }
 0x5ca   : > { %v2919_v35 = vsub.f32 %v8830_v12, %v2865_v22  ;;  %7218 = vpow2.f32 %v2991_v54 }
 0x5cb   : > { %v8976_v19 = vpop.eup %7204 }
 0x5cc   : > { %v2971_v39 = vmul.f32 1.442695, %v2919_v35  ;;  %v3043_v12 = vsel %vm1449_vm2, %v8976_v19, 0.0 }
 0x5cd   : > { %3050 = vadd.xlane.f32.xlu1 %v3049_v26  ;;  %v2889_v51 = vpop.xlane.xlu0 %2888  ;;  %v9017_v26 = vpop.permute.xlu1 %3871 }
 0x5ce   : > { %v2927_v56 = vsub.f32 %v8835_v4, %v2889_v51  ;;  %7220 = vpow2.f32 %v2971_v39 }
 0x5cf   : > { %v8979_v61 = vpop.eup %7206 }
 0x5d0   : > { %v8981_v31 = vpop.eup %7208  ;;  %v2987_v18 = vmul.f32 1.442695, %v2927_v56  ;;  %v3067_v14 = vsel %vm1449_vm2, %v8979_v61, 0.0 }
 0x5d1   : > { %v8987_v10 = vpop.eup %7210  ;;  %3044 = vadd.xlane.f32.xlu1 %v3043_v12  ;;  %3068 = vadd.xlane.f32.xlu0 %v3067_v14  ;;  %v3052_v4 = vsel %vm1449_vm2, %v8981_v31, 0.0  ;;  %v9019_v51 = vpop.permute.xlu1 %3760 }
 0x5d2   : > { %7222 = vpow2.f32 %v2987_v18  ;;  %v8989_v38 = vpop.eup %7212  ;;  %v3076_v33 = vsel %vm1449_vm2, %v8987_v10, 0.0 }
 0x5d3   : > { %v8995_v9 = vpop.eup %7214  ;;  %v3046_v11 = vsel %vm1449_vm2, %v8989_v38, 0.0 }
 0x5d4   : > { %v8997_v7 = vpop.eup %7216  ;;  %v3061_v62 = vsel %vm1449_vm2, %v8995_v9, 0.0 }
 0x5d5   : > { %3053 = vadd.xlane.f32.xlu1 %v3052_v4  ;;  %3077 = vadd.xlane.f32.xlu0 %v3076_v33  ;;  %v3070_v54 = vsel %vm1449_vm2, %v8997_v7, 0.0 }
 0x5d7   : > { %v9003_v48 = vpop.eup %7218 }
 0x5d8   : > { %v3085_v50 = vsel %vm1449_vm2, %v9003_v48, 0.0 }
 0x5d9   : > { %3047 = vadd.xlane.f32.xlu1 %v3046_v11  ;;  %3062 = vadd.xlane.f32.xlu0 %v3061_v62 }
 0x5db   : > { %v9009_v57 = vpop.eup %7220 }
 0x5dc   : > { %v3055_v35 = vsel %vm1449_vm2, %v9009_v57, 0.0 }
 0x5dd   : > { %3071 = vadd.xlane.f32.xlu1 %v3070_v54  ;;  %3086 = vadd.xlane.f32.xlu0 %v3085_v50 }
 0x5df   : > { %v9011_v22 = vpop.eup %7222 }
 0x5e0   : > { %v3079_v39 = vsel %vm1449_vm2, %v9011_v22, 0.0 }
 0x5e1   : > { %3056 = vadd.xlane.f32.xlu1 %v3055_v35  ;;  %3080 = vadd.xlane.f32.xlu0 %v3079_v39 }
 0x5f9   : > { %v2874_v56 = vpop.xlane.xlu1 %2873 }
 0x5fa   : > { %v2922_v18 = vsub.f32 %v8848_v28, %v2874_v56 }
 0x5fc   : > { %v2977_v12 = vmul.f32 1.442695, %v2922_v18 }
 0x5fd   : > { %v2898_v14 = vpop.xlane.xlu1 %2897 }
 0x5fe   : > { %7224 = vpow2.f32 %v2977_v12  ;;  %v2930_v4 = vsub.f32 %v8851_v23, %v2898_v14 }
 0x600   : > { %v2993_v33 = vmul.f32 1.442695, %v2930_v4 }
 0x601   : > { %v2868_v11 = vpop.xlane.xlu1 %2867 }
 0x602   : > { %7226 = vpow2.f32 %v2993_v33  ;;  %v2920_v62 = vsub.f32 %v8856_v15, %v2868_v11  ;;  %v9046_v15 = vpop.permute.xlu0 %3762 }
 0x604   : > { %v2973_v54 = vmul.f32 1.442695, %v2920_v62 }
 0x605   : > { %v2892_v18 = vpop.xlane.xlu1 %2891 }
 0x606   : > { %7228 = vpow2.f32 %v2973_v54  ;;  %v2928_v14 = vsub.f32 %v8861_v13, %v2892_v18 }
 0x608   : > { %v2989_v4 = vmul.f32 1.442695, %v2928_v14 }
 0x60a   : > { %7230 = vpow2.f32 %v2989_v4 }
 0x60b   : > { %v9024_v50 = vpop.eup %7224 }
 0x60c   : > { %v3064_v35 = vsel %vm1449_vm2, %v9024_v50, 0.0 }
 0x60d   : > { %3065 = vadd.xlane.f32.xlu1 %v3064_v35 }
 0x60f   : > { %v9028_v39 = vpop.eup %7226 }
 0x610   : > { %v3088_v28 = vsel %vm1449_vm2, %v9028_v39, 0.0 }
 0x611   : > { %3089 = vadd.xlane.f32.xlu0 %v3088_v28 }
 0x613   : > { %v9032_v23 = vpop.eup %7228 }
 0x614   : > { %v3058_v56 = vsel %vm1449_vm2, %v9032_v23, 0.0 }
 0x615   : > { %3059 = vadd.xlane.f32.xlu0 %v3058_v56 }
 0x61e   : > { %3752 = vrot.lane.b32.xlu1 %v7632_v46, %s7434_s23 }
 0x622   : > { %3867 = vrot.lane.b32.xlu1 %v10217_v43, %s7435_s19 }
 0x626   : > { %3756 = vrot.lane.b32.xlu1 %v7666_v5, %s7434_s23 }
 0x629   : > { %v3003_v12 = vpop.xlane.xlu0 %3002 }
 0x62a   : > { %3865 = vrot.lane.b32.xlu1 %v10219_v29, %s7435_s19 }
 0x62b   : > { %3869 = vrot.lane.b32.xlu0 %v10216_v47, %s7435_s19 }
 0x62d   : > { %v2997_v5 = vpop.xlane.xlu0 %2996 }
 0x62f   : > { %3754 = vrot.lane.b32.xlu0 %v7642_v53, %s7434_s23 }
 0x631   : > { %v3027_v46 = vpop.xlane.xlu1 %3026 }
 0x633   : > { %3976 = vrot.lane.b32.xlu0 %v10210_v2, %s7435_s19 }
 0x635   : > { %v3030_v47 = vpop.xlane.xlu0 %3029 }
 0x636   : > { %v3021_v43 = vpop.xlane.xlu1 %3020 }
 0x637   : > { %3758 = vrot.lane.b32.xlu0 %v10198_v8, %s7434_s23 }
 0x63a   : > { %v3006_v29 = vpop.xlane.xlu1 %3005 }
 0x63b   : > { %3974 = vrot.lane.b32.xlu0 %v10211_v41, %s7435_s19  ;;  %7232 = vrcp.f32 %v3006_v29  ;;  %v9063_v41 = vpop.eup %7230 }
 0x63c   : > { %7234 = vrcp.f32 %v2997_v5 }
 0x63d   : > { %7236 = vrcp.f32 %v3003_v12 }
 0x63e   : > { %v3000_v53 = vpop.xlane.xlu1 %2999  ;;  %v3015_v13 = vpop.xlane.xlu0 %3014 }
 0x63f   : > { %7238 = vrcp.f32 %v3000_v53  ;;  %3859 = vrot.lane.b32.xlu0 %v10196_v16, %s7434_s23 }
 0x640   : > { %7240 = vrcp.f32 %v3030_v47 }
 0x641   : > { %7242 = vrcp.f32 %v3021_v43 }
 0x642   : > { %7244 = vrcp.f32 %v3027_v46  ;;  %v3024_v2 = vpop.xlane.xlu1 %3023  ;;  %v3039_v8 = vpop.xlane.xlu0 %3038 }
 0x643   : > { %7246 = vrcp.f32 %v3024_v2  ;;  %4081 = vrot.lane.b32.xlu0 %v10215_v32, %s7435_s19  ;;  %v3082_v32 = vsel %vm1449_vm2, %v9063_v41, 0.0 }
 0x644   : > { %7248 = vrcp.f32 %v3039_v8 }
 0x646   : > { %v3009_v33 = vpop.xlane.xlu0 %3008 }
 0x647   : > { %3863 = vrot.lane.b32.xlu0 %v10203_v49, %s7434_s23 }
 0x648   : > { %v7233_v11 = vpop.eup %7232 }
 0x649   : > { %v7235_v62 = vpop.eup %7234  ;;  %v3126_v56 = vmul.f32 %v7233_v11, %v8910_v25 }
 0x64a   : > { %v3033_v54 = vpop.xlane.xlu1 %3032  ;;  %v3042_v35 = vpop.xlane.xlu0 %3041  ;;  %v3123_v49 = vmul.f32 %v7235_v62, %v8888_v44 }
 0x64b   : > { %v7237_v16 = vpop.eup %7236  ;;  %4079 = vrot.lane.b32.xlu0 %v8361_v30, %s7435_s19  ;;  %7250 = vrcp.f32 %v3042_v35  ;;  %v10232_v35 = vld [vmem:[#allocation5_spill] sm:$0xff] }
 0x64c   : > { %v7239_v28 = vpop.eup %7238  ;;  %v3125_v14 = vmul.f32 %v7237_v16, %v8883_v60  ;;  %7252 = vrcp.f32 %v3033_v54 }
 0x64d   : > { %v7241_v18 = vpop.eup %7240  ;;  %v3124_v12 = vmul.f32 %v7239_v28, %v8917_v59 }
 0x64e   : > { %v7243_v46 = vpop.eup %7242  ;;  %v3018_v5 = vpop.xlane.xlu1 %3017  ;;  %3083 = vadd.xlane.f32.xlu1 %v3082_v32  ;;  %v3134_v47 = vmul.f32 %v7241_v18, %v8900_v24  ;;  %v3156_v44 = vpack.c.bf16 %v3126_v56, %v3125_v14  ;;  %v10233_v14 = vld [vmem:[#allocation7_spill] sm:$0xff] }
 0x64f   : > { %v3036_v30 = vpop.xlane.xlu0 %3035  ;;  %v7245_v43 = vpop.eup %7244  ;;  %7254 = vrcp.f32 %v3018_v5  ;;  %3964 = vrot.lane.b32.xlu0 %v10200_v27, %s7434_s23  ;;  %v3155_v25 = vpack.c.bf16 %v3124_v12, %v3123_v49  ;;  %v3131_v60 = vmul.f32 %v7243_v46, %v8903_v55 }
 0x650   : > { %v7247_v4 = vpop.eup %7246  ;;  %7256 = vrcp.f32 %v3036_v30  ;;  %v3133_v29 = vmul.f32 %v7245_v43, %v8895_v6  ;;  %v10235_v30 = vld [vmem:[#allocation11_spill] sm:$0xff] }
 0x651   : > { %7258 = vrcp.f32 %v3009_v33  ;;  %6678 = vmatprep.mubr.msk.bf16.mxu0 %vm1449_vm2, %v3155_v25  ;;  %v3132_v59 = vmul.f32 %v7247_v4, %v8926_v37  ;;  %v10227_v37 = vld [vmem:[#allocation51_spill] sm:$0xff] }
 0x652   : > { %7260 = vrcp.f32 %v3015_v13  ;;  %v3012_v53 = vpop.xlane.xlu1 %3011  ;;  %6679 = vmatmul.mubr.msk.bf16.vlgmr.msra.gmra.mxu0 %vm1449_vm2, %v3156_v44  ;;  %v3160_v24 = vpack.c.bf16 %v3134_v47, %v3133_v29  ;;  %v10229_v13 = vld [vmem:[#allocation9_spill] sm:$0xff]  ;;  %v10236_v43 = vld [vmem:[#allocation15_spill] sm:$0xff] }
 0x653   : > { %7262 = vrcp.f32 %v3012_v53  ;;  %6703 = vmatpush3.bf16.msra.mxu0 %v8613_v52  ;;  %3966 = vrot.lane.b32.xlu0 %v10201_v42, %s7434_s23  ;;  %v3159_v27 = vpack.c.bf16 %v3132_v59, %v3131_v60  ;;  %v3075_v6 = vpop.xlane.xlu0 %3074  ;;  %v10228_v52 = vld [vmem:[#allocation6_spill] sm:$0xff]  ;;  %v7249_v42 = vpop.eup %7248  ;;  %v10237_v60 = vld [vmem:[#allocation25_spill] sm:$0xff] }
 0x654   : > { %6704 = vmatprep.subr.bf16.mxu0 %v8617_v63  ;;  %v3137_v12 = vmul.f32 %v7249_v42, %v8929_v21 }
 0x655   : > { %6694 = vmatprep.mubr.msk.bf16.mxu1 %vm1449_vm2, %v3159_v27 }
 0x656   : > { %v3051_v55 = vpop.xlane.xlu1 %3050  ;;  %6695 = vmatmul.mubr.msk.bf16.vlgmr.msra.gmra.mxu1 %vm1449_vm2, %v3160_v24 }
 0x657   : > { %6705 = vmatpush3.bf16.msra.mxu0 %v8617_v63  ;;  %6719 = vmatpush3.bf16.msra.mxu1 %v8631_v20  ;;  %v10230_v63 = vld [vmem:[#allocation10_spill] sm:$0xff]  ;;  %v10231_v20 = vld [vmem:[#allocation3_spill] sm:$0xff] }
 0x658   : > { %4075 = vrot.lane.b32.xlu0 %v10227_v37, %s7435_s19  ;;  %6706 = vmatprep.subr.bf16.mxu0 %v10228_v52  ;;  %v7251_v2 = vpop.eup %7250  ;;  %v10240_v37 = vld [vmem:[#allocation8_spill] sm:$0xff] }
 0x659   : > { %6720 = vmatprep.subr.bf16.mxu1 %v10229_v13  ;;  %v7253_v33 = vpop.eup %7252  ;;  %v3138_v16 = vmul.f32 %v7251_v2, %v8939_v58  ;;  %v10234_v58 = vld [vmem:[#allocation17_spill] sm:$0xff] }
 0x65a   : > { %v3045_v8 = vpop.xlane.xlu1 %3044  ;;  %v3069_v11 = vpop.xlane.xlu0 %3068  ;;  %v3135_v18 = vmul.f32 %v7253_v33, %v8945_v34 }
 0x65b   : > { %6707 = vmatpush3.bf16.msra.mxu0 %v10228_v52  ;;  %6721 = vmatpush3.bf16.msra.mxu1 %v10229_v13  ;;  %v3162_v25 = vpack.c.bf16 %v3138_v16, %v3137_v12  ;;  %v10243_v16 = vld [vmem:[#allocation49_spill] sm:$0xff] }
 0x65c   : > { %v7255_v62 = vpop.eup %7254  ;;  %4069 = vrot.lane.b32.xlu0 %v10230_v63, %s7434_s23  ;;  %6708 = vmatprep.subr.bf16.mxu0 %v10231_v20  ;;  %v10241_v63 = vld [vmem:[#allocation50_spill] sm:$0xff] }
 0x65d   : > { %v7257_v54 = vpop.eup %7256  ;;  %6722 = vmatprep.subr.bf16.mxu1 %v10232_v35  ;;  %v3130_v34 = vmul.f32 %v7255_v62, %v8950_v17 }
 0x65e   : > { %v7259_v28 = vpop.eup %7258  ;;  %v3054_v56 = vpop.xlane.xlu1 %3053  ;;  %v3136_v32 = vmul.f32 %v7257_v54, %v8954_v0 }
 0x65f   : > { %v7261_v49 = vpop.eup %7260  ;;  %6709 = vmatpush3.bf16.msra.mxu0 %v10231_v20  ;;  %6723 = vmatpush3.bf16.msra.mxu1 %v10232_v35  ;;  %7264 = vrcp.f32 %v3054_v56  ;;  %v3078_v0 = vpop.xlane.xlu0 %3077  ;;  %v3127_v21 = vmul.f32 %v7259_v28, %v8936_v45  ;;  %v10242_v35 = vld [vmem:[#allocation13_spill] sm:$0xff]  ;;  %v10245_v28 = vld [vmem:[#allocation19_spill] sm:$0xff]  ;;  %v3784_v56 = vsel %vm992_vm1, %v9046_v15, 0 }
 0x660   : > { %v7263_v46 = vpop.eup %7262  ;;  %3857 = vrot.lane.b32.xlu1 %v10233_v14, %s7434_s23  ;;  %4073 = vrot.lane.b32.xlu0 %v10234_v58, %s7434_s23  ;;  %v3161_v5 = vpack.c.bf16 %v3136_v32, %v3135_v18  ;;  %7266 = vrcp.f32 %v3045_v8  ;;  %v3129_v44 = vmul.f32 %v7261_v49, %v8919_v3  ;;  %v10238_v3 = vld [vmem:[#allocation4_spill] sm:$0xff]  ;;  %v3781_v18 = vsel %vm992_vm1, %v9019_v51, 0 }
 0x661   : > { %6724 = vmatprep.subr.bf16.mxu1 %v10235_v30  ;;  %6950 = vmatprep.subr.msk.bf16.mxu0 %vm992_vm1, %v10236_v43  ;;  %v3128_v4 = vmul.f32 %v7263_v46, %v8958_v1  ;;  %7268 = vrcp.f32 %v3051_v55  ;;  %v10239_v1 = vld [vmem:[#allocation26_spill] sm:$0xff] }
 0x662   : > { %6698 = vmatprep.mubr.msk.bf16.mxu1 %vm1449_vm2, %v3161_v5  ;;  %v3048_v47 = vpop.xlane.xlu1 %3047  ;;  %v3158_v59 = vpack.c.bf16 %v3130_v34, %v3129_v44 }
 0x663   : > { %7270 = vrcp.f32 %v3048_v47  ;;  %6699 = vmatmul.mubr.msk.bf16.gmra.mxu1 %vm1449_vm2, %v3162_v25  ;;  %v3157_v17 = vpack.c.bf16 %v3128_v4, %v3127_v21 }
 0x664   : > { %7272 = vrcp.f32 %v3078_v0  ;;  %6725 = vmatpush3.bf16.msra.mxu1 %v10235_v30  ;;  %3972 = vrot.lane.b32.xlu1 %v10237_v60, %s7435_s19 }
 0x665   : > { %7274 = vrcp.f32 %v3069_v11  ;;  %6954 = vmatprep.subr.msk.bf16.mxu1 %vm992_vm1, %v9017_v26  ;;  %6682 = vmatprep.mubr.msk.bf16.mxu0 %vm1449_vm2, %v3157_v17 }
 0x666   : > { %7276 = vrcp.f32 %v3075_v6  ;;  %v3072_v45 = vpop.xlane.xlu1 %3071  ;;  %6683 = vmatmul.mubr.msk.bf16.gmra.mxu0 %vm1449_vm2, %v3158_v59 }
 0x667   : > { %7278 = vrcp.f32 %v3072_v45 }
 0x668   : > { %3861 = vrot.lane.b32.xlu1 %v10238_v3, %s7434_s23 }
 0x66a   : > { %v3057_v49 = vpop.xlane.xlu1 %3056 }
 0x66c   : > { %3970 = vrot.lane.b32.xlu1 %v10239_v1, %s7435_s19  ;;  %v7265_v29 = vpop.eup %7264 }
 0x66d   : > { %v7267_v53 = vpop.eup %7266  ;;  %v3142_v55 = vmul.f32 %v7265_v29, %v8981_v31 }
 0x66e   : > { %v7269_v27 = vpop.eup %7268  ;;  %v3139_v52 = vmul.f32 %v7267_v53, %v8976_v19 }
 0x66f   : > { %v3141_v2 = vmul.f32 %v7269_v27, %v8971_v40  ;;  %v3790_v40 = vsel %vm992_vm1, %v10236_v43, 0 }
 0x670   : > { %v7271_v24 = vpop.eup %7270  ;;  %3962 = vrot.lane.b32.xlu1 %v10240_v37, %s7434_s23 }
 0x671   : > { %v7273_v6 = vpop.eup %7272  ;;  %v3140_v42 = vmul.f32 %v7271_v24, %v8989_v38  ;;  %v3164_v31 = vpack.c.bf16 %v3142_v55, %v3141_v2 }
 0x672   : > { %v7275_v13 = vpop.eup %7274  ;;  %v3150_v62 = vmul.f32 %v7273_v6, %v8987_v10 }
 0x673   : > { %v7277_v8 = vpop.eup %7276  ;;  %v3163_v33 = vpack.c.bf16 %v3140_v42, %v3139_v52  ;;  %v3147_v20 = vmul.f32 %v7275_v13, %v8979_v61  ;;  %v10244_v61 = vld [vmem:[#allocation20_spill] sm:$0xff] }
 0x674   : > { %v7279_v11 = vpop.eup %7278  ;;  %4077 = vrot.lane.b32.xlu1 %v10241_v63, %s7435_s19  ;;  %v3149_v38 = vmul.f32 %v7277_v8, %v8965_v36  ;;  %v3895_v36 = vsel %vm992_vm1, %v9017_v26, 0  ;;  %v3063_v26 = vpop.xlane.xlu0 %3062 }
 0x675   : > { %6710 = vmatprep.mubr.msk.bf16.mxu0 %vm1449_vm2, %v3163_v33  ;;  %v3148_v19 = vmul.f32 %v7279_v11, %v8997_v7  ;;  %v3787_v7 = vsel %vm992_vm1, %v10243_v16, 0 }
 0x676   : > { %6711 = vmatmul.mubr.msk.bf16.vlgmr.msra.gmra.mxu0 %vm1449_vm2, %v3164_v31  ;;  %v3168_v10 = vpack.c.bf16 %v3150_v62, %v3149_v38 }
 0x677   : > { %6735 = vmatpush3.bf16.xpose.msra.mxu0 %v3790_v40  ;;  %v3167_v54 = vpack.c.bf16 %v3148_v19, %v3147_v20 }
 0x678   : > { %3968 = vrot.lane.b32.xlu1 %v10242_v35, %s7434_s23  ;;  %6951 = vmatprep.subr.msk.bf16.mxu0 %vm992_vm1, %v10243_v16  ;;  %v3087_v32 = vpop.xlane.xlu0 %3086  ;;  %v10246_v16 = vld [vmem:[#allocation34_spill] sm:$0xff] }
 0x679   : > { %6726 = vmatprep.mubr.msk.bf16.mxu1 %vm1449_vm2, %v3167_v54 }
 0x67a   : > { %6727 = vmatmul.mubr.msk.bf16.vlgmr.msra.gmra.mxu1 %vm1449_vm2, %v3168_v10 }
 0x67b   : > { %6751 = vmatpush3.bf16.xpose.msra.mxu1 %v3895_v36 }
 0x67c   : > { %4067 = vrot.lane.b32.xlu1 %v10244_v61, %s7434_s23  ;;  %v3081_v12 = vpop.xlane.xlu0 %3080 }
 0x67f   : > { %6737 = vmatpush3.bf16.xpose.msra.mxu0 %v3787_v7 }
 0x680   : > { %4071 = vrot.lane.b32.xlu1 %v10245_v28, %s7434_s23  ;;  %6952 = vmatprep.subr.msk.bf16.mxu0 %vm992_vm1, %v9046_v15 }
 0x687   : > { %6739 = vmatpush3.bf16.xpose.msra.mxu0 %v3784_v56 }
 0x688   : > { %6953 = vmatprep.subr.msk.bf16.mxu0 %vm992_vm1, %v9019_v51 }
 0x68f   : > { %6741 = vmatpush3.bf16.xpose.msra.mxu0 %v3781_v18  ;;  %v10250_v18 = vld [vmem:[#allocation29_spill] sm:$0xff] }
 0x696   : > { %v3066_v46 = vpop.xlane.xlu1 %3065 }
 0x697   : > { %7280 = vrcp.f32 %v3066_v46 }
 0x698   : > { %7282 = vrcp.f32 %v3057_v49  ;;  %v10251_v49 = vld [vmem:[#allocation30_spill] sm:$0xff] }
 0x699   : > { %7284 = vrcp.f32 %v3063_v26 }
 0x69a   : > { %v3753_v14 = vpop.permute.xlu1 %3752  ;;  %v3090_v58 = vpop.xlane.xlu0 %3089 }
 0x69e   : > { %v3060_v5 = vpop.xlane.xlu0 %3059  ;;  %v3868_v15 = vpop.permute.xlu1 %3867 }
 0x69f   : > { %7286 = vrcp.f32 %v3060_v5  ;;  %v3889_v47 = vsel %vm992_vm1, %v3868_v15, 0 }
 0x6a0   : > { %7288 = vrcp.f32 %v3090_v58 }
 0x6a1   : > { %7290 = vrcp.f32 %v3081_v12 }
 0x6a2   : > { %v3870_v34 = vpop.permute.xlu0 %3869  ;;  %v3757_v51 = vpop.permute.xlu1 %3756  ;;  %7292 = vrcp.f32 %v3087_v32 }
 0x6a3   : > { %6955 = vmatprep.subr.msk.bf16.mxu1 %vm992_vm1, %v3870_v34  ;;  %v3892_v0 = vsel %vm992_vm1, %v3870_v34, 0  ;;  %v10253_v34 = vld [vmem:[#allocation43_spill] sm:$0xff] }
 0x6a4   : > { %6753 = vmatpush3.bf16.xpose.msra.mxu1 %v3892_v0  ;;  %v7281_v43 = vpop.eup %7280 }
 0x6a5   : > { %6956 = vmatprep.subr.msk.bf16.mxu1 %vm992_vm1, %v3868_v15  ;;  %v7283_v25 = vpop.eup %7282  ;;  %v3146_v60 = vmul.f32 %v7281_v43, %v9024_v50  ;;  %v10254_v43 = vld [vmem:[#allocation40_spill] sm:$0xff] }
 0x6a6   : > { %v3755_v30 = vpop.permute.xlu0 %3754  ;;  %v7285_v4 = vpop.eup %7284  ;;  %v3143_v59 = vmul.f32 %v7283_v25, %v9009_v57  ;;  %v10255_v25 = vld [vmem:[#allocation38_spill] sm:$0xff] }
 0x6a7   : > { %v3866_v17 = vpop.permute.xlu1 %3865  ;;  %v3145_v1 = vmul.f32 %v7285_v4, %v8995_v9  ;;  %v10256_v4 = vld [vmem:[#allocation39_spill] sm:$0xff] }
 0x6a8   : > { %v3886_v50 = vsel %vm992_vm1, %v3866_v17, 0 }
 0x6a9   : > { %v3166_v53 = vpack.c.bf16 %v3146_v60, %v3145_v1 }
 0x6aa   : > { %v3977_v21 = vpop.permute.xlu0 %3976 }
 0x6ab   : > { %6958 = vmatprep.subr.msk.bf16.mxu0 %vm992_vm1, %v3977_v21  ;;  %v4000_v57 = vsel %vm992_vm1, %v3977_v21, 0 }
 0x6ac   : > { %v7287_v44 = vpop.eup %7286  ;;  %6755 = vmatpush3.bf16.xpose.msra.mxu1 %v3889_v47 }
 0x6ad   : > { %6957 = vmatprep.subr.msk.bf16.mxu1 %vm992_vm1, %v3866_v17  ;;  %v3144_v45 = vmul.f32 %v7287_v44, %v9032_v23  ;;  %v7289_v13 = vpop.eup %7288 }
 0x6ae   : > { %v3759_v3 = vpop.permute.xlu0 %3758  ;;  %v7291_v2 = vpop.eup %7290  ;;  %v3154_v63 = vmul.f32 %v7289_v13, %v9028_v39 }
 0x6af   : > { %v3165_v29 = vpack.c.bf16 %v3144_v45, %v3143_v59  ;;  %v7293_v33 = vpop.eup %7292  ;;  %v3151_v31 = vmul.f32 %v7291_v2, %v9011_v22  ;;  %v10247_v22 = vld [vmem:[#allocation28_spill] sm:$0xff]  ;;  %v10257_v59 = vld [vmem:[#allocation35_spill] sm:$0xff] }
 0x6b0   : > { %v3153_v38 = vmul.f32 %v7293_v33, %v9003_v48  ;;  %v10249_v48 = vld [vmem:[#allocation33_spill] sm:$0xff]  ;;  %v782_v32 = vadd.f32 %v10250_v18, %v10247_v22  ;;  %v785_v12 = vadd.f32 %v10251_v49, %v10247_v22  ;;  %v830_v21 = vadd.f32 %v10255_v25, %v10247_v22 }
 0x6b1   : > { %6714 = vmatprep.mubr.msk.bf16.mxu0 %vm1449_vm2, %v3165_v29  ;;  %v801_v61 = vadd.f32 %v10249_v48, %v10247_v22  ;;  %v833_v47 = vadd.f32 %v10256_v4, %v10247_v22  ;;  %v814_v45 = vadd.f32 %v10257_v59, %v10247_v22  ;;  %v10259_v29 = vld [vmem:[#allocation37_spill] sm:$0xff] }
 0x6b2   : > { %6715 = vmatmul.mubr.msk.bf16.gmra.mxu0 %vm1449_vm2, %v3166_v53  ;;  %v3975_v27 = vpop.permute.xlu0 %3974  ;;  %v3170_v10 = vpack.c.bf16 %v3154_v63, %v3153_v38  ;;  %v910_v58 = vpack.c.bf16 %v785_v12, %v782_v32  ;;  %v9337_v4 = vld [vmem:[%s10069_s3 + $0xb0] sm:$0xff] }
 0x6b3   : > { %6742 = vmatprep.mubr.msk.bf16.mxu0 %vm992_vm1, %v3753_v14  ;;  %v3997_v9 = vsel %vm992_vm1, %v3975_v27, 0  ;;  %v10252_v14 = vld [vmem:[#allocation31_spill] sm:$0xff]  ;;  %v928_v17 = vpack.c.bf16 %v833_v47, %v830_v21  ;;  %v9342_v47 = vld [vmem:[%s10069_s3 + $0xb8] sm:$0xff] }
 0x6b4   : > { %6757 = vmatpush3.bf16.xpose.msra.mxu1 %v3886_v50  ;;  %v10260_v50 = vld [vmem:[#allocation47_spill] sm:$0xff] }
 0x6b6   : > { %v3860_v24 = vpop.permute.xlu0 %3859 }
 0x6ba   : > { %6743 = vmatmul.mubr.msk.bf16.vlgmr.msra.gmra.mxu0 %vm992_vm1, %v3755_v30  ;;  %v4082_v23 = vpop.permute.xlu0 %4081 }
 0x6bb   : > { %6767 = vmatpush3.bf16.xpose.msra.mxu0 %v4000_v57  ;;  %6746 = vmatprep.mubr.msk.bf16.mxu0 %vm992_vm1, %v3757_v51  ;;  %v4105_v26 = vsel %vm992_vm1, %v4082_v23, 0 }
 0x6bc   : > { %6959 = vmatprep.subr.msk.bf16.mxu0 %vm992_vm1, %v3975_v27  ;;  %6962 = vmatprep.subr.msk.bf16.mxu1 %vm992_vm1, %v4082_v23 }
 0x6be   : > { %v3864_v6 = vpop.permute.xlu0 %3863 }
 0x6c2   : > { %6747 = vmatmul.mubr.msk.bf16.gmra.mxu0 %vm992_vm1, %v3759_v3  ;;  %v4080_v11 = vpop.permute.xlu0 %4079  ;;  %v10258_v3 = vld [vmem:[#allocation36_spill] sm:$0xff] }
 0x6c3   : > { %6769 = vmatpush3.bf16.xpose.msra.mxu0 %v3997_v9  ;;  %v4102_v15 = vsel %vm992_vm1, %v4080_v11, 0  ;;  %v817_v1 = vadd.f32 %v10258_v3, %v10247_v22 }
 0x6c5   : > { %v922_v27 = vpack.c.bf16 %v817_v1, %v814_v45 }
 0x6c6   : > { %v3965_v35 = vpop.permute.xlu0 %3964 }
 0x6ca   : > { %v3967_v56 = vpop.permute.xlu0 %3966 }
 0x6ce   : > { %v4076_v51 = vpop.permute.xlu0 %4075 }
 0x6cf   : > { %v4096_v30 = vsel %vm992_vm1, %v4076_v51, 0 }
 0x6d2   : > { %v4070_v44 = vpop.permute.xlu0 %4069 }
 0x6d6   : > { %v4074_v53 = vpop.permute.xlu0 %4073 }
 0x6d7   : > { %v3084_v55 = vpop.xlane.xlu1 %3083 }
 0x6d8   : > { %7294 = vrcp.f32 %v3084_v55 }
 0x6db   : > { %v3858_v37 = vpop.permute.xlu1 %3857 }
 0x6df   : > { %v3973_v52 = vpop.permute.xlu1 %3972 }
 0x6e0   : > { %6960 = vmatprep.subr.msk.bf16.mxu0 %vm992_vm1, %v3973_v52  ;;  %v3994_v42 = vsel %vm992_vm1, %v3973_v52, 0 }
 0x6e1   : > { %6771 = vmatpush3.bf16.xpose.msra.mxu0 %v3994_v42 }
 0x6e3   : > { %v3862_v8 = vpop.permute.xlu1 %3861 }
 0x6e5   : > { %v7295_v62 = vpop.eup %7294 }
 0x6e6   : > { %v3152_v20 = vmul.f32 %v7295_v62, %v9063_v41  ;;  %v10248_v41 = vld [vmem:[#allocation32_spill] sm:$0xff] }
 0x6e7   : > { %v3971_v19 = vpop.permute.xlu1 %3970  ;;  %v798_v36 = vadd.f32 %v10248_v41, %v10247_v22 }
 0x6e8   : > { %6961 = vmatprep.subr.msk.bf16.mxu0 %vm992_vm1, %v3971_v19  ;;  %v3991_v40 = vsel %vm992_vm1, %v3971_v19, 0  ;;  %v3169_v54 = vpack.c.bf16 %v3152_v20, %v3151_v31  ;;  %v9278_v20 = vld [vmem:[%s10069_s3 + $0x80] sm:$0xff] }
 0x6e9   : > { %6773 = vmatpush3.bf16.xpose.msra.mxu0 %v3991_v40  ;;  %v916_v28 = vpack.c.bf16 %v801_v61, %v798_v36  ;;  %v9283_v40 = vld [vmem:[%s10069_s3 + $0x98] sm:$0xff]  ;;  %v9298_v36 = vld [vmem:[%s10069_s3 + $0x90] sm:$0xff] }
 0x6ea   : > { %6730 = vmatprep.mubr.msk.bf16.mxu1 %vm1449_vm2, %v3169_v54  ;;  %6798 = vmatprep.subr.bf16.mxu0 %v10246_v16 }
 0x6eb   : > { %v3963_v39 = vpop.permute.xlu1 %3962  ;;  %6731 = vmatmul.mubr.msk.bf16.gmra.mxu1 %vm1449_vm2, %v3170_v10 }
 0x6ec   : > { %6758 = vmatprep.mubr.msk.bf16.mxu1 %vm992_vm1, %v3858_v37  ;;  %6774 = vmatprep.mubr.msk.bf16.mxu0 %vm992_vm1, %v3963_v39  ;;  %v9291_v39 = vld [vmem:[%s10069_s3 + $0x88] sm:$0xff] }
 0x6ef   : > { %v4078_v7 = vpop.permute.xlu1 %4077 }
 0x6f0   : > { %6775 = vmatmul.mubr.msk.bf16.vlgmr.msra.gmra.mxu0 %vm992_vm1, %v3965_v35  ;;  %v4099_v0 = vsel %vm992_vm1, %v4078_v7, 0 }
 0x6f1   : > { %6778 = vmatprep.mubr.msk.bf16.mxu0 %vm992_vm1, %v3967_v56  ;;  %6799 = vmatpush3.bf16.msra.mxu0 %v10246_v16 }
 0x6f2   : > { %6800 = vmatprep.subr.bf16.mxu0 %v916_v28 }
 0x6f3   : > { %6759 = vmatmul.mubr.msk.bf16.vlgmr.msra.gmra.mxu1 %vm992_vm1, %v3860_v24  ;;  %v3969_v46 = vpop.permute.xlu1 %3968 }
 0x6f4   : > { %6783 = vmatpush3.bf16.xpose.msra.mxu1 %v4105_v26  ;;  %6762 = vmatprep.mubr.msk.bf16.mxu1 %vm992_vm1, %v3862_v8 }
 0x6f5   : > { %6963 = vmatprep.subr.msk.bf16.mxu1 %vm992_vm1, %v4080_v11  ;;  %6801 = vmatpush3.bf16.msra.mxu0 %v916_v28 }
 0x6f6   : > { %6802 = vmatprep.subr.bf16.mxu0 %v10252_v14 }
 0x6f7   : > { %v4068_v5 = vpop.permute.xlu1 %4067 }
 0x6f8   : > { %6779 = vmatmul.mubr.msk.bf16.gmra.mxu0 %vm992_vm1, %v3969_v46 }
 0x6f9   : > { %6803 = vmatpush3.bf16.msra.mxu0 %v10252_v14  ;;  %v9320_v14 = vld [vmem:[%s10069_s3 + $0xa0] sm:$0xff] }
 0x6fa   : > { %6804 = vmatprep.subr.bf16.mxu0 %v910_v58 }
 0x6fb   : > { %6763 = vmatmul.mubr.msk.bf16.gmra.mxu1 %vm992_vm1, %v3864_v6  ;;  %v4072_v60 = vpop.permute.xlu1 %4071 }
 0x6fc   : > { %6785 = vmatpush3.bf16.xpose.msra.mxu1 %v4102_v15  ;;  %6790 = vmatprep.mubr.msk.bf16.mxu1 %vm992_vm1, %v4068_v5  ;;  %v9325_v5 = vld [vmem:[%s10069_s3 + $0xa8] sm:$0xff] }
 0x6fd   : > { %6964 = vmatprep.subr.msk.bf16.mxu1 %vm992_vm1, %v4078_v7  ;;  %6805 = vmatpush3.bf16.msra.mxu0 %v910_v58 }
 0x6fe   : > { %6830 = vmatprep.subr.bf16.mxu0 %v10253_v34 }
 0x704   : > { %6787 = vmatpush3.bf16.xpose.msra.mxu1 %v4099_v0 }
 0x705   : > { %6965 = vmatprep.subr.msk.bf16.mxu1 %vm992_vm1, %v4076_v51 }
 0x70c   : > { %6789 = vmatpush3.bf16.xpose.msra.mxu1 %v4096_v30 }
 0x70d   : > { %6814 = vmatprep.subr.bf16.mxu1 %v10254_v43 }
 0x712   : > { %v9243_v24 = vpop.f32.mrf.mxu0 }
 0x713   : > { %6791 = vmatmul.mubr.msk.bf16.vlgmr.msra.gmra.mxu1 %vm992_vm1, %v4070_v44 }
 0x714   : > { %6794 = vmatprep.mubr.msk.bf16.mxu1 %vm992_vm1, %v4072_v60  ;;  %6815 = vmatpush3.bf16.msra.mxu1 %v10254_v43  ;;  %v9245_v57 = vpop.f32.mrf.mxu0 }
 0x715   : > { %6816 = vmatprep.subr.bf16.mxu1 %v928_v17 }
 0x716   : > { %v9247_v23 = vpop.f32.mrf.mxu0  ;;  %v9293_v41 = vpop.f32.mrf.mxu1 }
 0x718   : > { %6817 = vmatpush3.bf16.msra.mxu1 %v928_v17  ;;  %v9249_v9 = vpop.f32.mrf.mxu0  ;;  %v9311_v32 = vpop.f32.mrf.mxu1 }
 0x719   : > { %6818 = vmatprep.subr.bf16.mxu1 %v10259_v29 }
 0x71a   : > { %v9329_v51 = vpop.f32.mrf.mxu1 }
 0x71b   : > { %6795 = vmatmul.mubr.msk.bf16.gmra.mxu1 %vm992_vm1, %v4074_v53 }
 0x71c   : > { %6819 = vmatpush3.bf16.msra.mxu1 %v10259_v29  ;;  %v9347_v17 = vpop.f32.mrf.mxu1 }
 0x71d   : > { %6820 = vmatprep.subr.bf16.mxu1 %v922_v27 }
 0x720   : > { %6821 = vmatpush3.bf16.msra.mxu1 %v922_v27 }
 0x721   : > { %6846 = vmatprep.subr.bf16.mxu1 %v10260_v50 }
 0x723   : > { %v9359_v1 = vpop.f32.mrf.mxu1 }
 0x725   : > { %v9365_v27 = vpop.f32.mrf.mxu1 }
 0x726   : > { %v9251_v55 = vpop.f32.mrf.mxu0 }
 0x728   : > { %v9253_v37 = vpop.f32.mrf.mxu0 }
 0x72a   : > { %v9255_v6 = vpop.f32.mrf.mxu0 }
 0x72c   : > { %v9257_v52 = vpop.f32.mrf.mxu0 }
 0x736   : > { %v9259_v42 = vpop.f32.mrf.mxu0 }
 0x737   : > { %10261 = vst [vmem:[#allocation12_spill] sm:$0xff] %v9259_v42 }
 0x738   : > { %v9261_v13 = vpop.f32.mrf.mxu0 }
 0x73a   : > { %v9263_v2 = vpop.f32.mrf.mxu0 }
 0x73b   : > { %10262 = vst [vmem:[#allocation27_spill] sm:$0xff] %v9263_v2 }
 0x73c   : > { %v9265_v8 = vpop.f32.mrf.mxu0 }
 0x772   : > { %v9267_v33 = vpop.f32.mrf.mxu0 }
 0x773   : > { %10263 = vst [vmem:[#allocation16_spill] sm:$0xff] %v9267_v33 }
 0x774   : > { %v9269_v11 = vpop.f32.mrf.mxu0 }
 0x775   : > { %10264 = vst [vmem:[#allocation23_spill] sm:$0xff] %v9269_v11 }
 0x776   : > { %v9271_v62 = vpop.f32.mrf.mxu0 }
 0x777   : > { %10265 = vst [vmem:[#allocation24_spill] sm:$0xff] %v9271_v62 }
 0x778   : > { %v9273_v63 = vpop.f32.mrf.mxu0 }
 0x779   : > { %10266 = vst [vmem:[#allocation22_spill] sm:$0xff] %v9273_v63 }
 0x77a   : > { %v6744_v31 = vpop.f32.mrf.mxu0 }
 0x77b   : > { %v4174_v16 = vmul.f32 0.17677669, %v6744_v31  ;;  %v9367_v31 = vpop.f32.mrf.mxu1 }
 0x77c   : > { %v3826_v19 = vpop.f32.mrf.mxu0 }
 0x77d   : > { %v4172_v38 = vmul.f32 0.17677669, %v3826_v19  ;;  %v9309_v26 = vadd.f32 %v4174_v16, %v9298_v36  ;;  %v9369_v19 = vpop.f32.mrf.mxu1 }
 0x77e   : > { %v6745_v54 = vpop.f32.mrf.mxu0 }
 0x77f   : > { %v9286_v10 = vadd.f32 %v4172_v38, %v9278_v20  ;;  %v4175_v35 = vmul.f32 0.17677669, %v6745_v54  ;;  %v4242_v0 = vsel %vm1449_vm2, %v9309_v26, -inf  ;;  %v9371_v38 = vpop.f32.mrf.mxu1 }
 0x780   : > { %v3829_v22 = vpop.f32.mrf.mxu0  ;;  %10267 = vst [vmem:[#allocation14_spill] sm:$0xff] %v9371_v38 }
 0x781   : > { %v9301_v48 = vadd.f32 %v4175_v35, %v9283_v40  ;;  %v4173_v61 = vmul.f32 0.17677669, %v3829_v22  ;;  %v4236_v7 = vsel %vm1449_vm2, %v9286_v10, -inf  ;;  %v9373_v54 = vpop.f32.mrf.mxu1 }
 0x782   : > { %4237 = vmax.xlane.f32.xlu1 %v4236_v7  ;;  %v6748_v28 = vpop.f32.mrf.mxu0  ;;  %10268 = vst [vmem:[#allocation18_spill] sm:$0xff] %v9373_v54 }
 0x783   : > { %v9306_v56 = vadd.f32 %v4173_v61, %v9291_v39  ;;  %v4245_v12 = vsel %vm1449_vm2, %v9301_v48, -inf  ;;  %v4178_v30 = vmul.f32 0.17677669, %v6748_v28  ;;  %v9375_v35 = vpop.f32.mrf.mxu1 }
 0x784   : > { %v3842_v18 = vpop.f32.mrf.mxu0  ;;  %10269 = vst [vmem:[#allocation21_spill] sm:$0xff] %v9375_v35 }
 0x785   : > { %v4176_v49 = vmul.f32 0.17677669, %v3842_v18  ;;  %v4239_v46 = vsel %vm1449_vm2, %v9306_v56, -inf  ;;  %v9350_v60 = vadd.f32 %v4178_v30, %v9337_v4  ;;  %v9377_v16 = vpop.f32.mrf.mxu1 }
 0x786   : > { %4246 = vmax.xlane.f32.xlu1 %v4245_v12  ;;  %4240 = vmax.xlane.f32.xlu0 %v4239_v46  ;;  %v6749_v58 = vpop.f32.mrf.mxu0  ;;  %10270 = vst [vmem:[#allocation51_spill] sm:$0xff] %v9377_v16 }
 0x787   : > { %v9332_v43 = vadd.f32 %v4176_v49, %v9320_v14  ;;  %v4179_v25 = vmul.f32 0.17677669, %v6749_v58  ;;  %v4254_v29 = vsel %vm1449_vm2, %v9350_v60, -inf }
 0x788   : > { %v3845_v15 = vpop.f32.mrf.mxu0 }
 0x789   : > { %v4177_v21 = vmul.f32 0.17677669, %v3845_v15  ;;  %v9353_v59 = vadd.f32 %v4179_v25, %v9342_v47  ;;  %v4248_v45 = vsel %vm1449_vm2, %v9332_v43, -inf }
 0x78a   : > { %4243 = vmax.xlane.f32.xlu0 %v4242_v0 }
 0x78b   : > { %v9345_v44 = vadd.f32 %v4177_v21, %v9325_v5  ;;  %v4257_v53 = vsel %vm1449_vm2, %v9353_v59, -inf }
 0x78d   : > { %v4251_v3 = vsel %vm1449_vm2, %v9345_v44, -inf }
 0x78e   : > { %4249 = vmax.xlane.f32.xlu0 %v4248_v45  ;;  %4252 = vmax.xlane.f32.xlu1 %v4251_v3 }
 0x792   : > { %4255 = vmax.xlane.f32.xlu0 %v4254_v29  ;;  %4258 = vmax.xlane.f32.xlu1 %v4257_v53 }
 0x7ab   : > { %v9379_v22 = vpop.f32.mrf.mxu1 }
 0x7ac   : > { %10271 = vst [vmem:[#allocation6_spill] sm:$0xff] %v9379_v22 }
 0x7ad   : > { %v9381_v61 = vpop.f32.mrf.mxu1 }
 0x7ae   : > { %10272 = vst [vmem:[#allocation9_spill] sm:$0xff] %v9381_v61 }
 0x7af   : > { %v9383_v7 = vpop.f32.mrf.mxu1 }
 0x7b0   : > { %10273 = vst [vmem:[#allocation10_spill] sm:$0xff] %v9383_v7  ;;  %v6776_v28 = vpop.f32.mrf.mxu0 }
 0x7b1   : > { %v9385_v18 = vpop.f32.mrf.mxu1 }
 0x7b2   : > { %10274 = vst [vmem:[#allocation3_spill] sm:$0xff] %v9385_v18  ;;  %v4036_v49 = vpop.f32.mrf.mxu0 }
 0x7b3   : > { %v6760_v12 = vpop.f32.mrf.mxu1 }
 0x7b4   : > { %v4182_v58 = vmul.f32 0.17677669, %v6760_v12  ;;  %v6777_v0 = vpop.f32.mrf.mxu0 }
 0x7b5   : > { %v3931_v46 = vpop.f32.mrf.mxu1 }
 0x7b6   : > { %v4180_v15 = vmul.f32 0.17677669, %v3931_v46  ;;  %v9391_v3 = vadd.f32 %v4182_v58, %v9298_v36  ;;  %v4039_v7 = vpop.f32.mrf.mxu0 }
 0x7b7   : > { %v6761_v30 = vpop.f32.mrf.mxu1 }
 0x7b8   : > { %v9388_v25 = vadd.f32 %v4180_v15, %v9278_v20  ;;  %v4183_v21 = vmul.f32 0.17677669, %v6761_v30  ;;  %v4266_v58 = vsel %vm1449_vm2, %v9391_v3, -inf  ;;  %v6780_v61 = vpop.f32.mrf.mxu0 }
 0x7b9   : > { %v3934_v45 = vpop.f32.mrf.mxu1  ;;  %v4194_v62 = vmul.f32 0.17677669, %v6780_v61 }
 0x7ba   : > { %v4181_v29 = vmul.f32 0.17677669, %v3934_v45  ;;  %v4260_v53 = vsel %vm1449_vm2, %v9388_v25, -inf  ;;  %v9399_v46 = vadd.f32 %v4183_v21, %v9283_v40  ;;  %v4052_v50 = vpop.f32.mrf.mxu0 }
 0x7bb   : > { %4261 = vmax.xlane.f32.xlu0 %v4260_v53  ;;  %v6764_v18 = vpop.f32.mrf.mxu1 }
 0x7bc   : > { %v9396_v12 = vadd.f32 %v4181_v29, %v9291_v39  ;;  %v4186_v22 = vmul.f32 0.17677669, %v6764_v18  ;;  %v4188_v29 = vmul.f32 0.17677669, %v4036_v49  ;;  %v4269_v21 = vsel %vm1449_vm2, %v9399_v46, -inf }
 0x7bd   : > { %v3947_v15 = vpop.f32.mrf.mxu1 }
 0x7be   : > { %v4184_v30 = vmul.f32 0.17677669, %v3947_v15  ;;  %v4263_v45 = vsel %vm1449_vm2, %v9396_v12, -inf  ;;  %v9411_v18 = vadd.f32 %v4186_v22, %v9337_v4  ;;  %v9419_v49 = vadd.f32 %v4188_v29, %v9278_v20 }
 0x7bf   : > { %4267 = vmax.xlane.f32.xlu0 %v4266_v58  ;;  %4264 = vmax.xlane.f32.xlu1 %v4263_v45  ;;  %v6765_v53 = vpop.f32.mrf.mxu1  ;;  %v4189_v45 = vmul.f32 0.17677669, %v4039_v7  ;;  %v4192_v7 = vmul.f32 0.17677669, %v4052_v50 }
 0x7c0   : > { %v9406_v35 = vadd.f32 %v4184_v30, %v9320_v14  ;;  %v4187_v15 = vmul.f32 0.17677669, %v6765_v53  ;;  %v4190_v30 = vmul.f32 0.17677669, %v6776_v28  ;;  %v6781_v53 = vpop.f32.mrf.mxu0 }
 0x7c1   : > { %v3950_v38 = vpop.f32.mrf.mxu1  ;;  %v9432_v28 = vadd.f32 %v4189_v45, %v9291_v39 }
 0x7c2   : > { %v4185_v16 = vmul.f32 0.17677669, %v3950_v38  ;;  %v4272_v54 = vsel %vm1449_vm2, %v9406_v35, -inf  ;;  %v9422_v34 = vadd.f32 %v4187_v15, %v9342_v47  ;;  %v4278_v38 = vsel %vm1449_vm2, %v9411_v18, -inf  ;;  %v4055_v15 = vpop.f32.mrf.mxu0 }
 0x7c3   : > { %4270 = vmax.xlane.f32.xlu1 %v4269_v21  ;;  %4273 = vmax.xlane.f32.xlu0 %v4272_v54  ;;  %v9429_v54 = vadd.f32 %v4190_v30, %v9298_v36  ;;  %v4284_v21 = vsel %vm1449_vm2, %v9419_v49, -inf  ;;  %v4193_v50 = vmul.f32 0.17677669, %v4055_v15  ;;  %v4287_v45 = vsel %vm1449_vm2, %v9432_v28, -inf }
 0x7c4   : > { %v9416_v58 = vadd.f32 %v4185_v16, %v9325_v5  ;;  %v4191_v16 = vmul.f32 0.17677669, %v6777_v0  ;;  %v4281_v29 = vsel %vm1449_vm2, %v9422_v34, -inf  ;;  %v9444_v0 = vadd.f32 %v4192_v7, %v9320_v14 }
 0x7c5   : > { %v9452_v61 = vadd.f32 %v4193_v50, %v9325_v5 }
 0x7c6   : > { %v4275_v22 = vsel %vm1449_vm2, %v9416_v58, -inf  ;;  %v9441_v30 = vadd.f32 %v4191_v16, %v9283_v40  ;;  %v4296_v7 = vsel %vm1449_vm2, %v9444_v0, -inf }
 0x7c7   : > { %4279 = vmax.xlane.f32.xlu0 %v4278_v38  ;;  %4276 = vmax.xlane.f32.xlu1 %v4275_v22  ;;  %v4290_v38 = vsel %vm1449_vm2, %v9429_v54, -inf  ;;  %v9449_v22 = vadd.f32 %v4194_v62, %v9337_v4  ;;  %v4299_v50 = vsel %vm1449_vm2, %v9452_v61, -inf }
 0x7c8   : > { %v4293_v16 = vsel %vm1449_vm2, %v9441_v30, -inf }
 0x7cb   : > { %4282 = vmax.xlane.f32.xlu1 %v4281_v29  ;;  %4285 = vmax.xlane.f32.xlu0 %v4284_v21  ;;  %v4195_v29 = vmul.f32 0.17677669, %v6781_v53 }
 0x7cd   : > { %v9461_v62 = vadd.f32 %v4195_v29, %v9342_v47 }
 0x7cf   : > { %4291 = vmax.xlane.f32.xlu0 %v4290_v38  ;;  %4288 = vmax.xlane.f32.xlu1 %v4287_v45  ;;  %v4302_v38 = vsel %vm1449_vm2, %v9449_v22, -inf  ;;  %v4305_v29 = vsel %vm1449_vm2, %v9461_v62, -inf }
 0x7d3   : > { %v6792_v21 = vpop.f32.mrf.mxu1  ;;  %4294 = vmax.xlane.f32.xlu1 %v4293_v16  ;;  %4297 = vmax.xlane.f32.xlu0 %v4296_v7 }
 0x7d4   : > { %v4198_v53 = vmul.f32 0.17677669, %v6792_v21 }
 0x7d5   : > { %v4141_v15 = vpop.f32.mrf.mxu1 }
 0x7d6   : > { %v4196_v45 = vmul.f32 0.17677669, %v4141_v15  ;;  %v9469_v11 = vadd.f32 %v4198_v53, %v9298_v36 }
 0x7d7   : > { %v6793_v33 = vpop.f32.mrf.mxu1  ;;  %4303 = vmax.xlane.f32.xlu0 %v4302_v38  ;;  %4300 = vmax.xlane.f32.xlu1 %v4299_v50 }
 0x7d8   : > { %v9466_v63 = vadd.f32 %v4196_v45, %v9278_v20  ;;  %v4199_v16 = vmul.f32 0.17677669, %v6793_v33  ;;  %v4314_v53 = vsel %vm1449_vm2, %v9469_v11, -inf }
 0x7d9   : > { %v4144_v7 = vpop.f32.mrf.mxu1 }
 0x7da   : > { %v4197_v2 = vmul.f32 0.17677669, %v4144_v7  ;;  %v4308_v21 = vsel %vm1449_vm2, %v9466_v63, -inf  ;;  %v9479_v20 = vadd.f32 %v4199_v16, %v9283_v40 }
 0x7db   : > { %v6796_v15 = vpop.f32.mrf.mxu1  ;;  %4306 = vmax.xlane.f32.xlu1 %v4305_v29  ;;  %4309 = vmax.xlane.f32.xlu0 %v4308_v21 }
 0x7dc   : > { %v9476_v38 = vadd.f32 %v4197_v2, %v9291_v39  ;;  %v4202_v45 = vmul.f32 0.17677669, %v6796_v15  ;;  %v4317_v40 = vsel %vm1449_vm2, %v9479_v20, -inf }
 0x7dd   : > { %v4157_v33 = vpop.f32.mrf.mxu1 }
 0x7de   : > { %v4200_v36 = vmul.f32 0.17677669, %v4157_v33  ;;  %v4311_v50 = vsel %vm1449_vm2, %v9476_v38, -inf  ;;  %v9491_v39 = vadd.f32 %v4202_v45, %v9337_v4 }
 0x7df   : > { %v6797_v7 = vpop.f32.mrf.mxu1  ;;  %4315 = vmax.xlane.f32.xlu0 %v4314_v53  ;;  %4312 = vmax.xlane.f32.xlu1 %v4311_v50 }
 0x7e0   : > { %v9486_v29 = vadd.f32 %v4200_v36, %v9320_v14  ;;  %v4203_v16 = vmul.f32 0.17677669, %v6797_v7  ;;  %v4326_v36 = vsel %vm1449_vm2, %v9491_v39, -inf }
 0x7e1   : > { %v4160_v2 = vpop.f32.mrf.mxu1 }
 0x7e2   : > { %v4201_v21 = vmul.f32 0.17677669, %v4160_v2  ;;  %v4320_v15 = vsel %vm1449_vm2, %v9486_v29, -inf  ;;  %v9499_v14 = vadd.f32 %v4203_v16, %v9342_v47 }
 0x7e3   : > { %4318 = vmax.xlane.f32.xlu1 %v4317_v40  ;;  %4321 = vmax.xlane.f32.xlu0 %v4320_v15 }
 0x7e4   : > { %v9496_v33 = vadd.f32 %v4201_v21, %v9325_v5  ;;  %v4329_v45 = vsel %vm1449_vm2, %v9499_v14, -inf }
 0x7e6   : > { %v4323_v4 = vsel %vm1449_vm2, %v9496_v33, -inf }
 0x7e7   : > { %4327 = vmax.xlane.f32.xlu0 %v4326_v36  ;;  %4324 = vmax.xlane.f32.xlu1 %v4323_v4 }
 0x7eb   : > { %4330 = vmax.xlane.f32.xlu1 %v4329_v45 }
 0x80b   : > { %v4238_v53 = vpop.xlane.xlu1 %4237 }
 0x80c   : > { %v4332_v50 = vsub.f32 %v9286_v10, %v4238_v53 }
 0x80e   : > { %v4364_v5 = vmul.f32 1.442695, %v4332_v50 }
 0x80f   : > { %v4247_v7 = vpop.xlane.xlu1 %4246  ;;  %v4241_v2 = vpop.xlane.xlu0 %4240 }
 0x810   : > { %7296 = vpow2.f32 %v4364_v5  ;;  %v4335_v47 = vsub.f32 %v9301_v48, %v4247_v7  ;;  %v4333_v40 = vsub.f32 %v9306_v56, %v4241_v2 }
 0x812   : > { %v4366_v16 = vmul.f32 1.442695, %v4333_v40  ;;  %v4370_v21 = vmul.f32 1.442695, %v4335_v47 }
 0x813   : > { %v4244_v15 = vpop.xlane.xlu0 %4243 }
 0x814   : > { %v4334_v36 = vsub.f32 %v9309_v26, %v4244_v15  ;;  %7298 = vpow2.f32 %v4366_v16 }
 0x815   : > { %7300 = vpow2.f32 %v4370_v21 }
 0x816   : > { %v4368_v4 = vmul.f32 1.442695, %v4334_v36 }
 0x817   : > { %v4253_v45 = vpop.xlane.xlu1 %4252  ;;  %v4250_v42 = vpop.xlane.xlu0 %4249 }
 0x818   : > { %7302 = vpow2.f32 %v4368_v4  ;;  %v4337_v10 = vsub.f32 %v9345_v44, %v4253_v45  ;;  %v4336_v53 = vsub.f32 %v9332_v43, %v4250_v42 }
 0x81a   : > { %v4374_v50 = vmul.f32 1.442695, %v4337_v10  ;;  %v4372_v5 = vmul.f32 1.442695, %v4336_v53 }
 0x81b   : > { %v4259_v48 = vpop.xlane.xlu1 %4258  ;;  %v4256_v7 = vpop.xlane.xlu0 %4255 }
 0x81c   : > { %7304 = vpow2.f32 %v4374_v50  ;;  %v4339_v56 = vsub.f32 %v9353_v59, %v4259_v48  ;;  %v4338_v2 = vsub.f32 %v9350_v60, %v4256_v7 }
 0x81d   : > { %v9515_v26 = vpop.eup %7296  ;;  %7306 = vpow2.f32 %v4372_v5 }
 0x81e   : > { %v4378_v47 = vmul.f32 1.442695, %v4339_v56  ;;  %v4376_v40 = vmul.f32 1.442695, %v4338_v2  ;;  %v4428_v16 = vsel %vm1449_vm2, %v9515_v26, 0.0 }
 0x81f   : > { %4429 = vadd.xlane.f32.xlu0 %v4428_v16 }
 0x820   : > { %7308 = vpow2.f32 %v4378_v47 }
 0x821   : > { %7310 = vpow2.f32 %v4376_v40  ;;  %v9519_v42 = vpop.eup %7298 }
 0x822   : > { %v4431_v43 = vsel %vm1449_vm2, %v9519_v42, 0.0  ;;  %v9523_v44 = vpop.eup %7300 }
 0x823   : > { %4432 = vadd.xlane.f32.xlu1 %v4431_v43  ;;  %v4437_v21 = vsel %vm1449_vm2, %v9523_v44, 0.0 }
 0x825   : > { %v9525_v60 = vpop.eup %7302 }
 0x826   : > { %v4434_v59 = vsel %vm1449_vm2, %v9525_v60, 0.0 }
 0x827   : > { %4435 = vadd.xlane.f32.xlu0 %v4434_v59  ;;  %4438 = vadd.xlane.f32.xlu1 %v4437_v21 }
 0x829   : > { %v9531_v15 = vpop.eup %7304 }
 0x82a   : > { %v9533_v36 = vpop.eup %7306  ;;  %v4443_v4 = vsel %vm1449_vm2, %v9531_v15, 0.0 }
 0x82b   : > { %v4440_v45 = vsel %vm1449_vm2, %v9533_v36, 0.0  ;;  %4444 = vadd.xlane.f32.xlu1 %v4443_v4 }
 0x82c   : > { %4441 = vadd.xlane.f32.xlu0 %v4440_v45 }
 0x82d   : > { %v9539_v10 = vpop.eup %7308 }
 0x82e   : > { %v9541_v53 = vpop.eup %7310  ;;  %v4449_v50 = vsel %vm1449_vm2, %v9539_v10, 0.0 }
 0x82f   : > { %v4446_v5 = vsel %vm1449_vm2, %v9541_v53, 0.0  ;;  %4450 = vadd.xlane.f32.xlu1 %v4449_v50 }
 0x830   : > { %4447 = vadd.xlane.f32.xlu0 %v4446_v5 }
 0x844   : > { %v4262_v48 = vpop.xlane.xlu0 %4261 }
 0x845   : > { %v4340_v7 = vsub.f32 %v9388_v25, %v4262_v48 }
 0x847   : > { %v4380_v56 = vmul.f32 1.442695, %v4340_v7 }
 0x848   : > { %v4265_v2 = vpop.xlane.xlu1 %4264  ;;  %v4268_v47 = vpop.xlane.xlu0 %4267 }
 0x849   : > { %7312 = vpow2.f32 %v4380_v56  ;;  %v4341_v40 = vsub.f32 %v9396_v12, %v4265_v2  ;;  %v4342_v16 = vsub.f32 %v9391_v3, %v4268_v47 }
 0x84b   : > { %v4382_v43 = vmul.f32 1.442695, %v4341_v40  ;;  %v4384_v59 = vmul.f32 1.442695, %v4342_v16 }
 0x84c   : > { %v4271_v21 = vpop.xlane.xlu1 %4270  ;;  %v4274_v4 = vpop.xlane.xlu0 %4273 }
 0x84d   : > { %7314 = vpow2.f32 %v4382_v43  ;;  %v4343_v45 = vsub.f32 %v9399_v46, %v4271_v21  ;;  %v4344_v50 = vsub.f32 %v9406_v35, %v4274_v4 }
 0x84e   : > { %7316 = vpow2.f32 %v4384_v59 }
 0x84f   : > { %v4386_v5 = vmul.f32 1.442695, %v4343_v45  ;;  %v4388_v25 = vmul.f32 1.442695, %v4344_v50 }
 0x850   : > { %v4277_v48 = vpop.xlane.xlu1 %4276  ;;  %v4280_v7 = vpop.xlane.xlu0 %4279 }
 0x851   : > { %7318 = vpow2.f32 %v4386_v5  ;;  %v4345_v56 = vsub.f32 %v9416_v58, %v4277_v48  ;;  %v4346_v12 = vsub.f32 %v9411_v18, %v4280_v7 }
 0x852   : > { %7320 = vpow2.f32 %v4388_v25 }
 0x853   : > { %v4390_v3 = vmul.f32 1.442695, %v4345_v56  ;;  %v4392_v2 = vmul.f32 1.442695, %v4346_v12 }
 0x854   : > { %v4283_v47 = vpop.xlane.xlu1 %4282  ;;  %v4286_v40 = vpop.xlane.xlu0 %4285 }
 0x855   : > { %7322 = vpow2.f32 %v4390_v3  ;;  %v4347_v46 = vsub.f32 %v9422_v34, %v4283_v47  ;;  %v4348_v35 = vsub.f32 %v9419_v49, %v4286_v40 }
 0x856   : > { %v9556_v16 = vpop.eup %7312  ;;  %7324 = vpow2.f32 %v4392_v2 }
 0x857   : > { %v4394_v43 = vmul.f32 1.442695, %v4347_v46  ;;  %v4396_v59 = vmul.f32 1.442695, %v4348_v35  ;;  %v4452_v58 = vsel %vm1449_vm2, %v9556_v16, 0.0 }
 0x858   : > { %v4289_v21 = vpop.xlane.xlu1 %4288  ;;  %4453 = vadd.xlane.f32.xlu0 %v4452_v58  ;;  %v4292_v18 = vpop.xlane.xlu0 %4291 }
 0x859   : > { %7326 = vpow2.f32 %v4394_v43  ;;  %v4349_v4 = vsub.f32 %v9432_v28, %v4289_v21  ;;  %v4350_v45 = vsub.f32 %v9429_v54, %v4292_v18 }
 0x85a   : > { %v9562_v50 = vpop.eup %7314  ;;  %7328 = vpow2.f32 %v4396_v59 }
 0x85b   : > { %v9564_v34 = vpop.eup %7316  ;;  %v4398_v49 = vmul.f32 1.442695, %v4349_v4  ;;  %v4400_v5 = vmul.f32 1.442695, %v4350_v45  ;;  %v4455_v25 = vsel %vm1449_vm2, %v9562_v50, 0.0 }
 0x85c   : > { %v4295_v48 = vpop.xlane.xlu1 %4294  ;;  %4456 = vadd.xlane.f32.xlu1 %v4455_v25  ;;  %v4458_v7 = vsel %vm1449_vm2, %v9564_v34, 0.0  ;;  %v4298_v56 = vpop.xlane.xlu0 %4297 }
 0x85d   : > { %7330 = vpow2.f32 %v4398_v49  ;;  %v4351_v28 = vsub.f32 %v9441_v30, %v4295_v48  ;;  %4459 = vadd.xlane.f32.xlu0 %v4458_v7  ;;  %v4352_v54 = vsub.f32 %v9444_v0, %v4298_v56 }
 0x85e   : > { %v9572_v12 = vpop.eup %7318  ;;  %7332 = vpow2.f32 %v4400_v5 }
 0x85f   : > { %v9574_v3 = vpop.eup %7320  ;;  %v4402_v2 = vmul.f32 1.442695, %v4351_v28  ;;  %v4404_v47 = vmul.f32 1.442695, %v4352_v54  ;;  %v4461_v40 = vsel %vm1449_vm2, %v9572_v12, 0.0 }
 0x860   : > { %v4301_v46 = vpop.xlane.xlu1 %4300  ;;  %4462 = vadd.xlane.f32.xlu1 %v4461_v40  ;;  %v4464_v35 = vsel %vm1449_vm2, %v9574_v3, 0.0  ;;  %v4304_v43 = vpop.xlane.xlu0 %4303 }
 0x861   : > { %7334 = vpow2.f32 %v4402_v2  ;;  %v4353_v30 = vsub.f32 %v9452_v61, %v4301_v46  ;;  %4465 = vadd.xlane.f32.xlu0 %v4464_v35  ;;  %v4354_v0 = vsub.f32 %v9449_v22, %v4304_v43 }
 0x862   : > { %v9582_v59 = vpop.eup %7322  ;;  %7336 = vpow2.f32 %v4404_v47 }
 0x863   : > { %v9584_v58 = vpop.eup %7324  ;;  %v4406_v21 = vmul.f32 1.442695, %v4353_v30  ;;  %v4408_v18 = vmul.f32 1.442695, %v4354_v0  ;;  %v4467_v4 = vsel %vm1449_vm2, %v9582_v59, 0.0 }
 0x864   : > { %v4307_v45 = vpop.xlane.xlu1 %4306  ;;  %4468 = vadd.xlane.f32.xlu1 %v4467_v4  ;;  %v4470_v49 = vsel %vm1449_vm2, %v9584_v58, 0.0  ;;  %v4310_v5 = vpop.xlane.xlu0 %4309 }
 0x865   : > { %7338 = vpow2.f32 %v4406_v21  ;;  %v4355_v61 = vsub.f32 %v9461_v62, %v4307_v45  ;;  %4471 = vadd.xlane.f32.xlu0 %v4470_v49  ;;  %v4356_v22 = vsub.f32 %v9466_v63, %v4310_v5 }
 0x866   : > { %v9592_v25 = vpop.eup %7326  ;;  %7340 = vpow2.f32 %v4408_v18 }
 0x867   : > { %v9594_v48 = vpop.eup %7328  ;;  %v4410_v7 = vmul.f32 1.442695, %v4355_v61  ;;  %v4412_v56 = vmul.f32 1.442695, %v4356_v22  ;;  %v4473_v28 = vsel %vm1449_vm2, %v9592_v25, 0.0 }
 0x868   : > { %v4313_v54 = vpop.xlane.xlu1 %4312  ;;  %4474 = vadd.xlane.f32.xlu1 %v4473_v28  ;;  %v4476_v2 = vsel %vm1449_vm2, %v9594_v48, 0.0  ;;  %v4316_v47 = vpop.xlane.xlu0 %4315 }
 0x869   : > { %7342 = vpow2.f32 %v4410_v7  ;;  %v4357_v62 = vsub.f32 %v9476_v38, %v4313_v54  ;;  %4477 = vadd.xlane.f32.xlu0 %v4476_v2  ;;  %v4358_v63 = vsub.f32 %v9469_v11, %v4316_v47 }
 0x86a   : > { %v9602_v40 = vpop.eup %7330  ;;  %7344 = vpow2.f32 %v4412_v56 }
 0x86b   : > { %v9604_v46 = vpop.eup %7332  ;;  %v4414_v35 = vmul.f32 1.442695, %v4357_v62  ;;  %v4416_v43 = vmul.f32 1.442695, %v4358_v63  ;;  %v4479_v30 = vsel %vm1449_vm2, %v9602_v40, 0.0 }
 0x86c   : > { %v4319_v0 = vpop.xlane.xlu1 %4318  ;;  %4480 = vadd.xlane.f32.xlu1 %v4479_v30  ;;  %v4482_v21 = vsel %vm1449_vm2, %v9604_v46, 0.0  ;;  %v4322_v18 = vpop.xlane.xlu0 %4321 }
 0x86d   : > { %7346 = vpow2.f32 %v4414_v35  ;;  %v4359_v38 = vsub.f32 %v9479_v20, %v4319_v0  ;;  %4483 = vadd.xlane.f32.xlu0 %v4482_v21  ;;  %v4360_v11 = vsub.f32 %v9486_v29, %v4322_v18 }
 0x86e   : > { %v9612_v4 = vpop.eup %7334  ;;  %7348 = vpow2.f32 %v4416_v43 }
 0x86f   : > { %v9614_v45 = vpop.eup %7336  ;;  %v4418_v49 = vmul.f32 1.442695, %v4359_v38  ;;  %v4420_v5 = vmul.f32 1.442695, %v4360_v11  ;;  %v4485_v61 = vsel %vm1449_vm2, %v9612_v4, 0.0 }
 0x870   : > { %v4325_v22 = vpop.xlane.xlu1 %4324  ;;  %4486 = vadd.xlane.f32.xlu1 %v4485_v61  ;;  %v4488_v7 = vsel %vm1449_vm2, %v9614_v45, 0.0  ;;  %v4328_v56 = vpop.xlane.xlu0 %4327 }
 0x871   : > { %7350 = vpow2.f32 %v4418_v49  ;;  %v4361_v20 = vsub.f32 %v9496_v33, %v4325_v22  ;;  %4489 = vadd.xlane.f32.xlu0 %v4488_v7  ;;  %v4362_v29 = vsub.f32 %v9491_v39, %v4328_v56 }
 0x872   : > { %v9622_v28 = vpop.eup %7338  ;;  %7352 = vpow2.f32 %v4420_v5 }
 0x873   : > { %v9624_v54 = vpop.eup %7340  ;;  %v4422_v2 = vmul.f32 1.442695, %v4361_v20  ;;  %v4424_v47 = vmul.f32 1.442695, %v4362_v29  ;;  %v4491_v62 = vsel %vm1449_vm2, %v9622_v28, 0.0 }
 0x874   : > { %v4331_v63 = vpop.xlane.xlu1 %4330  ;;  %4492 = vadd.xlane.f32.xlu1 %v4491_v62  ;;  %v4494_v35 = vsel %vm1449_vm2, %v9624_v54, 0.0  ;;  %v6103_v62 = vpack.c.bf16 %v9249_v9, %v9249_v9  ;;  %v6110_v9 = vpack.c.bf16 %v9311_v32, %v9311_v32  ;;  %v6114_v32 = vpack.c.bf16 %v9365_v27, %v9365_v27 }
 0x875   : > { %7354 = vpow2.f32 %v4422_v2  ;;  %v4363_v33 = vsub.f32 %v9499_v14, %v4331_v63  ;;  %4495 = vadd.xlane.f32.xlu0 %v4494_v35  ;;  %v6102_v63 = vpack.c.bf16 %v9245_v57, %v9245_v57  ;;  %v6104_v35 = vpack.c.bf16 %v9243_v24, %v9243_v24 }
 0x876   : > { %v9631_v39 = vpop.eup %7342  ;;  %7356 = vpow2.f32 %v4424_v47  ;;  %v6107_v57 = vpack.c.bf16 %v9257_v52, %v9257_v52  ;;  %v6108_v24 = vpack.c.bf16 %v9251_v55, %v9251_v55  ;;  %v6112_v55 = vpack.c.bf16 %v9293_v41, %v9293_v41 }
 0x877   : > { %v9633_v43 = vpop.eup %7344  ;;  %v4426_v30 = vmul.f32 1.442695, %v4363_v33  ;;  %v4497_v0 = vsel %vm1449_vm2, %v9631_v39, 0.0  ;;  %v6105_v33 = vpack.c.bf16 %v9247_v23, %v9247_v23  ;;  %v6109_v23 = vpack.c.bf16 %v9255_v6, %v9255_v6 }
 0x878   : > { %4498 = vadd.xlane.f32.xlu1 %v4497_v0  ;;  %v4500_v21 = vsel %vm1449_vm2, %v9633_v43, 0.0  ;;  %v6113_v6 = vpack.c.bf16 %v9329_v51, %v9329_v51  ;;  %v6116_v51 = vpack.c.bf16 %v9359_v1, %v9359_v1  ;;  %v6119_v1 = vpack.c.bf16 %v9265_v8, %v9265_v8 }
 0x879   : > { %7358 = vpow2.f32 %v4426_v30  ;;  %4501 = vadd.xlane.f32.xlu0 %v4500_v21  ;;  %v6106_v30 = vpack.c.bf16 %v9253_v37, %v9253_v37  ;;  %v6111_v37 = vpack.c.bf16 %v9347_v17, %v9347_v17  ;;  %v6115_v21 = vpack.c.bf16 %v9369_v19, %v9369_v19 }
 0x87a   : > { %v9639_v18 = vpop.eup %7346  ;;  %v6118_v19 = vpack.c.bf16 %v9261_v13, %v9261_v13 }
 0x87b   : > { %v9641_v38 = vpop.eup %7348  ;;  %v4503_v14 = vsel %vm1449_vm2, %v9639_v18, 0.0 }
 0x87c   : > { %4504 = vadd.xlane.f32.xlu1 %v4503_v14  ;;  %v4506_v11 = vsel %vm1449_vm2, %v9641_v38, 0.0  ;;  %v6117_v14 = vpack.c.bf16 %v9367_v31, %v9367_v31 }
 0x87d   : > { %4507 = vadd.xlane.f32.xlu0 %v4506_v11 }
 0x87e   : > { %v9647_v49 = vpop.eup %7350 }
 0x87f   : > { %v9649_v5 = vpop.eup %7352  ;;  %v4509_v61 = vsel %vm1449_vm2, %v9647_v49, 0.0 }
 0x880   : > { %4510 = vadd.xlane.f32.xlu1 %v4509_v61  ;;  %v4512_v22 = vsel %vm1449_vm2, %v9649_v5, 0.0 }
 0x881   : > { %4513 = vadd.xlane.f32.xlu0 %v4512_v22 }
 0x882   : > { %v9655_v7 = vpop.eup %7354 }
 0x883   : > { %v9657_v56 = vpop.eup %7356  ;;  %v4515_v20 = vsel %vm1449_vm2, %v9655_v7, 0.0 }
 0x884   : > { %4516 = vadd.xlane.f32.xlu1 %v4515_v20  ;;  %v4518_v29 = vsel %vm1449_vm2, %v9657_v56, 0.0 }
 0x885   : > { %4519 = vadd.xlane.f32.xlu0 %v4518_v29  ;;  %v10275_v29 = vld [vmem:[#allocation12_spill] sm:$0xff] }
 0x886   : > { %v9663_v2 = vpop.eup %7358 }
 0x887   : > { %v4521_v47 = vsel %vm1449_vm2, %v9663_v2, 0.0 }
 0x888   : > { %4522 = vadd.xlane.f32.xlu1 %v4521_v47  ;;  %v6120_v47 = vpack.c.bf16 %v10275_v29, %v10275_v29 }
 0x899   : > { %3625 = vrot.lane.b32.xlu1 %v6103_v62, %s7433_s22 }
 0x89b   : > { %3623 = vrot.lane.b32.xlu0 %v6102_v63, %s7433_s22  ;;  %v10276_v63 = vld [vmem:[#allocation27_spill] sm:$0xff] }
 0x89d   : > { %3627 = vrot.lane.b32.xlu1 %v6104_v35, %s7433_s22  ;;  %v6121_v35 = vpack.c.bf16 %v10276_v63, %v10276_v63 }
 0x89f   : > { %3629 = vrot.lane.b32.xlu0 %v6105_v33, %s7433_s22 }
 0x8a1   : > { %3631 = vrot.lane.b32.xlu1 %v6106_v30, %s7433_s22 }
 0x8a3   : > { %3633 = vrot.lane.b32.xlu0 %v6107_v57, %s7433_s22  ;;  %v10277_v57 = vld [vmem:[#allocation23_spill] sm:$0xff] }
 0x8a5   : > { %3635 = vrot.lane.b32.xlu1 %v6108_v24, %s7433_s22  ;;  %v6122_v24 = vpack.c.bf16 %v10277_v57, %v10277_v57 }
 0x8a7   : > { %3637 = vrot.lane.b32.xlu0 %v6109_v23, %s7433_s22 }
 0x8a8   : > { %v4430_v52 = vpop.xlane.xlu0 %4429 }
 0x8a9   : > { %3639 = vrot.lane.b32.xlu1 %v6110_v9, %s7433_s22  ;;  %7360 = vrcp.f32 %v4430_v52 }
 0x8ab   : > { %3641 = vrot.lane.b32.xlu0 %v6111_v37, %s7433_s22 }
 0x8ac   : > { %v4433_v0 = vpop.xlane.xlu1 %4432 }
 0x8ad   : > { %3643 = vrot.lane.b32.xlu1 %v6112_v55, %s7433_s22  ;;  %7362 = vrcp.f32 %v4433_v0  ;;  %v10279_v55 = vld [vmem:[#allocation16_spill] sm:$0xff] }
 0x8af   : > { %3645 = vrot.lane.b32.xlu0 %v6113_v6, %s7433_s22  ;;  %v6124_v6 = vpack.c.bf16 %v10279_v55, %v10279_v55 }
 0x8b0   : > { %v4436_v17 = vpop.xlane.xlu0 %4435  ;;  %v4439_v41 = vpop.xlane.xlu1 %4438 }
 0x8b1   : > { %7364 = vrcp.f32 %v4436_v17  ;;  %3647 = vrot.lane.b32.xlu1 %v6114_v32, %s7433_s22  ;;  %v10281_v17 = vld [vmem:[#allocation43_spill] sm:$0xff] }
 0x8b2   : > { %7366 = vrcp.f32 %v4439_v41  ;;  %v10282_v41 = vld [vmem:[#allocation44_spill] sm:$0xff] }
 0x8b3   : > { %3649 = vrot.lane.b32.xlu0 %v6115_v21, %s7433_s22 }
 0x8b4   : > { %v4445_v27 = vpop.xlane.xlu1 %4444 }
 0x8b5   : > { %v4442_v11 = vpop.xlane.xlu0 %4441  ;;  %3651 = vrot.lane.b32.xlu1 %v6116_v51, %s7433_s22  ;;  %7368 = vrcp.f32 %v4445_v27 }
 0x8b6   : > { %7370 = vrcp.f32 %v4442_v11  ;;  %v7361_v61 = vpop.eup %7360 }
 0x8b7   : > { %3653 = vrot.lane.b32.xlu0 %v6117_v14, %s7433_s22  ;;  %v4556_v13 = vmul.f32 %v7361_v61, %v9515_v26  ;;  %v10278_v26 = vld [vmem:[#allocation22_spill] sm:$0xff] }
 0x8b8   : > { %v4451_v22 = vpop.xlane.xlu1 %4450 }
 0x8b9   : > { %v4448_v20 = vpop.xlane.xlu0 %4447  ;;  %3655 = vrot.lane.b32.xlu1 %v6118_v19, %s7433_s22  ;;  %7372 = vrcp.f32 %v4451_v22  ;;  %v10283_v19 = vld [vmem:[#allocation41_spill] sm:$0xff] }
 0x8ba   : > { %v7363_v31 = vpop.eup %7362  ;;  %7374 = vrcp.f32 %v4448_v20 }
 0x8bb   : > { %3657 = vrot.lane.b32.xlu0 %v6119_v1, %s7433_s22  ;;  %v4557_v62 = vmul.f32 %v7363_v31, %v9519_v42  ;;  %v6123_v42 = vpack.c.bf16 %v10278_v26, %v10278_v26 }
 0x8bd   : > { %3659 = vrot.lane.b32.xlu1 %v6120_v47, %s7433_s22  ;;  %v4588_v33 = vpack.c.bf16 %v4557_v62, %v4556_v13 }
 0x8be   : > { %v7365_v8 = vpop.eup %7364 }
 0x8bf   : > { %v7367_v30 = vpop.eup %7366  ;;  %v4558_v23 = vmul.f32 %v7365_v8, %v9525_v60  ;;  %3661 = vrot.lane.b32.xlu0 %v6121_v35, %s7433_s22  ;;  %6806 = vmatprep.mubr.msk.bf16.mxu0 %vm1449_vm2, %v4588_v33 }
 0x8c0   : > { %v4559_v9 = vmul.f32 %v7367_v30, %v9523_v44  ;;  %v10280_v44 = vld [vmem:[#allocation24_spill] sm:$0xff] }
 0x8c1   : > { %3663 = vrot.lane.b32.xlu1 %v6122_v24, %s7433_s22  ;;  %v6125_v32 = vpack.c.bf16 %v10280_v44, %v10280_v44 }
 0x8c2   : > { %v4589_v37 = vpack.c.bf16 %v4559_v9, %v4558_v23  ;;  %v7369_v52 = vpop.eup %7368 }
 0x8c3   : > { %3665 = vrot.lane.b32.xlu0 %v6123_v42, %s7433_s22  ;;  %v7371_v0 = vpop.eup %7370  ;;  %v4561_v60 = vmul.f32 %v7369_v52, %v9531_v15 }
 0x8c4   : > { %6807 = vmatmul.mubr.msk.bf16.vlgmr.msra.gmra.mxu0 %vm1449_vm2, %v4589_v37  ;;  %v4560_v21 = vmul.f32 %v7371_v0, %v9533_v36  ;;  %v10284_v36 = vld [vmem:[#allocation42_spill] sm:$0xff] }
 0x8c5   : > { %6831 = vmatpush3.bf16.msra.mxu0 %v10281_v17  ;;  %3667 = vrot.lane.b32.xlu1 %v6124_v6, %s7433_s22 }
 0x8c6   : > { %6832 = vmatprep.subr.bf16.mxu0 %v10282_v41  ;;  %v7373_v51 = vpop.eup %7372  ;;  %v4590_v14 = vpack.c.bf16 %v4561_v60, %v4560_v21  ;;  %v10286_v60 = vld [vmem:[#allocation48_spill] sm:$0xff] }
 0x8c7   : > { %3669 = vrot.lane.b32.xlu0 %v6125_v32, %s7433_s22  ;;  %v7375_v27 = vpop.eup %7374  ;;  %v4563_v11 = vmul.f32 %v7373_v51, %v9539_v10  ;;  %v10287_v51 = vld [vmem:[#allocation45_spill] sm:$0xff] }
 0x8c8   : > { %6810 = vmatprep.mubr.msk.bf16.mxu0 %vm1449_vm2, %v4590_v14  ;;  %v4562_v15 = vmul.f32 %v7375_v27, %v9541_v53 }
 0x8c9   : > { %6833 = vmatpush3.bf16.msra.mxu0 %v10282_v41 }
 0x8ca   : > { %6834 = vmatprep.subr.bf16.mxu0 %v10283_v19  ;;  %v4591_v61 = vpack.c.bf16 %v4563_v11, %v4562_v15 }
 0x8cc   : > { %6811 = vmatmul.mubr.msk.bf16.gmra.mxu0 %vm1449_vm2, %v4591_v61  ;;  %v10288_v61 = vld [vmem:[#allocation46_spill] sm:$0xff] }
 0x8cd   : > { %6835 = vmatpush3.bf16.msra.mxu0 %v10283_v19 }
 0x8ce   : > { %6836 = vmatprep.subr.bf16.mxu0 %v10284_v36 }
 0x8d1   : > { %6837 = vmatpush3.bf16.msra.mxu0 %v10284_v36 }
 0x8e1   : > { %v4454_v1 = vpop.xlane.xlu0 %4453 }
 0x8e2   : > { %7376 = vrcp.f32 %v4454_v1 }
 0x8e5   : > { %v4457_v10 = vpop.xlane.xlu1 %4456 }
 0x8e6   : > { %7378 = vrcp.f32 %v4457_v10  ;;  %v4460_v22 = vpop.xlane.xlu0 %4459 }
 0x8e7   : > { %7380 = vrcp.f32 %v4460_v22 }
 0x8e9   : > { %v4463_v20 = vpop.xlane.xlu1 %4462 }
 0x8ea   : > { %7382 = vrcp.f32 %v4463_v20  ;;  %v4466_v53 = vpop.xlane.xlu0 %4465 }
 0x8eb   : > { %7384 = vrcp.f32 %v4466_v53 }
 0x8ed   : > { %v4469_v31 = vpop.xlane.xlu1 %4468 }
 0x8ee   : > { %7386 = vrcp.f32 %v4469_v31  ;;  %v4472_v29 = vpop.xlane.xlu0 %4471 }
 0x8ef   : > { %7388 = vrcp.f32 %v4472_v29  ;;  %v7377_v47 = vpop.eup %7376 }
 0x8f0   : > { %v4564_v35 = vmul.f32 %v7377_v47, %v9556_v16 }
 0x8f1   : > { %v4475_v13 = vpop.xlane.xlu1 %4474 }
 0x8f2   : > { %7390 = vrcp.f32 %v4475_v13  ;;  %v4478_v62 = vpop.xlane.xlu0 %4477 }
 0x8f3   : > { %v7379_v63 = vpop.eup %7378  ;;  %7392 = vrcp.f32 %v4478_v62 }
 0x8f4   : > { %v4565_v8 = vmul.f32 %v7379_v63, %v9562_v50  ;;  %v7381_v33 = vpop.eup %7380 }
 0x8f5   : > { %v4481_v30 = vpop.xlane.xlu1 %4480  ;;  %v4566_v9 = vmul.f32 %v7381_v33, %v9564_v34  ;;  %v10285_v34 = vld [vmem:[#allocation47_spill] sm:$0xff] }
 0x8f6   : > { %7394 = vrcp.f32 %v4481_v30  ;;  %v4484_v57 = vpop.xlane.xlu0 %4483  ;;  %v4592_v24 = vpack.c.bf16 %v4565_v8, %v4564_v35 }
 0x8f7   : > { %v7383_v23 = vpop.eup %7382  ;;  %7396 = vrcp.f32 %v4484_v57 }
 0x8f8   : > { %v4567_v26 = vmul.f32 %v7383_v23, %v9572_v12  ;;  %6822 = vmatprep.mubr.msk.bf16.mxu1 %vm1449_vm2, %v4592_v24  ;;  %v7385_v42 = vpop.eup %7384 }
 0x8f9   : > { %v4487_v37 = vpop.xlane.xlu1 %4486  ;;  %v4568_v50 = vmul.f32 %v7385_v42, %v9574_v3 }
 0x8fa   : > { %v4593_v52 = vpack.c.bf16 %v4567_v26, %v4566_v9  ;;  %7398 = vrcp.f32 %v4487_v37  ;;  %v4490_v16 = vpop.xlane.xlu0 %4489 }
 0x8fb   : > { %v7387_v55 = vpop.eup %7386  ;;  %7400 = vrcp.f32 %v4490_v16 }
 0x8fc   : > { %6823 = vmatmul.mubr.msk.bf16.vlgmr.msra.gmra.mxu1 %vm1449_vm2, %v4593_v52  ;;  %v4569_v6 = vmul.f32 %v7387_v55, %v9582_v59  ;;  %v7389_v0 = vpop.eup %7388 }
 0x8fd   : > { %6847 = vmatpush3.bf16.msra.mxu1 %v10285_v34  ;;  %v4493_v12 = vpop.xlane.xlu1 %4492  ;;  %v4570_v21 = vmul.f32 %v7389_v0, %v9584_v58 }
 0x8fe   : > { %7402 = vrcp.f32 %v4493_v12  ;;  %6848 = vmatprep.subr.bf16.mxu1 %v10286_v60  ;;  %v4496_v44 = vpop.xlane.xlu0 %4495  ;;  %v4594_v32 = vpack.c.bf16 %v4569_v6, %v4568_v50 }
 0x8ff   : > { %v7391_v17 = vpop.eup %7390  ;;  %7404 = vrcp.f32 %v4496_v44 }
 0x900   : > { %6826 = vmatprep.mubr.msk.bf16.mxu1 %vm1449_vm2, %v4594_v32  ;;  %v4571_v41 = vmul.f32 %v7391_v17, %v9592_v25  ;;  %v7393_v3 = vpop.eup %7392 }
 0x901   : > { %6849 = vmatpush3.bf16.msra.mxu1 %v10286_v60  ;;  %v4499_v59 = vpop.xlane.xlu1 %4498  ;;  %v4572_v15 = vmul.f32 %v7393_v3, %v9594_v48 }
 0x902   : > { %7406 = vrcp.f32 %v4499_v59  ;;  %6850 = vmatprep.subr.bf16.mxu1 %v10287_v51  ;;  %v4502_v14 = vpop.xlane.xlu0 %4501  ;;  %v4595_v27 = vpack.c.bf16 %v4571_v41, %v4570_v21 }
 0x903   : > { %v7395_v11 = vpop.eup %7394  ;;  %7408 = vrcp.f32 %v4502_v14 }
 0x904   : > { %6827 = vmatmul.mubr.msk.bf16.gmra.mxu1 %vm1449_vm2, %v4595_v27  ;;  %v4573_v19 = vmul.f32 %v7395_v11, %v9602_v40  ;;  %v7397_v58 = vpop.eup %7396 }
 0x905   : > { %6851 = vmatpush3.bf16.msra.mxu1 %v10287_v51  ;;  %v4505_v25 = vpop.xlane.xlu1 %4504  ;;  %v4574_v22 = vmul.f32 %v7397_v58, %v9604_v46 }
 0x906   : > { %7410 = vrcp.f32 %v4505_v25  ;;  %6852 = vmatprep.subr.bf16.mxu1 %v10288_v61  ;;  %v4508_v36 = vpop.xlane.xlu0 %4507  ;;  %v4596_v1 = vpack.c.bf16 %v4573_v19, %v4572_v15 }
 0x907   : > { %v7399_v10 = vpop.eup %7398  ;;  %7412 = vrcp.f32 %v4508_v36 }
 0x908   : > { %v4575_v20 = vmul.f32 %v7399_v10, %v9612_v4  ;;  %6838 = vmatprep.mubr.msk.bf16.mxu0 %vm1449_vm2, %v4596_v1  ;;  %v7401_v48 = vpop.eup %7400 }
 0x909   : > { %6853 = vmatpush3.bf16.msra.mxu1 %v10288_v61  ;;  %v4511_v40 = vpop.xlane.xlu1 %4510  ;;  %v4576_v47 = vmul.f32 %v7401_v48, %v9614_v45 }
 0x90a   : > { %v4597_v53 = vpack.c.bf16 %v4575_v20, %v4574_v22  ;;  %7414 = vrcp.f32 %v4511_v40  ;;  %v4514_v31 = vpop.xlane.xlu0 %4513  ;;  %v7018_v40 = vld [vmem:[%s10070_s4 + $0x28] sm:$0xff]  }
 0x90b   : > { %v7403_v29 = vpop.eup %7402  ;;  %7416 = vrcp.f32 %v4514_v31  ;;  %6862 = vmatprep.subr.bf16.mxu0 %v7018_v40  ;;  %v7020_v31 = vld [vmem:[%s10070_s4 + $0x18] sm:$0xff]  }
 0x90c   : > { %6839 = vmatmul.mubr.msk.bf16.vlgmr.msra.gmra.mxu0 %vm1449_vm2, %v4597_v53  ;;  %v4577_v46 = vmul.f32 %v7403_v29, %v9622_v28  ;;  %v7405_v13 = vpop.eup %7404  ;;  %v7019_v53 = vld [vmem:[%s10070_s4 + $0x20] sm:$0xff]   ;;  %v7021_v29 = vld [vmem:[%s10070_s4 + $0x10] sm:$0xff]  }
 0x90d   : > { %v4517_v4 = vpop.xlane.xlu1 %4516  ;;  %v4578_v8 = vmul.f32 %v7405_v13, %v9624_v54  ;;  %6863 = vmatpush3.bf16.msra.mxu0 %v7018_v40  ;;  %v7022_v13 = vld [vmem:[%s10070_s4 + $0x8] sm:$0xff]  }
 0x90e   : > { %7418 = vrcp.f32 %v4517_v4  ;;  %v4520_v62 = vpop.xlane.xlu0 %4519  ;;  %v4598_v63 = vpack.c.bf16 %v4577_v46, %v4576_v47  ;;  %6864 = vmatprep.subr.bf16.mxu0 %v7019_v53 }
 0x90f   : > { %v7407_v35 = vpop.eup %7406  ;;  %7420 = vrcp.f32 %v4520_v62 }
 0x910   : > { %6842 = vmatprep.mubr.msk.bf16.mxu0 %vm1449_vm2, %v4598_v63  ;;  %v4579_v33 = vmul.f32 %v7407_v35, %v9631_v39  ;;  %v7409_v30 = vpop.eup %7408 }
 0x911   : > { %v4523_v57 = vpop.xlane.xlu1 %4522  ;;  %v4580_v23 = vmul.f32 %v7409_v30, %v9633_v43  ;;  %6865 = vmatpush3.bf16.msra.mxu0 %v7019_v53  ;;  %v10293_v53 = vld [vmem:[#allocation9_spill] sm:$0xff] }
 0x912   : > { %7422 = vrcp.f32 %v4523_v57  ;;  %v3624_v45 = vpop.permute.xlu0 %3623  ;;  %v4599_v24 = vpack.c.bf16 %v4579_v33, %v4578_v8  ;;  %6866 = vmatprep.subr.bf16.mxu0 %v7020_v31  ;;  %v7023_v33 = vld [vmem:[%s10070_s4] sm:$0xff]  }
 0x913   : > { %v7411_v28 = vpop.eup %7410  ;;  %3720 = vst.msk [vmem:[#allocation2] sm:$0xf] %vm3719_vm4, %v3624_v45 }
 0x914   : > { %6843 = vmatmul.mubr.msk.bf16.gmra.mxu0 %vm1449_vm2, %v4599_v24  ;;  %v4581_v9 = vmul.f32 %v7411_v28, %v9639_v18  ;;  %v7413_v26 = vpop.eup %7412 }
 0x915   : > { %v3626_v42 = vpop.permute.xlu1 %3625  ;;  %v4582_v52 = vmul.f32 %v7413_v26, %v9641_v38  ;;  %6867 = vmatpush3.bf16.msra.mxu0 %v7020_v31  ;;  %v6130_v31 = vpack.c.bf16 %v10293_v53, %v10293_v53 }
 0x916   : > { %3721 = vst.msk [vmem:[#allocation2 + $0x4] sm:$0xf] %vm3719_vm4, %v3626_v42  ;;  %v3630_v54 = vpop.permute.xlu0 %3629  ;;  %v4600_v39 = vpack.c.bf16 %v4581_v9, %v4580_v23  ;;  %6868 = vmatprep.subr.bf16.mxu0 %v7021_v29 }
 0x917   : > { %v7415_v37 = vpop.eup %7414  ;;  %3723 = vst.msk [vmem:[#allocation2 + $0xc] sm:$0xf] %vm3719_vm4, %v3630_v54 }
 0x918   : > { %v4583_v16 = vmul.f32 %v7415_v37, %v9647_v49  ;;  %6854 = vmatprep.mubr.msk.bf16.mxu1 %vm1449_vm2, %v4600_v39  ;;  %v7417_v55 = vpop.eup %7416 }
 0x919   : > { %v3628_v50 = vpop.permute.xlu1 %3627  ;;  %v4584_v0 = vmul.f32 %v7417_v55, %v9649_v5  ;;  %6869 = vmatpush3.bf16.msra.mxu0 %v7021_v29 }
 0x91a   : > { %v4601_v43 = vpack.c.bf16 %v4583_v16, %v4582_v52  ;;  %3722 = vst.msk [vmem:[#allocation2 + $0x8] sm:$0xf] %vm3719_vm4, %v3628_v50  ;;  %v3634_v18 = vpop.permute.xlu0 %3633  ;;  %6870 = vmatprep.subr.bf16.mxu0 %v7022_v13 }
 0x91b   : > { %v7419_v6 = vpop.eup %7418  ;;  %3725 = vst.msk [vmem:[#allocation2 + $0x14] sm:$0xf] %vm3719_vm4, %v3634_v18 }
 0x91c   : > { %6855 = vmatmul.mubr.msk.bf16.vlgmr.msra.gmra.mxu1 %vm1449_vm2, %v4601_v43  ;;  %v4585_v34 = vmul.f32 %v7419_v6, %v9655_v7  ;;  %v7421_v38 = vpop.eup %7420  ;;  %v10289_v43 = vld [vmem:[#allocation18_spill] sm:$0xff] }
 0x91d   : > { %v3632_v12 = vpop.permute.xlu1 %3631  ;;  %v4586_v32 = vmul.f32 %v7421_v38, %v9657_v56  ;;  %6871 = vmatpush3.bf16.msra.mxu0 %v7022_v13  ;;  %v6126_v18 = vpack.c.bf16 %v10289_v43, %v10289_v43  ;;  %v10294_v13 = vld [vmem:[#allocation6_spill] sm:$0xff] }
 0x91e   : > { %3724 = vst.msk [vmem:[#allocation2 + $0x10] sm:$0xf] %vm3719_vm4, %v3632_v12  ;;  %v3638_v49 = vpop.permute.xlu0 %3637  ;;  %v4602_v60 = vpack.c.bf16 %v4585_v34, %v4584_v0  ;;  %6872 = vmatprep.subr.bf16.mxu0 %v7023_v33  ;;  %v10290_v34 = vld [vmem:[#allocation51_spill] sm:$0xff] }
 0x91f   : > { %v7423_v44 = vpop.eup %7422  ;;  %3727 = vst.msk [vmem:[#allocation2 + $0x1c] sm:$0xf] %vm3719_vm4, %v3638_v49  ;;  %v6127_v38 = vpack.c.bf16 %v10290_v34, %v10290_v34 }
 0x920   : > { %6858 = vmatprep.mubr.msk.bf16.mxu1 %vm1449_vm2, %v4602_v60  ;;  %v4587_v17 = vmul.f32 %v7423_v44, %v9663_v2  ;;  %v10291_v44 = vld [vmem:[#allocation14_spill] sm:$0xff] }
 0x921   : > { %v3636_v21 = vpop.permute.xlu1 %3635  ;;  %6873 = vmatpush3.bf16.msra.mxu0 %v7023_v33  ;;  %v10296_v33 = vld [vmem:[#allocation10_spill] sm:$0xff] }
 0x922   : > { %3726 = vst.msk [vmem:[#allocation2 + $0x18] sm:$0xf] %vm3719_vm4, %v3636_v21  ;;  %v3642_v5 = vpop.permute.xlu0 %3641  ;;  %v4603_v7 = vpack.c.bf16 %v4587_v17, %v4586_v32  ;;  %v6128_v32 = vpack.c.bf16 %v10291_v44, %v10291_v44  ;;  %v10292_v17 = vld [vmem:[#allocation21_spill] sm:$0xff] }
 0x923   : > { %3729 = vst.msk [vmem:[#allocation2 + $0x24] sm:$0xf] %vm3719_vm4, %v3642_v5  ;;  %v6129_v21 = vpack.c.bf16 %v10292_v17, %v10292_v17 }
 0x924   : > { %6859 = vmatmul.mubr.msk.bf16.gmra.mxu1 %vm1449_vm2, %v4603_v7 }
 0x925   : > { %v3640_v41 = vpop.permute.xlu1 %3639 }
 0x926   : > { %3728 = vst.msk [vmem:[#allocation2 + $0x20] sm:$0xf] %vm3719_vm4, %v3640_v41  ;;  %v3646_v3 = vpop.permute.xlu0 %3645 }
 0x927   : > { %3731 = vst.msk [vmem:[#allocation2 + $0x2c] sm:$0xf] %vm3719_vm4, %v3646_v3 }
 0x929   : > { %v3644_v59 = vpop.permute.xlu1 %3643 }
 0x92a   : > { %3730 = vst.msk [vmem:[#allocation2 + $0x28] sm:$0xf] %vm3719_vm4, %v3644_v59  ;;  %v3650_v56 = vpop.permute.xlu0 %3649 }
 0x92b   : > { %3733 = vst.msk [vmem:[#allocation2 + $0x34] sm:$0xf] %vm3719_vm4, %v3650_v56 }
 0x92d   : > { %v3648_v2 = vpop.permute.xlu1 %3647 }
 0x92e   : > { %3732 = vst.msk [vmem:[#allocation2 + $0x30] sm:$0xf] %vm3719_vm4, %v3648_v2  ;;  %v3654_v51 = vpop.permute.xlu0 %3653 }
 0x92f   : > { %3735 = vst.msk [vmem:[#allocation2 + $0x3c] sm:$0xf] %vm3719_vm4, %v3654_v51 }
 0x931   : > { %v3652_v14 = vpop.permute.xlu1 %3651 }
 0x932   : > { %3734 = vst.msk [vmem:[#allocation2 + $0x38] sm:$0xf] %vm3719_vm4, %v3652_v14  ;;  %v3658_v27 = vpop.permute.xlu0 %3657 }
 0x933   : > { %3737 = vst.msk [vmem:[#allocation2 + $0x44] sm:$0xf] %vm3719_vm4, %v3658_v27 }
 0x935   : > { %v3656_v11 = vpop.permute.xlu1 %3655 }
 0x936   : > { %3736 = vst.msk [vmem:[#allocation2 + $0x40] sm:$0xf] %vm3719_vm4, %v3656_v11  ;;  %v3662_v15 = vpop.permute.xlu0 %3661 }
 0x937   : > { %3739 = vst.msk [vmem:[#allocation2 + $0x4c] sm:$0xf] %vm3719_vm4, %v3662_v15 }
 0x939   : > { %v3660_v19 = vpop.permute.xlu1 %3659 }
 0x93a   : > { %3738 = vst.msk [vmem:[#allocation2 + $0x48] sm:$0xf] %vm3719_vm4, %v3660_v19  ;;  %v3666_v58 = vpop.permute.xlu0 %3665 }
 0x93b   : > { %3741 = vst.msk [vmem:[#allocation2 + $0x54] sm:$0xf] %vm3719_vm4, %v3666_v58 }
 0x93d   : > { %v3664_v25 = vpop.permute.xlu1 %3663 }
 0x93e   : > { %3740 = vst.msk [vmem:[#allocation2 + $0x50] sm:$0xf] %vm3719_vm4, %v3664_v25  ;;  %v3670_v61 = vpop.permute.xlu0 %3669 }
 0x93f   : > { %3743 = vst.msk [vmem:[#allocation2 + $0x5c] sm:$0xf] %vm3719_vm4, %v3670_v61 }
 0x941   : > { %v3668_v36 = vpop.permute.xlu1 %3667 }
 0x942   : > { %3742 = vst.msk [vmem:[#allocation2 + $0x58] sm:$0xf] %vm3719_vm4, %v3668_v36 }
 0x984   : > { %v6808_v1 = vpop.f32.mrf.mxu0 }
 0x985   : > { %v6136_v10 = vpack.c.bf16 %v6808_v1, %v6808_v1 }
 0x986   : > { %v4650_v22 = vpop.f32.mrf.mxu0 }
 0x987   : > { %5012 = vrot.lane.b32.xlu1 %v6136_v10, %s7434_s23  ;;  %v6134_v35 = vpack.c.bf16 %v4650_v22, %v4650_v22 }
 0x988   : > { %v6809_v20 = vpop.f32.mrf.mxu0 }
 0x989   : > { %v6137_v48 = vpack.c.bf16 %v6809_v20, %v6809_v20 }
 0x98a   : > { %v4653_v4 = vpop.f32.mrf.mxu0 }
 0x98b   : > { %5014 = vrot.lane.b32.xlu0 %v6137_v48, %s7434_s23  ;;  %v6135_v45 = vpack.c.bf16 %v4653_v4, %v4653_v4  ;;  %v6132_v4 = vpack.c.bf16 %v10294_v13, %v10294_v13 }
 0x98c   : > { %v6812_v30 = vpop.f32.mrf.mxu0 }
 0x98d   : > { %v6140_v9 = vpack.c.bf16 %v6812_v30, %v6812_v30  ;;  %v6133_v30 = vpack.c.bf16 %v10296_v33, %v10296_v33 }
 0x98e   : > { %v4666_v28 = vpop.f32.mrf.mxu0 }
 0x98f   : > { %v6138_v16 = vpack.c.bf16 %v4666_v28, %v4666_v28 }
 0x990   : > { %v6813_v42 = vpop.f32.mrf.mxu0 }
 0x991   : > { %v6141_v39 = vpack.c.bf16 %v6813_v42, %v6813_v42 }
 0x992   : > { %v4669_v50 = vpop.f32.mrf.mxu0 }
 0x993   : > { %v6139_v6 = vpack.c.bf16 %v4669_v50, %v4669_v50 }
 0x9bc   : > { %v6824_v47 = vpop.f32.mrf.mxu1 }
 0x9bd   : > { %v6144_v46 = vpack.c.bf16 %v6824_v47, %v6824_v47 }
 0x9be   : > { %v4727_v62 = vpop.f32.mrf.mxu1 }
 0x9bf   : > { %5028 = vrot.lane.b32.xlu1 %v6144_v46, %s7434_s23  ;;  %v6142_v24 = vpack.c.bf16 %v4727_v62, %v4727_v62  ;;  %v10295_v62 = vld [vmem:[#allocation3_spill] sm:$0xff] }
 0x9c0   : > { %v6825_v63 = vpop.f32.mrf.mxu1 }
 0x9c1   : > { %v6145_v8 = vpack.c.bf16 %v6825_v63, %v6825_v63  ;;  %v6131_v63 = vpack.c.bf16 %v10295_v62, %v10295_v62 }
 0x9c2   : > { %v4730_v57 = vpop.f32.mrf.mxu1 }
 0x9c3   : > { %5008 = vrot.lane.b32.xlu1 %v6134_v35, %s7434_s23  ;;  %5030 = vrot.lane.b32.xlu0 %v6145_v8, %s7434_s23  ;;  %v6143_v26 = vpack.c.bf16 %v4730_v57, %v4730_v57 }
 0x9c4   : > { %v6828_v23 = vpop.f32.mrf.mxu1 }
 0x9c5   : > { %v6148_v37 = vpack.c.bf16 %v6828_v23, %v6828_v23 }
 0x9c6   : > { %v4743_v54 = vpop.f32.mrf.mxu1 }
 0x9c7   : > { %5024 = vrot.lane.b32.xlu1 %v6142_v24, %s7434_s23  ;;  %5010 = vrot.lane.b32.xlu0 %v6135_v45, %s7434_s23  ;;  %v6146_v12 = vpack.c.bf16 %v4743_v54, %v4743_v54 }
 0x9c8   : > { %v6829_v52 = vpop.f32.mrf.mxu1 }
 0x9c9   : > { %v6149_v55 = vpack.c.bf16 %v6829_v52, %v6829_v52 }
 0x9ca   : > { %v4746_v60 = vpop.f32.mrf.mxu1 }
 0x9cb   : > { %5020 = vrot.lane.b32.xlu1 %v6140_v9, %s7434_s23  ;;  %5026 = vrot.lane.b32.xlu0 %v6143_v26, %s7434_s23  ;;  %v6147_v41 = vpack.c.bf16 %v4746_v60, %v4746_v60 }
 0x9cc   : > { %v6840_v0 = vpop.f32.mrf.mxu0 }
 0x9cd   : > { %v6152_v3 = vpack.c.bf16 %v6840_v0, %v6840_v0 }
 0x9ce   : > { %v4804_v49 = vpop.f32.mrf.mxu0 }
 0x9cf   : > { %5022 = vrot.lane.b32.xlu0 %v6141_v39, %s7434_s23  ;;  %5036 = vrot.lane.b32.xlu1 %v6148_v37, %s7434_s23  ;;  %v6150_v2 = vpack.c.bf16 %v4804_v49, %v4804_v49 }
 0x9d0   : > { %v6841_v5 = vpop.f32.mrf.mxu0 }
 0x9d1   : > { %v6153_v51 = vpack.c.bf16 %v6841_v5, %v6841_v5 }
 0x9d2   : > { %v4807_v59 = vpop.f32.mrf.mxu0 }
 0x9d3   : > { %5016 = vrot.lane.b32.xlu1 %v6138_v16, %s7434_s23  ;;  %5038 = vrot.lane.b32.xlu0 %v6149_v55, %s7434_s23  ;;  %v6151_v11 = vpack.c.bf16 %v4807_v59, %v4807_v59 }
 0x9d4   : > { %v6844_v14 = vpop.f32.mrf.mxu0 }
 0x9d5   : > { %v6156_v25 = vpack.c.bf16 %v6844_v14, %v6844_v14 }
 0x9d6   : > { %v4820_v19 = vpop.f32.mrf.mxu0 }
 0x9d7   : > { %3671 = vrot.lane.b32.xlu1 %v6126_v18, %s7433_s22  ;;  %5018 = vrot.lane.b32.xlu0 %v6139_v6, %s7434_s23  ;;  %v6154_v1 = vpack.c.bf16 %v4820_v19, %v4820_v19 }
 0x9d8   : > { %v6845_v36 = vpop.f32.mrf.mxu0 }
 0x9d9   : > { %v6157_v10 = vpack.c.bf16 %v6845_v36, %v6845_v36 }
 0x9da   : > { %v4823_v22 = vpop.f32.mrf.mxu0 }
 0x9db   : > { %5032 = vrot.lane.b32.xlu1 %v6146_v12, %s7434_s23  ;;  %3673 = vrot.lane.b32.xlu0 %v6127_v38, %s7433_s22  ;;  %v6155_v20 = vpack.c.bf16 %v4823_v22, %v4823_v22 }
 0x9dc   : > { %v6856_v7 = vpop.f32.mrf.mxu1 }
 0x9dd   : > { %v6160_v48 = vpack.c.bf16 %v6856_v7, %v6856_v7 }
 0x9de   : > { %v4881_v56 = vpop.f32.mrf.mxu1 }
 0x9df   : > { %3675 = vrot.lane.b32.xlu1 %v6128_v32, %s7433_s22  ;;  %3677 = vrot.lane.b32.xlu0 %v6129_v21, %s7433_s22  ;;  %v6158_v15 = vpack.c.bf16 %v4881_v56, %v4881_v56 }
 0x9e0   : > { %v6857_v27 = vpop.f32.mrf.mxu1 }
 0x9e1   : > { %v6161_v29 = vpack.c.bf16 %v6857_v27, %v6857_v27 }
 0x9e2   : > { %v4884_v58 = vpop.f32.mrf.mxu1 }
 0x9e3   : > { %5034 = vrot.lane.b32.xlu0 %v6147_v41, %s7434_s23  ;;  %5044 = vrot.lane.b32.xlu1 %v6152_v3, %s7434_s23  ;;  %v6159_v61 = vpack.c.bf16 %v4884_v58, %v4884_v58 }
 0x9e4   : > { %v6860_v40 = vpop.f32.mrf.mxu1 }
 0x9e5   : > { %v6164_v24 = vpack.c.bf16 %v6860_v40, %v6860_v40 }
 0x9e6   : > { %v4897_v46 = vpop.f32.mrf.mxu1 }
 0x9e7   : > { %5040 = vrot.lane.b32.xlu1 %v6150_v2, %s7434_s23  ;;  %5046 = vrot.lane.b32.xlu0 %v6153_v51, %s7434_s23  ;;  %v6162_v57 = vpack.c.bf16 %v4897_v46, %v4897_v46 }
 0x9e8   : > { %v6861_v8 = vpop.f32.mrf.mxu1 }
 0x9e9   : > { %v6165_v23 = vpack.c.bf16 %v6861_v8, %v6861_v8 }
 0x9ea   : > { %v4900_v45 = vpop.f32.mrf.mxu1 }
 0x9eb   : > { %5042 = vrot.lane.b32.xlu0 %v6151_v11, %s7434_s23  ;;  %5056 = vrot.lane.b32.xlu1 %v6158_v15, %s7434_s23  ;;  %v6163_v28 = vpack.c.bf16 %v4900_v45, %v4900_v45 }
 0x9ef   : > { %5052 = vrot.lane.b32.xlu1 %v6156_v25, %s7434_s23  ;;  %5058 = vrot.lane.b32.xlu0 %v6159_v61, %s7434_s23 }
 0x9f3   : > { %5048 = vrot.lane.b32.xlu1 %v6154_v1, %s7434_s23  ;;  %5054 = vrot.lane.b32.xlu0 %v6157_v10, %s7434_s23 }
 0x9f7   : > { %5060 = vrot.lane.b32.xlu1 %v6160_v48, %s7434_s23  ;;  %5050 = vrot.lane.b32.xlu0 %v6155_v20, %s7434_s23 }
 0x9f9   : > { %v5013_v47 = vpop.permute.xlu1 %5012 }
 0x9fa   : > { %5107 = vst.msk [vmem:[#allocation2 + $0x8] sm:$0xf] %vm5104_vm5, %v5013_v47 }
 0x9fb   : > { %3679 = vrot.lane.b32.xlu1 %v6130_v31, %s7433_s22  ;;  %5062 = vrot.lane.b32.xlu0 %v6161_v29, %s7434_s23 }
 0x9fd   : > { %v5015_v35 = vpop.permute.xlu0 %5014 }
 0x9fe   : > { %5108 = vst.msk [vmem:[#allocation2 + $0xc] sm:$0xf] %vm5104_vm5, %v5015_v35 }
 0x9ff   : > { %3683 = vrot.lane.b32.xlu1 %v6132_v4, %s7433_s22  ;;  %3681 = vrot.lane.b32.xlu0 %v6131_v63, %s7433_s22  ;;  %v9958_v63 = vld [vmem:[%s10071_s5] ss:$0 sm:$0xff] }
 0xa03   : > { %3685 = vrot.lane.b32.xlu0 %v6133_v30, %s7433_s22  ;;  %5064 = vrot.lane.b32.xlu1 %v6162_v57, %s7434_s23 }
 0xa05   : > { %v7025_v43 = vld [vmem:[#allocation2 + $0x8] sm:$0xff]  }
 0xa07   : > { %5068 = vrot.lane.b32.xlu1 %v6164_v24, %s7434_s23  ;;  %5066 = vrot.lane.b32.xlu0 %v6163_v28, %s7434_s23 }
 0xa0b   : > { %5070 = vrot.lane.b32.xlu0 %v6165_v23, %s7434_s23 }
 0xa31   : > { %v5029_v9 = vpop.permute.xlu1 %5028 }
 0xa32   : > { %5115 = vst.msk [vmem:[#allocation2 + $0x28] sm:$0xf] %vm5104_vm5, %v5029_v9 }
 0xa35   : > { %v5009_v26 = vpop.permute.xlu1 %5008  ;;  %v5031_v42 = vpop.permute.xlu0 %5030 }
 0xa36   : > { %5105 = vst.msk [vmem:[#allocation2] sm:$0xf] %vm5104_vm5, %v5009_v26  ;;  %5116 = vst.msk [vmem:[#allocation2 + $0x2c] sm:$0xf] %vm5104_vm5, %v5031_v42 }
 0xa39   : > { %v5025_v54 = vpop.permute.xlu1 %5024  ;;  %v5011_v39 = vpop.permute.xlu0 %5010 }
 0xa3a   : > { %5113 = vst.msk [vmem:[#allocation2 + $0x20] sm:$0xf] %vm5104_vm5, %v5025_v54  ;;  %5106 = vst.msk [vmem:[#allocation2 + $0x4] sm:$0xf] %vm5104_vm5, %v5011_v39 }
 0xa3d   : > { %v5021_v37 = vpop.permute.xlu1 %5020  ;;  %v5027_v52 = vpop.permute.xlu0 %5026  ;;  %v7029_v3 = vld [vmem:[#allocation2 + $0x28] sm:$0xff]  }
 0xa3e   : > { %5111 = vst.msk [vmem:[#allocation2 + $0x18] sm:$0xf] %vm5104_vm5, %v5021_v37  ;;  %5114 = vst.msk [vmem:[#allocation2 + $0x24] sm:$0xf] %vm5104_vm5, %v5027_v52 }
 0xa41   : > { %v5037_v16 = vpop.permute.xlu1 %5036  ;;  %v5023_v55 = vpop.permute.xlu0 %5022  ;;  %v7024_v50 = vld [vmem:[#allocation2] sm:$0xff]  }
 0xa42   : > { %5119 = vst.msk [vmem:[#allocation2 + $0x38] sm:$0xf] %vm5104_vm5, %v5037_v16  ;;  %5112 = vst.msk [vmem:[#allocation2 + $0x1c] sm:$0xf] %vm5104_vm5, %v5023_v55  ;;  %6874 = vmatprep.mubr.msk.bf16.mxu0 %vm505_vm0, %v7024_v50 }
 0xa43   : > { %6875 = vmatmul.mubr.msk.bf16.vlgmr.msra.gmra.mxu0 %vm505_vm0, %v7025_v43 }
 0xa45   : > { %v5017_v18 = vpop.permute.xlu1 %5016  ;;  %v5039_v6 = vpop.permute.xlu0 %5038  ;;  %v7028_v17 = vld [vmem:[#allocation2 + $0x20] sm:$0xff]  }
 0xa46   : > { %5109 = vst.msk [vmem:[#allocation2 + $0x10] sm:$0xf] %vm5104_vm5, %v5017_v18  ;;  %5120 = vst.msk [vmem:[#allocation2 + $0x3c] sm:$0xf] %vm5104_vm5, %v5039_v6 }
 0xa49   : > { %v3672_v0 = vpop.permute.xlu1 %3671  ;;  %v5019_v34 = vpop.permute.xlu0 %5018  ;;  %v7027_v32 = vld [vmem:[#allocation2 + $0x18] sm:$0xff]  }
 0xa4a   : > { %3744 = vst.msk [vmem:[#allocation2 + $0x60] sm:$0xf] %vm3719_vm4, %v3672_v0 }
 0xa4b   : > { %5110 = vst.msk [vmem:[#allocation2 + $0x14] sm:$0xf] %vm5104_vm5, %v5019_v34 }
 0xa4d   : > { %v5033_v38 = vpop.permute.xlu1 %5032  ;;  %v3674_v12 = vpop.permute.xlu0 %3673  ;;  %v7031_v27 = vld [vmem:[#allocation2 + $0x38] sm:$0xff]  }
 0xa4e   : > { %5117 = vst.msk [vmem:[#allocation2 + $0x30] sm:$0xf] %vm5104_vm5, %v5033_v38 }
 0xa4f   : > { %3745 = vst.msk [vmem:[#allocation2 + $0x64] sm:$0xf] %vm3719_vm4, %v3674_v12 }
 0xa51   : > { %v3676_v49 = vpop.permute.xlu1 %3675  ;;  %v3678_v60 = vpop.permute.xlu0 %3677 }
 0xa52   : > { %v7026_v44 = vld [vmem:[#allocation2 + $0x10] sm:$0xff]   ;;  %3746 = vst.msk [vmem:[#allocation2 + $0x68] sm:$0xf] %vm3719_vm4, %v3676_v49  ;;  %3747 = vst.msk [vmem:[#allocation2 + $0x6c] sm:$0xf] %vm3719_vm4, %v3678_v60 }
 0xa53   : > { %6878 = vmatprep.mubr.msk.bf16.mxu0 %vm505_vm0, %v7026_v44 }
 0xa54   : > { %6879 = vmatmul.mubr.msk.bf16.gmra.mxu0 %vm505_vm0, %v7027_v32 }
 0xa55   : > { %v5045_v21 = vpop.permute.xlu1 %5044  ;;  %v5035_v5 = vpop.permute.xlu0 %5034  ;;  %6882 = vmatprep.mubr.msk.bf16.mxu0 %vm505_vm0, %v7028_v17 }
 0xa56   : > { %5123 = vst.msk [vmem:[#allocation2 + $0x48] sm:$0xf] %vm5104_vm5, %v5045_v21  ;;  %5118 = vst.msk [vmem:[#allocation2 + $0x34] sm:$0xf] %vm5104_vm5, %v5035_v5 }
 0xa59   : > { %v5041_v7 = vpop.permute.xlu1 %5040  ;;  %v5047_v41 = vpop.permute.xlu0 %5046 }
 0xa5a   : > { %5121 = vst.msk [vmem:[#allocation2 + $0x40] sm:$0xf] %vm5104_vm5, %v5041_v7  ;;  %5124 = vst.msk [vmem:[#allocation2 + $0x4c] sm:$0xf] %vm5104_vm5, %v5047_v41 }
 0xa5c   : > { %6883 = vmatmul.mubr.msk.bf16.gmra.mxu0 %vm505_vm0, %v7029_v3 }
 0xa5d   : > { %v5057_v59 = vpop.permute.xlu1 %5056  ;;  %v5043_v56 = vpop.permute.xlu0 %5042  ;;  %v7030_v2 = vld [vmem:[#allocation2 + $0x30] sm:$0xff]  }
 0xa5e   : > { %5129 = vst.msk [vmem:[#allocation2 + $0x60] sm:$0xf] %vm5104_vm5, %v5057_v59  ;;  %5122 = vst.msk [vmem:[#allocation2 + $0x44] sm:$0xf] %vm5104_vm5, %v5043_v56  ;;  %6886 = vmatprep.mubr.msk.bf16.mxu0 %vm505_vm0, %v7030_v2 }
 0xa61   : > { %v5053_v51 = vpop.permute.xlu1 %5052  ;;  %v5059_v14 = vpop.permute.xlu0 %5058  ;;  %v7033_v61 = vld [vmem:[#allocation2 + $0x48] sm:$0xff]  }
 0xa62   : > { %5127 = vst.msk [vmem:[#allocation2 + $0x58] sm:$0xf] %vm5104_vm5, %v5053_v51  ;;  %5130 = vst.msk [vmem:[#allocation2 + $0x64] sm:$0xf] %vm5104_vm5, %v5059_v14 }
 0xa64   : > { %6887 = vmatmul.mubr.msk.bf16.gmra.mxu0 %vm505_vm0, %v7031_v27 }
 0xa65   : > { %v5049_v11 = vpop.permute.xlu1 %5048  ;;  %v5055_v15 = vpop.permute.xlu0 %5054  ;;  %v7032_v19 = vld [vmem:[#allocation2 + $0x40] sm:$0xff]  }
 0xa66   : > { %5125 = vst.msk [vmem:[#allocation2 + $0x50] sm:$0xf] %vm5104_vm5, %v5049_v11  ;;  %5128 = vst.msk [vmem:[#allocation2 + $0x5c] sm:$0xf] %vm5104_vm5, %v5055_v15  ;;  %6890 = vmatprep.mubr.msk.bf16.mxu0 %vm505_vm0, %v7032_v19 }
 0xa69   : > { %v5061_v58 = vpop.permute.xlu1 %5060  ;;  %v5051_v25 = vpop.permute.xlu0 %5050  ;;  %v7036_v40 = vld [vmem:[#allocation2 + $0x60] sm:$0xff]  }
 0xa6a   : > { %5131 = vst.msk [vmem:[#allocation2 + $0x68] sm:$0xf] %vm5104_vm5, %v5061_v58  ;;  %5126 = vst.msk [vmem:[#allocation2 + $0x54] sm:$0xf] %vm5104_vm5, %v5051_v25 }
 0xa6c   : > { %6891 = vmatmul.mubr.msk.bf16.gmra.mxu0 %vm505_vm0, %v7033_v61 }
 0xa6d   : > { %v3680_v36 = vpop.permute.xlu1 %3679  ;;  %v5063_v1 = vpop.permute.xlu0 %5062  ;;  %v7035_v48 = vld [vmem:[#allocation2 + $0x58] sm:$0xff]  }
 0xa6e   : > { %3748 = vst.msk [vmem:[#allocation2 + $0x70] sm:$0xf] %vm3719_vm4, %v3680_v36 }
 0xa6f   : > { %5132 = vst.msk [vmem:[#allocation2 + $0x6c] sm:$0xf] %vm5104_vm5, %v5063_v1 }
 0xa71   : > { %v3684_v10 = vpop.permute.xlu1 %3683  ;;  %v3682_v22 = vpop.permute.xlu0 %3681  ;;  %v7034_v20 = vld [vmem:[#allocation2 + $0x50] sm:$0xff]  }
 0xa72   : > { %3750 = vst.msk [vmem:[#allocation2 + $0x78] sm:$0xf] %vm3719_vm4, %v3684_v10  ;;  %3749 = vst.msk [vmem:[#allocation2 + $0x74] sm:$0xf] %vm3719_vm4, %v3682_v22  ;;  %6894 = vmatprep.mubr.msk.bf16.mxu0 %vm505_vm0, %v7034_v20 }
 0xa74   : > { %6895 = vmatmul.mubr.msk.bf16.gmra.mxu0 %vm505_vm0, %v7035_v48 }
 0xa75   : > { %v5065_v53 = vpop.permute.xlu1 %5064  ;;  %v3686_v31 = vpop.permute.xlu0 %3685  ;;  %6898 = vmatprep.mubr.msk.bf16.mxu0 %vm505_vm0, %v7036_v40 }
 0xa76   : > { %5133 = vst.msk [vmem:[#allocation2 + $0x70] sm:$0xf] %vm5104_vm5, %v5065_v53  ;;  %v7037_v46 = vld [vmem:[#allocation2 + $0x68] sm:$0xff]  }
 0xa77   : > { %3751 = vst.msk [vmem:[#allocation2 + $0x7c] sm:$0xf] %vm3719_vm4, %v3686_v31 }
 0xa79   : > { %v5069_v29 = vpop.permute.xlu1 %5068  ;;  %v5067_v47 = vpop.permute.xlu0 %5066 }
 0xa7a   : > { %5135 = vst.msk [vmem:[#allocation2 + $0x78] sm:$0xf] %vm5104_vm5, %v5069_v29  ;;  %5134 = vst.msk [vmem:[#allocation2 + $0x74] sm:$0xf] %vm5104_vm5, %v5067_v47 }
 0xa7c   : > { %6899 = vmatmul.mubr.msk.bf16.gmra.mxu0 %vm505_vm0, %v7037_v46 }
 0xa7d   : > { %v5071_v13 = vpop.permute.xlu0 %5070 }
 0xa7e   : > { %5136 = vst.msk [vmem:[#allocation2 + $0x7c] sm:$0xf] %vm5104_vm5, %v5071_v13 }
 0xa81   : > { %v7038_v4 = vld [vmem:[#allocation2 + $0x70] sm:$0xff]  }
 0xa82   : > { %6902 = vmatprep.mubr.msk.bf16.mxu0 %vm505_vm0, %v7038_v4 }
 0xa85   : > { %v7039_v62 = vld [vmem:[#allocation2 + $0x78] sm:$0xff]  }
 0xa86   : > { %6903 = vmatmul.mubr.msk.bf16.gmra.mxu0 %vm505_vm0, %v7039_v62 }
 0xb03   : > { %v6876_v35 = vpop.f32.mrf.mxu0 }
 0xb04   : > { %v5395_v8 = vadd.f32 %v6876_v35, %v9958_v63 }
 0xb05   : > { %v5386_v33 = vpop.f32.mrf.mxu0 }
 0xb06   : > { %v6168_v30 = vpack.c.bf16 %v5395_v8, %v5395_v8  ;;  %v5387_v57 = vadd.f32 %v9958_v63, %v5386_v33 }
 0xb07   : > { %v6877_v45 = vpop.f32.mrf.mxu0 }
 0xb08   : > { %5644 = vst.msk [vmem:[%s9966_s7 + $0x8] sm:$0xf] %vm5641_vm6, %v6168_v30  ;;  %v6166_v24 = vpack.c.bf16 %v5387_v57, %v5387_v57  ;;  %v5398_v28 = vadd.f32 %v6877_v45, %v9958_v63 }
 0xb09   : > { %v5389_v23 = vpop.f32.mrf.mxu0 }
 0xb0a   : > { %5642 = vst.msk [vmem:[%s9966_s7] sm:$0xf] %vm5641_vm6, %v6166_v24  ;;  %v6169_v9 = vpack.c.bf16 %v5398_v28, %v5398_v28  ;;  %v5390_v26 = vadd.f32 %v9958_v63, %v5389_v23 }
 0xb0c   : > { %5645 = vst.msk [vmem:[%s9966_s7 + $0xc] sm:$0xf] %vm5641_vm6, %v6169_v9  ;;  %v6167_v42 = vpack.c.bf16 %v5390_v26, %v5390_v26 }
 0xb0e   : > { %5643 = vst.msk [vmem:[%s9966_s7 + $0x4] sm:$0xf] %vm5641_vm6, %v6167_v42 }
 0xb14   : > { %v6880_v54 = vpop.f32.mrf.mxu0 }
 0xb15   : > { %v5411_v39 = vadd.f32 %v6880_v54, %v9958_v63 }
 0xb16   : > { %v5402_v37 = vpop.f32.mrf.mxu0 }
 0xb17   : > { %v6172_v52 = vpack.c.bf16 %v5411_v39, %v5411_v39  ;;  %v5403_v16 = vadd.f32 %v9958_v63, %v5402_v37 }
 0xb18   : > { %v6881_v55 = vpop.f32.mrf.mxu0 }
 0xb19   : > { %5648 = vst.msk [vmem:[%s9966_s7 + $0x18] sm:$0xf] %vm5641_vm6, %v6172_v52  ;;  %v6170_v50 = vpack.c.bf16 %v5403_v16, %v5403_v16  ;;  %v5414_v43 = vadd.f32 %v6881_v55, %v9958_v63 }
 0xb1a   : > { %v5405_v18 = vpop.f32.mrf.mxu0 }
 0xb1b   : > { %5646 = vst.msk [vmem:[%s9966_s7 + $0x10] sm:$0xf] %vm5641_vm6, %v6170_v50  ;;  %v6173_v6 = vpack.c.bf16 %v5414_v43, %v5414_v43  ;;  %v5406_v0 = vadd.f32 %v9958_v63, %v5405_v18 }
 0xb1c   : > { %v6884_v34 = vpop.f32.mrf.mxu0 }
 0xb1d   : > { %5649 = vst.msk [vmem:[%s9966_s7 + $0x1c] sm:$0xf] %vm5641_vm6, %v6173_v6  ;;  %v6171_v38 = vpack.c.bf16 %v5406_v0, %v5406_v0  ;;  %v5427_v12 = vadd.f32 %v6884_v34, %v9958_v63 }
 0xb1e   : > { %v5418_v49 = vpop.f32.mrf.mxu0 }
 0xb1f   : > { %5647 = vst.msk [vmem:[%s9966_s7 + $0x14] sm:$0xf] %vm5641_vm6, %v6171_v38  ;;  %v6176_v60 = vpack.c.bf16 %v5427_v12, %v5427_v12  ;;  %v5419_v44 = vadd.f32 %v9958_v63, %v5418_v49 }
 0xb20   : > { %v6885_v32 = vpop.f32.mrf.mxu0 }
 0xb21   : > { %5652 = vst.msk [vmem:[%s9966_s7 + $0x28] sm:$0xf] %vm5641_vm6, %v6176_v60  ;;  %v6174_v17 = vpack.c.bf16 %v5419_v44, %v5419_v44  ;;  %v5430_v21 = vadd.f32 %v6885_v32, %v9958_v63 }
 0xb22   : > { %v5421_v5 = vpop.f32.mrf.mxu0 }
 0xb23   : > { %5650 = vst.msk [vmem:[%s9966_s7 + $0x20] sm:$0xf] %vm5641_vm6, %v6174_v17  ;;  %v6177_v7 = vpack.c.bf16 %v5430_v21, %v5430_v21  ;;  %v5422_v41 = vadd.f32 %v9958_v63, %v5421_v5 }
 0xb24   : > { %v6888_v3 = vpop.f32.mrf.mxu0 }
 0xb25   : > { %5653 = vst.msk [vmem:[%s9966_s7 + $0x2c] sm:$0xf] %vm5641_vm6, %v6177_v7  ;;  %v6175_v59 = vpack.c.bf16 %v5422_v41, %v5422_v41  ;;  %v5443_v56 = vadd.f32 %v6888_v3, %v9958_v63 }
 0xb26   : > { %v5434_v2 = vpop.f32.mrf.mxu0 }
 0xb27   : > { %5651 = vst.msk [vmem:[%s9966_s7 + $0x24] sm:$0xf] %vm5641_vm6, %v6175_v59  ;;  %v6180_v51 = vpack.c.bf16 %v5443_v56, %v5443_v56  ;;  %v5435_v14 = vadd.f32 %v9958_v63, %v5434_v2 }
 0xb28   : > { %v6889_v27 = vpop.f32.mrf.mxu0 }
 0xb29   : > { %5656 = vst.msk [vmem:[%s9966_s7 + $0x38] sm:$0xf] %vm5641_vm6, %v6180_v51  ;;  %v6178_v11 = vpack.c.bf16 %v5435_v14, %v5435_v14  ;;  %v5446_v15 = vadd.f32 %v6889_v27, %v9958_v63 }
 0xb2a   : > { %v5437_v19 = vpop.f32.mrf.mxu0 }
 0xb2b   : > { %5654 = vst.msk [vmem:[%s9966_s7 + $0x30] sm:$0xf] %vm5641_vm6, %v6178_v11  ;;  %v6181_v58 = vpack.c.bf16 %v5446_v15, %v5446_v15  ;;  %v5438_v25 = vadd.f32 %v9958_v63, %v5437_v19 }
 0xb2c   : > { %v6892_v61 = vpop.f32.mrf.mxu0 }
 0xb2d   : > { %5657 = vst.msk [vmem:[%s9966_s7 + $0x3c] sm:$0xf] %vm5641_vm6, %v6181_v58  ;;  %v6179_v36 = vpack.c.bf16 %v5438_v25, %v5438_v25  ;;  %v5459_v1 = vadd.f32 %v6892_v61, %v9958_v63 }
 0xb2e   : > { %v5450_v10 = vpop.f32.mrf.mxu0 }
 0xb2f   : > { %5655 = vst.msk [vmem:[%s9966_s7 + $0x34] sm:$0xf] %vm5641_vm6, %v6179_v36  ;;  %v6184_v22 = vpack.c.bf16 %v5459_v1, %v5459_v1  ;;  %v5451_v20 = vadd.f32 %v9958_v63, %v5450_v10 }
 0xb30   : > { %v6893_v48 = vpop.f32.mrf.mxu0 }
 0xb31   : > { %5660 = vst.msk [vmem:[%s9966_s7 + $0x48] sm:$0xf] %vm5641_vm6, %v6184_v22  ;;  %v6182_v40 = vpack.c.bf16 %v5451_v20, %v5451_v20  ;;  %v5462_v53 = vadd.f32 %v6893_v48, %v9958_v63 }
 0xb32   : > { %v5453_v31 = vpop.f32.mrf.mxu0 }
 0xb33   : > { %5658 = vst.msk [vmem:[%s9966_s7 + $0x40] sm:$0xf] %vm5641_vm6, %v6182_v40  ;;  %v6185_v29 = vpack.c.bf16 %v5462_v53, %v5462_v53  ;;  %v5454_v47 = vadd.f32 %v9958_v63, %v5453_v31 }
 0xb34   : > { %v6896_v46 = vpop.f32.mrf.mxu0 }
 0xb35   : > { %5661 = vst.msk [vmem:[%s9966_s7 + $0x4c] sm:$0xf] %vm5641_vm6, %v6185_v29  ;;  %v6183_v13 = vpack.c.bf16 %v5454_v47, %v5454_v47  ;;  %v5475_v4 = vadd.f32 %v6896_v46, %v9958_v63 }
 0xb36   : > { %v5466_v62 = vpop.f32.mrf.mxu0 }
 0xb37   : > { %5659 = vst.msk [vmem:[%s9966_s7 + $0x44] sm:$0xf] %vm5641_vm6, %v6183_v13  ;;  %v6188_v35 = vpack.c.bf16 %v5475_v4, %v5475_v4  ;;  %v5467_v8 = vadd.f32 %v9958_v63, %v5466_v62 }
 0xb38   : > { %v6897_v33 = vpop.f32.mrf.mxu0 }
 0xb39   : > { %5664 = vst.msk [vmem:[%s9966_s7 + $0x58] sm:$0xf] %vm5641_vm6, %v6188_v35  ;;  %v6186_v30 = vpack.c.bf16 %v5467_v8, %v5467_v8  ;;  %v5478_v57 = vadd.f32 %v6897_v33, %v9958_v63 }
 0xb3a   : > { %v5469_v45 = vpop.f32.mrf.mxu0 }
 0xb3b   : > { %5662 = vst.msk [vmem:[%s9966_s7 + $0x50] sm:$0xf] %vm5641_vm6, %v6186_v30  ;;  %v6189_v24 = vpack.c.bf16 %v5478_v57, %v5478_v57  ;;  %v5470_v28 = vadd.f32 %v9958_v63, %v5469_v45 }
 0xb3c   : > { %v6900_v23 = vpop.f32.mrf.mxu0 }
 0xb3d   : > { %5665 = vst.msk [vmem:[%s9966_s7 + $0x5c] sm:$0xf] %vm5641_vm6, %v6189_v24  ;;  %v6187_v9 = vpack.c.bf16 %v5470_v28, %v5470_v28  ;;  %v5491_v26 = vadd.f32 %v6900_v23, %v9958_v63 }
 0xb3e   : > { %v5482_v42 = vpop.f32.mrf.mxu0 }
 0xb3f   : > { %5663 = vst.msk [vmem:[%s9966_s7 + $0x54] sm:$0xf] %vm5641_vm6, %v6187_v9  ;;  %v6192_v54 = vpack.c.bf16 %v5491_v26, %v5491_v26  ;;  %v5483_v39 = vadd.f32 %v9958_v63, %v5482_v42 }
 0xb40   : > { %v6901_v37 = vpop.f32.mrf.mxu0 }
 0xb41   : > { %5668 = vst.msk [vmem:[%s9966_s7 + $0x68] sm:$0xf] %vm5641_vm6, %v6192_v54  ;;  %v6190_v52 = vpack.c.bf16 %v5483_v39, %v5483_v39  ;;  %v5494_v16 = vadd.f32 %v6901_v37, %v9958_v63 }
 0xb42   : > { %v5485_v55 = vpop.f32.mrf.mxu0 }
 0xb43   : > { %5666 = vst.msk [vmem:[%s9966_s7 + $0x60] sm:$0xf] %vm5641_vm6, %v6190_v52  ;;  %v6193_v50 = vpack.c.bf16 %v5494_v16, %v5494_v16  ;;  %v5486_v43 = vadd.f32 %v9958_v63, %v5485_v55 }
 0xb45   : > { %5669 = vst.msk [vmem:[%s9966_s7 + $0x6c] sm:$0xf] %vm5641_vm6, %v6193_v50  ;;  %v6191_v18 = vpack.c.bf16 %v5486_v43, %v5486_v43 }
 0xb46   : > { %v6904_v6 = vpop.f32.mrf.mxu0 }
 0xb47   : > { %5667 = vst.msk [vmem:[%s9966_s7 + $0x64] sm:$0xf] %vm5641_vm6, %v6191_v18  ;;  %v5507_v0 = vadd.f32 %v6904_v6, %v9958_v63 }
 0xb48   : > { %v5498_v34 = vpop.f32.mrf.mxu0 }
 0xb49   : > { %v6196_v38 = vpack.c.bf16 %v5507_v0, %v5507_v0  ;;  %v5499_v12 = vadd.f32 %v9958_v63, %v5498_v34 }
 0xb4a   : > { %v6905_v49 = vpop.f32.mrf.mxu0 }
 0xb4b   : > { %5672 = vst.msk [vmem:[%s9966_s7 + $0x78] sm:$0xf] %vm5641_vm6, %v6196_v38  ;;  %v6194_v60 = vpack.c.bf16 %v5499_v12, %v5499_v12  ;;  %v5510_v44 = vadd.f32 %v6905_v49, %v9958_v63 }
 0xb4c   : > { %v5501_v32 = vpop.f32.mrf.mxu0 }
 0xb4d   : > { %5670 = vst.msk [vmem:[%s9966_s7 + $0x70] sm:$0xf] %vm5641_vm6, %v6194_v60  ;;  %v6197_v17 = vpack.c.bf16 %v5510_v44, %v5510_v44  ;;  %v5502_v21 = vadd.f32 %v9958_v63, %v5501_v32 }
 0xb4f   : > { %5673 = vst.msk [vmem:[%s9966_s7 + $0x7c] sm:$0xf] %vm5641_vm6, %v6197_v17  ;;  %v6195_v5 = vpack.c.bf16 %v5502_v21, %v5502_v21 }
 0xb51   : > { %5671 = vst.msk [vmem:[%s9966_s7 + $0x74] sm:$0xf] %vm5641_vm6, %v6195_v5 }
 0xb52 PF: > { %s16_s21 = sadd.s32 1, %s7430_s21  }
 0xb53   : > { %p13_p4 = scmp.ge.s32.totalorder %s16_s21, 4  }
 0xb55   :  { %15 = sbr.rel (!%p13_p4) target bundleno = 1 (0x1), region = 74 }

// kernel: tpu_custom_call.1
= control target key start
LH: loop header
LB: loop body
LE: loop exit
PB: predicated region body
PF: predicated region fallthrough
CT: control target
= control target key end

     0   :  { %s7471_s21 = smov 0   ;;  %s10066_s0 = inlined_call_operand.vmem [shape: bf16[512,96], index: 0, kind: input, shape index: {}]   ;;  %s10067_s1 = inlined_call_operand.vmem [shape: bf16[96,288], index: 1, kind: input, shape index: {}]   ;;  %s10068_s2 = inlined_call_operand.vmem [shape: f32[1,288], index: 2, kind: input, shape index: {}]   ;;  %s10069_s3 = inlined_call_operand.vmem [shape: f32[3,64,64], index: 3, kind: input, shape index: {}]   ;;  %s10070_s4 = inlined_call_operand.vmem [shape: bf16[96,96], index: 4, kind: input, shape index: {}]   ;;  %s10071_s5 = inlined_call_operand.vmem [shape: f32[1,96], index: 5, kind: input, shape index: {}]   ;;  %s10072_s6 = inlined_call_operand.vmem [shape: bf16[512,96], index: 6, kind: output, shape index: {}]  }
   0x1 LB: > { %s5730_s22 = sadd.s32 4294967295, %s7430_s21   ;;  %p5734_p0 = scmp.ge.s32.totalorder %s7430_s21, 1  ;;  %s7430_s21 = sphi %s7471_s21, %s16_s21  }
   0x2   : > { %p213_p1 = scmp.lt.s32.totalorder %s7430_s21, 3 }
   0x4   : > { %p214_p2 = pnand %p5734_p0, %p213_p1 }
   0x6   : > { %217 = sbr.rel (%p214_p2) target bundleno = 2898 (0xb52), region = 44 }
   0xb   : > { %v6978_v0 = vld [vmem:[%s10067_s1 + $0x7c] ss:$12 sps:$4 sm:$0xff]   ;;  %s5735_s25 = sshll.u32 %s5730_s22, 5  ;;  %v6980_v1 = vld [vmem:[%s10067_s1 + $0x78] ss:$12 sps:$4 sm:$0xff]   ;;  %v7432_v2 = vmov 0   ;;  %v314_v35 = vlaneseq }
   0xc   : > { %586 = vmatprep.mubr.bf16.mxu0 %v7432_v2  ;;  %p244_p3 = scmp.lt.s32.totalorder %s5735_s25, 63  ;;  %706 = vmatprep.mubr.bf16.mxu1 %v7432_v2  ;;  %v6981_v3 = vld [vmem:[%s10067_s1 + $0x64] ss:$12 sps:$4 sm:$0xff]   ;;  %v6983_v4 = vld [vmem:[%s10067_s1 + $0x60] ss:$12 sps:$4 sm:$0xff]   ;;  %vm505_vm0 = vcmask 785408  }
   0xd   : > { %558 = vmatprep.subr.bf16.mxu0 %v6978_v0  ;;  %6906 = vmatprep.subr.bf16.mxu1 %v6978_v0  ;;  %v6984_v5 = vld [vmem:[%s10067_s1 + $0x4c] ss:$12 sps:$4 sm:$0xff]   ;;  %v6986_v6 = vld [vmem:[%s10067_s1 + $0x48] ss:$12 sps:$4 sm:$0xff]   ;;  %v6989_v8 = vld [vmem:[%s10067_s1 + $0x30] ss:$12 sps:$4 sm:$0xff]  }
   0xe   : > { %559 = vmatpush1.bf16.msra.mxu0 %v6980_v1  ;;  %s10298_s25 = smov (!%p244_p3, %s5735_s25), 63  ;;  %6912 = vmatpush1.bf16.msra.mxu1 %v6980_v1  ;;  %v6987_v7 = vld [vmem:[%s10067_s1 + $0x34] ss:$12 sps:$4 sm:$0xff]   ;;  %v6990_v9 = vld [vmem:[%s10067_s1 + $0x1c] ss:$12 sps:$4 sm:$0xff]   ;;  %v7615_v36 = vshrl.u32 %v314_v35, 7 }
   0xf   : > { %560 = vmatprep.subr.bf16.mxu0 %v6981_v3  ;;  %6907 = vmatprep.subr.bf16.mxu1 %v6981_v3  ;;  %s5736_s10 = sshll.u32 %s10298_s25, 2  ;;  %v6992_v10 = vld [vmem:[%s10067_s1 + $0x18] ss:$12 sps:$4 sm:$0xff]   ;;  %v6995_v12 = vld [vmem:[%s10067_s1] ss:$12 sps:$4 sm:$0xff]   ;;  %vm992_vm1 = vcmask 261120  }
  0x10   : > { %s7507_s15 = scalar_lea.vmem %s10066_s0, %s5736_s10  ;;  %v6993_v11 = vld [vmem:[%s10067_s1 + $0x4] ss:$12 sps:$4 sm:$0xff]   ;;  %v7012_v15 = vld [vmem:[%s10067_s1 + $0x80] ss:$12 sps:$4 sm:$0xff]   ;;  %v7013_v16 = vld [vmem:[%s10067_s1 + $0x68] ss:$12 sps:$4 sm:$0xff]   ;;  %s9966_s7 = scalar_lea.vmem %s10072_s6, %s5736_s10 }
  0x11   : > { %v6996_v13 = vld [vmem:[%s7507_s15] sm:$0xff]   ;;  %v6997_v17 = vld [vmem:[%s7507_s15 + $0x8] sm:$0xff]   ;;  %v7014_v19 = vld [vmem:[%s10067_s1 + $0x50] ss:$12 sps:$4 sm:$0xff]   ;;  %v316_v37 = vsub.s32 0, %v7615_v36  ;;  %s7433_s22 = smov 32  }
  0x12   : > { %561 = vmatpush1.bf16.msra.mxu0 %v6983_v4  ;;  %6913 = vmatpush1.bf16.msra.mxu1 %v6983_v4  ;;  %v7529_v14 = vld [vmem:[%s7507_s15 + $0x60] sm:$0xff]   ;;  %v7544_v18 = vld [vmem:[%s7507_s15 + $0x68] sm:$0xff]   ;;  %v6998_v21 = vld [vmem:[%s7507_s15 + $0x10] sm:$0xff]   ;;  %s7434_s23 = smov 64   ;;  %vm1449_vm2 = vcmask 523264   ;;  %s7435_s19 = smov 96  }
  0x13   : > { %562 = vmatprep.subr.bf16.mxu0 %v6984_v5  ;;  %6908 = vmatprep.subr.bf16.mxu1 %v6984_v5  ;;  %v7015_v20 = vld [vmem:[%s10067_s1 + $0x38] ss:$12 sps:$4 sm:$0xff]   ;;  %v7010_v22 = vld [vmem:[%s7507_s15 + $0x70] sm:$0xff]   ;;  %v7016_v23 = vld [vmem:[%s10067_s1 + $0x20] ss:$12 sps:$4 sm:$0xff]   ;;  %vm2318_vm3 = vcmask 257024  }
  0x14   : > { %v7017_v24 = vld [vmem:[%s10067_s1 + $0x8] ss:$12 sps:$4 sm:$0xff]   ;;  %v6999_v25 = vld [vmem:[%s7507_s15 + $0x18] sm:$0xff]   ;;  %v7000_v27 = vld [vmem:[%s7507_s15 + $0x20] sm:$0xff]   ;;  %vm3719_vm4 = vcmask 519424   ;;  %vm5104_vm5 = vcmask 781824  }
  0x15   : > { %v7011_v26 = vld [vmem:[%s7507_s15 + $0x78] sm:$0xff]   ;;  %v7001_v28 = vld [vmem:[%s7507_s15 + $0x28] sm:$0xff]   ;;  %v7002_v29 = vld [vmem:[%s7507_s15 + $0x30] sm:$0xff]   ;;  %vm5641_vm6 = vcmask 781312  }
  0x16   : > { %563 = vmatpush1.bf16.msra.mxu0 %v6986_v6  ;;  %6914 = vmatpush1.bf16.msra.mxu1 %v6986_v6  ;;  %v7003_v30 = vld [vmem:[%s7507_s15 + $0x38] sm:$0xff]   ;;  %v7004_v31 = vld [vmem:[%s7507_s15 + $0x40] sm:$0xff]   ;;  %v7005_v32 = vld [vmem:[%s7507_s15 + $0x48] sm:$0xff]  }
  0x17   : > { %564 = vmatprep.subr.bf16.mxu0 %v6987_v7  ;;  %6909 = vmatprep.subr.bf16.mxu1 %v6987_v7  ;;  %v7007_v33 = vld [vmem:[%s7507_s15 + $0x50] sm:$0xff]   ;;  %v7009_v34 = vld [vmem:[%s7507_s15 + $0x58] sm:$0xff]   ;;  %v7621_v38 = vld [vmem:[%s10068_s2] sm:$0x7] }
  0x18   : > { %v7624_v40 = vrot.slane %v7621_v38, %v316_v37 }
  0x1a   : > { %565 = vmatpush1.bf16.msra.mxu0 %v6989_v8  ;;  %6915 = vmatpush1.bf16.msra.mxu1 %v6989_v8 }
  0x1b   : > { %566 = vmatprep.subr.bf16.mxu0 %v6990_v9  ;;  %6910 = vmatprep.subr.bf16.mxu1 %v6990_v9 }
  0x1e   : > { %567 = vmatpush1.bf16.msra.mxu0 %v6992_v10  ;;  %6916 = vmatpush1.bf16.msra.mxu1 %v6992_v10 }
  0x1f   : > { %568 = vmatprep.subr.bf16.mxu0 %v6993_v11  ;;  %6911 = vmatprep.subr.bf16.mxu1 %v6993_v11 }
  0x22   : > { %569 = vmatpush1.bf16.msra.mxu0 %v6995_v12  ;;  %6917 = vmatpush1.bf16.msra.mxu1 %v6995_v12 }
  0x23   : > { %6434 = vmatprep.subr.bf16.mxu1 %v7012_v15 }
  0x25   : > { %5773 = vmatmul.mubr.msk.bf16.vlgmr.msra.gmra.mxu0 %vm505_vm0, %v6996_v13  ;;  %5785 = vmatmul.mubr.msk.bf16.vlgmr.msra.gmra.mxu1 %vm505_vm0, %v7529_v14 }
  0x26   : > { %596 = vmatprep.mubr.bf16.mxu0 %v7432_v2  ;;  %716 = vmatprep.mubr.bf16.mxu1 %v7432_v2 }
  0x27   : > { %6435 = vmatpush3.bf16.msra.mxu1 %v7012_v15 }
  0x28   : > { %6436 = vmatprep.subr.bf16.mxu1 %v7013_v16 }
  0x2b   : > { %6437 = vmatpush3.bf16.msra.mxu1 %v7013_v16 }
  0x2c   : > { %6438 = vmatprep.subr.bf16.mxu1 %v7014_v19 }
  0x2d   : > { %5774 = vmatmul.mubr.msk.bf16.gmra.mxu0 %vm505_vm0, %v6997_v17  ;;  %5786 = vmatmul.mubr.msk.bf16.gmra.mxu1 %vm505_vm0, %v7544_v18 }
  0x2e   : > { %606 = vmatprep.mubr.bf16.mxu0 %v7432_v2  ;;  %726 = vmatprep.mubr.bf16.mxu1 %v7432_v2 }
  0x2f   : > { %6439 = vmatpush3.bf16.msra.mxu1 %v7014_v19 }
  0x30   : > { %6440 = vmatprep.subr.bf16.mxu1 %v7015_v20 }
  0x33   : > { %6441 = vmatpush3.bf16.msra.mxu1 %v7015_v20 }
  0x34   : > { %6442 = vmatprep.subr.bf16.mxu1 %v7016_v23 }
  0x35   : > { %5775 = vmatmul.mubr.msk.bf16.gmra.mxu0 %vm505_vm0, %v6998_v21  ;;  %5787 = vmatmul.mubr.msk.bf16.gmra.mxu1 %vm505_vm0, %v7010_v22 }
  0x36   : > { %616 = vmatprep.mubr.bf16.mxu0 %v7432_v2  ;;  %736 = vmatprep.mubr.bf16.mxu1 %v7432_v2 }
  0x37   : > { %6443 = vmatpush3.bf16.msra.mxu1 %v7016_v23 }
  0x38   : > { %6444 = vmatprep.subr.bf16.mxu1 %v7017_v24 }
  0x3b   : > { %6445 = vmatpush3.bf16.msra.mxu1 %v7017_v24 }
  0x3d   : > { %5776 = vmatmul.mubr.msk.bf16.gmra.mxu0 %vm505_vm0, %v6999_v25  ;;  %5788 = vmatmul.mubr.msk.bf16.gmra.mxu1 %vm505_vm0, %v7011_v26 }
  0x3e   : > { %626 = vmatprep.mubr.bf16.mxu0 %v7432_v2  ;;  %6446 = vmatprep.mubr.msk.bf16.mxu1 %vm505_vm0, %v6996_v13 }
  0x45   : > { %5777 = vmatmul.mubr.msk.bf16.gmra.mxu0 %vm505_vm0, %v7000_v27  ;;  %6447 = vmatmul.mubr.msk.bf16.vlgmr.msra.gmra.mxu1 %vm505_vm0, %v6997_v17 }
  0x46   : > { %636 = vmatprep.mubr.bf16.mxu0 %v7432_v2  ;;  %6450 = vmatprep.mubr.msk.bf16.mxu1 %vm505_vm0, %v6998_v21 }
  0x4d   : > { %5778 = vmatmul.mubr.msk.bf16.gmra.mxu0 %vm505_vm0, %v7001_v28  ;;  %6451 = vmatmul.mubr.msk.bf16.gmra.mxu1 %vm505_vm0, %v6999_v25 }
  0x4e   : > { %646 = vmatprep.mubr.bf16.mxu0 %v7432_v2  ;;  %6454 = vmatprep.mubr.msk.bf16.mxu1 %vm505_vm0, %v7000_v27 }
  0x55   : > { %5779 = vmatmul.mubr.msk.bf16.gmra.mxu0 %vm505_vm0, %v7002_v29  ;;  %6455 = vmatmul.mubr.msk.bf16.gmra.mxu1 %vm505_vm0, %v7001_v28 }
  0x56   : > { %656 = vmatprep.mubr.bf16.mxu0 %v7432_v2  ;;  %6458 = vmatprep.mubr.msk.bf16.mxu1 %vm505_vm0, %v7002_v29 }
  0x5d   : > { %5780 = vmatmul.mubr.msk.bf16.gmra.mxu0 %vm505_vm0, %v7003_v30  ;;  %6459 = vmatmul.mubr.msk.bf16.gmra.mxu1 %vm505_vm0, %v7003_v30 }
  0x5e   : > { %666 = vmatprep.mubr.bf16.mxu0 %v7432_v2  ;;  %6462 = vmatprep.mubr.msk.bf16.mxu1 %vm505_vm0, %v7004_v31 }
  0x65   : > { %5781 = vmatmul.mubr.msk.bf16.gmra.mxu0 %vm505_vm0, %v7004_v31  ;;  %6463 = vmatmul.mubr.msk.bf16.gmra.mxu1 %vm505_vm0, %v7005_v32 }
  0x66   : > { %676 = vmatprep.mubr.bf16.mxu0 %v7432_v2  ;;  %6466 = vmatprep.mubr.msk.bf16.mxu1 %vm505_vm0, %v7007_v33 }
  0x6d   : > { %5782 = vmatmul.mubr.msk.bf16.gmra.mxu0 %vm505_vm0, %v7005_v32  ;;  %6467 = vmatmul.mubr.msk.bf16.gmra.mxu1 %vm505_vm0, %v7009_v34 }
  0x6e   : > { %686 = vmatprep.mubr.bf16.mxu0 %v7432_v2  ;;  %6470 = vmatprep.mubr.msk.bf16.mxu1 %vm505_vm0, %v7529_v14 }
  0x75   : > { %5783 = vmatmul.mubr.msk.bf16.gmra.mxu0 %vm505_vm0, %v7007_v33  ;;  %6471 = vmatmul.mubr.msk.bf16.gmra.mxu1 %vm505_vm0, %v7544_v18 }
  0x76   : > { %696 = vmatprep.mubr.bf16.mxu0 %v7432_v2  ;;  %6474 = vmatprep.mubr.msk.bf16.mxu1 %vm505_vm0, %v7010_v22 }
  0x7d   : > { %5784 = vmatmul.mubr.msk.bf16.gmra.mxu0 %vm505_vm0, %v7009_v34  ;;  %6475 = vmatmul.mubr.msk.bf16.gmra.mxu1 %vm505_vm0, %v7011_v26 }
  0xe5   : > { %v588_v39 = vpop.f32.mrf.mxu0  ;;  %v7674_v10 = vpop.f32.mrf.mxu1 }
  0xe6   : > { %v589_v43 = vadd.f32 %v588_v39, %v7624_v40 }
  0xe7   : > { %v7626_v41 = vpop.f32.mrf.mxu0  ;;  %v7678_v13 = vpop.f32.mrf.mxu1 }
  0xe9   : > { %v592_v42 = vpop.f32.mrf.mxu0  ;;  %v7682_v16 = vpop.f32.mrf.mxu1 }
  0xea   : > { %v593_v44 = vadd.f32 %v592_v42, %v7624_v40 }
  0xeb   : > { %v7630_v45 = vpop.f32.mrf.mxu0  ;;  %v7688_v21 = vpop.f32.mrf.mxu1 }
  0xec   : > { %v7632_v46 = vpack.c.bf16 %v593_v44, %v589_v43 }
  0xed   : > { %v598_v47 = vpop.f32.mrf.mxu0  ;;  %v718_v25 = vpop.f32.mrf.mxu1 }
  0xee   : > { %6486 = vmatprep.mubr.msk.bf16.mxu1 %vm992_vm1, %v7632_v46  ;;  %v599_v50 = vadd.f32 %v598_v47, %v7624_v40 }
  0xef   : > { %v7636_v48 = vpop.f32.mrf.mxu0  ;;  %v7700_v30 = vpop.f32.mrf.mxu1 }
  0xf1   : > { %v602_v49 = vpop.f32.mrf.mxu0  ;;  %v722_v37 = vpop.f32.mrf.mxu1 }
  0xf2   : > { %v603_v51 = vadd.f32 %v602_v49, %v7624_v40 }
  0xf3   : > { %v7640_v52 = vpop.f32.mrf.mxu0 }
  0xf4   : > { %v7642_v53 = vpack.c.bf16 %v603_v51, %v599_v50  ;;  %v7720_v51 = vpop.f32.mrf.mxu1 }
  0xf5   : > { %v608_v54 = vpop.f32.mrf.mxu0 }
  0xf6   : > { %986 = vrot.lane.b32.xlu1 %v7642_v53, %s7433_s22  ;;  %v609_v3 = vadd.f32 %v608_v54, %v7624_v40 }
  0xf7   : > { %v7646_v55 = vpop.f32.mrf.mxu0 }
  0xf9   : > { %v612_v56 = vpop.f32.mrf.mxu0 }
  0xfa   : > { %984 = vrot.lane.b32.xlu1 %v7632_v46, %s7433_s22  ;;  %v613_v0 = vadd.f32 %v612_v56, %v7624_v40 }
  0xfb   : > { %v7650_v57 = vpop.f32.mrf.mxu0 }
  0xfc   : > { %v7666_v5 = vpack.c.bf16 %v613_v0, %v609_v3 }
  0xfd   : > { %v618_v58 = vpop.f32.mrf.mxu0 }
  0xfe   : > { %v619_v61 = vadd.f32 %v618_v58, %v7624_v40 }
  0xff   : > { %v7652_v59 = vpop.f32.mrf.mxu0 }
 0x101   : > { %v622_v60 = vpop.f32.mrf.mxu0 }
 0x102   : > { %v623_v62 = vadd.f32 %v622_v60, %v7624_v40 }
 0x103   : > { %v7656_v63 = vpop.f32.mrf.mxu0 }
 0x104   : > { %v7659_v1 = vpack.c.bf16 %v623_v62, %v619_v61  ;;  %v728_v61 = vpop.f32.mrf.mxu1 }
 0x105   : > { %v628_v2 = vpop.f32.mrf.mxu0 }
 0x106   : > { %10147 = vst [vmem:[#allocation3_spill] sm:$0xff] %v7659_v1  ;;  %990 = vrot.lane.b32.xlu0 %v7659_v1, %s7433_s22  ;;  %v629_v44 = vadd.f32 %v628_v2, %v7624_v40 }
 0x107   : > { %v7664_v4 = vpop.f32.mrf.mxu0 }
 0x109   : > { %v632_v6 = vpop.f32.mrf.mxu0 }
 0x10a   : > { %988 = vrot.lane.b32.xlu0 %v7666_v5, %s7433_s22  ;;  %v633_v39 = vadd.f32 %v632_v6, %v7624_v40  ;;  %v7736_v6 = vpop.f32.mrf.mxu1 }
 0x10b   : > { %v7670_v7 = vpop.f32.mrf.mxu0 }
 0x10c   : > { %v7722_v54 = vpack.c.bf16 %v633_v39, %v629_v44 }
 0x10d   : > { %v638_v8 = vpop.f32.mrf.mxu0 }
 0x10e   : > { %v639_v34 = vadd.f32 %v638_v8, %v7624_v40  ;;  %10151 = vst [vmem:[#allocation7_spill] sm:$0xff] %v7722_v54 }
 0x10f   : > { %v7672_v9 = vpop.f32.mrf.mxu0 }
 0x111   : > { %v642_v11 = vpop.f32.mrf.mxu0 }
 0x112   : > { %v643_v31 = vadd.f32 %v642_v11, %v7624_v40 }
 0x113   : > { %v7676_v12 = vpop.f32.mrf.mxu0 }
 0x114   : > { %v7711_v42 = vpack.c.bf16 %v643_v31, %v639_v34 }
 0x115   : > { %v648_v14 = vpop.f32.mrf.mxu0 }
 0x116   : > { %v649_v18 = vadd.f32 %v648_v14, %v7624_v40  ;;  %10150 = vst [vmem:[#allocation6_spill] sm:$0xff] %v7711_v42  ;;  %v320_v14 = vsub.s32 1, %v7615_v36 }
 0x117   : > { %v7680_v15 = vpop.f32.mrf.mxu0 }
 0x119   : > { %v652_v17 = vpop.f32.mrf.mxu0 }
 0x11a   : > { %v653_v19 = vadd.f32 %v652_v17, %v7624_v40 }
 0x11b   : > { %v7686_v20 = vpop.f32.mrf.mxu0 }
 0x11c   : > { %v7690_v22 = vpack.c.bf16 %v653_v19, %v649_v18  ;;  %v732_v18 = vpop.f32.mrf.mxu1  ;;  %v719_v19 = vadd.f32 %v718_v25, %v7624_v40 }
 0x11d   : > { %v658_v23 = vpop.f32.mrf.mxu0 }
 0x11e   : > { %10148 = vst [vmem:[#allocation4_spill] sm:$0xff] %v7690_v22  ;;  %1090 = vrot.lane.b32.xlu1 %v7690_v22, %s7433_s22  ;;  %v659_v27 = vadd.f32 %v658_v23, %v7624_v40  ;;  %v723_v23 = vadd.f32 %v722_v37, %v7624_v40  ;;  %v7750_v31 = vpop.f32.mrf.mxu1 }
 0x11f   : > { %v7694_v24 = vpop.f32.mrf.mxu0 }
 0x120   : > { %v7754_v34 = vpack.c.bf16 %v723_v23, %v719_v19 }
 0x121   : > { %v662_v26 = vpop.f32.mrf.mxu0 }
 0x122   : > { %v663_v28 = vadd.f32 %v662_v26, %v7624_v40  ;;  %10154 = vst [vmem:[#allocation10_spill] sm:$0xff] %v7754_v34 }
 0x123   : > { %v7698_v29 = vpop.f32.mrf.mxu0 }
 0x124   : > { %v7703_v32 = vpack.c.bf16 %v663_v28, %v659_v27  ;;  %v7746_v27 = vrot.slane %v7621_v38, %v320_v14 }
 0x125   : > { %v668_v33 = vpop.f32.mrf.mxu0 }
 0x126   : > { %10149 = vst [vmem:[#allocation5_spill] sm:$0xff] %v7703_v32  ;;  %1092 = vrot.lane.b32.xlu0 %v7703_v32, %s7433_s22  ;;  %v669_v47 = vadd.f32 %v668_v33, %v7624_v40  ;;  %v615_v33 = vadd.f32 %v7650_v57, %v7746_v27  ;;  %v611_v25 = vadd.f32 %v7646_v55, %v7746_v27 }
 0x127   : > { %v7708_v35 = vpop.f32.mrf.mxu0  ;;  %v605_v44 = vadd.f32 %v7640_v52, %v7746_v27  ;;  %v601_v57 = vadd.f32 %v7636_v48, %v7746_v27  ;;  %v655_v52 = vadd.f32 %v7686_v20, %v7746_v27  ;;  %v651_v48 = vadd.f32 %v7680_v15, %v7746_v27 }
 0x129   : > { %v672_v43 = vpop.f32.mrf.mxu0 }
 0x12a   : > { %v673_v49 = vadd.f32 %v672_v43, %v7624_v40  ;;  %1088 = vrot.lane.b32.xlu0 %v7711_v42, %s7433_s22  ;;  %v738_v43 = vpop.f32.mrf.mxu1 }
 0x12b   : > { %v7718_v50 = vpop.f32.mrf.mxu0  ;;  %v739_v23 = vadd.f32 %v738_v43, %v7624_v40  ;;  %v645_v43 = vadd.f32 %v7676_v12, %v7746_v27  ;;  %v713_v12 = vadd.f32 %v7682_v16, %v7624_v40 }
 0x12c   : > { %v7724_v56 = vpack.c.bf16 %v673_v49, %v669_v47  ;;  %v7764_v47 = vpack.c.bf16 %v615_v33, %v611_v25  ;;  %v740_v55 = vpop.f32.mrf.mxu1 }
 0x12d   : > { %v678_v58 = vpop.f32.mrf.mxu0  ;;  %v741_v16 = vadd.f32 %v740_v55, %v7746_v27  ;;  %v591_v55 = vadd.f32 %v7626_v41, %v7746_v27 }
 0x12e   : > { %10152 = vst [vmem:[#allocation8_spill] sm:$0xff] %v7724_v56  ;;  %6518 = vmatprep.mubr.msk.bf16.mxu0 %vm992_vm1, %v7724_v56  ;;  %1086 = vrot.lane.b32.xlu0 %v7722_v54, %s7433_s22  ;;  %v679_v0 = vadd.f32 %v678_v58, %v7624_v40  ;;  %10155 = vst [vmem:[#allocation11_spill] sm:$0xff] %v7764_v47  ;;  %v742_v33 = vpop.f32.mrf.mxu1 }
 0x12f   : > { %v7730_v60 = vpop.f32.mrf.mxu0  ;;  %v743_v25 = vadd.f32 %v742_v33, %v7624_v40 }
 0x130   : > { %v681_v33 = vadd.f32 %v7730_v60, %v7746_v27 }
 0x131   : > { %v682_v62 = vpop.f32.mrf.mxu0 }
 0x132   : > { %v683_v2 = vadd.f32 %v682_v62, %v7624_v40 }
 0x133   : > { %v7734_v3 = vpop.f32.mrf.mxu0 }
 0x134   : > { %v7738_v8 = vpack.c.bf16 %v683_v2, %v679_v0  ;;  %v7772_v0 = vpack.c.bf16 %v605_v44, %v601_v57  ;;  %v685_v41 = vadd.f32 %v7734_v3, %v7746_v27 }
 0x135   : > { %v688_v11 = vpop.f32.mrf.mxu0 }
 0x136   : > { %10153 = vst [vmem:[#allocation9_spill] sm:$0xff] %v7738_v8  ;;  %1189 = vrot.lane.b32.xlu0 %v7738_v8, %s7433_s22  ;;  %10156 = vst [vmem:[#allocation12_spill] sm:$0xff] %v7772_v0  ;;  %v689_v19 = vadd.f32 %v688_v11, %v7624_v40  ;;  %v729_v11 = vadd.f32 %v728_v61, %v7624_v40  ;;  %v709_v61 = vadd.f32 %v7674_v10, %v7624_v40 }
 0x137   : > { %v690_v17 = vpop.f32.mrf.mxu0 }
 0x138   : > { %v691_v15 = vadd.f32 %v690_v17, %v7746_v27  ;;  %v641_v17 = vadd.f32 %v7672_v9, %v7746_v27  ;;  %v744_v9 = vpop.f32.mrf.mxu1  ;;  %v7828_v10 = vpack.c.bf16 %v713_v12, %v709_v61 }
 0x139   : > { %v692_v26 = vpop.f32.mrf.mxu0 }
 0x13a   : > { %1187 = vrot.lane.b32.xlu0 %v7724_v56, %s7433_s22  ;;  %v693_v2 = vadd.f32 %v692_v26, %v7624_v40  ;;  %v7818_v57 = vpack.c.bf16 %v645_v43, %v641_v17  ;;  %10164 = vst [vmem:[#allocation20_spill] sm:$0xff] %v7828_v10 }
 0x13b   : > { %v694_v28 = vpop.f32.mrf.mxu0 }
 0x13c   : > { %v7789_v20 = vpack.c.bf16 %v693_v2, %v689_v19  ;;  %v695_v26 = vadd.f32 %v694_v28, %v7746_v27  ;;  %v7804_v28 = vpack.c.bf16 %v743_v25, %v739_v23  ;;  %10162 = vst [vmem:[#allocation18_spill] sm:$0xff] %v7818_v57  ;;  %v595_v2 = vadd.f32 %v7630_v45, %v7746_v27 }
 0x13d   : > { %v698_v39 = vpop.f32.mrf.mxu0  ;;  %v665_v19 = vadd.f32 %v7698_v29, %v7746_v27  ;;  %v661_v45 = vadd.f32 %v7694_v24, %v7746_v27  ;;  %v675_v29 = vadd.f32 %v7718_v50, %v7746_v27  ;;  %v671_v25 = vadd.f32 %v7708_v35, %v7746_v27 }
 0x13e   : > { %1290 = vrot.lane.b32.xlu0 %v7754_v34, %s7433_s22  ;;  %v699_v58 = vadd.f32 %v698_v39, %v7624_v40  ;;  %v7787_v39 = vpack.c.bf16 %v655_v52, %v651_v48  ;;  %10159 = vst [vmem:[#allocation15_spill] sm:$0xff] %v7789_v20  ;;  %v7801_v44 = vpack.c.bf16 %v695_v26, %v691_v15  ;;  %10161 = vst [vmem:[#allocation17_spill] sm:$0xff] %v7804_v28 }
 0x13f   : > { %v7760_v37 = vpop.f32.mrf.mxu0  ;;  %v745_v52 = vadd.f32 %v744_v9, %v7746_v27  ;;  %v7862_v23 = vpack.c.bf16 %v665_v19, %v661_v45  ;;  %v7872_v26 = vpack.c.bf16 %v685_v41, %v681_v33  ;;  %v7878_v15 = vpack.c.bf16 %v675_v29, %v671_v25 }
 0x140   : > { %10158 = vst [vmem:[#allocation14_spill] sm:$0xff] %v7787_v39  ;;  %10160 = vst [vmem:[#allocation16_spill] sm:$0xff] %v7801_v44  ;;  %v701_v60 = vadd.f32 %v7760_v37, %v7746_v27  ;;  %v324_v35 = vsub.s32 2, %v7615_v36 }
 0x141   : > { %v702_v49 = vpop.f32.mrf.mxu0  ;;  %10168 = vst [vmem:[#allocation24_spill] sm:$0xff] %v7862_v23  ;;  %10169 = vst [vmem:[#allocation25_spill] sm:$0xff] %v7872_v26 }
 0x142   : > { %v703_v62 = vadd.f32 %v702_v49, %v7624_v40  ;;  %1826 = vrot.lane.b32.xlu0 %v7764_v47, %s7434_s23  ;;  %v733_v49 = vadd.f32 %v732_v18, %v7624_v40  ;;  %v635_v18 = vadd.f32 %v7670_v7, %v7746_v27  ;;  %v625_v40 = vadd.f32 %v7656_v63, %v7746_v27 }
 0x143   : > { %v7846_v63 = vpack.c.bf16 %v745_v52, %v741_v16  ;;  %v704_v24 = vpop.f32.mrf.mxu0  ;;  %10170 = vst [vmem:[#allocation26_spill] sm:$0xff] %v7878_v15  ;;  %v7891_v43 = vrot.slane %v7621_v38, %v324_v35 }
 0x144   : > { %v7777_v14 = vpack.c.bf16 %v703_v62, %v699_v58  ;;  %v7820_v58 = vpack.c.bf16 %v733_v49, %v729_v11  ;;  %v631_v62 = vadd.f32 %v7664_v4, %v7746_v27  ;;  %v621_v4 = vadd.f32 %v7652_v59, %v7746_v27  ;;  %v6448_v11 = vpop.f32.mrf.mxu1 }
 0x145   : > { %10166 = vst [vmem:[#allocation22_spill] sm:$0xff] %v7846_v63  ;;  %v7854_v59 = vpack.c.bf16 %v595_v2, %v591_v55  ;;  %v705_v3 = vadd.f32 %v704_v24, %v7746_v27  ;;  %10172 = vst [vmem:[#allocation28_spill] sm:$0xff] %v7891_v43  ;;  %v790_v17 = vadd.f32 %v6448_v11, %v7891_v43 }
 0x146   : > { %10157 = vst [vmem:[#allocation13_spill] sm:$0xff] %v7777_v14  ;;  %1824 = vrot.lane.b32.xlu0 %v7772_v0, %s7434_s23  ;;  %1193 = vrot.lane.b32.xlu1 %v7777_v14, %s7433_s22  ;;  %10163 = vst [vmem:[#allocation19_spill] sm:$0xff] %v7820_v58  ;;  %v7832_v7 = vpack.c.bf16 %v635_v18, %v631_v62  ;;  %v7844_v48 = vpack.c.bf16 %v625_v40, %v621_v4  ;;  %v7893_v49 = vpop.f32.mrf.mxu1 }
 0x147   : > { %10167 = vst [vmem:[#allocation23_spill] sm:$0xff] %v7854_v59  ;;  %v7885_v50 = vpack.c.bf16 %v705_v3, %v701_v60  ;;  %10173 = vst [vmem:[#allocation29_spill] sm:$0xff] %v7893_v49  ;;  %v8078_v49 = vld [vmem:[%s10069_s3 + $0x38] sm:$0xff] }
 0x148   : > { %10165 = vst [vmem:[#allocation21_spill] sm:$0xff] %v7832_v7  ;;  %v6449_v61 = vpop.f32.mrf.mxu1 }
 0x149   : > { %10171 = vst [vmem:[#allocation27_spill] sm:$0xff] %v7885_v50  ;;  %v793_v37 = vadd.f32 %v6449_v61, %v7891_v43 }
 0x14a   : > { %1919 = vrot.lane.b32.xlu0 %v7787_v39, %s7434_s23  ;;  %1191 = vrot.lane.b32.xlu1 %v7789_v20, %s7433_s22  ;;  %v7897_v12 = vpop.f32.mrf.mxu1 }
 0x14b   : > { %10174 = vst [vmem:[#allocation30_spill] sm:$0xff] %v7897_v12  ;;  %v7899_v18 = vpack.c.bf16 %v793_v37, %v790_v17 }
 0x14c   : > { %v6452_v9 = vpop.f32.mrf.mxu1 }
 0x14d   : > { %10175 = vst [vmem:[#allocation31_spill] sm:$0xff] %v7899_v18  ;;  %v806_v38 = vadd.f32 %v6452_v9, %v7891_v43 }
 0x14e   : > { %2012 = vrot.lane.b32.xlu0 %v7801_v44, %s7434_s23  ;;  %1294 = vrot.lane.b32.xlu1 %v7804_v28, %s7433_s22  ;;  %v7903_v40 = vpop.f32.mrf.mxu1 }
 0x14f   : > { %10176 = vst [vmem:[#allocation32_spill] sm:$0xff] %v7903_v40 }
 0x150   : > { %v6453_v16 = vpop.f32.mrf.mxu1 }
 0x151   : > { %v809_v4 = vadd.f32 %v6453_v16, %v7891_v43 }
 0x152   : > { %1917 = vrot.lane.b32.xlu0 %v7818_v57, %s7434_s23  ;;  %1292 = vrot.lane.b32.xlu1 %v7820_v58, %s7433_s22  ;;  %v7908_v2 = vpop.f32.mrf.mxu1 }
 0x153   : > { %10177 = vst [vmem:[#allocation33_spill] sm:$0xff] %v7908_v2  ;;  %v7910_v55 = vpack.c.bf16 %v809_v4, %v806_v38 }
 0x154   : > { %v6456_v19 = vpop.f32.mrf.mxu1 }
 0x155   : > { %10178 = vst [vmem:[#allocation34_spill] sm:$0xff] %v7910_v55  ;;  %v822_v29 = vadd.f32 %v6456_v19, %v7891_v43 }
 0x156   : > { %1915 = vrot.lane.b32.xlu0 %v7832_v7, %s7434_s23  ;;  %1288 = vrot.lane.b32.xlu1 %v7828_v10, %s7433_s22  ;;  %v7913_v41 = vpop.f32.mrf.mxu1 }
 0x157   : > { %10179 = vst [vmem:[#allocation35_spill] sm:$0xff] %v7913_v41  ;;  %v8050_v41 = vld [vmem:[%s10069_s3 + $0x8] sm:$0xff] }
 0x158   : > { %v6457_v24 = vpop.f32.mrf.mxu1 }
 0x159   : > { %v825_v25 = vadd.f32 %v6457_v24, %v7891_v43 }
 0x15a   : > { %1828 = vrot.lane.b32.xlu1 %v7844_v48, %s7434_s23  ;;  %2107 = vrot.lane.b32.xlu0 %v7846_v63, %s7434_s23  ;;  %v7918_v3 = vpop.f32.mrf.mxu1 }
 0x15b   : > { %10180 = vst [vmem:[#allocation36_spill] sm:$0xff] %v7918_v3  ;;  %v7920_v60 = vpack.c.bf16 %v825_v25, %v822_v29 }
 0x15c   : > { %v6460_v35 = vpop.f32.mrf.mxu1 }
 0x15d   : > { %10181 = vst [vmem:[#allocation37_spill] sm:$0xff] %v7920_v60  ;;  %v838_v37 = vadd.f32 %v6460_v35, %v7891_v43 }
 0x15e   : > { %1822 = vrot.lane.b32.xlu1 %v7854_v59, %s7434_s23  ;;  %v7923_v17 = vpop.f32.mrf.mxu1 }
 0x15f   : > { %10182 = vst [vmem:[#allocation38_spill] sm:$0xff] %v7923_v17 }
 0x160   : > { %v6461_v9 = vpop.f32.mrf.mxu1 }
 0x162   : > { %1921 = vrot.lane.b32.xlu1 %v7862_v23, %s7434_s23 }
 0x166   : > { %2010 = vrot.lane.b32.xlu1 %v7872_v26, %s7434_s23 }
 0x168   : > { %v987_v33 = vpop.permute.xlu1 %986 }
 0x169   : > { %v1009_v11 = vsel %vm992_vm1, %v987_v33, 0 }
 0x16a   : > { %2008 = vrot.lane.b32.xlu1 %v7878_v15, %s7434_s23 }
 0x16c   : > { %v985_v61 = vpop.permute.xlu1 %984 }
 0x16d   : > { %v1006_v4 = vsel %vm992_vm1, %v985_v61, 0 }
 0x16e   : > { %2014 = vrot.lane.b32.xlu1 %v7885_v50, %s7434_s23 }
 0x178   : > { %v991_v62 = vpop.permute.xlu0 %990 }
 0x179   : > { %6918 = vmatprep.subr.msk.bf16.mxu1 %vm992_vm1, %v991_v62  ;;  %v1015_v36 = vsel %vm992_vm1, %v991_v62, 0  ;;  %v841_v62 = vadd.f32 %v6461_v9, %v7891_v43 }
 0x17a   : > { %6479 = vmatpush3.bf16.xpose.msra.mxu1 %v1015_v36  ;;  %v7928_v36 = vpop.f32.mrf.mxu1 }
 0x17b   : > { %10183 = vst [vmem:[#allocation39_spill] sm:$0xff] %v7928_v36  ;;  %v7930_v38 = vpack.c.bf16 %v841_v62, %v838_v37  ;;  %v8060_v36 = vld [vmem:[%s10069_s3 + $0x30] sm:$0xff] }
 0x17c   : > { %v989_v52 = vpop.permute.xlu0 %988  ;;  %v6464_v16 = vpop.f32.mrf.mxu1 }
 0x17d   : > { %6919 = vmatprep.subr.msk.bf16.mxu1 %vm992_vm1, %v989_v52  ;;  %v1012_v45 = vsel %vm992_vm1, %v989_v52, 0  ;;  %10184 = vst [vmem:[#allocation40_spill] sm:$0xff] %v7930_v38  ;;  %v854_v52 = vadd.f32 %v6464_v16, %v7891_v43 }
 0x17e   : > { %v845_v19 = vpop.f32.mrf.mxu1 }
 0x182   : > { %6481 = vmatpush3.bf16.xpose.msra.mxu1 %v1012_v45  ;;  %v846_v45 = vadd.f32 %v845_v19, %v7891_v43 }
 0x183   : > { %6920 = vmatprep.subr.msk.bf16.mxu1 %vm992_vm1, %v987_v33  ;;  %v6465_v33 = vpop.f32.mrf.mxu1 }
 0x184   : > { %v857_v29 = vadd.f32 %v6465_v33, %v7891_v43 }
 0x185   : > { %v848_v24 = vpop.f32.mrf.mxu1 }
 0x186   : > { %v7936_v25 = vpack.c.bf16 %v857_v29, %v854_v52  ;;  %v849_v35 = vadd.f32 %v848_v24, %v7891_v43 }
 0x188   : > { %10185 = vst [vmem:[#allocation41_spill] sm:$0xff] %v7936_v25  ;;  %v7939_v9 = vpack.c.bf16 %v849_v35, %v846_v45 }
 0x18a   : > { %6483 = vmatpush3.bf16.xpose.msra.mxu1 %v1009_v11  ;;  %v6468_v11 = vpop.f32.mrf.mxu1  ;;  %10186 = vst [vmem:[#allocation42_spill] sm:$0xff] %v7939_v9 }
 0x18b   : > { %6921 = vmatprep.subr.msk.bf16.mxu1 %vm992_vm1, %v985_v61  ;;  %v870_v52 = vadd.f32 %v6468_v11, %v7891_v43 }
 0x18c   : > { %v861_v62 = vpop.f32.mrf.mxu1 }
 0x18e   : > { %v6469_v19 = vpop.f32.mrf.mxu1 }
 0x18f   : > { %v873_v45 = vadd.f32 %v6469_v19, %v7891_v43 }
 0x190   : > { %v1091_v16 = vpop.permute.xlu1 %1090  ;;  %v864_v33 = vpop.f32.mrf.mxu1 }
 0x191   : > { %v7951_v29 = vpack.c.bf16 %v873_v45, %v870_v52  ;;  %v865_v24 = vadd.f32 %v864_v33, %v7891_v43  ;;  %v1113_v11 = vsel %vm992_vm1, %v1091_v16, 0 }
 0x192   : > { %6485 = vmatpush3.bf16.xpose.msra.mxu1 %v1006_v4  ;;  %v862_v4 = vadd.f32 %v861_v62, %v7891_v43  ;;  %v6472_v35 = vpop.f32.mrf.mxu1 }
 0x193   : > { %10187 = vst [vmem:[#allocation43_spill] sm:$0xff] %v7951_v29  ;;  %v886_v9 = vadd.f32 %v6472_v35, %v7891_v43 }
 0x198   : > { %v1093_v37 = vpop.permute.xlu0 %1092 }
 0x199   : > { %6487 = vmatmul.mubr.msk.bf16.vlgmr.msra.gmra.mxu1 %vm992_vm1, %v7642_v53  ;;  %6922 = vmatprep.subr.msk.bf16.mxu1 %vm992_vm1, %v1093_v37  ;;  %v1116_v61 = vsel %vm992_vm1, %v1093_v37, 0  ;;  %v7954_v37 = vpack.c.bf16 %v865_v24, %v862_v4 }
 0x19a   : > { %6490 = vmatprep.mubr.msk.bf16.mxu1 %vm992_vm1, %v7666_v5  ;;  %6495 = vmatpush3.bf16.xpose.msra.mxu1 %v1116_v61  ;;  %v877_v61 = vpop.f32.mrf.mxu1 }
 0x19b   : > { %6923 = vmatprep.subr.msk.bf16.mxu1 %vm992_vm1, %v1091_v16  ;;  %10188 = vst [vmem:[#allocation44_spill] sm:$0xff] %v7954_v37  ;;  %v878_v52 = vadd.f32 %v877_v61, %v7891_v43 }
 0x19c   : > { %v1089_v62 = vpop.permute.xlu0 %1088  ;;  %v6473_v19 = vpop.f32.mrf.mxu1 }
 0x19d   : > { %v889_v4 = vadd.f32 %v6473_v19, %v7891_v43 }
 0x19e   : > { %v880_v45 = vpop.f32.mrf.mxu1 }
 0x19f   : > { %v7965_v33 = vpack.c.bf16 %v889_v4, %v886_v9  ;;  %v881_v24 = vadd.f32 %v880_v45, %v7891_v43 }
 0x1a0   : > { %v6476_v35 = vpop.f32.mrf.mxu1  ;;  %v1087_v37 = vpop.permute.xlu0 %1086 }
 0x1a1   : > { %6491 = vmatmul.mubr.msk.bf16.gmra.mxu1 %vm992_vm1, %v7659_v1  ;;  %10189 = vst [vmem:[#allocation45_spill] sm:$0xff] %v7965_v33  ;;  %v7968_v16 = vpack.c.bf16 %v881_v24, %v878_v52  ;;  %v902_v61 = vadd.f32 %v6476_v35, %v7891_v43 }
 0x1a2   : > { %6497 = vmatpush3.bf16.xpose.msra.mxu1 %v1113_v11  ;;  %6502 = vmatprep.mubr.msk.bf16.mxu1 %vm992_vm1, %v7722_v54  ;;  %v1110_v11 = vsel %vm992_vm1, %v1089_v62, 0  ;;  %v893_v25 = vpop.f32.mrf.mxu1 }
 0x1a3   : > { %6924 = vmatprep.subr.msk.bf16.mxu1 %vm992_vm1, %v1089_v62  ;;  %10190 = vst [vmem:[#allocation46_spill] sm:$0xff] %v7968_v16  ;;  %v894_v60 = vadd.f32 %v893_v25, %v7891_v43  ;;  %v1107_v62 = vsel %vm992_vm1, %v1087_v37, 0 }
 0x1a4   : > { %v6477_v19 = vpop.f32.mrf.mxu1 }
 0x1a5   : > { %v905_v9 = vadd.f32 %v6477_v19, %v7891_v43 }
 0x1a6   : > { %v896_v4 = vpop.f32.mrf.mxu1 }
 0x1a7   : > { %v7975_v33 = vpack.c.bf16 %v905_v9, %v902_v61  ;;  %v897_v52 = vadd.f32 %v896_v4, %v7891_v43 }
 0x1a8   : > { %v1190_v24 = vpop.permute.xlu0 %1189 }
 0x1a9   : > { %10191 = vst [vmem:[#allocation47_spill] sm:$0xff] %v7975_v33  ;;  %v7978_v45 = vpack.c.bf16 %v897_v52, %v894_v60 }
 0x1aa   : > { %6499 = vmatpush3.bf16.xpose.msra.mxu1 %v1110_v11 }
 0x1ab   : > { %6925 = vmatprep.subr.msk.bf16.mxu1 %vm992_vm1, %v1087_v37  ;;  %10192 = vst [vmem:[#allocation48_spill] sm:$0xff] %v7978_v45 }
 0x1ac   : > { %v1188_v60 = vpop.permute.xlu0 %1187 }
 0x1b0   : > { %v1291_v9 = vpop.permute.xlu0 %1290 }
 0x1b1   : > { %v1312_v16 = vsel %vm992_vm1, %v1291_v9, 0 }
 0x1b2   : > { %6501 = vmatpush3.bf16.xpose.msra.mxu1 %v1107_v62  ;;  %v1211_v62 = vsel %vm992_vm1, %v1190_v24, 0 }
 0x1b8   : > { %v1194_v11 = vpop.permute.xlu1 %1193 }
 0x1b9   : > { %6503 = vmatmul.mubr.msk.bf16.vlgmr.msra.gmra.mxu1 %vm992_vm1, %v7711_v42  ;;  %6926 = vmatprep.subr.msk.bf16.mxu0 %vm992_vm1, %v1194_v11  ;;  %v1217_v25 = vsel %vm992_vm1, %v1194_v11, 0 }
 0x1ba   : > { %6506 = vmatprep.mubr.msk.bf16.mxu1 %vm992_vm1, %v7690_v22  ;;  %6511 = vmatpush3.bf16.xpose.msra.mxu0 %v1217_v25  ;;  %v1827_v25 = vpop.permute.xlu0 %1826 }
 0x1bc   : > { %v1192_v35 = vpop.permute.xlu1 %1191 }
 0x1bd   : > { %6927 = vmatprep.subr.msk.bf16.mxu0 %vm992_vm1, %v1192_v35  ;;  %v1214_v37 = vsel %vm992_vm1, %v1192_v35, 0 }
 0x1c0   : > { %v1295_v61 = vpop.permute.xlu1 %1294 }
 0x1c1   : > { %6507 = vmatmul.mubr.msk.bf16.gmra.mxu1 %vm992_vm1, %v7703_v32  ;;  %6930 = vmatprep.subr.msk.bf16.mxu1 %vm992_vm1, %v1295_v61  ;;  %v1318_v19 = vsel %vm992_vm1, %v1295_v61, 0  ;;  %v1825_v61 = vpop.permute.xlu0 %1824 }
 0x1c2   : > { %6513 = vmatpush3.bf16.xpose.msra.mxu0 %v1214_v37  ;;  %6527 = vmatpush3.bf16.xpose.msra.mxu1 %v1318_v19  ;;  %v1208_v19 = vsel %vm992_vm1, %v1188_v60, 0 }
 0x1c3   : > { %6534 = vmatprep.mubr.msk.bf16.mxu1 %vm992_vm1, %v7828_v10  ;;  %6928 = vmatprep.subr.msk.bf16.mxu0 %vm992_vm1, %v1190_v24 }
 0x1c4   : > { %v1293_v4 = vpop.permute.xlu1 %1292 }
 0x1c5   : > { %6931 = vmatprep.subr.msk.bf16.mxu1 %vm992_vm1, %v1293_v4  ;;  %v1315_v11 = vsel %vm992_vm1, %v1293_v4, 0  ;;  %v1920_v4 = vpop.permute.xlu0 %1919 }
 0x1c8   : > { %v1289_v52 = vpop.permute.xlu1 %1288 }
 0x1ca   : > { %6515 = vmatpush3.bf16.xpose.msra.mxu0 %v1211_v62  ;;  %6529 = vmatpush3.bf16.xpose.msra.mxu1 %v1315_v11  ;;  %v1309_v62 = vsel %vm992_vm1, %v1289_v52, 0 }
 0x1cb   : > { %6929 = vmatprep.subr.msk.bf16.mxu0 %vm992_vm1, %v1188_v60  ;;  %6932 = vmatprep.subr.msk.bf16.mxu1 %vm992_vm1, %v1291_v9  ;;  %v8011_v60 = vpop.permute.xlu0 %2012 }
 0x1cc   : > { %v1829_v35 = vpop.permute.xlu1 %1828 }
 0x1cf   : > { %v1918_v9 = vpop.permute.xlu0 %1917 }
 0x1d0   : > { %v1823_v37 = vpop.permute.xlu1 %1822 }
 0x1d2   : > { %6517 = vmatpush3.bf16.xpose.msra.mxu0 %v1208_v19  ;;  %6531 = vmatpush3.bf16.xpose.msra.mxu1 %v1312_v16  ;;  %v8032_v19 = vld [vmem:[%s10069_s3 + $0x10] sm:$0xff] }
 0x1d3   : > { %6542 = vmatprep.subr.bf16.mxu0 %v1829_v35  ;;  %6933 = vmatprep.subr.msk.bf16.mxu1 %vm992_vm1, %v1289_v52 }
 0x1d4   : > { %v1922_v24 = vpop.permute.xlu1 %1921 }
 0x1d8   : > { %v8009_v11 = vpop.permute.xlu1 %2010 }
 0x1d9   : > { %6519 = vmatmul.mubr.msk.bf16.vlgmr.msra.gmra.mxu0 %vm992_vm1, %v7738_v8 }
 0x1da   : > { %6522 = vmatprep.mubr.msk.bf16.mxu0 %vm992_vm1, %v7789_v20  ;;  %6533 = vmatpush3.bf16.xpose.msra.mxu1 %v1309_v62 }
 0x1db   : > { %6543 = vmatpush3.bf16.msra.mxu0 %v1829_v35  ;;  %6558 = vmatprep.subr.bf16.mxu1 %v1922_v24 }
 0x1dc   : > { %6544 = vmatprep.subr.bf16.mxu0 %v1827_v25  ;;  %v8013_v16 = vpop.permute.xlu1 %2008 }
 0x1df   : > { %6545 = vmatpush3.bf16.msra.mxu0 %v1827_v25  ;;  %v1916_v25 = vpop.permute.xlu0 %1915 }
 0x1e0   : > { %6546 = vmatprep.subr.bf16.mxu0 %v1825_v61  ;;  %v8021_v52 = vpop.permute.xlu1 %2014 }
 0x1e1   : > { %6523 = vmatmul.mubr.msk.bf16.gmra.mxu0 %vm992_vm1, %v7777_v14  ;;  %6535 = vmatmul.mubr.msk.bf16.vlgmr.msra.gmra.mxu1 %vm992_vm1, %v7754_v34 }
 0x1e2   : > { %6538 = vmatprep.mubr.msk.bf16.mxu1 %vm992_vm1, %v7820_v58  ;;  %6559 = vmatpush3.bf16.msra.mxu1 %v1922_v24 }
 0x1e3   : > { %6547 = vmatpush3.bf16.msra.mxu0 %v1825_v61  ;;  %6560 = vmatprep.subr.bf16.mxu1 %v1920_v4  ;;  %v8026_v35 = vpop.permute.xlu0 %2107 }
 0x1e4   : > { %6548 = vmatprep.subr.bf16.mxu0 %v1823_v37  ;;  %10193 = vst [vmem:[#allocation49_spill] sm:$0xff] %v8026_v35 }
 0x1e6   : > { %6561 = vmatpush3.bf16.msra.mxu1 %v1920_v4  ;;  %v8037_v4 = vld [vmem:[%s10069_s3] sm:$0xff] }
 0x1e7   : > { %6549 = vmatpush3.bf16.msra.mxu0 %v1823_v37  ;;  %6562 = vmatprep.subr.bf16.mxu1 %v1918_v9 }
 0x1e8   : > { %6574 = vmatprep.subr.bf16.mxu0 %v8021_v52 }
 0x1e9   : > { %6539 = vmatmul.mubr.msk.bf16.gmra.mxu1 %vm992_vm1, %v7804_v28 }
 0x1ea   : > { %6563 = vmatpush3.bf16.msra.mxu1 %v1918_v9 }
 0x1eb   : > { %6564 = vmatprep.subr.bf16.mxu1 %v1916_v25 }
 0x1ee   : > { %6565 = vmatpush3.bf16.msra.mxu1 %v1916_v25 }
 0x1ef   : > { %6590 = vmatprep.subr.bf16.mxu1 %v8026_v35 }
 0x259   : > { %v6488_v61 = vpop.f32.mrf.mxu1 }
 0x25a   : > { %v1387_v37 = vmul.f32 0.17677669, %v6488_v61 }
 0x25b   : > { %v1051_v24 = vpop.f32.mrf.mxu1 }
 0x25c   : > { %v1385_v62 = vmul.f32 0.17677669, %v1051_v24  ;;  %v8040_v9 = vadd.f32 %v1387_v37, %v8032_v19  ;;  %v8055_v37 = vld [vmem:[%s10069_s3 + $0x18] sm:$0xff] }
 0x25d   : > { %v6489_v25 = vpop.f32.mrf.mxu1 }
 0x25e   : > { %v1388_v45 = vmul.f32 0.17677669, %v6489_v25  ;;  %v1456_v33 = vsel %vm1449_vm2, %v8040_v9, -inf  ;;  %v8045_v3 = vadd.f32 %v1385_v62, %v8037_v4 }
 0x25f   : > { %1457 = vmax.xlane.f32.xlu0 %v1456_v33  ;;  %v1054_v61 = vpop.f32.mrf.mxu1 }
 0x260   : > { %v1386_v24 = vmul.f32 0.17677669, %v1054_v61  ;;  %v1450_v33 = vsel %vm1449_vm2, %v8045_v3, -inf  ;;  %v8068_v38 = vadd.f32 %v1388_v45, %v8055_v37  ;;  %v8083_v45 = vld [vmem:[%s10069_s3 + $0x20] sm:$0xff] }
 0x261   : > { %v6492_v25 = vpop.f32.mrf.mxu1 }
 0x262   : > { %v1391_v62 = vmul.f32 0.17677669, %v6492_v25  ;;  %v8065_v17 = vadd.f32 %v1386_v24, %v8050_v41 }
 0x263   : > { %1451 = vmax.xlane.f32.xlu0 %v1450_v33  ;;  %v1067_v29 = vpop.f32.mrf.mxu1 }
 0x264   : > { %v1389_v18 = vmul.f32 0.17677669, %v1067_v29  ;;  %v1453_v61 = vsel %vm1449_vm2, %v8065_v17, -inf  ;;  %v8073_v12 = vadd.f32 %v1391_v62, %v8060_v36  ;;  %v1459_v29 = vsel %vm1449_vm2, %v8068_v38, -inf  ;;  %v8090_v62 = vld [vmem:[%s10069_s3 + $0x28] sm:$0xff] }
 0x265   : > { %1454 = vmax.xlane.f32.xlu1 %v1453_v61  ;;  %v6493_v25 = vpop.f32.mrf.mxu1 }
 0x266   : > { %v1392_v24 = vmul.f32 0.17677669, %v6493_v25  ;;  %v1468_v2 = vsel %vm1449_vm2, %v8073_v12, -inf  ;;  %v8098_v43 = vadd.f32 %v1389_v18, %v8083_v45 }
 0x267   : > { %1460 = vmax.xlane.f32.xlu0 %v1459_v29  ;;  %v1070_v33 = vpop.f32.mrf.mxu1 }
 0x268   : > { %v1390_v61 = vmul.f32 0.17677669, %v1070_v33  ;;  %v8095_v40 = vadd.f32 %v1392_v24, %v8078_v49  ;;  %v1462_v33 = vsel %vm1449_vm2, %v8098_v43, -inf }
 0x269   : > { %1469 = vmax.xlane.f32.xlu1 %v1468_v2 }
 0x26a   : > { %v1471_v25 = vsel %vm1449_vm2, %v8095_v40, -inf  ;;  %v8103_v29 = vadd.f32 %v1390_v61, %v8090_v62 }
 0x26b   : > { %1472 = vmax.xlane.f32.xlu0 %v1471_v25 }
 0x26c   : > { %v1465_v55 = vsel %vm1449_vm2, %v8103_v29, -inf }
 0x26d   : > { %1463 = vmax.xlane.f32.xlu1 %v1462_v33 }
 0x26f   : > { %1466 = vmax.xlane.f32.xlu0 %v1465_v55 }
 0x279   : > { %v6504_v24 = vpop.f32.mrf.mxu1 }
 0x27a   : > { %v1395_v7 = vmul.f32 0.17677669, %v6504_v24 }
 0x27b   : > { %v1152_v18 = vpop.f32.mrf.mxu1 }
 0x27c   : > { %v1393_v26 = vmul.f32 0.17677669, %v1152_v18  ;;  %v8110_v2 = vadd.f32 %v1395_v7, %v8032_v19 }
 0x27d   : > { %v6505_v57 = vpop.f32.mrf.mxu1 }
 0x27e   : > { %v1396_v39 = vmul.f32 0.17677669, %v6505_v57  ;;  %v1480_v61 = vsel %vm1449_vm2, %v8110_v2, -inf  ;;  %v8115_v25 = vadd.f32 %v1393_v26, %v8037_v4 }
 0x27f   : > { %1481 = vmax.xlane.f32.xlu1 %v1480_v61  ;;  %v1155_v33 = vpop.f32.mrf.mxu1 }
 0x280   : > { %v1394_v63 = vmul.f32 0.17677669, %v1155_v33  ;;  %v8118_v55 = vadd.f32 %v1396_v39, %v8055_v37  ;;  %v1474_v7 = vsel %vm1449_vm2, %v8115_v25, -inf }
 0x281   : > { %v6508_v24 = vpop.f32.mrf.mxu1 }
 0x282   : > { %v1399_v23 = vmul.f32 0.17677669, %v6508_v24  ;;  %v1483_v57 = vsel %vm1449_vm2, %v8118_v55, -inf  ;;  %v8125_v18 = vadd.f32 %v1394_v63, %v8050_v41 }
 0x283   : > { %1475 = vmax.xlane.f32.xlu1 %v1474_v7  ;;  %1484 = vmax.xlane.f32.xlu0 %v1483_v57  ;;  %v1168_v26 = vpop.f32.mrf.mxu1 }
 0x284   : > { %v1397_v61 = vmul.f32 0.17677669, %v1168_v26  ;;  %v8128_v33 = vadd.f32 %v1399_v23, %v8060_v36  ;;  %v1477_v24 = vsel %vm1449_vm2, %v8125_v18, -inf }
 0x285   : > { %v6509_v39 = vpop.f32.mrf.mxu1 }
 0x286   : > { %v1400_v15 = vmul.f32 0.17677669, %v6509_v39  ;;  %v1492_v59 = vsel %vm1449_vm2, %v8128_v33, -inf  ;;  %v8135_v44 = vadd.f32 %v1397_v61, %v8083_v45 }
 0x287   : > { %1478 = vmax.xlane.f32.xlu0 %v1477_v24  ;;  %1493 = vmax.xlane.f32.xlu1 %v1492_v59  ;;  %v1171_v63 = vpop.f32.mrf.mxu1 }
 0x288   : > { %v1398_v7 = vmul.f32 0.17677669, %v1171_v63  ;;  %v8138_v57 = vadd.f32 %v1400_v15, %v8078_v49  ;;  %v1486_v23 = vsel %vm1449_vm2, %v8135_v44, -inf }
 0x28a   : > { %v1495_v26 = vsel %vm1449_vm2, %v8138_v57, -inf  ;;  %v8145_v39 = vadd.f32 %v1398_v7, %v8090_v62 }
 0x28b   : > { %1487 = vmax.xlane.f32.xlu1 %v1486_v23  ;;  %1496 = vmax.xlane.f32.xlu0 %v1495_v26 }
 0x28c   : > { %v1489_v61 = vsel %vm1449_vm2, %v8145_v39, -inf }
 0x28f   : > { %1490 = vmax.xlane.f32.xlu0 %v1489_v61 }
 0x299   : > { %v6520_v59 = vpop.f32.mrf.mxu0 }
 0x29a   : > { %v1403_v24 = vmul.f32 0.17677669, %v6520_v59 }
 0x29b   : > { %v1253_v63 = vpop.f32.mrf.mxu0 }
 0x29c   : > { %v8150_v15 = vadd.f32 %v1403_v24, %v8032_v19  ;;  %v1401_v26 = vmul.f32 0.17677669, %v1253_v63 }
 0x29d   : > { %v6521_v50 = vpop.f32.mrf.mxu0 }
 0x29e   : > { %v1404_v28 = vmul.f32 0.17677669, %v6521_v50  ;;  %v1504_v0 = vsel %vm1449_vm2, %v8150_v15, -inf }
 0x29f   : > { %v1256_v14 = vpop.f32.mrf.mxu0  ;;  %1505 = vmax.xlane.f32.xlu1 %v1504_v0 }
 0x2a0   : > { %v8155_v7 = vadd.f32 %v1404_v28, %v8055_v37  ;;  %v1402_v50 = vmul.f32 0.17677669, %v1256_v14  ;;  %v8165_v28 = vadd.f32 %v1401_v26, %v8037_v4 }
 0x2a1   : > { %v6536_v23 = vpop.f32.mrf.mxu1  ;;  %v6524_v59 = vpop.f32.mrf.mxu0 }
 0x2a2   : > { %v1411_v47 = vmul.f32 0.17677669, %v6536_v23  ;;  %v1507_v61 = vsel %vm1449_vm2, %v8155_v7, -inf }
 0x2a3   : > { %1508 = vmax.xlane.f32.xlu0 %v1507_v61  ;;  %v1354_v24 = vpop.f32.mrf.mxu1  ;;  %v1269_v63 = vpop.f32.mrf.mxu0  ;;  %v1407_v61 = vmul.f32 0.17677669, %v6524_v59 }
 0x2a4   : > { %v8160_v34 = vadd.f32 %v1411_v47, %v8032_v19  ;;  %v1409_v32 = vmul.f32 0.17677669, %v1354_v24  ;;  %v8171_v47 = vadd.f32 %v1402_v50, %v8050_v41 }
 0x2a5   : > { %v6537_v58 = vpop.f32.mrf.mxu1  ;;  %v6525_v24 = vpop.f32.mrf.mxu0  ;;  %v8183_v59 = vadd.f32 %v1407_v61, %v8060_v36 }
 0x2a6   : > { %v1412_v35 = vmul.f32 0.17677669, %v6537_v58  ;;  %v1528_v0 = vsel %vm1449_vm2, %v8160_v34, -inf  ;;  %v1498_v58 = vsel %vm1449_vm2, %v8165_v28, -inf  ;;  %v8178_v26 = vadd.f32 %v1409_v32, %v8037_v4 }
 0x2a7   : > { %1529 = vmax.xlane.f32.xlu1 %v1528_v0  ;;  %v1357_v23 = vpop.f32.mrf.mxu1  ;;  %v1408_v50 = vmul.f32 0.17677669, %v6525_v24  ;;  %v1405_v4 = vmul.f32 0.17677669, %v1269_v63 }
 0x2a8   : > { %v8168_v20 = vadd.f32 %v1412_v35, %v8055_v37  ;;  %v1410_v14 = vmul.f32 0.17677669, %v1357_v23  ;;  %v1501_v37 = vsel %vm1449_vm2, %v8171_v47, -inf  ;;  %v1522_v23 = vsel %vm1449_vm2, %v8178_v26, -inf }
 0x2a9   : > { %v6540_v8 = vpop.f32.mrf.mxu1 }
 0x2aa   : > { %v1531_v19 = vsel %vm1449_vm2, %v8168_v20, -inf  ;;  %v1415_v0 = vmul.f32 0.17677669, %v6540_v8  ;;  %v8188_v10 = vadd.f32 %v1410_v14, %v8050_v41  ;;  %v8195_v8 = vadd.f32 %v1408_v50, %v8078_v49 }
 0x2ab   : > { %1499 = vmax.xlane.f32.xlu1 %v1498_v58  ;;  %1532 = vmax.xlane.f32.xlu0 %v1531_v19  ;;  %v1370_v35 = vpop.f32.mrf.mxu1  ;;  %v1516_v58 = vsel %vm1449_vm2, %v8183_v59, -inf  ;;  %v1272_v19 = vpop.f32.mrf.mxu0  ;;  %v8201_v14 = vadd.f32 %v1405_v4, %v8083_v45 }
 0x2ac   : > { %v1525_v61 = vsel %vm1449_vm2, %v8188_v10, -inf  ;;  %v8198_v24 = vadd.f32 %v1415_v0, %v8060_v36  ;;  %v1406_v41 = vmul.f32 0.17677669, %v1272_v19  ;;  %v1413_v63 = vmul.f32 0.17677669, %v1370_v35 }
 0x2ad   : > { %v6541_v32 = vpop.f32.mrf.mxu1  ;;  %v1510_v36 = vsel %vm1449_vm2, %v8201_v14, -inf }
 0x2ae   : > { %v1416_v1 = vmul.f32 0.17677669, %v6541_v32  ;;  %v8215_v35 = vadd.f32 %v1413_v63, %v8083_v45 }
 0x2af   : > { %1523 = vmax.xlane.f32.xlu1 %v1522_v23  ;;  %1502 = vmax.xlane.f32.xlu0 %v1501_v37  ;;  %v1519_v37 = vsel %vm1449_vm2, %v8195_v8, -inf  ;;  %v1540_v23 = vsel %vm1449_vm2, %v8198_v24, -inf  ;;  %v1373_v50 = vpop.f32.mrf.mxu1 }
 0x2b0   : > { %v8208_v32 = vadd.f32 %v1416_v1, %v8078_v49  ;;  %v1414_v0 = vmul.f32 0.17677669, %v1373_v50  ;;  %v1534_v1 = vsel %vm1449_vm2, %v8215_v35, -inf }
 0x2b2   : > { %v1543_v4 = vsel %vm1449_vm2, %v8208_v32, -inf  ;;  %v8225_v19 = vadd.f32 %v1414_v0, %v8090_v62 }
 0x2b3   : > { %1517 = vmax.xlane.f32.xlu1 %v1516_v58  ;;  %1526 = vmax.xlane.f32.xlu0 %v1525_v61  ;;  %v8218_v58 = vadd.f32 %v1406_v41, %v8090_v62 }
 0x2b4   : > { %v1537_v45 = vsel %vm1449_vm2, %v8225_v19, -inf }
 0x2b5   : > { %v1513_v49 = vsel %vm1449_vm2, %v8218_v58, -inf }
 0x2b7   : > { %1520 = vmax.xlane.f32.xlu0 %v1519_v37  ;;  %1541 = vmax.xlane.f32.xlu1 %v1540_v23 }
 0x2bb   : > { %1511 = vmax.xlane.f32.xlu1 %v1510_v36  ;;  %1544 = vmax.xlane.f32.xlu0 %v1543_v4 }
 0x2bf   : > { %1535 = vmax.xlane.f32.xlu1 %v1534_v1  ;;  %1514 = vmax.xlane.f32.xlu0 %v1513_v49 }
 0x2c3   : > { %1538 = vmax.xlane.f32.xlu0 %v1537_v45 }
 0x2e8   : > { %v1458_v61 = vpop.xlane.xlu0 %1457 }
 0x2e9   : > { %v1548_v41 = vsub.f32 %v8040_v9, %v1458_v61 }
 0x2eb   : > { %v1582_v63 = vmul.f32 1.442695, %v1548_v41 }
 0x2ec   : > { %v1452_v37 = vpop.xlane.xlu0 %1451 }
 0x2ed   : > { %7040 = vpow2.f32 %v1582_v63  ;;  %v1546_v23 = vsub.f32 %v8045_v3, %v1452_v37 }
 0x2ee   : > { %v1455_v50 = vpop.xlane.xlu1 %1454 }
 0x2ef   : > { %v1578_v36 = vmul.f32 1.442695, %v1546_v23  ;;  %v1547_v4 = vsub.f32 %v8065_v17, %v1455_v50 }
 0x2f0   : > { %v1461_v62 = vpop.xlane.xlu0 %1460 }
 0x2f1   : > { %7042 = vpow2.f32 %v1578_v36  ;;  %v1549_v0 = vsub.f32 %v8068_v38, %v1461_v62  ;;  %v1580_v1 = vmul.f32 1.442695, %v1547_v4 }
 0x2f2   : > { %v1470_v49 = vpop.xlane.xlu1 %1469 }
 0x2f3   : > { %v1584_v22 = vmul.f32 1.442695, %v1549_v0  ;;  %v1552_v45 = vsub.f32 %v8073_v12, %v1470_v49 }
 0x2f4   : > { %v1473_v42 = vpop.xlane.xlu0 %1472 }
 0x2f5   : > { %7044 = vpow2.f32 %v1584_v22  ;;  %v1590_v9 = vmul.f32 1.442695, %v1552_v45  ;;  %v1553_v61 = vsub.f32 %v8095_v40, %v1473_v42 }
 0x2f6   : > { %7046 = vpow2.f32 %v1580_v1  ;;  %v1464_v3 = vpop.xlane.xlu1 %1463 }
 0x2f7   : > { %7048 = vpow2.f32 %v1590_v9  ;;  %v1592_v41 = vmul.f32 1.442695, %v1553_v61  ;;  %v1550_v17 = vsub.f32 %v8098_v43, %v1464_v3 }
 0x2f8   : > { %v1467_v63 = vpop.xlane.xlu0 %1466 }
 0x2f9   : > { %v1586_v37 = vmul.f32 1.442695, %v1550_v17  ;;  %v1551_v38 = vsub.f32 %v8103_v29, %v1467_v63  ;;  %7050 = vpow2.f32 %v1592_v41 }
 0x2fa   : > { %v8237_v23 = vpop.eup %7040 }
 0x2fb   : > { %7052 = vpow2.f32 %v1586_v37  ;;  %v1588_v12 = vmul.f32 1.442695, %v1551_v38  ;;  %v1648_v22 = vsel %vm1449_vm2, %v8237_v23, 0.0 }
 0x2fc   : > { %1649 = vadd.xlane.f32.xlu1 %v1648_v22 }
 0x2fd   : > { %7054 = vpow2.f32 %v1588_v12 }
 0x2fe   : > { %v8241_v42 = vpop.eup %7042 }
 0x2ff   : > { %v1642_v40 = vsel %vm1449_vm2, %v8241_v42, 0.0 }
 0x300   : > { %1643 = vadd.xlane.f32.xlu1 %v1642_v40 }
 0x302   : > { %v8245_v43 = vpop.eup %7044 }
 0x303   : > { %v8247_v50 = vpop.eup %7046  ;;  %v1651_v29 = vsel %vm1449_vm2, %v8245_v43, 0.0 }
 0x304   : > { %v8251_v36 = vpop.eup %7048  ;;  %1652 = vadd.xlane.f32.xlu0 %v1651_v29  ;;  %v1645_v0 = vsel %vm1449_vm2, %v8247_v50, 0.0 }
 0x305   : > { %v1660_v4 = vsel %vm1449_vm2, %v8251_v36, 0.0 }
 0x306   : > { %1661 = vadd.xlane.f32.xlu1 %v1660_v4  ;;  %v8255_v62 = vpop.eup %7050 }
 0x307   : > { %v1663_v3 = vsel %vm1449_vm2, %v8255_v62, 0.0 }
 0x308   : > { %v8259_v1 = vpop.eup %7052  ;;  %v1482_v49 = vpop.xlane.xlu1 %1481  ;;  %1646 = vadd.xlane.f32.xlu0 %v1645_v0 }
 0x309   : > { %v1556_v45 = vsub.f32 %v8110_v2, %v1482_v49  ;;  %v1654_v9 = vsel %vm1449_vm2, %v8259_v1, 0.0 }
 0x30a   : > { %1655 = vadd.xlane.f32.xlu1 %v1654_v9  ;;  %v8266_v41 = vpop.eup %7054 }
 0x30b   : > { %v1598_v61 = vmul.f32 1.442695, %v1556_v45  ;;  %v1657_v22 = vsel %vm1449_vm2, %v8266_v41, 0.0 }
 0x30c   : > { %v1476_v17 = vpop.xlane.xlu1 %1475  ;;  %v1485_v63 = vpop.xlane.xlu0 %1484  ;;  %1664 = vadd.xlane.f32.xlu0 %v1663_v3 }
 0x30d   : > { %7056 = vpow2.f32 %v1598_v61  ;;  %v1554_v37 = vsub.f32 %v8115_v25, %v1476_v17  ;;  %v1557_v38 = vsub.f32 %v8118_v55, %v1485_v63 }
 0x30f   : > { %v1594_v12 = vmul.f32 1.442695, %v1554_v37  ;;  %v1600_v2 = vmul.f32 1.442695, %v1557_v38 }
 0x310   : > { %v1479_v40 = vpop.xlane.xlu0 %1478  ;;  %v1494_v29 = vpop.xlane.xlu1 %1493  ;;  %1658 = vadd.xlane.f32.xlu0 %v1657_v22 }
 0x311   : > { %7058 = vpow2.f32 %v1594_v12  ;;  %v1555_v4 = vsub.f32 %v8125_v18, %v1479_v40  ;;  %v1560_v0 = vsub.f32 %v8128_v33, %v1494_v29 }
 0x312   : > { %7060 = vpow2.f32 %v1600_v2 }
 0x313   : > { %v1596_v49 = vmul.f32 1.442695, %v1555_v4  ;;  %v1606_v45 = vmul.f32 1.442695, %v1560_v0 }
 0x314   : > { %v1488_v9 = vpop.xlane.xlu1 %1487  ;;  %v1497_v25 = vpop.xlane.xlu0 %1496 }
 0x315   : > { %v1558_v55 = vsub.f32 %v8135_v44, %v1488_v9  ;;  %v1561_v61 = vsub.f32 %v8138_v57, %v1497_v25  ;;  %7062 = vpow2.f32 %v1606_v45 }
 0x316   : > { %7064 = vpow2.f32 %v1596_v49 }
 0x317   : > { %v1602_v3 = vmul.f32 1.442695, %v1558_v55  ;;  %v1608_v17 = vmul.f32 1.442695, %v1561_v61 }
 0x318   : > { %v1491_v63 = vpop.xlane.xlu0 %1490 }
 0x319   : > { %7066 = vpow2.f32 %v1602_v3  ;;  %v1559_v37 = vsub.f32 %v8145_v39, %v1491_v63 }
 0x31a   : > { %v8277_v18 = vpop.eup %7056  ;;  %7068 = vpow2.f32 %v1608_v17 }
 0x31b   : > { %v1604_v33 = vmul.f32 1.442695, %v1559_v37  ;;  %v1672_v38 = vsel %vm1449_vm2, %v8277_v18, 0.0 }
 0x31c   : > { %1673 = vadd.xlane.f32.xlu1 %v1672_v38 }
 0x31d   : > { %7070 = vpow2.f32 %v1604_v33 }
 0x31e   : > { %v8281_v44 = vpop.eup %7058 }
 0x31f   : > { %v1666_v57 = vsel %vm1449_vm2, %v8281_v44, 0.0  ;;  %v8285_v12 = vpop.eup %7060 }
 0x320   : > { %1667 = vadd.xlane.f32.xlu0 %v1666_v57  ;;  %v1675_v39 = vsel %vm1449_vm2, %v8285_v12, 0.0 }
 0x322   : > { %v8287_v2 = vpop.eup %7062 }
 0x323   : > { %v8291_v22 = vpop.eup %7064  ;;  %v1684_v40 = vsel %vm1449_vm2, %v8287_v2, 0.0 }
 0x324   : > { %1676 = vadd.xlane.f32.xlu0 %v1675_v39  ;;  %1685 = vadd.xlane.f32.xlu1 %v1684_v40  ;;  %v1669_v0 = vsel %vm1449_vm2, %v8291_v22, 0.0 }
 0x326   : > { %v8295_v29 = vpop.eup %7066 }
 0x327   : > { %v1678_v4 = vsel %vm1449_vm2, %v8295_v29, 0.0  ;;  %v8301_v45 = vpop.eup %7068 }
 0x328   : > { %v1506_v49 = vpop.xlane.xlu1 %1505  ;;  %1670 = vadd.xlane.f32.xlu0 %v1669_v0  ;;  %1679 = vadd.xlane.f32.xlu1 %v1678_v4  ;;  %v1687_v3 = vsel %vm1449_vm2, %v8301_v45, 0.0  ;;  %v721_v4 = vadd.f32 %v7700_v30, %v7746_v27  ;;  %v725_v0 = vadd.f32 %v7720_v51, %v7746_v27 }
 0x329   : > { %v1564_v9 = vsub.f32 %v8150_v15, %v1506_v49 }
 0x32a   : > { %v8304_v25 = vpop.eup %7070 }
 0x32b   : > { %v1614_v55 = vmul.f32 1.442695, %v1564_v9  ;;  %v1681_v61 = vsel %vm1449_vm2, %v8304_v25, 0.0 }
 0x32c   : > { %1682 = vadd.xlane.f32.xlu0 %v1681_v61  ;;  %1688 = vadd.xlane.f32.xlu1 %v1687_v3  ;;  %v1509_v37 = vpop.xlane.xlu0 %1508  ;;  %v8323_v3 = vpack.c.bf16 %v725_v0, %v721_v4 }
 0x32d   : > { %7072 = vpow2.f32 %v1614_v55  ;;  %v1565_v39 = vsub.f32 %v8155_v7, %v1509_v37 }
 0x32e   : > { %10194 = vst [vmem:[#allocation50_spill] sm:$0xff] %v8323_v3 }
 0x32f   : > { %v1616_v55 = vmul.f32 1.442695, %v1565_v39 }
 0x330   : > { %v1530_v17 = vpop.xlane.xlu1 %1529 }
 0x331   : > { %v1572_v63 = vsub.f32 %v8160_v34, %v1530_v17 }
 0x333   : > { %v1630_v33 = vmul.f32 1.442695, %v1572_v63 }
 0x334   : > { %v1500_v38 = vpop.xlane.xlu1 %1499  ;;  %v1533_v57 = vpop.xlane.xlu0 %1532 }
 0x335   : > { %7074 = vpow2.f32 %v1630_v33  ;;  %v1562_v15 = vsub.f32 %v8165_v28, %v1500_v38  ;;  %v1573_v61 = vsub.f32 %v8168_v20, %v1533_v57 }
 0x337   : > { %v1610_v40 = vmul.f32 1.442695, %v1562_v15  ;;  %v1632_v30 = vmul.f32 1.442695, %v1573_v61 }
 0x338   : > { %v1524_v49 = vpop.xlane.xlu1 %1523  ;;  %v1503_v17 = vpop.xlane.xlu0 %1502 }
 0x339   : > { %7076 = vpow2.f32 %v1610_v40  ;;  %v1570_v34 = vsub.f32 %v8178_v26, %v1524_v49  ;;  %v1563_v51 = vsub.f32 %v8171_v47, %v1503_v17  ;;  %v735_v17 = vadd.f32 %v7750_v31, %v7746_v27 }
 0x33a   : > { %v8318_v9 = vpop.eup %7072 }
 0x33b   : > { %v1626_v28 = vmul.f32 1.442695, %v1570_v34  ;;  %v1696_v7 = vsel %vm1449_vm2, %v8318_v9, 0.0  ;;  %v1612_v20 = vmul.f32 1.442695, %v1563_v51  ;;  %v711_v51 = vadd.f32 %v7678_v13, %v7746_v27 }
 0x33c   : > { %1697 = vadd.xlane.f32.xlu0 %v1696_v7  ;;  %v1527_v33 = vpop.xlane.xlu0 %1526  ;;  %v731_v7 = vadd.f32 %v7736_v6, %v7746_v27 }
 0x33d   : > { %7078 = vpow2.f32 %v1626_v28  ;;  %2103 = vrot.lane.b32.xlu1 %v8323_v3, %s7434_s23  ;;  %v1571_v15 = vsub.f32 %v8188_v10, %v1527_v33  ;;  %v1518_v28 = vpop.xlane.xlu1 %1517 }
 0x33e   : > { %7080 = vpow2.f32 %v1616_v55  ;;  %v1568_v31 = vsub.f32 %v8183_v59, %v1518_v28 }
 0x33f   : > { %7082 = vpow2.f32 %v1632_v30  ;;  %v1628_v40 = vmul.f32 1.442695, %v1571_v15  ;;  %v8361_v30 = vpack.c.bf16 %v735_v17, %v731_v7 }
 0x340   : > { %7084 = vpow2.f32 %v1612_v20  ;;  %v715_v20 = vadd.f32 %v7688_v21, %v7746_v27 }
 0x341   : > { %7086 = vpow2.f32 %v1628_v40  ;;  %v1542_v33 = vpop.xlane.xlu1 %1541 }
 0x342   : > { %v8328_v26 = vpop.eup %7074  ;;  %v1576_v28 = vsub.f32 %v8198_v24, %v1542_v33 }
 0x343   : > { %v1720_v63 = vsel %vm1449_vm2, %v8328_v26, 0.0 }
 0x344   : > { %1721 = vadd.xlane.f32.xlu0 %v1720_v63  ;;  %v1521_v63 = vpop.xlane.xlu0 %1520 }
 0x345   : > { %v1512_v15 = vpop.xlane.xlu1 %1511 }
 0x346   : > { %v8332_v37 = vpop.eup %7076  ;;  %v1566_v13 = vsub.f32 %v8201_v14, %v1512_v15 }
 0x347   : > { %v1690_v38 = vsel %vm1449_vm2, %v8332_v37, 0.0 }
 0x348   : > { %1691 = vadd.xlane.f32.xlu0 %v1690_v38  ;;  %v8369_v38 = vpack.c.bf16 %v715_v20, %v711_v51  ;;  %v1545_v6 = vpop.xlane.xlu0 %1544  ;;  %v1618_v21 = vmul.f32 1.442695, %v1566_v13 }
 0x349   : > { %v1536_v40 = vpop.xlane.xlu1 %1535  ;;  %v1577_v20 = vsub.f32 %v8208_v32, %v1545_v6 }
 0x34a   : > { %v8337_v57 = vpop.eup %7078  ;;  %10195 = vst [vmem:[#allocation51_spill] sm:$0xff] %v8369_v38  ;;  %v1574_v27 = vsub.f32 %v8215_v35, %v1536_v40  ;;  %v1638_v35 = vmul.f32 1.442695, %v1576_v28 }
 0x34b   : > { %v1714_v47 = vsel %vm1449_vm2, %v8337_v57, 0.0  ;;  %v8341_v39 = vpop.eup %7080 }
 0x34c   : > { %1715 = vadd.xlane.f32.xlu0 %v1714_v47  ;;  %v1699_v4 = vsel %vm1449_vm2, %v8341_v39, 0.0  ;;  %v8345_v0 = vpop.eup %7082  ;;  %v1622_v47 = vmul.f32 1.442695, %v1568_v31  ;;  %v1634_v7 = vmul.f32 1.442695, %v1574_v27 }
 0x34d   : > { %v1723_v49 = vsel %vm1449_vm2, %v8345_v0, 0.0  ;;  %v8349_v10 = vpop.eup %7084  ;;  %v1640_v31 = vmul.f32 1.442695, %v1577_v20 }
 0x34e   : > { %v1693_v34 = vsel %vm1449_vm2, %v8349_v10, 0.0  ;;  %v8353_v55 = vpop.eup %7086  ;;  %7088 = vpow2.f32 %v1622_v47 }
 0x34f   : > { %v1717_v61 = vsel %vm1449_vm2, %v8353_v55, 0.0  ;;  %7090 = vpow2.f32 %v1618_v21 }
 0x350   : > { %1700 = vadd.xlane.f32.xlu0 %v1699_v4  ;;  %v1515_v4 = vpop.xlane.xlu0 %1514  ;;  %7092 = vpow2.f32 %v1634_v7 }
 0x354   : > { %1724 = vadd.xlane.f32.xlu0 %v1723_v49  ;;  %v1567_v49 = vsub.f32 %v8218_v58, %v1515_v4 }
 0x356   : > { %v1620_v17 = vmul.f32 1.442695, %v1567_v49 }
 0x358   : > { %1694 = vadd.xlane.f32.xlu0 %v1693_v34  ;;  %v1539_v34 = vpop.xlane.xlu0 %1538  ;;  %7094 = vpow2.f32 %v1620_v17 }
 0x359   : > { %v1575_v51 = vsub.f32 %v8225_v19, %v1539_v34 }
 0x35b   : > { %v1636_v15 = vmul.f32 1.442695, %v1575_v51  ;;  %v8381_v58 = vpop.eup %7088 }
 0x35c   : > { %v1708_v19 = vsel %vm1449_vm2, %v8381_v58, 0.0 }
 0x361   : > { %1718 = vadd.xlane.f32.xlu1 %v1717_v61  ;;  %v1569_v61 = vsub.f32 %v8195_v8, %v1521_v63  ;;  %v8385_v63 = vpop.eup %7090 }
 0x362   : > { %v1702_v33 = vsel %vm1449_vm2, %v8385_v63, 0.0  ;;  %v8389_v6 = vpop.eup %7092 }
 0x363   : > { %v1624_v59 = vmul.f32 1.442695, %v1569_v61  ;;  %v1726_v40 = vsel %vm1449_vm2, %v8389_v6, 0.0 }
 0x365   : > { %7096 = vpow2.f32 %v1624_v59  ;;  %v8391_v13 = vpop.eup %7094 }
 0x366   : > { %7098 = vpow2.f32 %v1636_v15  ;;  %v1705_v49 = vsel %vm1449_vm2, %v8391_v13, 0.0 }
 0x367   : > { %7100 = vpow2.f32 %v1638_v35 }
 0x368   : > { %7102 = vpow2.f32 %v1640_v31 }
 0x36e   : > { %2105 = vrot.lane.b32.xlu0 %v8361_v30, %s7434_s23 }
 0x372   : > { %2101 = vrot.lane.b32.xlu1 %v8369_v38, %s7434_s23  ;;  %v8395_v4 = vpop.eup %7096 }
 0x373   : > { %v8399_v34 = vpop.eup %7098  ;;  %v1711_v61 = vsel %vm1449_vm2, %v8395_v4, 0.0 }
 0x374   : > { %v8403_v7 = vpop.eup %7100  ;;  %v1729_v51 = vsel %vm1449_vm2, %v8399_v34, 0.0 }
 0x375   : > { %v8407_v59 = vpop.eup %7102 }
 0x385   : > { %v1650_v14 = vpop.xlane.xlu1 %1649 }
 0x389   : > { %v1644_v8 = vpop.xlane.xlu1 %1643 }
 0x38d   : > { %1709 = vadd.xlane.f32.xlu0 %v1708_v19  ;;  %v1653_v24 = vpop.xlane.xlu0 %1652 }
 0x38e   : > { %7104 = vrcp.f32 %v1653_v24 }
 0x38f   : > { %v1662_v32 = vpop.xlane.xlu1 %1661  ;;  %7106 = vrcp.f32 %v1644_v8  ;;  %v1735_v8 = vsel %vm1449_vm2, %v8407_v59, 0.0 }
 0x390   : > { %7108 = vrcp.f32 %v1650_v14  ;;  %v1732_v14 = vsel %vm1449_vm2, %v8403_v7, 0.0 }
 0x391   : > { %1703 = vadd.xlane.f32.xlu0 %v1702_v33  ;;  %v1647_v47 = vpop.xlane.xlu0 %1646 }
 0x392   : > { %7110 = vrcp.f32 %v1647_v47 }
 0x393   : > { %v1656_v21 = vpop.xlane.xlu1 %1655 }
 0x395   : > { %1727 = vadd.xlane.f32.xlu0 %v1726_v40  ;;  %v1665_v27 = vpop.xlane.xlu0 %1664 }
 0x396   : > { %7112 = vrcp.f32 %v1665_v27  ;;  %1706 = vadd.xlane.f32.xlu1 %v1705_v49 }
 0x397   : > { %7114 = vrcp.f32 %v1656_v21 }
 0x398   : > { %7116 = vrcp.f32 %v1662_v32 }
 0x399   : > { %1712 = vadd.xlane.f32.xlu0 %v1711_v61  ;;  %v1659_v17 = vpop.xlane.xlu0 %1658 }
 0x39a   : > { %7118 = vrcp.f32 %v1659_v17  ;;  %1730 = vadd.xlane.f32.xlu1 %v1729_v51 }
 0x39b   : > { %v7105_v28 = vpop.eup %7104 }
 0x39c   : > { %v7107_v20 = vpop.eup %7106  ;;  %v1773_v31 = vmul.f32 %v7105_v28, %v8245_v43 }
 0x39d   : > { %1733 = vadd.xlane.f32.xlu0 %v1732_v14  ;;  %v7109_v15 = vpop.eup %7108  ;;  %v1770_v19 = vmul.f32 %v7107_v20, %v8241_v42  ;;  %v10197_v14 = vld [vmem:[#allocation4_spill] sm:$0xff] }
 0x39e   : > { %v1772_v32 = vmul.f32 %v7109_v15, %v8237_v23 }
 0x39f   : > { %v7111_v35 = vpop.eup %7110 }
 0x3a0   : > { %v1771_v24 = vmul.f32 %v7111_v35, %v8247_v50  ;;  %v1803_v47 = vpack.c.bf16 %v1773_v31, %v1772_v32 }
 0x3a1   : > { %1736 = vadd.xlane.f32.xlu0 %v1735_v8  ;;  %v10198_v8 = vld [vmem:[#allocation3_spill] sm:$0xff] }
 0x3a2   : > { %v1802_v33 = vpack.c.bf16 %v1771_v24, %v1770_v19  ;;  %v10199_v19 = vld [vmem:[#allocation20_spill] sm:$0xff] }
 0x3a3   : > { %v7113_v40 = vpop.eup %7112 }
 0x3a4   : > { %6550 = vmatprep.mubr.msk.bf16.mxu0 %vm1449_vm2, %v1802_v33  ;;  %v7115_v21 = vpop.eup %7114  ;;  %v1777_v42 = vmul.f32 %v7113_v40, %v8255_v62 }
 0x3a5   : > { %6551 = vmatmul.mubr.msk.bf16.vlgmr.msra.gmra.mxu0 %vm1449_vm2, %v1803_v47  ;;  %v7117_v27 = vpop.eup %7116  ;;  %v1774_v50 = vmul.f32 %v7115_v21, %v8259_v1  ;;  %v1674_v17 = vpop.xlane.xlu1 %1673 }
 0x3a6   : > { %6575 = vmatpush3.bf16.msra.mxu0 %v8021_v52  ;;  %v1776_v61 = vmul.f32 %v7117_v27, %v8251_v36  ;;  %v10200_v27 = vld [vmem:[#allocation9_spill] sm:$0xff] }
 0x3a7   : > { %v7119_v43 = vpop.eup %7118  ;;  %6576 = vmatprep.subr.bf16.mxu0 %v8011_v60 }
 0x3a8   : > { %v1775_v23 = vmul.f32 %v7119_v43, %v8266_v41  ;;  %v1805_v28 = vpack.c.bf16 %v1777_v42, %v1776_v61  ;;  %v10201_v42 = vld [vmem:[#allocation15_spill] sm:$0xff] }
 0x3a9   : > { %v1668_v49 = vpop.xlane.xlu0 %1667 }
 0x3aa   : > { %6577 = vmatpush3.bf16.msra.mxu0 %v8011_v60  ;;  %v1804_v51 = vpack.c.bf16 %v1775_v23, %v1774_v50 }
 0x3ab   : > { %6578 = vmatprep.subr.bf16.mxu0 %v8009_v11  ;;  %2353 = vrot.lane.b32.xlu1 %v7642_v53, %s7435_s19 }
 0x3ac   : > { %6554 = vmatprep.mubr.msk.bf16.mxu0 %vm1449_vm2, %v1804_v51 }
 0x3ad   : > { %6555 = vmatmul.mubr.msk.bf16.gmra.mxu0 %vm1449_vm2, %v1805_v28  ;;  %v1677_v52 = vpop.xlane.xlu0 %1676  ;;  %v1686_v62 = vpop.xlane.xlu1 %1685 }
 0x3ae   : > { %6579 = vmatpush3.bf16.msra.mxu0 %v8009_v11  ;;  %7120 = vrcp.f32 %v1677_v52  ;;  %v10206_v52 = vld [vmem:[#allocation11_spill] sm:$0xff] }
 0x3af   : > { %6580 = vmatprep.subr.bf16.mxu0 %v8013_v16  ;;  %7122 = vrcp.f32 %v1668_v49  ;;  %2448 = vrot.lane.b32.xlu1 %v7722_v54, %s7435_s19  ;;  %v10203_v49 = vld [vmem:[#allocation5_spill] sm:$0xff] }
 0x3b0   : > { %7124 = vrcp.f32 %v1674_v17  ;;  %v10204_v17 = vld [vmem:[#allocation19_spill] sm:$0xff] }
 0x3b1   : > { %v1671_v60 = vpop.xlane.xlu0 %1670  ;;  %v1680_v36 = vpop.xlane.xlu1 %1679 }
 0x3b2   : > { %6581 = vmatpush3.bf16.msra.mxu0 %v8013_v16  ;;  %7126 = vrcp.f32 %v1671_v60  ;;  %v10196_v16 = vld [vmem:[#allocation6_spill] sm:$0xff]  ;;  %v10208_v60 = vld [vmem:[#allocation12_spill] sm:$0xff] }
 0x3b3   : > { %6934 = vmatprep.subr.msk.bf16.mxu0 %vm992_vm1, %v7844_v48  ;;  %7128 = vrcp.f32 %v1680_v36  ;;  %2355 = vrot.lane.b32.xlu1 %v7666_v5, %s7435_s19 }
 0x3b5   : > { %v1683_v11 = vpop.xlane.xlu0 %1682  ;;  %v1689_v1 = vpop.xlane.xlu1 %1688 }
 0x3b6   : > { %7130 = vrcp.f32 %v1683_v11  ;;  %v10209_v11 = vld [vmem:[#allocation17_spill] sm:$0xff] }
 0x3b7   : > { %7132 = vrcp.f32 %v1689_v1  ;;  %2351 = vrot.lane.b32.xlu0 %v7632_v46, %s7435_s19  ;;  %2545 = vrot.lane.b32.xlu1 %v7724_v56, %s7435_s19 }
 0x3b8   : > { %7134 = vrcp.f32 %v1686_v62 }
 0x3bb   : > { %2450 = vrot.lane.b32.xlu0 %v10196_v16, %s7435_s19  ;;  %v7121_v41 = vpop.eup %7120  ;;  %2452 = vrot.lane.b32.xlu1 %v10197_v14, %s7435_s19 }
 0x3bc   : > { %v7123_v20 = vpop.eup %7122  ;;  %v1781_v31 = vmul.f32 %v7121_v41, %v8285_v12  ;;  %v10211_v41 = vld [vmem:[#allocation16_spill] sm:$0xff] }
 0x3bd   : > { %v7125_v15 = vpop.eup %7124  ;;  %v1778_v24 = vmul.f32 %v7123_v20, %v8281_v44 }
 0x3be   : > { %v1780_v47 = vmul.f32 %v7125_v15, %v8277_v18  ;;  %v10202_v18 = vld [vmem:[#allocation49_spill] sm:$0xff]  ;;  %v10212_v15 = vld [vmem:[#allocation23_spill] sm:$0xff] }
 0x3bf   : > { %v7127_v35 = vpop.eup %7126  ;;  %2357 = vrot.lane.b32.xlu0 %v10198_v8, %s7435_s19  ;;  %2642 = vrot.lane.b32.xlu1 %v10199_v19, %s7435_s19 }
 0x3c0   : > { %v1779_v32 = vmul.f32 %v7127_v35, %v8291_v22  ;;  %v7129_v33 = vpop.eup %7128  ;;  %v1807_v43 = vpack.c.bf16 %v1781_v31, %v1780_v47  ;;  %v10213_v35 = vld [vmem:[#allocation26_spill] sm:$0xff] }
 0x3c1   : > { %v1782_v50 = vmul.f32 %v7129_v33, %v8295_v29  ;;  %v10216_v47 = vld [vmem:[#allocation14_spill] sm:$0xff] }
 0x3c2   : > { %v1806_v40 = vpack.c.bf16 %v1779_v32, %v1778_v24  ;;  %v10214_v24 = vld [vmem:[#allocation24_spill] sm:$0xff]  ;;  %v10215_v32 = vld [vmem:[#allocation22_spill] sm:$0xff] }
 0x3c3   : > { %v7131_v21 = vpop.eup %7130  ;;  %2547 = vrot.lane.b32.xlu0 %v10200_v27, %s7435_s19  ;;  %2549 = vrot.lane.b32.xlu1 %v10201_v42, %s7435_s19 }
 0x3c4   : > { %v7133_v12 = vpop.eup %7132  ;;  %6566 = vmatprep.mubr.msk.bf16.mxu1 %vm1449_vm2, %v1806_v40  ;;  %v1783_v44 = vmul.f32 %v7131_v21, %v8304_v25  ;;  %v10205_v25 = vld [vmem:[#allocation10_spill] sm:$0xff]  ;;  %v2104_v21 = vpop.permute.xlu1 %2103 }
 0x3c5   : > { %6567 = vmatmul.mubr.msk.bf16.vlgmr.msra.gmra.mxu1 %vm1449_vm2, %v1807_v43  ;;  %v7135_v22 = vpop.eup %7134  ;;  %v1785_v61 = vmul.f32 %v7133_v12, %v8301_v45  ;;  %v1698_v51 = vpop.xlane.xlu0 %1697  ;;  %v10207_v45 = vld [vmem:[#allocation13_spill] sm:$0xff]  ;;  %v10217_v43 = vld [vmem:[#allocation18_spill] sm:$0xff] }
 0x3c6   : > { %6591 = vmatpush3.bf16.msra.mxu1 %v10202_v18  ;;  %v1808_v23 = vpack.c.bf16 %v1783_v44, %v1782_v50  ;;  %v1784_v29 = vmul.f32 %v7135_v22, %v8287_v2  ;;  %v10210_v2 = vld [vmem:[#allocation27_spill] sm:$0xff]  ;;  %v10218_v50 = vld [vmem:[#allocation25_spill] sm:$0xff] }
 0x3c7   : > { %2454 = vrot.lane.b32.xlu0 %v10203_v49, %s7435_s19  ;;  %2646 = vrot.lane.b32.xlu1 %v10204_v17, %s7435_s19 }
 0x3c8   : > { %6570 = vmatprep.mubr.msk.bf16.mxu1 %vm1449_vm2, %v1808_v23  ;;  %v1809_v28 = vpack.c.bf16 %v1785_v61, %v1784_v29  ;;  %v10219_v29 = vld [vmem:[#allocation21_spill] sm:$0xff] }
 0x3cb   : > { %2644 = vrot.lane.b32.xlu0 %v10205_v25, %s7435_s19  ;;  %3175 = vrot.lane.b32.xlu1 %v10206_v52, %s7433_s22 }
 0x3cd   : > { %6571 = vmatmul.mubr.msk.bf16.gmra.mxu1 %vm1449_vm2, %v1809_v28  ;;  %v1722_v62 = vpop.xlane.xlu0 %1721 }
 0x3cf   : > { %2551 = vrot.lane.b32.xlu0 %v10207_v45, %s7435_s19  ;;  %3173 = vrot.lane.b32.xlu1 %v10208_v60, %s7433_s22 }
 0x3d1   : > { %v1692_v36 = vpop.xlane.xlu0 %1691 }
 0x3d3   : > { %2648 = vrot.lane.b32.xlu0 %v10209_v11, %s7435_s19  ;;  %3355 = vrot.lane.b32.xlu1 %v10210_v2, %s7433_s22 }
 0x3d5   : > { %v1716_v1 = vpop.xlane.xlu0 %1715 }
 0x3d7   : > { %3177 = vrot.lane.b32.xlu0 %v7844_v48, %s7433_s22  ;;  %3353 = vrot.lane.b32.xlu1 %v10211_v41, %s7433_s22 }
 0x3d9   : > { %v1701_v20 = vpop.xlane.xlu0 %1700 }
 0x3da   : > { %7136 = vrcp.f32 %v1701_v20 }
 0x3db   : > { %3171 = vrot.lane.b32.xlu0 %v10212_v15, %s7433_s22  ;;  %3349 = vrot.lane.b32.xlu1 %v10213_v35, %s7433_s22  ;;  %7138 = vrcp.f32 %v1692_v36 }
 0x3dc   : > { %7140 = vrcp.f32 %v1698_v51 }
 0x3dd   : > { %v1725_v31 = vpop.xlane.xlu0 %1724 }
 0x3df   : > { %3266 = vrot.lane.b32.xlu0 %v10214_v24, %s7433_s22  ;;  %3444 = vrot.lane.b32.xlu1 %v10215_v32, %s7433_s22 }
 0x3e1   : > { %v1695_v33 = vpop.xlane.xlu0 %1694 }
 0x3e2   : > { %7142 = vrcp.f32 %v1695_v33 }
 0x3e3   : > { %3264 = vrot.lane.b32.xlu0 %v10216_v47, %s7433_s22  ;;  %3442 = vrot.lane.b32.xlu1 %v8361_v30, %s7433_s22  ;;  %7144 = vrcp.f32 %v1725_v31 }
 0x3e4   : > { %7146 = vrcp.f32 %v1716_v1 }
 0x3e5   : > { %v2106_v40 = vpop.permute.xlu0 %2105  ;;  %7148 = vrcp.f32 %v1722_v62 }
 0x3e6   : > { %6592 = vmatprep.subr.bf16.mxu1 %v2106_v40 }
 0x3e7   : > { %3262 = vrot.lane.b32.xlu0 %v10217_v43, %s7433_s22  ;;  %6593 = vmatpush3.bf16.msra.mxu1 %v2106_v40  ;;  %v7137_v44 = vpop.eup %7136 }
 0x3e8   : > { %3764 = vrot.lane.b32.xlu1 %v10206_v52, %s7435_s19  ;;  %6594 = vmatprep.subr.bf16.mxu1 %v2104_v21  ;;  %v7139_v22 = vpop.eup %7138  ;;  %v1789_v61 = vmul.f32 %v7137_v44, %v8341_v39  ;;  %v2378_v44 = vsel %vm992_vm1, %v10206_v52, 0 }
 0x3e9   : > { %v7141_v18 = vpop.eup %7140  ;;  %v1786_v28 = vmul.f32 %v7139_v22, %v8332_v37  ;;  %v2381_v37 = vsel %vm992_vm1, %v7844_v48, 0 }
 0x3ea   : > { %v1719_v12 = vpop.xlane.xlu1 %1718  ;;  %v1788_v36 = vmul.f32 %v7141_v18, %v8318_v9 }
 0x3eb   : > { %3351 = vrot.lane.b32.xlu0 %v10218_v50, %s7433_s22  ;;  %6595 = vmatpush3.bf16.msra.mxu1 %v2104_v21  ;;  %7150 = vrcp.f32 %v1719_v12 }
 0x3ec   : > { %3438 = vrot.lane.b32.xlu1 %v8369_v38, %s7433_s22  ;;  %v1811_v39 = vpack.c.bf16 %v1789_v61, %v1788_v36 }
 0x3ee   : > { %v2102_v51 = vpop.permute.xlu1 %2101 }
 0x3ef   : > { %v7143_v23 = vpop.eup %7142  ;;  %3260 = vrot.lane.b32.xlu0 %v10219_v29, %s7433_s22  ;;  %6596 = vmatprep.subr.bf16.mxu1 %v2102_v51 }
 0x3f0   : > { %v1787_v62 = vmul.f32 %v7143_v23, %v8349_v10  ;;  %6597 = vmatpush3.bf16.msra.mxu1 %v2102_v51  ;;  %v7145_v20 = vpop.eup %7144  ;;  %v2469_v23 = vsel %vm992_vm1, %v10219_v29, 0 }
 0x3f1   : > { %6938 = vmatprep.subr.msk.bf16.mxu1 %vm992_vm1, %v10214_v24  ;;  %v7147_v10 = vpop.eup %7146  ;;  %v1797_v33 = vmul.f32 %v7145_v20, %v8345_v0  ;;  %v2475_v0 = vsel %vm992_vm1, %v10216_v47, 0 }
 0x3f2   : > { %v1810_v1 = vpack.c.bf16 %v1787_v62, %v1786_v28  ;;  %v7149_v9 = vpop.eup %7148  ;;  %v1794_v40 = vmul.f32 %v7147_v10, %v8337_v57  ;;  %v2478_v57 = vsel %vm992_vm1, %v10214_v24, 0 }
 0x3f3   : > { %3766 = vrot.lane.b32.xlu0 %v7844_v48, %s7435_s19  ;;  %v1796_v12 = vmul.f32 %v7149_v9, %v8328_v26  ;;  %v2375_v26 = vsel %vm992_vm1, %v10208_v60, 0 }
 0x3f4   : > { %6582 = vmatprep.mubr.msk.bf16.mxu0 %vm1449_vm2, %v1810_v1 }
 0x3f5   : > { %6583 = vmatmul.mubr.msk.bf16.vlgmr.msra.gmra.mxu0 %vm1449_vm2, %v1811_v39  ;;  %v1815_v22 = vpack.c.bf16 %v1797_v33, %v1796_v12 }
 0x3f6   : > { %6607 = vmatpush3.bf16.xpose.msra.mxu0 %v2381_v37 }
 0x3f7   : > { %6935 = vmatprep.subr.msk.bf16.mxu0 %vm992_vm1, %v10206_v52  ;;  %3440 = vrot.lane.b32.xlu0 %v8323_v3, %s7433_s22  ;;  %v2472_v52 = vsel %vm992_vm1, %v10217_v43, 0 }
 0x3f8   : > { %v7151_v31 = vpop.eup %7150 }
 0x3f9   : > { %v1795_v21 = vmul.f32 %v7151_v31, %v8353_v55  ;;  %v2372_v55 = vsel %vm992_vm1, %v10212_v15, 0 }
 0x3fb   : > { %v1814_v48 = vpack.c.bf16 %v1795_v21, %v1794_v40 }
 0x3fd   : > { %6598 = vmatprep.mubr.msk.bf16.mxu1 %vm1449_vm2, %v1814_v48 }
 0x3fe   : > { %6609 = vmatpush3.bf16.xpose.msra.mxu0 %v2378_v44  ;;  %6599 = vmatmul.mubr.msk.bf16.vlgmr.msra.gmra.mxu1 %vm1449_vm2, %v1815_v22 }
 0x3ff   : > { %6936 = vmatprep.subr.msk.bf16.mxu0 %vm992_vm1, %v10208_v60  ;;  %6623 = vmatpush3.bf16.xpose.msra.mxu1 %v2478_v57 }
 0x400   : > { %6939 = vmatprep.subr.msk.bf16.mxu1 %vm992_vm1, %v10216_v47 }
 0x406   : > { %6611 = vmatpush3.bf16.xpose.msra.mxu0 %v2375_v26 }
 0x407   : > { %6937 = vmatprep.subr.msk.bf16.mxu0 %vm992_vm1, %v10212_v15  ;;  %6625 = vmatpush3.bf16.xpose.msra.mxu1 %v2475_v0 }
 0x408   : > { %6940 = vmatprep.subr.msk.bf16.mxu1 %vm992_vm1, %v10217_v43 }
 0x40e   : > { %6613 = vmatpush3.bf16.xpose.msra.mxu0 %v2372_v55 }
 0x40f   : > { %6942 = vmatprep.subr.msk.bf16.mxu0 %vm992_vm1, %v10210_v2  ;;  %6627 = vmatpush3.bf16.xpose.msra.mxu1 %v2472_v52 }
 0x410   : > { %6941 = vmatprep.subr.msk.bf16.mxu1 %vm992_vm1, %v10219_v29 }
 0x416   : > { %v1710_v18 = vpop.xlane.xlu0 %1709 }
 0x417   : > { %6629 = vmatpush3.bf16.xpose.msra.mxu1 %v2469_v23 }
 0x418   : > { %6946 = vmatprep.subr.msk.bf16.mxu1 %vm992_vm1, %v10215_v32 }
 0x41a   : > { %v1704_v61 = vpop.xlane.xlu0 %1703 }
 0x41b   : > { %7152 = vrcp.f32 %v1704_v61 }
 0x41c   : > { %7154 = vrcp.f32 %v1710_v18 }
 0x41e   : > { %v1728_v51 = vpop.xlane.xlu0 %1727 }
 0x41f   : > { %v1707_v28 = vpop.xlane.xlu1 %1706 }
 0x420   : > { %7156 = vrcp.f32 %v1707_v28 }
 0x421   : > { %7158 = vrcp.f32 %v1728_v51 }
 0x422   : > { %v1713_v62 = vpop.xlane.xlu0 %1712 }
 0x423   : > { %7160 = vrcp.f32 %v1713_v62  ;;  %v1731_v36 = vpop.xlane.xlu1 %1730 }
 0x424   : > { %7162 = vrcp.f32 %v1731_v36 }
 0x426   : > { %v1734_v1 = vpop.xlane.xlu0 %1733 }
 0x427   : > { %v2354_v39 = vpop.permute.xlu1 %2353  ;;  %7164 = vrcp.f32 %v1734_v1 }
 0x428   : > { %v7153_v20 = vpop.eup %7152 }
 0x429   : > { %v7155_v9 = vpop.eup %7154  ;;  %v1790_v21 = vmul.f32 %v7153_v20, %v8385_v63 }
 0x42a   : > { %v1737_v37 = vpop.xlane.xlu0 %1736  ;;  %v1792_v57 = vmul.f32 %v7155_v9, %v8381_v58 }
 0x42b   : > { %7166 = vrcp.f32 %v1737_v37  ;;  %v2449_v10 = vpop.permute.xlu1 %2448  ;;  %v2672_v37 = vsel %vm992_vm1, %v10215_v32, 0 }
 0x42d   : > { %v7157_v31 = vpop.eup %7156 }
 0x42e   : > { %v2352_v33 = vpop.permute.xlu0 %2351  ;;  %v7159_v40 = vpop.eup %7158  ;;  %v1791_v12 = vmul.f32 %v7157_v31, %v8391_v13  ;;  %v2569_v31 = vsel %vm992_vm1, %v10218_v50, 0 }
 0x42f   : > { %v2356_v44 = vpop.permute.xlu1 %2355  ;;  %v1798_v18 = vmul.f32 %v7159_v40, %v8389_v6 }
 0x430   : > { %v7161_v48 = vpop.eup %7160  ;;  %v1812_v22 = vpack.c.bf16 %v1791_v12, %v1790_v21 }
 0x431   : > { %v1793_v26 = vmul.f32 %v7161_v48, %v8395_v4  ;;  %v7163_v0 = vpop.eup %7162 }
 0x432   : > { %v2451_v55 = vpop.permute.xlu0 %2450  ;;  %6586 = vmatprep.mubr.msk.bf16.mxu0 %vm1449_vm2, %v1812_v22  ;;  %v1799_v23 = vmul.f32 %v7163_v0, %v8399_v34  ;;  %v2575_v34 = vsel %vm992_vm1, %v10210_v2, 0  ;;  %v2666_v22 = vsel %vm992_vm1, %v8323_v3, 0 }
 0x433   : > { %v1813_v52 = vpack.c.bf16 %v1793_v26, %v1792_v57  ;;  %v2546_v61 = vpop.permute.xlu1 %2545 }
 0x434   : > { %v1816_v63 = vpack.c.bf16 %v1799_v23, %v1798_v18  ;;  %v7165_v13 = vpop.eup %7164 }
 0x435   : > { %6587 = vmatmul.mubr.msk.bf16.gmra.mxu0 %vm1449_vm2, %v1813_v52  ;;  %v1800_v4 = vmul.f32 %v7165_v13, %v8403_v7 }
 0x436   : > { %6614 = vmatprep.mubr.msk.bf16.mxu0 %vm992_vm1, %v2352_v33  ;;  %v2358_v51 = vpop.permute.xlu0 %2357  ;;  %6602 = vmatprep.mubr.msk.bf16.mxu1 %vm1449_vm2, %v1816_v63  ;;  %v2669_v33 = vsel %vm992_vm1, %v8361_v30, 0 }
 0x437   : > { %v2453_v6 = vpop.permute.xlu1 %2452 }
 0x438   : > { %v7167_v58 = vpop.eup %7166 }
 0x439   : > { %v1801_v28 = vmul.f32 %v7167_v58, %v8407_v59 }
 0x43a   : > { %v2548_v62 = vpop.permute.xlu0 %2547 }
 0x43b   : > { %v1817_v36 = vpack.c.bf16 %v1801_v28, %v1800_v4  ;;  %v2643_v7 = vpop.permute.xlu1 %2642 }
 0x43d   : > { %6603 = vmatmul.mubr.msk.bf16.gmra.mxu1 %vm1449_vm2, %v1817_v36  ;;  %6615 = vmatmul.mubr.msk.bf16.vlgmr.msra.gmra.mxu0 %vm992_vm1, %v2354_v39  ;;  %v2572_v39 = vsel %vm992_vm1, %v10211_v41, 0 }
 0x43e   : > { %6639 = vmatpush3.bf16.xpose.msra.mxu0 %v2575_v34  ;;  %6618 = vmatprep.mubr.msk.bf16.mxu0 %vm992_vm1, %v2356_v44  ;;  %v2455_v1 = vpop.permute.xlu0 %2454  ;;  %v2566_v44 = vsel %vm992_vm1, %v10213_v35, 0 }
 0x43f   : > { %6630 = vmatprep.mubr.msk.bf16.mxu1 %vm992_vm1, %v2449_v10  ;;  %6943 = vmatprep.subr.msk.bf16.mxu0 %vm992_vm1, %v10211_v41  ;;  %v2550_v10 = vpop.permute.xlu1 %2549 }
 0x442   : > { %v2645_v59 = vpop.permute.xlu0 %2644 }
 0x443   : > { %v2647_v40 = vpop.permute.xlu1 %2646 }
 0x445   : > { %6619 = vmatmul.mubr.msk.bf16.gmra.mxu0 %vm992_vm1, %v2358_v51  ;;  %6631 = vmatmul.mubr.msk.bf16.vlgmr.msra.gmra.mxu1 %vm992_vm1, %v2451_v55  ;;  %v2663_v55 = vsel %vm992_vm1, %v8369_v38, 0 }
 0x446   : > { %6641 = vmatpush3.bf16.xpose.msra.mxu0 %v2572_v39  ;;  %6655 = vmatpush3.bf16.xpose.msra.mxu1 %v2672_v37  ;;  %v2552_v20 = vpop.permute.xlu0 %2551 }
 0x447   : > { %6634 = vmatprep.mubr.msk.bf16.mxu1 %vm992_vm1, %v2453_v6  ;;  %6944 = vmatprep.subr.msk.bf16.mxu0 %vm992_vm1, %v10218_v50  ;;  %v3176_v48 = vpop.permute.xlu1 %3175 }
 0x448   : > { %6646 = vmatprep.mubr.msk.bf16.mxu0 %vm992_vm1, %v2546_v61  ;;  %6947 = vmatprep.subr.msk.bf16.mxu1 %vm992_vm1, %v8361_v30 }
 0x44a   : > { %v2649_v9 = vpop.permute.xlu0 %2648 }
 0x44b   : > { %v3174_v26 = vpop.permute.xlu1 %3173 }
 0x44d   : > { %6635 = vmatmul.mubr.msk.bf16.gmra.mxu1 %vm992_vm1, %v2455_v1 }
 0x44e   : > { %6643 = vmatpush3.bf16.xpose.msra.mxu0 %v2569_v31  ;;  %6657 = vmatpush3.bf16.xpose.msra.mxu1 %v2669_v33  ;;  %v3178_v21 = vpop.permute.xlu0 %3177 }
 0x44f   : > { %6945 = vmatprep.subr.msk.bf16.mxu0 %vm992_vm1, %v10213_v35  ;;  %6948 = vmatprep.subr.msk.bf16.mxu1 %vm992_vm1, %v8323_v3  ;;  %v8613_v52 = vpop.permute.xlu1 %3355 }
 0x450   : > { %6662 = vmatprep.mubr.msk.bf16.mxu1 %vm992_vm1, %v2643_v7 }
 0x452   : > { %v3172_v12 = vpop.permute.xlu0 %3171 }
 0x453   : > { %v8617_v63 = vpop.permute.xlu1 %3353 }
 0x456   : > { %6645 = vmatpush3.bf16.xpose.msra.mxu0 %v2566_v44  ;;  %6659 = vmatpush3.bf16.xpose.msra.mxu1 %v2666_v22  ;;  %v3267_v57 = vpop.permute.xlu0 %3266 }
 0x457   : > { %6949 = vmatprep.subr.msk.bf16.mxu1 %vm992_vm1, %v8369_v38  ;;  %6670 = vmatprep.subr.bf16.mxu0 %v3178_v21  ;;  %v8624_v36 = vpop.permute.xlu1 %3349 }
 0x458   : > { %10221 = vst [vmem:[#allocation3_spill] sm:$0xff] %v8624_v36 }
 0x45a   : > { %v3265_v0 = vpop.permute.xlu0 %3264 }
 0x45d   : > { %6647 = vmatmul.mubr.msk.bf16.vlgmr.msra.gmra.mxu0 %vm992_vm1, %v2548_v62 }
 0x45e   : > { %6650 = vmatprep.mubr.msk.bf16.mxu0 %vm992_vm1, %v2550_v10  ;;  %6661 = vmatpush3.bf16.xpose.msra.mxu1 %v2663_v55  ;;  %v3263_v18 = vpop.permute.xlu0 %3262 }
 0x45f   : > { %6671 = vmatpush3.bf16.msra.mxu0 %v3178_v21  ;;  %6686 = vmatprep.subr.bf16.mxu1 %v3267_v57 }
 0x460   : > { %6672 = vmatprep.subr.bf16.mxu0 %v3176_v48 }
 0x462   : > { %v8620_v51 = vpop.permute.xlu0 %3351 }
 0x463   : > { %6673 = vmatpush3.bf16.msra.mxu0 %v3176_v48  ;;  %10220 = vst [vmem:[#allocation6_spill] sm:$0xff] %v8620_v51 }
 0x464   : > { %6674 = vmatprep.subr.bf16.mxu0 %v3174_v26 }
 0x465   : > { %6651 = vmatmul.mubr.msk.bf16.gmra.mxu0 %vm992_vm1, %v2552_v20  ;;  %6663 = vmatmul.mubr.msk.bf16.vlgmr.msra.gmra.mxu1 %vm992_vm1, %v2645_v59  ;;  %v6552_v23 = vpop.f32.mrf.mxu0  ;;  %v8631_v20 = vpop.permute.xlu1 %3444 }
 0x466   : > { %v6072_v13 = vpack.c.bf16 %v6552_v23, %v6552_v23  ;;  %6666 = vmatprep.mubr.msk.bf16.mxu1 %vm992_vm1, %v2647_v40  ;;  %6687 = vmatpush3.bf16.msra.mxu1 %v3267_v57  ;;  %v3261_v1 = vpop.permute.xlu0 %3260 }
 0x467   : > { %6675 = vmatpush3.bf16.msra.mxu0 %v3174_v26  ;;  %6688 = vmatprep.subr.bf16.mxu1 %v3265_v0  ;;  %v1880_v61 = vpop.f32.mrf.mxu0 }
 0x468   : > { %2321 = vst.msk [vmem:[#allocation2 + $0x8] sm:$0xf] %vm2318_vm3, %v6072_v13  ;;  %6676 = vmatprep.subr.bf16.mxu0 %v3172_v12  ;;  %v6070_v58 = vpack.c.bf16 %v1880_v61, %v1880_v61 }
 0x469   : > { %v6553_v4 = vpop.f32.mrf.mxu0 }
 0x46a   : > { %2319 = vst.msk [vmem:[#allocation2] sm:$0xf] %vm2318_vm3, %v6070_v58  ;;  %v6073_v28 = vpack.c.bf16 %v6553_v4, %v6553_v4  ;;  %6689 = vmatpush3.bf16.msra.mxu1 %v3265_v0 }
 0x46b   : > { %6677 = vmatpush3.bf16.msra.mxu0 %v3172_v12  ;;  %6690 = vmatprep.subr.bf16.mxu1 %v3263_v18  ;;  %v1883_v62 = vpop.f32.mrf.mxu0 }
 0x46c   : > { %2322 = vst.msk [vmem:[#allocation2 + $0xc] sm:$0xf] %vm2318_vm3, %v6073_v28  ;;  %6702 = vmatprep.subr.bf16.mxu0 %v8613_v52  ;;  %v6071_v6 = vpack.c.bf16 %v1883_v62, %v1883_v62 }
 0x46d   : > { %6667 = vmatmul.mubr.msk.bf16.gmra.mxu1 %vm992_vm1, %v2649_v9  ;;  %v6556_v34 = vpop.f32.mrf.mxu0 }
 0x46e   : > { %2320 = vst.msk [vmem:[#allocation2 + $0x4] sm:$0xf] %vm2318_vm3, %v6071_v6  ;;  %v6076_v7 = vpack.c.bf16 %v6556_v34, %v6556_v34  ;;  %6691 = vmatpush3.bf16.msra.mxu1 %v3263_v18 }
 0x46f   : > { %6692 = vmatprep.subr.bf16.mxu1 %v3261_v1  ;;  %v1896_v59 = vpop.f32.mrf.mxu0 }
 0x470   : > { %2325 = vst.msk [vmem:[#allocation2 + $0x18] sm:$0xf] %vm2318_vm3, %v6076_v7  ;;  %v6074_v39 = vpack.c.bf16 %v1896_v59, %v1896_v59 }
 0x471   : > { %v6557_v37 = vpop.f32.mrf.mxu0 }
 0x472   : > { %2323 = vst.msk [vmem:[#allocation2 + $0x10] sm:$0xf] %vm2318_vm3, %v6074_v39  ;;  %v6077_v10 = vpack.c.bf16 %v6557_v37, %v6557_v37  ;;  %6693 = vmatpush3.bf16.msra.mxu1 %v3261_v1 }
 0x473   : > { %6718 = vmatprep.subr.bf16.mxu1 %v8631_v20  ;;  %v1899_v9 = vpop.f32.mrf.mxu0 }
 0x474   : > { %2326 = vst.msk [vmem:[#allocation2 + $0x1c] sm:$0xf] %vm2318_vm3, %v6077_v10  ;;  %v6075_v31 = vpack.c.bf16 %v1899_v9, %v1899_v9 }
 0x476   : > { %2324 = vst.msk [vmem:[#allocation2 + $0x14] sm:$0xf] %vm2318_vm3, %v6075_v31 }
 0x485   : > { %v6568_v33 = vpop.f32.mrf.mxu1 }
 0x486   : > { %v6080_v40 = vpack.c.bf16 %v6568_v33, %v6568_v33 }
 0x487   : > { %v1973_v21 = vpop.f32.mrf.mxu1 }
 0x488   : > { %2329 = vst.msk [vmem:[#allocation2 + $0x28] sm:$0xf] %vm2318_vm3, %v6080_v40  ;;  %v6078_v12 = vpack.c.bf16 %v1973_v21, %v1973_v21 }
 0x489   : > { %v6569_v48 = vpop.f32.mrf.mxu1 }
 0x48a   : > { %2327 = vst.msk [vmem:[#allocation2 + $0x20] sm:$0xf] %vm2318_vm3, %v6078_v12  ;;  %v6081_v44 = vpack.c.bf16 %v6569_v48, %v6569_v48 }
 0x48b   : > { %v1976_v22 = vpop.f32.mrf.mxu1 }
 0x48c   : > { %2330 = vst.msk [vmem:[#allocation2 + $0x2c] sm:$0xf] %vm2318_vm3, %v6081_v44  ;;  %v6079_v57 = vpack.c.bf16 %v1976_v22, %v1976_v22 }
 0x48d   : > { %v6572_v26 = vpop.f32.mrf.mxu1 }
 0x48e   : > { %2328 = vst.msk [vmem:[#allocation2 + $0x24] sm:$0xf] %vm2318_vm3, %v6079_v57  ;;  %v6084_v0 = vpack.c.bf16 %v6572_v26, %v6572_v26 }
 0x48f   : > { %v1989_v55 = vpop.f32.mrf.mxu1 }
 0x490   : > { %2333 = vst.msk [vmem:[#allocation2 + $0x38] sm:$0xf] %vm2318_vm3, %v6084_v0  ;;  %v6082_v18 = vpack.c.bf16 %v1989_v55, %v1989_v55 }
 0x491   : > { %v6573_v23 = vpop.f32.mrf.mxu1 }
 0x492   : > { %2331 = vst.msk [vmem:[#allocation2 + $0x30] sm:$0xf] %vm2318_vm3, %v6082_v18  ;;  %v6085_v13 = vpack.c.bf16 %v6573_v23, %v6573_v23  ;;  %v8659_v23 = vld [vmem:[%s10069_s3 + $0x50] sm:$0xff] }
 0x493   : > { %v1992_v61 = vpop.f32.mrf.mxu1 }
 0x494   : > { %2334 = vst.msk [vmem:[#allocation2 + $0x3c] sm:$0xf] %vm2318_vm3, %v6085_v13  ;;  %v6083_v58 = vpack.c.bf16 %v1992_v61, %v1992_v61 }
 0x496   : > { %2332 = vst.msk [vmem:[#allocation2 + $0x34] sm:$0xf] %vm2318_vm3, %v6083_v58 }
 0x4b5   : > { %v6584_v4 = vpop.f32.mrf.mxu0 }
 0x4b6   : > { %v6088_v28 = vpack.c.bf16 %v6584_v4, %v6584_v4 }
 0x4b7   : > { %v2066_v62 = vpop.f32.mrf.mxu0 }
 0x4b8   : > { %2337 = vst.msk [vmem:[#allocation2 + $0x48] sm:$0xf] %vm2318_vm3, %v6088_v28  ;;  %v6086_v6 = vpack.c.bf16 %v2066_v62, %v2066_v62  ;;  %v8665_v28 = vld [vmem:[%s10069_s3 + $0x40] sm:$0xff] }
 0x4b9   : > { %v6585_v34 = vpop.f32.mrf.mxu0 }
 0x4ba   : > { %2335 = vst.msk [vmem:[#allocation2 + $0x40] sm:$0xf] %vm2318_vm3, %v6086_v6  ;;  %v6089_v1 = vpack.c.bf16 %v6585_v34, %v6585_v34 }
 0x4bb   : > { %v2069_v7 = vpop.f32.mrf.mxu0 }
 0x4bc   : > { %2338 = vst.msk [vmem:[#allocation2 + $0x4c] sm:$0xf] %vm2318_vm3, %v6089_v1  ;;  %v6087_v59 = vpack.c.bf16 %v2069_v7, %v2069_v7 }
 0x4be   : > { %2336 = vst.msk [vmem:[#allocation2 + $0x44] sm:$0xf] %vm2318_vm3, %v6087_v59  ;;  %v6600_v39 = vpop.f32.mrf.mxu1  ;;  %v8674_v59 = vld [vmem:[%s10069_s3 + $0x58] sm:$0xff] }
 0x4bf   : > { %v6096_v37 = vpack.c.bf16 %v6600_v39, %v6600_v39 }
 0x4c0   : > { %v2159_v10 = vpop.f32.mrf.mxu1 }
 0x4c1   : > { %2345 = vst.msk [vmem:[#allocation2 + $0x68] sm:$0xf] %vm2318_vm3, %v6096_v37  ;;  %v6094_v9 = vpack.c.bf16 %v2159_v10, %v2159_v10 }
 0x4c2   : > { %v6601_v31 = vpop.f32.mrf.mxu1 }
 0x4c3   : > { %2343 = vst.msk [vmem:[#allocation2 + $0x60] sm:$0xf] %vm2318_vm3, %v6094_v9  ;;  %v6097_v33 = vpack.c.bf16 %v6601_v31, %v6601_v31 }
 0x4c4   : > { %v2162_v40 = vpop.f32.mrf.mxu1 }
 0x4c5   : > { %2346 = vst.msk [vmem:[#allocation2 + $0x6c] sm:$0xf] %vm2318_vm3, %v6097_v33  ;;  %v6095_v21 = vpack.c.bf16 %v2162_v40, %v2162_v40 }
 0x4c7   : > { %2344 = vst.msk [vmem:[#allocation2 + $0x64] sm:$0xf] %vm2318_vm3, %v6095_v21 }
 0x4f5   : > { %v6588_v12 = vpop.f32.mrf.mxu0 }
 0x4f6   : > { %v6092_v48 = vpack.c.bf16 %v6588_v12, %v6588_v12 }
 0x4f7   : > { %v2082_v44 = vpop.f32.mrf.mxu0 }
 0x4f8   : > { %2341 = vst.msk [vmem:[#allocation2 + $0x58] sm:$0xf] %vm2318_vm3, %v6092_v48  ;;  %v6090_v22 = vpack.c.bf16 %v2082_v44, %v2082_v44 }
 0x4f9   : > { %v6589_v57 = vpop.f32.mrf.mxu0 }
 0x4fa   : > { %2339 = vst.msk [vmem:[#allocation2 + $0x50] sm:$0xf] %vm2318_vm3, %v6090_v22  ;;  %v6093_v26 = vpack.c.bf16 %v6589_v57, %v6589_v57 }
 0x4fb   : > { %v2085_v0 = vpop.f32.mrf.mxu0 }
 0x4fc   : > { %2342 = vst.msk [vmem:[#allocation2 + $0x5c] sm:$0xf] %vm2318_vm3, %v6093_v26  ;;  %v6091_v55 = vpack.c.bf16 %v2085_v0, %v2085_v0 }
 0x4fd   : > { %v6604_v18 = vpop.f32.mrf.mxu1  ;;  %v6616_v13 = vpop.f32.mrf.mxu0 }
 0x4fe   : > { %2340 = vst.msk [vmem:[#allocation2 + $0x54] sm:$0xf] %vm2318_vm3, %v6091_v55  ;;  %v6100_v61 = vpack.c.bf16 %v6604_v18, %v6604_v18  ;;  %v2741_v58 = vmul.f32 0.17677669, %v6616_v13 }
 0x4ff   : > { %v2175_v4 = vpop.f32.mrf.mxu1  ;;  %v2417_v62 = vpop.f32.mrf.mxu0 }
 0x500   : > { %2349 = vst.msk [vmem:[#allocation2 + $0x78] sm:$0xf] %vm2318_vm3, %v6100_v61  ;;  %v8669_v6 = vadd.f32 %v2741_v58, %v8659_v23  ;;  %v6098_v34 = vpack.c.bf16 %v2175_v4, %v2175_v4  ;;  %v2739_v1 = vmul.f32 0.17677669, %v2417_v62 }
 0x501   : > { %v6605_v7 = vpop.f32.mrf.mxu1  ;;  %v6617_v39 = vpop.f32.mrf.mxu0 }
 0x502   : > { %2347 = vst.msk [vmem:[#allocation2 + $0x70] sm:$0xf] %vm2318_vm3, %v6098_v34  ;;  %v8678_v37 = vadd.f32 %v2739_v1, %v8665_v28  ;;  %v6101_v10 = vpack.c.bf16 %v6605_v7, %v6605_v7  ;;  %v2742_v9 = vmul.f32 0.17677669, %v6617_v39  ;;  %v2809_v31 = vsel %vm1449_vm2, %v8669_v6, -inf  ;;  %v8702_v39 = vld [vmem:[%s10069_s3 + $0x48] sm:$0xff] }
 0x503   : > { %v2178_v33 = vpop.f32.mrf.mxu1  ;;  %2810 = vmax.xlane.f32.xlu0 %v2809_v31  ;;  %v2420_v40 = vpop.f32.mrf.mxu0 }
 0x504   : > { %2350 = vst.msk [vmem:[#allocation2 + $0x7c] sm:$0xf] %vm2318_vm3, %v6101_v10  ;;  %v8684_v21 = vadd.f32 %v2742_v9, %v8674_v59  ;;  %v6099_v12 = vpack.c.bf16 %v2178_v33, %v2178_v33  ;;  %v2803_v48 = vsel %vm1449_vm2, %v8678_v37, -inf  ;;  %v2740_v4 = vmul.f32 0.17677669, %v2420_v40 }
 0x505   : > { %2804 = vmax.xlane.f32.xlu1 %v2803_v48  ;;  %v6620_v44 = vpop.f32.mrf.mxu0  ;;  %v6632_v22 = vpop.f32.mrf.mxu1 }
 0x506   : > { %2348 = vst.msk [vmem:[#allocation2 + $0x74] sm:$0xf] %vm2318_vm3, %v6099_v12  ;;  %v2749_v57 = vmul.f32 0.17677669, %v6632_v22  ;;  %v2812_v13 = vsel %vm1449_vm2, %v8684_v21, -inf  ;;  %v8713_v48 = vadd.f32 %v2740_v4, %v8702_v39 }
 0x507   : > { %v2433_v26 = vpop.f32.mrf.mxu0  ;;  %v2514_v0 = vpop.f32.mrf.mxu1  ;;  %v2745_v22 = vmul.f32 0.17677669, %v6620_v44 }
 0x508   : > { %v8690_v55 = vadd.f32 %v2749_v57, %v8659_v23  ;;  %v2747_v18 = vmul.f32 0.17677669, %v2514_v0  ;;  %v8718_v57 = vld [vmem:[%s10069_s3 + $0x78] sm:$0xff] }
 0x509   : > { %2813 = vmax.xlane.f32.xlu1 %v2812_v13  ;;  %v6633_v61 = vpop.f32.mrf.mxu1  ;;  %v6621_v34 = vpop.f32.mrf.mxu0  ;;  %v8725_v13 = vld [vmem:[%s10069_s3 + $0x70] sm:$0xff] }
 0x50a   : > { %v2750_v58 = vmul.f32 0.17677669, %v6633_v61  ;;  %v8695_v62 = vadd.f32 %v2747_v18, %v8665_v28  ;;  %v2833_v1 = vsel %vm1449_vm2, %v8690_v55, -inf  ;;  %v2746_v33 = vmul.f32 0.17677669, %v6621_v34 }
 0x50b   : > { %v2517_v7 = vpop.f32.mrf.mxu1  ;;  %2834 = vmax.xlane.f32.xlu0 %v2833_v1  ;;  %v8733_v34 = vadd.f32 %v2745_v22, %v8725_v13  ;;  %v2436_v1 = vpop.f32.mrf.mxu0  ;;  %v8745_v22 = vld [vmem:[%s10069_s3 + $0x68] sm:$0xff] }
 0x50c   : > { %v8705_v10 = vadd.f32 %v2750_v58, %v8674_v59  ;;  %v2748_v9 = vmul.f32 0.17677669, %v2517_v7  ;;  %v2827_v0 = vsel %vm1449_vm2, %v8695_v62, -inf  ;;  %v8728_v58 = vadd.f32 %v2746_v33, %v8718_v57 }
 0x50d   : > { %v6636_v31 = vpop.f32.mrf.mxu1 }
 0x50e   : > { %v8708_v40 = vadd.f32 %v2748_v9, %v8702_v39  ;;  %v2836_v12 = vsel %vm1449_vm2, %v8705_v10, -inf  ;;  %v2753_v7 = vmul.f32 0.17677669, %v6636_v31  ;;  %v2806_v9 = vsel %vm1449_vm2, %v8713_v48, -inf }
 0x50f   : > { %2837 = vmax.xlane.f32.xlu1 %v2836_v12  ;;  %v2530_v18 = vpop.f32.mrf.mxu1  ;;  %2828 = vmax.xlane.f32.xlu0 %v2827_v0  ;;  %v2744_v12 = vmul.f32 0.17677669, %v2436_v1  ;;  %v2824_v33 = vsel %vm1449_vm2, %v8728_v58, -inf }
 0x510   : > { %v2830_v4 = vsel %vm1449_vm2, %v8708_v40, -inf  ;;  %v8748_v31 = vadd.f32 %v2753_v7, %v8725_v13  ;;  %v2751_v19 = vmul.f32 0.17677669, %v2530_v18 }
 0x511   : > { %v6637_v61 = vpop.f32.mrf.mxu1 }
 0x512   : > { %v2754_v44 = vmul.f32 0.17677669, %v6637_v61  ;;  %v2743_v61 = vmul.f32 0.17677669, %v2433_v26  ;;  %v8758_v26 = vadd.f32 %v2744_v12, %v8745_v22 }
 0x513   : > { %2831 = vmax.xlane.f32.xlu1 %v2830_v4  ;;  %2807 = vmax.xlane.f32.xlu0 %v2806_v9  ;;  %v2533_v17 = vpop.f32.mrf.mxu1  ;;  %v2821_v4 = vsel %vm1449_vm2, %v8733_v34, -inf }
 0x514   : > { %v8738_v0 = vadd.f32 %v2754_v44, %v8718_v57  ;;  %v8755_v44 = vld [vmem:[%s10069_s3 + $0x60] sm:$0xff]  ;;  %v2752_v1 = vmul.f32 0.17677669, %v2533_v17  ;;  %v2818_v12 = vsel %vm1449_vm2, %v8758_v26, -inf }
 0x515   : > { %v8763_v7 = vadd.f32 %v2743_v61, %v8755_v44  ;;  %v8773_v17 = vadd.f32 %v2751_v19, %v8755_v44 }
 0x516   : > { %v2848_v9 = vsel %vm1449_vm2, %v8738_v0, -inf  ;;  %v8768_v3 = vadd.f32 %v2752_v1, %v8745_v22 }
 0x517   : > { %2825 = vmax.xlane.f32.xlu1 %v2824_v33  ;;  %2822 = vmax.xlane.f32.xlu0 %v2821_v4  ;;  %v2845_v33 = vsel %vm1449_vm2, %v8748_v31, -inf  ;;  %v2815_v18 = vsel %vm1449_vm2, %v8763_v7, -inf  ;;  %v2839_v35 = vsel %vm1449_vm2, %v8773_v17, -inf }
 0x51b   : > { %2849 = vmax.xlane.f32.xlu1 %v2848_v9  ;;  %2846 = vmax.xlane.f32.xlu0 %v2845_v33  ;;  %v2842_v33 = vsel %vm1449_vm2, %v8768_v3, -inf }
 0x51d   : > { %v6648_v45 = vpop.f32.mrf.mxu0 }
 0x51e   : > { %v2757_v4 = vmul.f32 0.17677669, %v6648_v45 }
 0x51f   : > { %v2611_v56 = vpop.f32.mrf.mxu0  ;;  %2819 = vmax.xlane.f32.xlu1 %v2818_v12  ;;  %2816 = vmax.xlane.f32.xlu0 %v2815_v18 }
 0x520   : > { %v8780_v1 = vadd.f32 %v2757_v4, %v8659_v23  ;;  %v2755_v18 = vmul.f32 0.17677669, %v2611_v56 }
 0x521   : > { %v6649_v61 = vpop.f32.mrf.mxu0 }
 0x522   : > { %v2758_v9 = vmul.f32 0.17677669, %v6649_v61  ;;  %v2857_v4 = vsel %vm1449_vm2, %v8780_v1, -inf }
 0x523   : > { %2843 = vmax.xlane.f32.xlu1 %v2842_v33  ;;  %2840 = vmax.xlane.f32.xlu0 %v2839_v35  ;;  %v2614_v61 = vpop.f32.mrf.mxu0  ;;  %v8795_v35 = vadd.f32 %v2755_v18, %v8665_v28 }
 0x524   : > { %v8785_v19 = vadd.f32 %v2758_v9, %v8674_v59  ;;  %v2756_v9 = vmul.f32 0.17677669, %v2614_v61 }
 0x525   : > { %v6664_v45 = vpop.f32.mrf.mxu1  ;;  %v6652_v25 = vpop.f32.mrf.mxu0 }
 0x526   : > { %v2765_v14 = vmul.f32 0.17677669, %v6664_v45  ;;  %v2860_v12 = vsel %vm1449_vm2, %v8785_v19, -inf  ;;  %v2761_v61 = vmul.f32 0.17677669, %v6652_v25 }
 0x527   : > { %v2708_v50 = vpop.f32.mrf.mxu1  ;;  %2861 = vmax.xlane.f32.xlu1 %v2860_v12  ;;  %2858 = vmax.xlane.f32.xlu0 %v2857_v4 }
 0x528   : > { %v8792_v11 = vadd.f32 %v2765_v14, %v8659_v23  ;;  %v2763_v45 = vmul.f32 0.17677669, %v2708_v50  ;;  %v8803_v14 = vadd.f32 %v2756_v9, %v8702_v39  ;;  %v2851_v50 = vsel %vm1449_vm2, %v8795_v35, -inf }
 0x529   : > { %v6665_v33 = vpop.f32.mrf.mxu1 }
 0x52a   : > { %v2766_v54 = vmul.f32 0.17677669, %v6665_v33  ;;  %v2881_v56 = vsel %vm1449_vm2, %v8792_v11, -inf  ;;  %v8808_v18 = vadd.f32 %v2763_v45, %v8665_v28  ;;  %v2627_v28 = vpop.f32.mrf.mxu0 }
 0x52b   : > { %v2711_v36 = vpop.f32.mrf.mxu1  ;;  %2882 = vmax.xlane.f32.xlu0 %v2881_v56  ;;  %v2759_v45 = vmul.f32 0.17677669, %v2627_v28 }
 0x52c   : > { %v8800_v51 = vadd.f32 %v2766_v54, %v8674_v59  ;;  %v2764_v23 = vmul.f32 0.17677669, %v2711_v36  ;;  %v2854_v59 = vsel %vm1449_vm2, %v8803_v14, -inf  ;;  %v8818_v36 = vadd.f32 %v2761_v61, %v8725_v13 }
 0x52d   : > { %v6668_v4 = vpop.f32.mrf.mxu1  ;;  %v2875_v25 = vsel %vm1449_vm2, %v8808_v18, -inf }
 0x52e   : > { %v2884_v12 = vsel %vm1449_vm2, %v8800_v51, -inf  ;;  %v8813_v54 = vadd.f32 %v2764_v23, %v8702_v39  ;;  %v2769_v33 = vmul.f32 0.17677669, %v6668_v4  ;;  %v2869_v56 = vsel %vm1449_vm2, %v8818_v36, -inf }
 0x52f   : > { %2885 = vmax.xlane.f32.xlu1 %v2884_v12  ;;  %2852 = vmax.xlane.f32.xlu0 %v2851_v50  ;;  %v2724_v23 = vpop.f32.mrf.mxu1  ;;  %v8830_v12 = vadd.f32 %v2759_v45, %v8755_v44 }
 0x530   : > { %v2878_v9 = vsel %vm1449_vm2, %v8813_v54, -inf  ;;  %v8825_v39 = vadd.f32 %v2769_v33, %v8725_v13  ;;  %v2767_v61 = vmul.f32 0.17677669, %v2724_v23  ;;  %v6653_v33 = vpop.f32.mrf.mxu0 }
 0x531   : > { %v2863_v13 = vsel %vm1449_vm2, %v8830_v12, -inf }
 0x532   : > { %v2893_v50 = vsel %vm1449_vm2, %v8825_v39, -inf  ;;  %v8835_v4 = vadd.f32 %v2767_v61, %v8755_v44  ;;  %v2762_v44 = vmul.f32 0.17677669, %v6653_v33  ;;  %v2630_v45 = vpop.f32.mrf.mxu0  ;;  %v8867_v33 = vpop.permute.xlu1 %3442 }
 0x533   : > { %2855 = vmax.xlane.f32.xlu1 %v2854_v59  ;;  %2876 = vmax.xlane.f32.xlu0 %v2875_v25  ;;  %v6669_v25 = vpop.f32.mrf.mxu1  ;;  %10222 = vst [vmem:[#allocation9_spill] sm:$0xff] %v8867_v33 }
 0x534   : > { %v2887_v59 = vsel %vm1449_vm2, %v8835_v4, -inf  ;;  %v8848_v28 = vadd.f32 %v2762_v44, %v8718_v57  ;;  %v8869_v44 = vpop.permute.xlu0 %3766 }
 0x535   : > { %v2727_v61 = vpop.f32.mrf.mxu1  ;;  %10223 = vst [vmem:[#allocation15_spill] sm:$0xff] %v8869_v44 }
 0x537   : > { %2879 = vmax.xlane.f32.xlu1 %v2878_v9  ;;  %2870 = vmax.xlane.f32.xlu0 %v2869_v56  ;;  %v2770_v9 = vmul.f32 0.17677669, %v6669_v25  ;;  %v2760_v56 = vmul.f32 0.17677669, %v2630_v45  ;;  %v8871_v25 = vpop.permute.xlu1 %3764 }
 0x538   : > { %10224 = vst [vmem:[#allocation49_spill] sm:$0xff] %v8871_v25 }
 0x539   : > { %v8851_v23 = vadd.f32 %v2770_v9, %v8718_v57  ;;  %v8873_v9 = vpop.permute.xlu0 %3440 }
 0x53a   : > { %10225 = vst [vmem:[#allocation5_spill] sm:$0xff] %v8873_v9 }
 0x53b   : > { %2894 = vmax.xlane.f32.xlu0 %v2893_v50  ;;  %v2896_v50 = vsel %vm1449_vm2, %v8851_v23, -inf  ;;  %v8875_v45 = vpop.permute.xlu1 %3438 }
 0x53c   : > { %10226 = vst [vmem:[#allocation11_spill] sm:$0xff] %v8875_v45 }
 0x53f   : > { %2864 = vmax.xlane.f32.xlu0 %v2863_v13 }
 0x543   : > { %2888 = vmax.xlane.f32.xlu0 %v2887_v59 }
 0x548   : > { %3871 = vrot.lane.b32.xlu1 %v10214_v24, %s7435_s19  ;;  %v2872_v24 = vsel %vm1449_vm2, %v8848_v28, -inf }
 0x54c   : > { %3760 = vrot.lane.b32.xlu1 %v10212_v15, %s7435_s19  ;;  %v8856_v15 = vadd.f32 %v2760_v56, %v8745_v22 }
 0x54e   : > { %v2866_v57 = vsel %vm1449_vm2, %v8856_v15, -inf }
 0x559   : > { %3762 = vrot.lane.b32.xlu0 %v10208_v60, %s7435_s19  ;;  %v2768_v60 = vmul.f32 0.17677669, %v2727_v61 }
 0x55b   : > { %v8861_v13 = vadd.f32 %v2768_v60, %v8745_v22 }
 0x55d   : > { %v2890_v59 = vsel %vm1449_vm2, %v8861_v13, -inf }
 0x570   : > { %2873 = vmax.xlane.f32.xlu1 %v2872_v24 }
 0x574   : > { %2897 = vmax.xlane.f32.xlu1 %v2896_v50 }
 0x578   : > { %2867 = vmax.xlane.f32.xlu1 %v2866_v57 }
 0x57c   : > { %2891 = vmax.xlane.f32.xlu1 %v2890_v59 }
 0x58c   : > { %v2811_v22 = vpop.xlane.xlu0 %2810 }
 0x58d   : > { %v2901_v56 = vsub.f32 %v8669_v6, %v2811_v22 }
 0x58e   : > { %v2805_v24 = vpop.xlane.xlu1 %2804 }
 0x58f   : > { %v2935_v61 = vmul.f32 1.442695, %v2901_v56  ;;  %v2899_v60 = vsub.f32 %v8678_v37, %v2805_v24 }
 0x591   : > { %7168 = vpow2.f32 %v2935_v61  ;;  %v2931_v50 = vmul.f32 1.442695, %v2899_v60 }
 0x592   : > { %v2814_v57 = vpop.xlane.xlu1 %2813 }
 0x593   : > { %7170 = vpow2.f32 %v2931_v50  ;;  %v2902_v25 = vsub.f32 %v8684_v21, %v2814_v57 }
 0x594   : > { %v2835_v59 = vpop.xlane.xlu0 %2834 }
 0x595   : > { %v2909_v44 = vsub.f32 %v8690_v55, %v2835_v59  ;;  %v2937_v56 = vmul.f32 1.442695, %v2902_v25 }
 0x597   : > { %v2951_v33 = vmul.f32 1.442695, %v2909_v44 }
 0x598   : > { %v2838_v9 = vpop.xlane.xlu1 %2837  ;;  %v2829_v38 = vpop.xlane.xlu0 %2828 }
 0x599   : > { %v2910_v45 = vsub.f32 %v8705_v10, %v2838_v9  ;;  %7172 = vpow2.f32 %v2951_v33  ;;  %v2907_v6 = vsub.f32 %v8695_v62, %v2829_v38 }
 0x59b   : > { %v2953_v22 = vmul.f32 1.442695, %v2910_v45  ;;  %v2947_v37 = vmul.f32 1.442695, %v2907_v6 }
 0x59c   : > { %v2832_v24 = vpop.xlane.xlu1 %2831  ;;  %v2808_v61 = vpop.xlane.xlu0 %2807 }
 0x59d   : > { %7174 = vpow2.f32 %v2953_v22  ;;  %v2900_v55 = vsub.f32 %v8713_v48, %v2808_v61  ;;  %v2908_v10 = vsub.f32 %v8708_v40, %v2832_v24 }
 0x59e   : > { %v8883_v60 = vpop.eup %7168  ;;  %7176 = vpow2.f32 %v2947_v37 }
 0x59f   : > { %v3001_v21 = vsel %vm1449_vm2, %v8883_v60, 0.0  ;;  %7178 = vpow2.f32 %v2937_v56  ;;  %v2933_v38 = vmul.f32 1.442695, %v2900_v55  ;;  %v2949_v45 = vmul.f32 1.442695, %v2908_v10 }
 0x5a0   : > { %v8888_v44 = vpop.eup %7170  ;;  %v2826_v62 = vpop.xlane.xlu1 %2825  ;;  %3002 = vadd.xlane.f32.xlu0 %v3001_v21 }
 0x5a1   : > { %v2823_v33 = vpop.xlane.xlu0 %2822  ;;  %v2995_v9 = vsel %vm1449_vm2, %v8888_v44, 0.0  ;;  %7180 = vpow2.f32 %v2933_v38 }
 0x5a2   : > { %v2905_v25 = vsub.f32 %v8733_v34, %v2823_v33 }
 0x5a4   : > { %v2943_v48 = vmul.f32 1.442695, %v2905_v25  ;;  %v2850_v50 = vpop.xlane.xlu1 %2849  ;;  %2996 = vadd.xlane.f32.xlu0 %v2995_v9 }
 0x5a5   : > { %v2847_v57 = vpop.xlane.xlu0 %2846  ;;  %v2914_v40 = vsub.f32 %v8738_v0, %v2850_v50 }
 0x5a6   : > { %7182 = vpow2.f32 %v2943_v48  ;;  %v2913_v59 = vsub.f32 %v8748_v31, %v2847_v57  ;;  %v8895_v6 = vpop.eup %7172  ;;  %v2906_v31 = vsub.f32 %v8728_v58, %v2826_v62 }
 0x5a7   : > { %7184 = vpow2.f32 %v2949_v45  ;;  %v3025_v34 = vsel %vm1449_vm2, %v8895_v6, 0.0  ;;  %v2961_v21 = vmul.f32 1.442695, %v2914_v40 }
 0x5a8   : > { %v2959_v22 = vmul.f32 1.442695, %v2913_v59  ;;  %v2820_v56 = vpop.xlane.xlu1 %2819  ;;  %3026 = vadd.xlane.f32.xlu1 %v3025_v34  ;;  %v2945_v58 = vmul.f32 1.442695, %v2906_v31 }
 0x5a9   : > { %v2817_v37 = vpop.xlane.xlu0 %2816  ;;  %v2904_v62 = vsub.f32 %v8758_v26, %v2820_v56 }
 0x5aa   : > { %v8900_v24 = vpop.eup %7174  ;;  %7186 = vpow2.f32 %v2959_v22  ;;  %v2903_v61 = vsub.f32 %v8763_v7, %v2817_v37 }
 0x5ab   : > { %v8903_v55 = vpop.eup %7176  ;;  %v3028_v0 = vsel %vm1449_vm2, %v8900_v24, 0.0  ;;  %v2941_v22 = vmul.f32 1.442695, %v2904_v62 }
 0x5ac   : > { %v2939_v10 = vmul.f32 1.442695, %v2903_v61  ;;  %v2844_v38 = vpop.xlane.xlu1 %2843  ;;  %3029 = vadd.xlane.f32.xlu0 %v3028_v0  ;;  %v3019_v33 = vsel %vm1449_vm2, %v8903_v55, 0.0  ;;  %v8910_v25 = vpop.eup %7178 }
 0x5ad   : > { %v2912_v9 = vsub.f32 %v8768_v3, %v2844_v38  ;;  %3020 = vadd.xlane.f32.xlu1 %v3019_v33  ;;  %v2841_v7 = vpop.xlane.xlu0 %2840  ;;  %v3004_v57 = vsel %vm1449_vm2, %v8910_v25, 0.0 }
 0x5ae   : > { %7188 = vpow2.f32 %v2939_v10  ;;  %v2911_v45 = vsub.f32 %v8773_v17, %v2841_v7  ;;  %v8917_v59 = vpop.eup %7180 }
 0x5af   : > { %7190 = vpow2.f32 %v2961_v21  ;;  %v2957_v48 = vmul.f32 1.442695, %v2912_v9  ;;  %v2998_v26 = vsel %vm1449_vm2, %v8917_v59, 0.0 }
 0x5b0   : > { %v2955_v50 = vmul.f32 1.442695, %v2911_v45  ;;  %v2862_v17 = vpop.xlane.xlu1 %2861 }
 0x5b1   : > { %3005 = vadd.xlane.f32.xlu1 %v3004_v57  ;;  %v2859_v40 = vpop.xlane.xlu0 %2858 }
 0x5b2   : > { %7192 = vpow2.f32 %v2955_v50  ;;  %v2917_v34 = vsub.f32 %v8780_v1, %v2859_v40 }
 0x5b3   : > { %v8919_v3 = vpop.eup %7182  ;;  %7194 = vpow2.f32 %v2945_v58 }
 0x5b4   : > { %7196 = vpow2.f32 %v2957_v48  ;;  %v3013_v56 = vsel %vm1449_vm2, %v8919_v3, 0.0  ;;  %v8926_v37 = vpop.eup %7184  ;;  %v2967_v0 = vmul.f32 1.442695, %v2917_v34 }
 0x5b5   : > { %2999 = vadd.xlane.f32.xlu1 %v2998_v26  ;;  %3014 = vadd.xlane.f32.xlu0 %v3013_v56  ;;  %v2883_v61 = vpop.xlane.xlu0 %2882  ;;  %7198 = vpow2.f32 %v2941_v22  ;;  %v3022_v1 = vsel %vm1449_vm2, %v8926_v37, 0.0 }
 0x5b6   : > { %v2925_v31 = vsub.f32 %v8792_v11, %v2883_v61  ;;  %v2918_v11 = vsub.f32 %v8785_v19, %v2862_v17 }
 0x5b7   : > { %v8929_v21 = vpop.eup %7186 }
 0x5b8   : > { %v2983_v10 = vmul.f32 1.442695, %v2925_v31  ;;  %v2886_v38 = vpop.xlane.xlu1 %2885  ;;  %v3037_v33 = vsel %vm1449_vm2, %v8929_v21, 0.0 }
 0x5b9   : > { %3023 = vadd.xlane.f32.xlu1 %v3022_v1  ;;  %3038 = vadd.xlane.f32.xlu0 %v3037_v33  ;;  %v2853_v9 = vpop.xlane.xlu0 %2852  ;;  %v2926_v62 = vsub.f32 %v8800_v51, %v2886_v38 }
 0x5ba   : > { %7200 = vpow2.f32 %v2983_v10  ;;  %v2915_v7 = vsub.f32 %v8795_v35, %v2853_v9  ;;  %v2969_v35 = vmul.f32 1.442695, %v2918_v11 }
 0x5bb   : > { %v8936_v45 = vpop.eup %7188  ;;  %7202 = vpow2.f32 %v2967_v0  ;;  %v2985_v51 = vmul.f32 1.442695, %v2926_v62 }
 0x5bc   : > { %v8939_v58 = vpop.eup %7190  ;;  %v2963_v48 = vmul.f32 1.442695, %v2915_v7  ;;  %v2856_v50 = vpop.xlane.xlu1 %2855  ;;  %v3007_v57 = vsel %vm1449_vm2, %v8936_v45, 0.0 }
 0x5bd   : > { %3008 = vadd.xlane.f32.xlu0 %v3007_v57  ;;  %v2877_v40 = vpop.xlane.xlu0 %2876  ;;  %v2916_v26 = vsub.f32 %v8803_v14, %v2856_v50  ;;  %v3040_v19 = vsel %vm1449_vm2, %v8939_v58, 0.0 }
 0x5be   : > { %v2923_v22 = vsub.f32 %v8808_v18, %v2877_v40  ;;  %7204 = vpow2.f32 %v2963_v48 }
 0x5bf   : > { %v8945_v34 = vpop.eup %7192  ;;  %v2965_v10 = vmul.f32 1.442695, %v2916_v26 }
 0x5c0   : > { %v8950_v17 = vpop.eup %7194  ;;  %v2979_v56 = vmul.f32 1.442695, %v2923_v22  ;;  %v2880_v61 = vpop.xlane.xlu1 %2879  ;;  %v3031_v31 = vsel %vm1449_vm2, %v8945_v34, 0.0 }
 0x5c1   : > { %v8954_v0 = vpop.eup %7196  ;;  %3041 = vadd.xlane.f32.xlu0 %v3040_v19  ;;  %3032 = vadd.xlane.f32.xlu1 %v3031_v31  ;;  %v2871_v18 = vpop.xlane.xlu0 %2870  ;;  %v2924_v38 = vsub.f32 %v8813_v54, %v2880_v61  ;;  %v3016_v7 = vsel %vm1449_vm2, %v8950_v17, 0.0 }
 0x5c2   : > { %7206 = vpow2.f32 %v2979_v56  ;;  %v2921_v14 = vsub.f32 %v8818_v36, %v2871_v18  ;;  %v8958_v1 = vpop.eup %7198  ;;  %v3034_v9 = vsel %vm1449_vm2, %v8954_v0, 0.0 }
 0x5c3   : > { %7208 = vpow2.f32 %v2969_v35  ;;  %v2981_v48 = vmul.f32 1.442695, %v2924_v38  ;;  %v3010_v50 = vsel %vm1449_vm2, %v8958_v1, 0.0 }
 0x5c4   : > { %7210 = vpow2.f32 %v2985_v51  ;;  %v2975_v33 = vmul.f32 1.442695, %v2921_v14 }
 0x5c5   : > { %3035 = vadd.xlane.f32.xlu0 %v3034_v9  ;;  %3017 = vadd.xlane.f32.xlu1 %v3016_v7  ;;  %v2895_v11 = vpop.xlane.xlu0 %2894  ;;  %7212 = vpow2.f32 %v2965_v10 }
 0x5c6   : > { %v2929_v62 = vsub.f32 %v8825_v39, %v2895_v11  ;;  %7214 = vpow2.f32 %v2975_v33 }
 0x5c7   : > { %v8965_v36 = vpop.eup %7200  ;;  %7216 = vpow2.f32 %v2981_v48 }
 0x5c8   : > { %v2991_v54 = vmul.f32 1.442695, %v2929_v62  ;;  %v3073_v57 = vsel %vm1449_vm2, %v8965_v36, 0.0  ;;  %v8971_v40 = vpop.eup %7202 }
 0x5c9   : > { %3011 = vadd.xlane.f32.xlu1 %v3010_v50  ;;  %3074 = vadd.xlane.f32.xlu0 %v3073_v57  ;;  %v2865_v22 = vpop.xlane.xlu0 %2864  ;;  %v3049_v26 = vsel %vm1449_vm2, %v8971_v40, 0.0 }
 0x5ca   : > { %v2919_v35 = vsub.f32 %v8830_v12, %v2865_v22  ;;  %7218 = vpow2.f32 %v2991_v54 }
 0x5cb   : > { %v8976_v19 = vpop.eup %7204 }
 0x5cc   : > { %v2971_v39 = vmul.f32 1.442695, %v2919_v35  ;;  %v3043_v12 = vsel %vm1449_vm2, %v8976_v19, 0.0 }
 0x5cd   : > { %3050 = vadd.xlane.f32.xlu1 %v3049_v26  ;;  %v2889_v51 = vpop.xlane.xlu0 %2888  ;;  %v9017_v26 = vpop.permute.xlu1 %3871 }
 0x5ce   : > { %v2927_v56 = vsub.f32 %v8835_v4, %v2889_v51  ;;  %7220 = vpow2.f32 %v2971_v39 }
 0x5cf   : > { %v8979_v61 = vpop.eup %7206 }
 0x5d0   : > { %v8981_v31 = vpop.eup %7208  ;;  %v2987_v18 = vmul.f32 1.442695, %v2927_v56  ;;  %v3067_v14 = vsel %vm1449_vm2, %v8979_v61, 0.0 }
 0x5d1   : > { %v8987_v10 = vpop.eup %7210  ;;  %3044 = vadd.xlane.f32.xlu1 %v3043_v12  ;;  %3068 = vadd.xlane.f32.xlu0 %v3067_v14  ;;  %v3052_v4 = vsel %vm1449_vm2, %v8981_v31, 0.0  ;;  %v9019_v51 = vpop.permute.xlu1 %3760 }
 0x5d2   : > { %7222 = vpow2.f32 %v2987_v18  ;;  %v8989_v38 = vpop.eup %7212  ;;  %v3076_v33 = vsel %vm1449_vm2, %v8987_v10, 0.0 }
 0x5d3   : > { %v8995_v9 = vpop.eup %7214  ;;  %v3046_v11 = vsel %vm1449_vm2, %v8989_v38, 0.0 }
 0x5d4   : > { %v8997_v7 = vpop.eup %7216  ;;  %v3061_v62 = vsel %vm1449_vm2, %v8995_v9, 0.0 }
 0x5d5   : > { %3053 = vadd.xlane.f32.xlu1 %v3052_v4  ;;  %3077 = vadd.xlane.f32.xlu0 %v3076_v33  ;;  %v3070_v54 = vsel %vm1449_vm2, %v8997_v7, 0.0 }
 0x5d7   : > { %v9003_v48 = vpop.eup %7218 }
 0x5d8   : > { %v3085_v50 = vsel %vm1449_vm2, %v9003_v48, 0.0 }
 0x5d9   : > { %3047 = vadd.xlane.f32.xlu1 %v3046_v11  ;;  %3062 = vadd.xlane.f32.xlu0 %v3061_v62 }
 0x5db   : > { %v9009_v57 = vpop.eup %7220 }
 0x5dc   : > { %v3055_v35 = vsel %vm1449_vm2, %v9009_v57, 0.0 }
 0x5dd   : > { %3071 = vadd.xlane.f32.xlu1 %v3070_v54  ;;  %3086 = vadd.xlane.f32.xlu0 %v3085_v50 }
 0x5df   : > { %v9011_v22 = vpop.eup %7222 }
 0x5e0   : > { %v3079_v39 = vsel %vm1449_vm2, %v9011_v22, 0.0 }
 0x5e1   : > { %3056 = vadd.xlane.f32.xlu1 %v3055_v35  ;;  %3080 = vadd.xlane.f32.xlu0 %v3079_v39 }
 0x5f9   : > { %v2874_v56 = vpop.xlane.xlu1 %2873 }
 0x5fa   : > { %v2922_v18 = vsub.f32 %v8848_v28, %v2874_v56 }
 0x5fc   : > { %v2977_v12 = vmul.f32 1.442695, %v2922_v18 }
 0x5fd   : > { %v2898_v14 = vpop.xlane.xlu1 %2897 }
 0x5fe   : > { %7224 = vpow2.f32 %v2977_v12  ;;  %v2930_v4 = vsub.f32 %v8851_v23, %v2898_v14 }
 0x600   : > { %v2993_v33 = vmul.f32 1.442695, %v2930_v4 }
 0x601   : > { %v2868_v11 = vpop.xlane.xlu1 %2867 }
 0x602   : > { %7226 = vpow2.f32 %v2993_v33  ;;  %v2920_v62 = vsub.f32 %v8856_v15, %v2868_v11  ;;  %v9046_v15 = vpop.permute.xlu0 %3762 }
 0x604   : > { %v2973_v54 = vmul.f32 1.442695, %v2920_v62 }
 0x605   : > { %v2892_v18 = vpop.xlane.xlu1 %2891 }
 0x606   : > { %7228 = vpow2.f32 %v2973_v54  ;;  %v2928_v14 = vsub.f32 %v8861_v13, %v2892_v18 }
 0x608   : > { %v2989_v4 = vmul.f32 1.442695, %v2928_v14 }
 0x60a   : > { %7230 = vpow2.f32 %v2989_v4 }
 0x60b   : > { %v9024_v50 = vpop.eup %7224 }
 0x60c   : > { %v3064_v35 = vsel %vm1449_vm2, %v9024_v50, 0.0 }
 0x60d   : > { %3065 = vadd.xlane.f32.xlu1 %v3064_v35 }
 0x60f   : > { %v9028_v39 = vpop.eup %7226 }
 0x610   : > { %v3088_v28 = vsel %vm1449_vm2, %v9028_v39, 0.0 }
 0x611   : > { %3089 = vadd.xlane.f32.xlu0 %v3088_v28 }
 0x613   : > { %v9032_v23 = vpop.eup %7228 }
 0x614   : > { %v3058_v56 = vsel %vm1449_vm2, %v9032_v23, 0.0 }
 0x615   : > { %3059 = vadd.xlane.f32.xlu0 %v3058_v56 }
 0x61e   : > { %3752 = vrot.lane.b32.xlu1 %v7632_v46, %s7434_s23 }
 0x622   : > { %3867 = vrot.lane.b32.xlu1 %v10217_v43, %s7435_s19 }
 0x626   : > { %3756 = vrot.lane.b32.xlu1 %v7666_v5, %s7434_s23 }
 0x629   : > { %v3003_v12 = vpop.xlane.xlu0 %3002 }
 0x62a   : > { %3865 = vrot.lane.b32.xlu1 %v10219_v29, %s7435_s19 }
 0x62b   : > { %3869 = vrot.lane.b32.xlu0 %v10216_v47, %s7435_s19 }
 0x62d   : > { %v2997_v5 = vpop.xlane.xlu0 %2996 }
 0x62f   : > { %3754 = vrot.lane.b32.xlu0 %v7642_v53, %s7434_s23 }
 0x631   : > { %v3027_v46 = vpop.xlane.xlu1 %3026 }
 0x633   : > { %3976 = vrot.lane.b32.xlu0 %v10210_v2, %s7435_s19 }
 0x635   : > { %v3030_v47 = vpop.xlane.xlu0 %3029 }
 0x636   : > { %v3021_v43 = vpop.xlane.xlu1 %3020 }
 0x637   : > { %3758 = vrot.lane.b32.xlu0 %v10198_v8, %s7434_s23 }
 0x63a   : > { %v3006_v29 = vpop.xlane.xlu1 %3005 }
 0x63b   : > { %3974 = vrot.lane.b32.xlu0 %v10211_v41, %s7435_s19  ;;  %7232 = vrcp.f32 %v3006_v29  ;;  %v9063_v41 = vpop.eup %7230 }
 0x63c   : > { %7234 = vrcp.f32 %v2997_v5 }
 0x63d   : > { %7236 = vrcp.f32 %v3003_v12 }
 0x63e   : > { %v3000_v53 = vpop.xlane.xlu1 %2999  ;;  %v3015_v13 = vpop.xlane.xlu0 %3014 }
 0x63f   : > { %7238 = vrcp.f32 %v3000_v53  ;;  %3859 = vrot.lane.b32.xlu0 %v10196_v16, %s7434_s23 }
 0x640   : > { %7240 = vrcp.f32 %v3030_v47 }
 0x641   : > { %7242 = vrcp.f32 %v3021_v43 }
 0x642   : > { %7244 = vrcp.f32 %v3027_v46  ;;  %v3024_v2 = vpop.xlane.xlu1 %3023  ;;  %v3039_v8 = vpop.xlane.xlu0 %3038 }
 0x643   : > { %7246 = vrcp.f32 %v3024_v2  ;;  %4081 = vrot.lane.b32.xlu0 %v10215_v32, %s7435_s19  ;;  %v3082_v32 = vsel %vm1449_vm2, %v9063_v41, 0.0 }
 0x644   : > { %7248 = vrcp.f32 %v3039_v8 }
 0x646   : > { %v3009_v33 = vpop.xlane.xlu0 %3008 }
 0x647   : > { %3863 = vrot.lane.b32.xlu0 %v10203_v49, %s7434_s23 }
 0x648   : > { %v7233_v11 = vpop.eup %7232 }
 0x649   : > { %v7235_v62 = vpop.eup %7234  ;;  %v3126_v56 = vmul.f32 %v7233_v11, %v8910_v25 }
 0x64a   : > { %v3033_v54 = vpop.xlane.xlu1 %3032  ;;  %v3042_v35 = vpop.xlane.xlu0 %3041  ;;  %v3123_v49 = vmul.f32 %v7235_v62, %v8888_v44 }
 0x64b   : > { %v7237_v16 = vpop.eup %7236  ;;  %4079 = vrot.lane.b32.xlu0 %v8361_v30, %s7435_s19  ;;  %7250 = vrcp.f32 %v3042_v35  ;;  %v10232_v35 = vld [vmem:[#allocation5_spill] sm:$0xff] }
 0x64c   : > { %v7239_v28 = vpop.eup %7238  ;;  %v3125_v14 = vmul.f32 %v7237_v16, %v8883_v60  ;;  %7252 = vrcp.f32 %v3033_v54 }
 0x64d   : > { %v7241_v18 = vpop.eup %7240  ;;  %v3124_v12 = vmul.f32 %v7239_v28, %v8917_v59 }
 0x64e   : > { %v7243_v46 = vpop.eup %7242  ;;  %v3018_v5 = vpop.xlane.xlu1 %3017  ;;  %3083 = vadd.xlane.f32.xlu1 %v3082_v32  ;;  %v3134_v47 = vmul.f32 %v7241_v18, %v8900_v24  ;;  %v3156_v44 = vpack.c.bf16 %v3126_v56, %v3125_v14  ;;  %v10233_v14 = vld [vmem:[#allocation7_spill] sm:$0xff] }
 0x64f   : > { %v3036_v30 = vpop.xlane.xlu0 %3035  ;;  %v7245_v43 = vpop.eup %7244  ;;  %7254 = vrcp.f32 %v3018_v5  ;;  %3964 = vrot.lane.b32.xlu0 %v10200_v27, %s7434_s23  ;;  %v3155_v25 = vpack.c.bf16 %v3124_v12, %v3123_v49  ;;  %v3131_v60 = vmul.f32 %v7243_v46, %v8903_v55 }
 0x650   : > { %v7247_v4 = vpop.eup %7246  ;;  %7256 = vrcp.f32 %v3036_v30  ;;  %v3133_v29 = vmul.f32 %v7245_v43, %v8895_v6  ;;  %v10235_v30 = vld [vmem:[#allocation11_spill] sm:$0xff] }
 0x651   : > { %7258 = vrcp.f32 %v3009_v33  ;;  %6678 = vmatprep.mubr.msk.bf16.mxu0 %vm1449_vm2, %v3155_v25  ;;  %v3132_v59 = vmul.f32 %v7247_v4, %v8926_v37  ;;  %v10227_v37 = vld [vmem:[#allocation51_spill] sm:$0xff] }
 0x652   : > { %7260 = vrcp.f32 %v3015_v13  ;;  %v3012_v53 = vpop.xlane.xlu1 %3011  ;;  %6679 = vmatmul.mubr.msk.bf16.vlgmr.msra.gmra.mxu0 %vm1449_vm2, %v3156_v44  ;;  %v3160_v24 = vpack.c.bf16 %v3134_v47, %v3133_v29  ;;  %v10229_v13 = vld [vmem:[#allocation9_spill] sm:$0xff]  ;;  %v10236_v43 = vld [vmem:[#allocation15_spill] sm:$0xff] }
 0x653   : > { %7262 = vrcp.f32 %v3012_v53  ;;  %6703 = vmatpush3.bf16.msra.mxu0 %v8613_v52  ;;  %3966 = vrot.lane.b32.xlu0 %v10201_v42, %s7434_s23  ;;  %v3159_v27 = vpack.c.bf16 %v3132_v59, %v3131_v60  ;;  %v3075_v6 = vpop.xlane.xlu0 %3074  ;;  %v10228_v52 = vld [vmem:[#allocation6_spill] sm:$0xff]  ;;  %v7249_v42 = vpop.eup %7248  ;;  %v10237_v60 = vld [vmem:[#allocation25_spill] sm:$0xff] }
 0x654   : > { %6704 = vmatprep.subr.bf16.mxu0 %v8617_v63  ;;  %v3137_v12 = vmul.f32 %v7249_v42, %v8929_v21 }
 0x655   : > { %6694 = vmatprep.mubr.msk.bf16.mxu1 %vm1449_vm2, %v3159_v27 }
 0x656   : > { %v3051_v55 = vpop.xlane.xlu1 %3050  ;;  %6695 = vmatmul.mubr.msk.bf16.vlgmr.msra.gmra.mxu1 %vm1449_vm2, %v3160_v24 }
 0x657   : > { %6705 = vmatpush3.bf16.msra.mxu0 %v8617_v63  ;;  %6719 = vmatpush3.bf16.msra.mxu1 %v8631_v20  ;;  %v10230_v63 = vld [vmem:[#allocation10_spill] sm:$0xff]  ;;  %v10231_v20 = vld [vmem:[#allocation3_spill] sm:$0xff] }
 0x658   : > { %4075 = vrot.lane.b32.xlu0 %v10227_v37, %s7435_s19  ;;  %6706 = vmatprep.subr.bf16.mxu0 %v10228_v52  ;;  %v7251_v2 = vpop.eup %7250  ;;  %v10240_v37 = vld [vmem:[#allocation8_spill] sm:$0xff] }
 0x659   : > { %6720 = vmatprep.subr.bf16.mxu1 %v10229_v13  ;;  %v7253_v33 = vpop.eup %7252  ;;  %v3138_v16 = vmul.f32 %v7251_v2, %v8939_v58  ;;  %v10234_v58 = vld [vmem:[#allocation17_spill] sm:$0xff] }
 0x65a   : > { %v3045_v8 = vpop.xlane.xlu1 %3044  ;;  %v3069_v11 = vpop.xlane.xlu0 %3068  ;;  %v3135_v18 = vmul.f32 %v7253_v33, %v8945_v34 }
 0x65b   : > { %6707 = vmatpush3.bf16.msra.mxu0 %v10228_v52  ;;  %6721 = vmatpush3.bf16.msra.mxu1 %v10229_v13  ;;  %v3162_v25 = vpack.c.bf16 %v3138_v16, %v3137_v12  ;;  %v10243_v16 = vld [vmem:[#allocation49_spill] sm:$0xff] }
 0x65c   : > { %v7255_v62 = vpop.eup %7254  ;;  %4069 = vrot.lane.b32.xlu0 %v10230_v63, %s7434_s23  ;;  %6708 = vmatprep.subr.bf16.mxu0 %v10231_v20  ;;  %v10241_v63 = vld [vmem:[#allocation50_spill] sm:$0xff] }
 0x65d   : > { %v7257_v54 = vpop.eup %7256  ;;  %6722 = vmatprep.subr.bf16.mxu1 %v10232_v35  ;;  %v3130_v34 = vmul.f32 %v7255_v62, %v8950_v17 }
 0x65e   : > { %v7259_v28 = vpop.eup %7258  ;;  %v3054_v56 = vpop.xlane.xlu1 %3053  ;;  %v3136_v32 = vmul.f32 %v7257_v54, %v8954_v0 }
 0x65f   : > { %v7261_v49 = vpop.eup %7260  ;;  %6709 = vmatpush3.bf16.msra.mxu0 %v10231_v20  ;;  %6723 = vmatpush3.bf16.msra.mxu1 %v10232_v35  ;;  %7264 = vrcp.f32 %v3054_v56  ;;  %v3078_v0 = vpop.xlane.xlu0 %3077  ;;  %v3127_v21 = vmul.f32 %v7259_v28, %v8936_v45  ;;  %v10242_v35 = vld [vmem:[#allocation13_spill] sm:$0xff]  ;;  %v10245_v28 = vld [vmem:[#allocation19_spill] sm:$0xff]  ;;  %v3784_v56 = vsel %vm992_vm1, %v9046_v15, 0 }
 0x660   : > { %v7263_v46 = vpop.eup %7262  ;;  %3857 = vrot.lane.b32.xlu1 %v10233_v14, %s7434_s23  ;;  %4073 = vrot.lane.b32.xlu0 %v10234_v58, %s7434_s23  ;;  %v3161_v5 = vpack.c.bf16 %v3136_v32, %v3135_v18  ;;  %7266 = vrcp.f32 %v3045_v8  ;;  %v3129_v44 = vmul.f32 %v7261_v49, %v8919_v3  ;;  %v10238_v3 = vld [vmem:[#allocation4_spill] sm:$0xff]  ;;  %v3781_v18 = vsel %vm992_vm1, %v9019_v51, 0 }
 0x661   : > { %6724 = vmatprep.subr.bf16.mxu1 %v10235_v30  ;;  %6950 = vmatprep.subr.msk.bf16.mxu0 %vm992_vm1, %v10236_v43  ;;  %v3128_v4 = vmul.f32 %v7263_v46, %v8958_v1  ;;  %7268 = vrcp.f32 %v3051_v55  ;;  %v10239_v1 = vld [vmem:[#allocation26_spill] sm:$0xff] }
 0x662   : > { %6698 = vmatprep.mubr.msk.bf16.mxu1 %vm1449_vm2, %v3161_v5  ;;  %v3048_v47 = vpop.xlane.xlu1 %3047  ;;  %v3158_v59 = vpack.c.bf16 %v3130_v34, %v3129_v44 }
 0x663   : > { %7270 = vrcp.f32 %v3048_v47  ;;  %6699 = vmatmul.mubr.msk.bf16.gmra.mxu1 %vm1449_vm2, %v3162_v25  ;;  %v3157_v17 = vpack.c.bf16 %v3128_v4, %v3127_v21 }
 0x664   : > { %7272 = vrcp.f32 %v3078_v0  ;;  %6725 = vmatpush3.bf16.msra.mxu1 %v10235_v30  ;;  %3972 = vrot.lane.b32.xlu1 %v10237_v60, %s7435_s19 }
 0x665   : > { %7274 = vrcp.f32 %v3069_v11  ;;  %6954 = vmatprep.subr.msk.bf16.mxu1 %vm992_vm1, %v9017_v26  ;;  %6682 = vmatprep.mubr.msk.bf16.mxu0 %vm1449_vm2, %v3157_v17 }
 0x666   : > { %7276 = vrcp.f32 %v3075_v6  ;;  %v3072_v45 = vpop.xlane.xlu1 %3071  ;;  %6683 = vmatmul.mubr.msk.bf16.gmra.mxu0 %vm1449_vm2, %v3158_v59 }
 0x667   : > { %7278 = vrcp.f32 %v3072_v45 }
 0x668   : > { %3861 = vrot.lane.b32.xlu1 %v10238_v3, %s7434_s23 }
 0x66a   : > { %v3057_v49 = vpop.xlane.xlu1 %3056 }
 0x66c   : > { %3970 = vrot.lane.b32.xlu1 %v10239_v1, %s7435_s19  ;;  %v7265_v29 = vpop.eup %7264 }
 0x66d   : > { %v7267_v53 = vpop.eup %7266  ;;  %v3142_v55 = vmul.f32 %v7265_v29, %v8981_v31 }
 0x66e   : > { %v7269_v27 = vpop.eup %7268  ;;  %v3139_v52 = vmul.f32 %v7267_v53, %v8976_v19 }
 0x66f   : > { %v3141_v2 = vmul.f32 %v7269_v27, %v8971_v40  ;;  %v3790_v40 = vsel %vm992_vm1, %v10236_v43, 0 }
 0x670   : > { %v7271_v24 = vpop.eup %7270  ;;  %3962 = vrot.lane.b32.xlu1 %v10240_v37, %s7434_s23 }
 0x671   : > { %v7273_v6 = vpop.eup %7272  ;;  %v3140_v42 = vmul.f32 %v7271_v24, %v8989_v38  ;;  %v3164_v31 = vpack.c.bf16 %v3142_v55, %v3141_v2 }
 0x672   : > { %v7275_v13 = vpop.eup %7274  ;;  %v3150_v62 = vmul.f32 %v7273_v6, %v8987_v10 }
 0x673   : > { %v7277_v8 = vpop.eup %7276  ;;  %v3163_v33 = vpack.c.bf16 %v3140_v42, %v3139_v52  ;;  %v3147_v20 = vmul.f32 %v7275_v13, %v8979_v61  ;;  %v10244_v61 = vld [vmem:[#allocation20_spill] sm:$0xff] }
 0x674   : > { %v7279_v11 = vpop.eup %7278  ;;  %4077 = vrot.lane.b32.xlu1 %v10241_v63, %s7435_s19  ;;  %v3149_v38 = vmul.f32 %v7277_v8, %v8965_v36  ;;  %v3895_v36 = vsel %vm992_vm1, %v9017_v26, 0  ;;  %v3063_v26 = vpop.xlane.xlu0 %3062 }
 0x675   : > { %6710 = vmatprep.mubr.msk.bf16.mxu0 %vm1449_vm2, %v3163_v33  ;;  %v3148_v19 = vmul.f32 %v7279_v11, %v8997_v7  ;;  %v3787_v7 = vsel %vm992_vm1, %v10243_v16, 0 }
 0x676   : > { %6711 = vmatmul.mubr.msk.bf16.vlgmr.msra.gmra.mxu0 %vm1449_vm2, %v3164_v31  ;;  %v3168_v10 = vpack.c.bf16 %v3150_v62, %v3149_v38 }
 0x677   : > { %6735 = vmatpush3.bf16.xpose.msra.mxu0 %v3790_v40  ;;  %v3167_v54 = vpack.c.bf16 %v3148_v19, %v3147_v20 }
 0x678   : > { %3968 = vrot.lane.b32.xlu1 %v10242_v35, %s7434_s23  ;;  %6951 = vmatprep.subr.msk.bf16.mxu0 %vm992_vm1, %v10243_v16  ;;  %v3087_v32 = vpop.xlane.xlu0 %3086  ;;  %v10246_v16 = vld [vmem:[#allocation34_spill] sm:$0xff] }
 0x679   : > { %6726 = vmatprep.mubr.msk.bf16.mxu1 %vm1449_vm2, %v3167_v54 }
 0x67a   : > { %6727 = vmatmul.mubr.msk.bf16.vlgmr.msra.gmra.mxu1 %vm1449_vm2, %v3168_v10 }
 0x67b   : > { %6751 = vmatpush3.bf16.xpose.msra.mxu1 %v3895_v36 }
 0x67c   : > { %4067 = vrot.lane.b32.xlu1 %v10244_v61, %s7434_s23  ;;  %v3081_v12 = vpop.xlane.xlu0 %3080 }
 0x67f   : > { %6737 = vmatpush3.bf16.xpose.msra.mxu0 %v3787_v7 }
 0x680   : > { %4071 = vrot.lane.b32.xlu1 %v10245_v28, %s7434_s23  ;;  %6952 = vmatprep.subr.msk.bf16.mxu0 %vm992_vm1, %v9046_v15 }
 0x687   : > { %6739 = vmatpush3.bf16.xpose.msra.mxu0 %v3784_v56 }
 0x688   : > { %6953 = vmatprep.subr.msk.bf16.mxu0 %vm992_vm1, %v9019_v51 }
 0x68f   : > { %6741 = vmatpush3.bf16.xpose.msra.mxu0 %v3781_v18  ;;  %v10250_v18 = vld [vmem:[#allocation29_spill] sm:$0xff] }
 0x696   : > { %v3066_v46 = vpop.xlane.xlu1 %3065 }
 0x697   : > { %7280 = vrcp.f32 %v3066_v46 }
 0x698   : > { %7282 = vrcp.f32 %v3057_v49  ;;  %v10251_v49 = vld [vmem:[#allocation30_spill] sm:$0xff] }
 0x699   : > { %7284 = vrcp.f32 %v3063_v26 }
 0x69a   : > { %v3753_v14 = vpop.permute.xlu1 %3752  ;;  %v3090_v58 = vpop.xlane.xlu0 %3089 }
 0x69e   : > { %v3060_v5 = vpop.xlane.xlu0 %3059  ;;  %v3868_v15 = vpop.permute.xlu1 %3867 }
 0x69f   : > { %7286 = vrcp.f32 %v3060_v5  ;;  %v3889_v47 = vsel %vm992_vm1, %v3868_v15, 0 }
 0x6a0   : > { %7288 = vrcp.f32 %v3090_v58 }
 0x6a1   : > { %7290 = vrcp.f32 %v3081_v12 }
 0x6a2   : > { %v3870_v34 = vpop.permute.xlu0 %3869  ;;  %v3757_v51 = vpop.permute.xlu1 %3756  ;;  %7292 = vrcp.f32 %v3087_v32 }
 0x6a3   : > { %6955 = vmatprep.subr.msk.bf16.mxu1 %vm992_vm1, %v3870_v34  ;;  %v3892_v0 = vsel %vm992_vm1, %v3870_v34, 0  ;;  %v10253_v34 = vld [vmem:[#allocation43_spill] sm:$0xff] }
 0x6a4   : > { %6753 = vmatpush3.bf16.xpose.msra.mxu1 %v3892_v0  ;;  %v7281_v43 = vpop.eup %7280 }
 0x6a5   : > { %6956 = vmatprep.subr.msk.bf16.mxu1 %vm992_vm1, %v3868_v15  ;;  %v7283_v25 = vpop.eup %7282  ;;  %v3146_v60 = vmul.f32 %v7281_v43, %v9024_v50  ;;  %v10254_v43 = vld [vmem:[#allocation40_spill] sm:$0xff] }
 0x6a6   : > { %v3755_v30 = vpop.permute.xlu0 %3754  ;;  %v7285_v4 = vpop.eup %7284  ;;  %v3143_v59 = vmul.f32 %v7283_v25, %v9009_v57  ;;  %v10255_v25 = vld [vmem:[#allocation38_spill] sm:$0xff] }
 0x6a7   : > { %v3866_v17 = vpop.permute.xlu1 %3865  ;;  %v3145_v1 = vmul.f32 %v7285_v4, %v8995_v9  ;;  %v10256_v4 = vld [vmem:[#allocation39_spill] sm:$0xff] }
 0x6a8   : > { %v3886_v50 = vsel %vm992_vm1, %v3866_v17, 0 }
 0x6a9   : > { %v3166_v53 = vpack.c.bf16 %v3146_v60, %v3145_v1 }
 0x6aa   : > { %v3977_v21 = vpop.permute.xlu0 %3976 }
 0x6ab   : > { %6958 = vmatprep.subr.msk.bf16.mxu0 %vm992_vm1, %v3977_v21  ;;  %v4000_v57 = vsel %vm992_vm1, %v3977_v21, 0 }
 0x6ac   : > { %v7287_v44 = vpop.eup %7286  ;;  %6755 = vmatpush3.bf16.xpose.msra.mxu1 %v3889_v47 }
 0x6ad   : > { %6957 = vmatprep.subr.msk.bf16.mxu1 %vm992_vm1, %v3866_v17  ;;  %v3144_v45 = vmul.f32 %v7287_v44, %v9032_v23  ;;  %v7289_v13 = vpop.eup %7288 }
 0x6ae   : > { %v3759_v3 = vpop.permute.xlu0 %3758  ;;  %v7291_v2 = vpop.eup %7290  ;;  %v3154_v63 = vmul.f32 %v7289_v13, %v9028_v39 }
 0x6af   : > { %v3165_v29 = vpack.c.bf16 %v3144_v45, %v3143_v59  ;;  %v7293_v33 = vpop.eup %7292  ;;  %v3151_v31 = vmul.f32 %v7291_v2, %v9011_v22  ;;  %v10247_v22 = vld [vmem:[#allocation28_spill] sm:$0xff]  ;;  %v10257_v59 = vld [vmem:[#allocation35_spill] sm:$0xff] }
 0x6b0   : > { %v3153_v38 = vmul.f32 %v7293_v33, %v9003_v48  ;;  %v10249_v48 = vld [vmem:[#allocation33_spill] sm:$0xff]  ;;  %v782_v32 = vadd.f32 %v10250_v18, %v10247_v22  ;;  %v785_v12 = vadd.f32 %v10251_v49, %v10247_v22  ;;  %v830_v21 = vadd.f32 %v10255_v25, %v10247_v22 }
 0x6b1   : > { %6714 = vmatprep.mubr.msk.bf16.mxu0 %vm1449_vm2, %v3165_v29  ;;  %v801_v61 = vadd.f32 %v10249_v48, %v10247_v22  ;;  %v833_v47 = vadd.f32 %v10256_v4, %v10247_v22  ;;  %v814_v45 = vadd.f32 %v10257_v59, %v10247_v22  ;;  %v10259_v29 = vld [vmem:[#allocation37_spill] sm:$0xff] }
 0x6b2   : > { %6715 = vmatmul.mubr.msk.bf16.gmra.mxu0 %vm1449_vm2, %v3166_v53  ;;  %v3975_v27 = vpop.permute.xlu0 %3974  ;;  %v3170_v10 = vpack.c.bf16 %v3154_v63, %v3153_v38  ;;  %v910_v58 = vpack.c.bf16 %v785_v12, %v782_v32  ;;  %v9337_v4 = vld [vmem:[%s10069_s3 + $0xb0] sm:$0xff] }
 0x6b3   : > { %6742 = vmatprep.mubr.msk.bf16.mxu0 %vm992_vm1, %v3753_v14  ;;  %v3997_v9 = vsel %vm992_vm1, %v3975_v27, 0  ;;  %v10252_v14 = vld [vmem:[#allocation31_spill] sm:$0xff]  ;;  %v928_v17 = vpack.c.bf16 %v833_v47, %v830_v21  ;;  %v9342_v47 = vld [vmem:[%s10069_s3 + $0xb8] sm:$0xff] }
 0x6b4   : > { %6757 = vmatpush3.bf16.xpose.msra.mxu1 %v3886_v50  ;;  %v10260_v50 = vld [vmem:[#allocation47_spill] sm:$0xff] }
 0x6b6   : > { %v3860_v24 = vpop.permute.xlu0 %3859 }
 0x6ba   : > { %6743 = vmatmul.mubr.msk.bf16.vlgmr.msra.gmra.mxu0 %vm992_vm1, %v3755_v30  ;;  %v4082_v23 = vpop.permute.xlu0 %4081 }
 0x6bb   : > { %6767 = vmatpush3.bf16.xpose.msra.mxu0 %v4000_v57  ;;  %6746 = vmatprep.mubr.msk.bf16.mxu0 %vm992_vm1, %v3757_v51  ;;  %v4105_v26 = vsel %vm992_vm1, %v4082_v23, 0 }
 0x6bc   : > { %6959 = vmatprep.subr.msk.bf16.mxu0 %vm992_vm1, %v3975_v27  ;;  %6962 = vmatprep.subr.msk.bf16.mxu1 %vm992_vm1, %v4082_v23 }
 0x6be   : > { %v3864_v6 = vpop.permute.xlu0 %3863 }
 0x6c2   : > { %6747 = vmatmul.mubr.msk.bf16.gmra.mxu0 %vm992_vm1, %v3759_v3  ;;  %v4080_v11 = vpop.permute.xlu0 %4079  ;;  %v10258_v3 = vld [vmem:[#allocation36_spill] sm:$0xff] }
 0x6c3   : > { %6769 = vmatpush3.bf16.xpose.msra.mxu0 %v3997_v9  ;;  %v4102_v15 = vsel %vm992_vm1, %v4080_v11, 0  ;;  %v817_v1 = vadd.f32 %v10258_v3, %v10247_v22 }
 0x6c5   : > { %v922_v27 = vpack.c.bf16 %v817_v1, %v814_v45 }
 0x6c6   : > { %v3965_v35 = vpop.permute.xlu0 %3964 }
 0x6ca   : > { %v3967_v56 = vpop.permute.xlu0 %3966 }
 0x6ce   : > { %v4076_v51 = vpop.permute.xlu0 %4075 }
 0x6cf   : > { %v4096_v30 = vsel %vm992_vm1, %v4076_v51, 0 }
 0x6d2   : > { %v4070_v44 = vpop.permute.xlu0 %4069 }
 0x6d6   : > { %v4074_v53 = vpop.permute.xlu0 %4073 }
 0x6d7   : > { %v3084_v55 = vpop.xlane.xlu1 %3083 }
 0x6d8   : > { %7294 = vrcp.f32 %v3084_v55 }
 0x6db   : > { %v3858_v37 = vpop.permute.xlu1 %3857 }
 0x6df   : > { %v3973_v52 = vpop.permute.xlu1 %3972 }
 0x6e0   : > { %6960 = vmatprep.subr.msk.bf16.mxu0 %vm992_vm1, %v3973_v52  ;;  %v3994_v42 = vsel %vm992_vm1, %v3973_v52, 0 }
 0x6e1   : > { %6771 = vmatpush3.bf16.xpose.msra.mxu0 %v3994_v42 }
 0x6e3   : > { %v3862_v8 = vpop.permute.xlu1 %3861 }
 0x6e5   : > { %v7295_v62 = vpop.eup %7294 }
 0x6e6   : > { %v3152_v20 = vmul.f32 %v7295_v62, %v9063_v41  ;;  %v10248_v41 = vld [vmem:[#allocation32_spill] sm:$0xff] }
 0x6e7   : > { %v3971_v19 = vpop.permute.xlu1 %3970  ;;  %v798_v36 = vadd.f32 %v10248_v41, %v10247_v22 }
 0x6e8   : > { %6961 = vmatprep.subr.msk.bf16.mxu0 %vm992_vm1, %v3971_v19  ;;  %v3991_v40 = vsel %vm992_vm1, %v3971_v19, 0  ;;  %v3169_v54 = vpack.c.bf16 %v3152_v20, %v3151_v31  ;;  %v9278_v20 = vld [vmem:[%s10069_s3 + $0x80] sm:$0xff] }
 0x6e9   : > { %6773 = vmatpush3.bf16.xpose.msra.mxu0 %v3991_v40  ;;  %v916_v28 = vpack.c.bf16 %v801_v61, %v798_v36  ;;  %v9283_v40 = vld [vmem:[%s10069_s3 + $0x98] sm:$0xff]  ;;  %v9298_v36 = vld [vmem:[%s10069_s3 + $0x90] sm:$0xff] }
 0x6ea   : > { %6730 = vmatprep.mubr.msk.bf16.mxu1 %vm1449_vm2, %v3169_v54  ;;  %6798 = vmatprep.subr.bf16.mxu0 %v10246_v16 }
 0x6eb   : > { %v3963_v39 = vpop.permute.xlu1 %3962  ;;  %6731 = vmatmul.mubr.msk.bf16.gmra.mxu1 %vm1449_vm2, %v3170_v10 }
 0x6ec   : > { %6758 = vmatprep.mubr.msk.bf16.mxu1 %vm992_vm1, %v3858_v37  ;;  %6774 = vmatprep.mubr.msk.bf16.mxu0 %vm992_vm1, %v3963_v39  ;;  %v9291_v39 = vld [vmem:[%s10069_s3 + $0x88] sm:$0xff] }
 0x6ef   : > { %v4078_v7 = vpop.permute.xlu1 %4077 }
 0x6f0   : > { %6775 = vmatmul.mubr.msk.bf16.vlgmr.msra.gmra.mxu0 %vm992_vm1, %v3965_v35  ;;  %v4099_v0 = vsel %vm992_vm1, %v4078_v7, 0 }
 0x6f1   : > { %6778 = vmatprep.mubr.msk.bf16.mxu0 %vm992_vm1, %v3967_v56  ;;  %6799 = vmatpush3.bf16.msra.mxu0 %v10246_v16 }
 0x6f2   : > { %6800 = vmatprep.subr.bf16.mxu0 %v916_v28 }
 0x6f3   : > { %6759 = vmatmul.mubr.msk.bf16.vlgmr.msra.gmra.mxu1 %vm992_vm1, %v3860_v24  ;;  %v3969_v46 = vpop.permute.xlu1 %3968 }
 0x6f4   : > { %6783 = vmatpush3.bf16.xpose.msra.mxu1 %v4105_v26  ;;  %6762 = vmatprep.mubr.msk.bf16.mxu1 %vm992_vm1, %v3862_v8 }
 0x6f5   : > { %6963 = vmatprep.subr.msk.bf16.mxu1 %vm992_vm1, %v4080_v11  ;;  %6801 = vmatpush3.bf16.msra.mxu0 %v916_v28 }
 0x6f6   : > { %6802 = vmatprep.subr.bf16.mxu0 %v10252_v14 }
 0x6f7   : > { %v4068_v5 = vpop.permute.xlu1 %4067 }
 0x6f8   : > { %6779 = vmatmul.mubr.msk.bf16.gmra.mxu0 %vm992_vm1, %v3969_v46 }
 0x6f9   : > { %6803 = vmatpush3.bf16.msra.mxu0 %v10252_v14  ;;  %v9320_v14 = vld [vmem:[%s10069_s3 + $0xa0] sm:$0xff] }
 0x6fa   : > { %6804 = vmatprep.subr.bf16.mxu0 %v910_v58 }
 0x6fb   : > { %6763 = vmatmul.mubr.msk.bf16.gmra.mxu1 %vm992_vm1, %v3864_v6  ;;  %v4072_v60 = vpop.permute.xlu1 %4071 }
 0x6fc   : > { %6785 = vmatpush3.bf16.xpose.msra.mxu1 %v4102_v15  ;;  %6790 = vmatprep.mubr.msk.bf16.mxu1 %vm992_vm1, %v4068_v5  ;;  %v9325_v5 = vld [vmem:[%s10069_s3 + $0xa8] sm:$0xff] }
 0x6fd   : > { %6964 = vmatprep.subr.msk.bf16.mxu1 %vm992_vm1, %v4078_v7  ;;  %6805 = vmatpush3.bf16.msra.mxu0 %v910_v58 }
 0x6fe   : > { %6830 = vmatprep.subr.bf16.mxu0 %v10253_v34 }
 0x704   : > { %6787 = vmatpush3.bf16.xpose.msra.mxu1 %v4099_v0 }
 0x705   : > { %6965 = vmatprep.subr.msk.bf16.mxu1 %vm992_vm1, %v4076_v51 }
 0x70c   : > { %6789 = vmatpush3.bf16.xpose.msra.mxu1 %v4096_v30 }
 0x70d   : > { %6814 = vmatprep.subr.bf16.mxu1 %v10254_v43 }
 0x712   : > { %v9243_v24 = vpop.f32.mrf.mxu0 }
 0x713   : > { %6791 = vmatmul.mubr.msk.bf16.vlgmr.msra.gmra.mxu1 %vm992_vm1, %v4070_v44 }
 0x714   : > { %6794 = vmatprep.mubr.msk.bf16.mxu1 %vm992_vm1, %v4072_v60  ;;  %6815 = vmatpush3.bf16.msra.mxu1 %v10254_v43  ;;  %v9245_v57 = vpop.f32.mrf.mxu0 }
 0x715   : > { %6816 = vmatprep.subr.bf16.mxu1 %v928_v17 }
 0x716   : > { %v9247_v23 = vpop.f32.mrf.mxu0  ;;  %v9293_v41 = vpop.f32.mrf.mxu1 }
 0x718   : > { %6817 = vmatpush3.bf16.msra.mxu1 %v928_v17  ;;  %v9249_v9 = vpop.f32.mrf.mxu0  ;;  %v9311_v32 = vpop.f32.mrf.mxu1 }
 0x719   : > { %6818 = vmatprep.subr.bf16.mxu1 %v10259_v29 }
 0x71a   : > { %v9329_v51 = vpop.f32.mrf.mxu1 }
 0x71b   : > { %6795 = vmatmul.mubr.msk.bf16.gmra.mxu1 %vm992_vm1, %v4074_v53 }
 0x71c   : > { %6819 = vmatpush3.bf16.msra.mxu1 %v10259_v29  ;;  %v9347_v17 = vpop.f32.mrf.mxu1 }
 0x71d   : > { %6820 = vmatprep.subr.bf16.mxu1 %v922_v27 }
 0x720   : > { %6821 = vmatpush3.bf16.msra.mxu1 %v922_v27 }
 0x721   : > { %6846 = vmatprep.subr.bf16.mxu1 %v10260_v50 }
 0x723   : > { %v9359_v1 = vpop.f32.mrf.mxu1 }
 0x725   : > { %v9365_v27 = vpop.f32.mrf.mxu1 }
 0x726   : > { %v9251_v55 = vpop.f32.mrf.mxu0 }
 0x728   : > { %v9253_v37 = vpop.f32.mrf.mxu0 }
 0x72a   : > { %v9255_v6 = vpop.f32.mrf.mxu0 }
 0x72c   : > { %v9257_v52 = vpop.f32.mrf.mxu0 }
 0x736   : > { %v9259_v42 = vpop.f32.mrf.mxu0 }
 0x737   : > { %10261 = vst [vmem:[#allocation12_spill] sm:$0xff] %v9259_v42 }
 0x738   : > { %v9261_v13 = vpop.f32.mrf.mxu0 }
 0x73a   : > { %v9263_v2 = vpop.f32.mrf.mxu0 }
 0x73b   : > { %10262 = vst [vmem:[#allocation27_spill] sm:$0xff] %v9263_v2 }
 0x73c   : > { %v9265_v8 = vpop.f32.mrf.mxu0 }
 0x772   : > { %v9267_v33 = vpop.f32.mrf.mxu0 }
 0x773   : > { %10263 = vst [vmem:[#allocation16_spill] sm:$0xff] %v9267_v33 }
 0x774   : > { %v9269_v11 = vpop.f32.mrf.mxu0 }
 0x775   : > { %10264 = vst [vmem:[#allocation23_spill] sm:$0xff] %v9269_v11 }
 0x776   : > { %v9271_v62 = vpop.f32.mrf.mxu0 }
 0x777   : > { %10265 = vst [vmem:[#allocation24_spill] sm:$0xff] %v9271_v62 }
 0x778   : > { %v9273_v63 = vpop.f32.mrf.mxu0 }
 0x779   : > { %10266 = vst [vmem:[#allocation22_spill] sm:$0xff] %v9273_v63 }
 0x77a   : > { %v6744_v31 = vpop.f32.mrf.mxu0 }
 0x77b   : > { %v4174_v16 = vmul.f32 0.17677669, %v6744_v31  ;;  %v9367_v31 = vpop.f32.mrf.mxu1 }
 0x77c   : > { %v3826_v19 = vpop.f32.mrf.mxu0 }
 0x77d   : > { %v4172_v38 = vmul.f32 0.17677669, %v3826_v19  ;;  %v9309_v26 = vadd.f32 %v4174_v16, %v9298_v36  ;;  %v9369_v19 = vpop.f32.mrf.mxu1 }
 0x77e   : > { %v6745_v54 = vpop.f32.mrf.mxu0 }
 0x77f   : > { %v9286_v10 = vadd.f32 %v4172_v38, %v9278_v20  ;;  %v4175_v35 = vmul.f32 0.17677669, %v6745_v54  ;;  %v4242_v0 = vsel %vm1449_vm2, %v9309_v26, -inf  ;;  %v9371_v38 = vpop.f32.mrf.mxu1 }
 0x780   : > { %v3829_v22 = vpop.f32.mrf.mxu0  ;;  %10267 = vst [vmem:[#allocation14_spill] sm:$0xff] %v9371_v38 }
 0x781   : > { %v9301_v48 = vadd.f32 %v4175_v35, %v9283_v40  ;;  %v4173_v61 = vmul.f32 0.17677669, %v3829_v22  ;;  %v4236_v7 = vsel %vm1449_vm2, %v9286_v10, -inf  ;;  %v9373_v54 = vpop.f32.mrf.mxu1 }
 0x782   : > { %4237 = vmax.xlane.f32.xlu1 %v4236_v7  ;;  %v6748_v28 = vpop.f32.mrf.mxu0  ;;  %10268 = vst [vmem:[#allocation18_spill] sm:$0xff] %v9373_v54 }
 0x783   : > { %v9306_v56 = vadd.f32 %v4173_v61, %v9291_v39  ;;  %v4245_v12 = vsel %vm1449_vm2, %v9301_v48, -inf  ;;  %v4178_v30 = vmul.f32 0.17677669, %v6748_v28  ;;  %v9375_v35 = vpop.f32.mrf.mxu1 }
 0x784   : > { %v3842_v18 = vpop.f32.mrf.mxu0  ;;  %10269 = vst [vmem:[#allocation21_spill] sm:$0xff] %v9375_v35 }
 0x785   : > { %v4176_v49 = vmul.f32 0.17677669, %v3842_v18  ;;  %v4239_v46 = vsel %vm1449_vm2, %v9306_v56, -inf  ;;  %v9350_v60 = vadd.f32 %v4178_v30, %v9337_v4  ;;  %v9377_v16 = vpop.f32.mrf.mxu1 }
 0x786   : > { %4246 = vmax.xlane.f32.xlu1 %v4245_v12  ;;  %4240 = vmax.xlane.f32.xlu0 %v4239_v46  ;;  %v6749_v58 = vpop.f32.mrf.mxu0  ;;  %10270 = vst [vmem:[#allocation51_spill] sm:$0xff] %v9377_v16 }
 0x787   : > { %v9332_v43 = vadd.f32 %v4176_v49, %v9320_v14  ;;  %v4179_v25 = vmul.f32 0.17677669, %v6749_v58  ;;  %v4254_v29 = vsel %vm1449_vm2, %v9350_v60, -inf }
 0x788   : > { %v3845_v15 = vpop.f32.mrf.mxu0 }
 0x789   : > { %v4177_v21 = vmul.f32 0.17677669, %v3845_v15  ;;  %v9353_v59 = vadd.f32 %v4179_v25, %v9342_v47  ;;  %v4248_v45 = vsel %vm1449_vm2, %v9332_v43, -inf }
 0x78a   : > { %4243 = vmax.xlane.f32.xlu0 %v4242_v0 }
 0x78b   : > { %v9345_v44 = vadd.f32 %v4177_v21, %v9325_v5  ;;  %v4257_v53 = vsel %vm1449_vm2, %v9353_v59, -inf }
 0x78d   : > { %v4251_v3 = vsel %vm1449_vm2, %v9345_v44, -inf }
 0x78e   : > { %4249 = vmax.xlane.f32.xlu0 %v4248_v45  ;;  %4252 = vmax.xlane.f32.xlu1 %v4251_v3 }
 0x792   : > { %4255 = vmax.xlane.f32.xlu0 %v4254_v29  ;;  %4258 = vmax.xlane.f32.xlu1 %v4257_v53 }
 0x7ab   : > { %v9379_v22 = vpop.f32.mrf.mxu1 }
 0x7ac   : > { %10271 = vst [vmem:[#allocation6_spill] sm:$0xff] %v9379_v22 }
 0x7ad   : > { %v9381_v61 = vpop.f32.mrf.mxu1 }
 0x7ae   : > { %10272 = vst [vmem:[#allocation9_spill] sm:$0xff] %v9381_v61 }
 0x7af   : > { %v9383_v7 = vpop.f32.mrf.mxu1 }
 0x7b0   : > { %10273 = vst [vmem:[#allocation10_spill] sm:$0xff] %v9383_v7  ;;  %v6776_v28 = vpop.f32.mrf.mxu0 }
 0x7b1   : > { %v9385_v18 = vpop.f32.mrf.mxu1 }
 0x7b2   : > { %10274 = vst [vmem:[#allocation3_spill] sm:$0xff] %v9385_v18  ;;  %v4036_v49 = vpop.f32.mrf.mxu0 }
 0x7b3   : > { %v6760_v12 = vpop.f32.mrf.mxu1 }
 0x7b4   : > { %v4182_v58 = vmul.f32 0.17677669, %v6760_v12  ;;  %v6777_v0 = vpop.f32.mrf.mxu0 }
 0x7b5   : > { %v3931_v46 = vpop.f32.mrf.mxu1 }
 0x7b6   : > { %v4180_v15 = vmul.f32 0.17677669, %v3931_v46  ;;  %v9391_v3 = vadd.f32 %v4182_v58, %v9298_v36  ;;  %v4039_v7 = vpop.f32.mrf.mxu0 }
 0x7b7   : > { %v6761_v30 = vpop.f32.mrf.mxu1 }
 0x7b8   : > { %v9388_v25 = vadd.f32 %v4180_v15, %v9278_v20  ;;  %v4183_v21 = vmul.f32 0.17677669, %v6761_v30  ;;  %v4266_v58 = vsel %vm1449_vm2, %v9391_v3, -inf  ;;  %v6780_v61 = vpop.f32.mrf.mxu0 }
 0x7b9   : > { %v3934_v45 = vpop.f32.mrf.mxu1  ;;  %v4194_v62 = vmul.f32 0.17677669, %v6780_v61 }
 0x7ba   : > { %v4181_v29 = vmul.f32 0.17677669, %v3934_v45  ;;  %v4260_v53 = vsel %vm1449_vm2, %v9388_v25, -inf  ;;  %v9399_v46 = vadd.f32 %v4183_v21, %v9283_v40  ;;  %v4052_v50 = vpop.f32.mrf.mxu0 }
 0x7bb   : > { %4261 = vmax.xlane.f32.xlu0 %v4260_v53  ;;  %v6764_v18 = vpop.f32.mrf.mxu1 }
 0x7bc   : > { %v9396_v12 = vadd.f32 %v4181_v29, %v9291_v39  ;;  %v4186_v22 = vmul.f32 0.17677669, %v6764_v18  ;;  %v4188_v29 = vmul.f32 0.17677669, %v4036_v49  ;;  %v4269_v21 = vsel %vm1449_vm2, %v9399_v46, -inf }
 0x7bd   : > { %v3947_v15 = vpop.f32.mrf.mxu1 }
 0x7be   : > { %v4184_v30 = vmul.f32 0.17677669, %v3947_v15  ;;  %v4263_v45 = vsel %vm1449_vm2, %v9396_v12, -inf  ;;  %v9411_v18 = vadd.f32 %v4186_v22, %v9337_v4  ;;  %v9419_v49 = vadd.f32 %v4188_v29, %v9278_v20 }
 0x7bf   : > { %4267 = vmax.xlane.f32.xlu0 %v4266_v58  ;;  %4264 = vmax.xlane.f32.xlu1 %v4263_v45  ;;  %v6765_v53 = vpop.f32.mrf.mxu1  ;;  %v4189_v45 = vmul.f32 0.17677669, %v4039_v7  ;;  %v4192_v7 = vmul.f32 0.17677669, %v4052_v50 }
 0x7c0   : > { %v9406_v35 = vadd.f32 %v4184_v30, %v9320_v14  ;;  %v4187_v15 = vmul.f32 0.17677669, %v6765_v53  ;;  %v4190_v30 = vmul.f32 0.17677669, %v6776_v28  ;;  %v6781_v53 = vpop.f32.mrf.mxu0 }
 0x7c1   : > { %v3950_v38 = vpop.f32.mrf.mxu1  ;;  %v9432_v28 = vadd.f32 %v4189_v45, %v9291_v39 }
 0x7c2   : > { %v4185_v16 = vmul.f32 0.17677669, %v3950_v38  ;;  %v4272_v54 = vsel %vm1449_vm2, %v9406_v35, -inf  ;;  %v9422_v34 = vadd.f32 %v4187_v15, %v9342_v47  ;;  %v4278_v38 = vsel %vm1449_vm2, %v9411_v18, -inf  ;;  %v4055_v15 = vpop.f32.mrf.mxu0 }
 0x7c3   : > { %4270 = vmax.xlane.f32.xlu1 %v4269_v21  ;;  %4273 = vmax.xlane.f32.xlu0 %v4272_v54  ;;  %v9429_v54 = vadd.f32 %v4190_v30, %v9298_v36  ;;  %v4284_v21 = vsel %vm1449_vm2, %v9419_v49, -inf  ;;  %v4193_v50 = vmul.f32 0.17677669, %v4055_v15  ;;  %v4287_v45 = vsel %vm1449_vm2, %v9432_v28, -inf }
 0x7c4   : > { %v9416_v58 = vadd.f32 %v4185_v16, %v9325_v5  ;;  %v4191_v16 = vmul.f32 0.17677669, %v6777_v0  ;;  %v4281_v29 = vsel %vm1449_vm2, %v9422_v34, -inf  ;;  %v9444_v0 = vadd.f32 %v4192_v7, %v9320_v14 }
 0x7c5   : > { %v9452_v61 = vadd.f32 %v4193_v50, %v9325_v5 }
 0x7c6   : > { %v4275_v22 = vsel %vm1449_vm2, %v9416_v58, -inf  ;;  %v9441_v30 = vadd.f32 %v4191_v16, %v9283_v40  ;;  %v4296_v7 = vsel %vm1449_vm2, %v9444_v0, -inf }
 0x7c7   : > { %4279 = vmax.xlane.f32.xlu0 %v4278_v38  ;;  %4276 = vmax.xlane.f32.xlu1 %v4275_v22  ;;  %v4290_v38 = vsel %vm1449_vm2, %v9429_v54, -inf  ;;  %v9449_v22 = vadd.f32 %v4194_v62, %v9337_v4  ;;  %v4299_v50 = vsel %vm1449_vm2, %v9452_v61, -inf }
 0x7c8   : > { %v4293_v16 = vsel %vm1449_vm2, %v9441_v30, -inf }
 0x7cb   : > { %4282 = vmax.xlane.f32.xlu1 %v4281_v29  ;;  %4285 = vmax.xlane.f32.xlu0 %v4284_v21  ;;  %v4195_v29 = vmul.f32 0.17677669, %v6781_v53 }
 0x7cd   : > { %v9461_v62 = vadd.f32 %v4195_v29, %v9342_v47 }
 0x7cf   : > { %4291 = vmax.xlane.f32.xlu0 %v4290_v38  ;;  %4288 = vmax.xlane.f32.xlu1 %v4287_v45  ;;  %v4302_v38 = vsel %vm1449_vm2, %v9449_v22, -inf  ;;  %v4305_v29 = vsel %vm1449_vm2, %v9461_v62, -inf }
 0x7d3   : > { %v6792_v21 = vpop.f32.mrf.mxu1  ;;  %4294 = vmax.xlane.f32.xlu1 %v4293_v16  ;;  %4297 = vmax.xlane.f32.xlu0 %v4296_v7 }
 0x7d4   : > { %v4198_v53 = vmul.f32 0.17677669, %v6792_v21 }
 0x7d5   : > { %v4141_v15 = vpop.f32.mrf.mxu1 }
 0x7d6   : > { %v4196_v45 = vmul.f32 0.17677669, %v4141_v15  ;;  %v9469_v11 = vadd.f32 %v4198_v53, %v9298_v36 }
 0x7d7   : > { %v6793_v33 = vpop.f32.mrf.mxu1  ;;  %4303 = vmax.xlane.f32.xlu0 %v4302_v38  ;;  %4300 = vmax.xlane.f32.xlu1 %v4299_v50 }
 0x7d8   : > { %v9466_v63 = vadd.f32 %v4196_v45, %v9278_v20  ;;  %v4199_v16 = vmul.f32 0.17677669, %v6793_v33  ;;  %v4314_v53 = vsel %vm1449_vm2, %v9469_v11, -inf }
 0x7d9   : > { %v4144_v7 = vpop.f32.mrf.mxu1 }
 0x7da   : > { %v4197_v2 = vmul.f32 0.17677669, %v4144_v7  ;;  %v4308_v21 = vsel %vm1449_vm2, %v9466_v63, -inf  ;;  %v9479_v20 = vadd.f32 %v4199_v16, %v9283_v40 }
 0x7db   : > { %v6796_v15 = vpop.f32.mrf.mxu1  ;;  %4306 = vmax.xlane.f32.xlu1 %v4305_v29  ;;  %4309 = vmax.xlane.f32.xlu0 %v4308_v21 }
 0x7dc   : > { %v9476_v38 = vadd.f32 %v4197_v2, %v9291_v39  ;;  %v4202_v45 = vmul.f32 0.17677669, %v6796_v15  ;;  %v4317_v40 = vsel %vm1449_vm2, %v9479_v20, -inf }
 0x7dd   : > { %v4157_v33 = vpop.f32.mrf.mxu1 }
 0x7de   : > { %v4200_v36 = vmul.f32 0.17677669, %v4157_v33  ;;  %v4311_v50 = vsel %vm1449_vm2, %v9476_v38, -inf  ;;  %v9491_v39 = vadd.f32 %v4202_v45, %v9337_v4 }
 0x7df   : > { %v6797_v7 = vpop.f32.mrf.mxu1  ;;  %4315 = vmax.xlane.f32.xlu0 %v4314_v53  ;;  %4312 = vmax.xlane.f32.xlu1 %v4311_v50 }
 0x7e0   : > { %v9486_v29 = vadd.f32 %v4200_v36, %v9320_v14  ;;  %v4203_v16 = vmul.f32 0.17677669, %v6797_v7  ;;  %v4326_v36 = vsel %vm1449_vm2, %v9491_v39, -inf }
 0x7e1   : > { %v4160_v2 = vpop.f32.mrf.mxu1 }
 0x7e2   : > { %v4201_v21 = vmul.f32 0.17677669, %v4160_v2  ;;  %v4320_v15 = vsel %vm1449_vm2, %v9486_v29, -inf  ;;  %v9499_v14 = vadd.f32 %v4203_v16, %v9342_v47 }
 0x7e3   : > { %4318 = vmax.xlane.f32.xlu1 %v4317_v40  ;;  %4321 = vmax.xlane.f32.xlu0 %v4320_v15 }
 0x7e4   : > { %v9496_v33 = vadd.f32 %v4201_v21, %v9325_v5  ;;  %v4329_v45 = vsel %vm1449_vm2, %v9499_v14, -inf }
 0x7e6   : > { %v4323_v4 = vsel %vm1449_vm2, %v9496_v33, -inf }
 0x7e7   : > { %4327 = vmax.xlane.f32.xlu0 %v4326_v36  ;;  %4324 = vmax.xlane.f32.xlu1 %v4323_v4 }
 0x7eb   : > { %4330 = vmax.xlane.f32.xlu1 %v4329_v45 }
 0x80b   : > { %v4238_v53 = vpop.xlane.xlu1 %4237 }
 0x80c   : > { %v4332_v50 = vsub.f32 %v9286_v10, %v4238_v53 }
 0x80e   : > { %v4364_v5 = vmul.f32 1.442695, %v4332_v50 }
 0x80f   : > { %v4247_v7 = vpop.xlane.xlu1 %4246  ;;  %v4241_v2 = vpop.xlane.xlu0 %4240 }
 0x810   : > { %7296 = vpow2.f32 %v4364_v5  ;;  %v4335_v47 = vsub.f32 %v9301_v48, %v4247_v7  ;;  %v4333_v40 = vsub.f32 %v9306_v56, %v4241_v2 }
 0x812   : > { %v4366_v16 = vmul.f32 1.442695, %v4333_v40  ;;  %v4370_v21 = vmul.f32 1.442695, %v4335_v47 }
 0x813   : > { %v4244_v15 = vpop.xlane.xlu0 %4243 }
 0x814   : > { %v4334_v36 = vsub.f32 %v9309_v26, %v4244_v15  ;;  %7298 = vpow2.f32 %v4366_v16 }
 0x815   : > { %7300 = vpow2.f32 %v4370_v21 }
 0x816   : > { %v4368_v4 = vmul.f32 1.442695, %v4334_v36 }
 0x817   : > { %v4253_v45 = vpop.xlane.xlu1 %4252  ;;  %v4250_v42 = vpop.xlane.xlu0 %4249 }
 0x818   : > { %7302 = vpow2.f32 %v4368_v4  ;;  %v4337_v10 = vsub.f32 %v9345_v44, %v4253_v45  ;;  %v4336_v53 = vsub.f32 %v9332_v43, %v4250_v42 }
 0x81a   : > { %v4374_v50 = vmul.f32 1.442695, %v4337_v10  ;;  %v4372_v5 = vmul.f32 1.442695, %v4336_v53 }
 0x81b   : > { %v4259_v48 = vpop.xlane.xlu1 %4258  ;;  %v4256_v7 = vpop.xlane.xlu0 %4255 }
 0x81c   : > { %7304 = vpow2.f32 %v4374_v50  ;;  %v4339_v56 = vsub.f32 %v9353_v59, %v4259_v48  ;;  %v4338_v2 = vsub.f32 %v9350_v60, %v4256_v7 }
 0x81d   : > { %v9515_v26 = vpop.eup %7296  ;;  %7306 = vpow2.f32 %v4372_v5 }
 0x81e   : > { %v4378_v47 = vmul.f32 1.442695, %v4339_v56  ;;  %v4376_v40 = vmul.f32 1.442695, %v4338_v2  ;;  %v4428_v16 = vsel %vm1449_vm2, %v9515_v26, 0.0 }
 0x81f   : > { %4429 = vadd.xlane.f32.xlu0 %v4428_v16 }
 0x820   : > { %7308 = vpow2.f32 %v4378_v47 }
 0x821   : > { %7310 = vpow2.f32 %v4376_v40  ;;  %v9519_v42 = vpop.eup %7298 }
 0x822   : > { %v4431_v43 = vsel %vm1449_vm2, %v9519_v42, 0.0  ;;  %v9523_v44 = vpop.eup %7300 }
 0x823   : > { %4432 = vadd.xlane.f32.xlu1 %v4431_v43  ;;  %v4437_v21 = vsel %vm1449_vm2, %v9523_v44, 0.0 }
 0x825   : > { %v9525_v60 = vpop.eup %7302 }
 0x826   : > { %v4434_v59 = vsel %vm1449_vm2, %v9525_v60, 0.0 }
 0x827   : > { %4435 = vadd.xlane.f32.xlu0 %v4434_v59  ;;  %4438 = vadd.xlane.f32.xlu1 %v4437_v21 }
 0x829   : > { %v9531_v15 = vpop.eup %7304 }
 0x82a   : > { %v9533_v36 = vpop.eup %7306  ;;  %v4443_v4 = vsel %vm1449_vm2, %v9531_v15, 0.0 }
 0x82b   : > { %v4440_v45 = vsel %vm1449_vm2, %v9533_v36, 0.0  ;;  %4444 = vadd.xlane.f32.xlu1 %v4443_v4 }
 0x82c   : > { %4441 = vadd.xlane.f32.xlu0 %v4440_v45 }
 0x82d   : > { %v9539_v10 = vpop.eup %7308 }
 0x82e   : > { %v9541_v53 = vpop.eup %7310  ;;  %v4449_v50 = vsel %vm1449_vm2, %v9539_v10, 0.0 }
 0x82f   : > { %v4446_v5 = vsel %vm1449_vm2, %v9541_v53, 0.0  ;;  %4450 = vadd.xlane.f32.xlu1 %v4449_v50 }
 0x830   : > { %4447 = vadd.xlane.f32.xlu0 %v4446_v5 }
 0x844   : > { %v4262_v48 = vpop.xlane.xlu0 %4261 }
 0x845   : > { %v4340_v7 = vsub.f32 %v9388_v25, %v4262_v48 }
 0x847   : > { %v4380_v56 = vmul.f32 1.442695, %v4340_v7 }
 0x848   : > { %v4265_v2 = vpop.xlane.xlu1 %4264  ;;  %v4268_v47 = vpop.xlane.xlu0 %4267 }
 0x849   : > { %7312 = vpow2.f32 %v4380_v56  ;;  %v4341_v40 = vsub.f32 %v9396_v12, %v4265_v2  ;;  %v4342_v16 = vsub.f32 %v9391_v3, %v4268_v47 }
 0x84b   : > { %v4382_v43 = vmul.f32 1.442695, %v4341_v40  ;;  %v4384_v59 = vmul.f32 1.442695, %v4342_v16 }
 0x84c   : > { %v4271_v21 = vpop.xlane.xlu1 %4270  ;;  %v4274_v4 = vpop.xlane.xlu0 %4273 }
 0x84d   : > { %7314 = vpow2.f32 %v4382_v43  ;;  %v4343_v45 = vsub.f32 %v9399_v46, %v4271_v21  ;;  %v4344_v50 = vsub.f32 %v9406_v35, %v4274_v4 }
 0x84e   : > { %7316 = vpow2.f32 %v4384_v59 }
 0x84f   : > { %v4386_v5 = vmul.f32 1.442695, %v4343_v45  ;;  %v4388_v25 = vmul.f32 1.442695, %v4344_v50 }
 0x850   : > { %v4277_v48 = vpop.xlane.xlu1 %4276  ;;  %v4280_v7 = vpop.xlane.xlu0 %4279 }
 0x851   : > { %7318 = vpow2.f32 %v4386_v5  ;;  %v4345_v56 = vsub.f32 %v9416_v58, %v4277_v48  ;;  %v4346_v12 = vsub.f32 %v9411_v18, %v4280_v7 }
 0x852   : > { %7320 = vpow2.f32 %v4388_v25 }
 0x853   : > { %v4390_v3 = vmul.f32 1.442695, %v4345_v56  ;;  %v4392_v2 = vmul.f32 1.442695, %v4346_v12 }
 0x854   : > { %v4283_v47 = vpop.xlane.xlu1 %4282  ;;  %v4286_v40 = vpop.xlane.xlu0 %4285 }
 0x855   : > { %7322 = vpow2.f32 %v4390_v3  ;;  %v4347_v46 = vsub.f32 %v9422_v34, %v4283_v47  ;;  %v4348_v35 = vsub.f32 %v9419_v49, %v4286_v40 }
 0x856   : > { %v9556_v16 = vpop.eup %7312  ;;  %7324 = vpow2.f32 %v4392_v2 }
 0x857   : > { %v4394_v43 = vmul.f32 1.442695, %v4347_v46  ;;  %v4396_v59 = vmul.f32 1.442695, %v4348_v35  ;;  %v4452_v58 = vsel %vm1449_vm2, %v9556_v16, 0.0 }
 0x858   : > { %v4289_v21 = vpop.xlane.xlu1 %4288  ;;  %4453 = vadd.xlane.f32.xlu0 %v4452_v58  ;;  %v4292_v18 = vpop.xlane.xlu0 %4291 }
 0x859   : > { %7326 = vpow2.f32 %v4394_v43  ;;  %v4349_v4 = vsub.f32 %v9432_v28, %v4289_v21  ;;  %v4350_v45 = vsub.f32 %v9429_v54, %v4292_v18 }
 0x85a   : > { %v9562_v50 = vpop.eup %7314  ;;  %7328 = vpow2.f32 %v4396_v59 }
 0x85b   : > { %v9564_v34 = vpop.eup %7316  ;;  %v4398_v49 = vmul.f32 1.442695, %v4349_v4  ;;  %v4400_v5 = vmul.f32 1.442695, %v4350_v45  ;;  %v4455_v25 = vsel %vm1449_vm2, %v9562_v50, 0.0 }
 0x85c   : > { %v4295_v48 = vpop.xlane.xlu1 %4294  ;;  %4456 = vadd.xlane.f32.xlu1 %v4455_v25  ;;  %v4458_v7 = vsel %vm1449_vm2, %v9564_v34, 0.0  ;;  %v4298_v56 = vpop.xlane.xlu0 %4297 }
 0x85d   : > { %7330 = vpow2.f32 %v4398_v49  ;;  %v4351_v28 = vsub.f32 %v9441_v30, %v4295_v48  ;;  %4459 = vadd.xlane.f32.xlu0 %v4458_v7  ;;  %v4352_v54 = vsub.f32 %v9444_v0, %v4298_v56 }
 0x85e   : > { %v9572_v12 = vpop.eup %7318  ;;  %7332 = vpow2.f32 %v4400_v5 }
 0x85f   : > { %v9574_v3 = vpop.eup %7320  ;;  %v4402_v2 = vmul.f32 1.442695, %v4351_v28  ;;  %v4404_v47 = vmul.f32 1.442695, %v4352_v54  ;;  %v4461_v40 = vsel %vm1449_vm2, %v9572_v12, 0.0 }
 0x860   : > { %v4301_v46 = vpop.xlane.xlu1 %4300  ;;  %4462 = vadd.xlane.f32.xlu1 %v4461_v40  ;;  %v4464_v35 = vsel %vm1449_vm2, %v9574_v3, 0.0  ;;  %v4304_v43 = vpop.xlane.xlu0 %4303 }
 0x861   : > { %7334 = vpow2.f32 %v4402_v2  ;;  %v4353_v30 = vsub.f32 %v9452_v61, %v4301_v46  ;;  %4465 = vadd.xlane.f32.xlu0 %v4464_v35  ;;  %v4354_v0 = vsub.f32 %v9449_v22, %v4304_v43 }
 0x862   : > { %v9582_v59 = vpop.eup %7322  ;;  %7336 = vpow2.f32 %v4404_v47 }
 0x863   : > { %v9584_v58 = vpop.eup %7324  ;;  %v4406_v21 = vmul.f32 1.442695, %v4353_v30  ;;  %v4408_v18 = vmul.f32 1.442695, %v4354_v0  ;;  %v4467_v4 = vsel %vm1449_vm2, %v9582_v59, 0.0 }
 0x864   : > { %v4307_v45 = vpop.xlane.xlu1 %4306  ;;  %4468 = vadd.xlane.f32.xlu1 %v4467_v4  ;;  %v4470_v49 = vsel %vm1449_vm2, %v9584_v58, 0.0  ;;  %v4310_v5 = vpop.xlane.xlu0 %4309 }
 0x865   : > { %7338 = vpow2.f32 %v4406_v21  ;;  %v4355_v61 = vsub.f32 %v9461_v62, %v4307_v45  ;;  %4471 = vadd.xlane.f32.xlu0 %v4470_v49  ;;  %v4356_v22 = vsub.f32 %v9466_v63, %v4310_v5 }
 0x866   : > { %v9592_v25 = vpop.eup %7326  ;;  %7340 = vpow2.f32 %v4408_v18 }
 0x867   : > { %v9594_v48 = vpop.eup %7328  ;;  %v4410_v7 = vmul.f32 1.442695, %v4355_v61  ;;  %v4412_v56 = vmul.f32 1.442695, %v4356_v22  ;;  %v4473_v28 = vsel %vm1449_vm2, %v9592_v25, 0.0 }
 0x868   : > { %v4313_v54 = vpop.xlane.xlu1 %4312  ;;  %4474 = vadd.xlane.f32.xlu1 %v4473_v28  ;;  %v4476_v2 = vsel %vm1449_vm2, %v9594_v48, 0.0  ;;  %v4316_v47 = vpop.xlane.xlu0 %4315 }
 0x869   : > { %7342 = vpow2.f32 %v4410_v7  ;;  %v4357_v62 = vsub.f32 %v9476_v38, %v4313_v54  ;;  %4477 = vadd.xlane.f32.xlu0 %v4476_v2  ;;  %v4358_v63 = vsub.f32 %v9469_v11, %v4316_v47 }
 0x86a   : > { %v9602_v40 = vpop.eup %7330  ;;  %7344 = vpow2.f32 %v4412_v56 }
 0x86b   : > { %v9604_v46 = vpop.eup %7332  ;;  %v4414_v35 = vmul.f32 1.442695, %v4357_v62  ;;  %v4416_v43 = vmul.f32 1.442695, %v4358_v63  ;;  %v4479_v30 = vsel %vm1449_vm2, %v9602_v40, 0.0 }
 0x86c   : > { %v4319_v0 = vpop.xlane.xlu1 %4318  ;;  %4480 = vadd.xlane.f32.xlu1 %v4479_v30  ;;  %v4482_v21 = vsel %vm1449_vm2, %v9604_v46, 0.0  ;;  %v4322_v18 = vpop.xlane.xlu0 %4321 }
 0x86d   : > { %7346 = vpow2.f32 %v4414_v35  ;;  %v4359_v38 = vsub.f32 %v9479_v20, %v4319_v0  ;;  %4483 = vadd.xlane.f32.xlu0 %v4482_v21  ;;  %v4360_v11 = vsub.f32 %v9486_v29, %v4322_v18 }
 0x86e   : > { %v9612_v4 = vpop.eup %7334  ;;  %7348 = vpow2.f32 %v4416_v43 }
 0x86f   : > { %v9614_v45 = vpop.eup %7336  ;;  %v4418_v49 = vmul.f32 1.442695, %v4359_v38  ;;  %v4420_v5 = vmul.f32 1.442695, %v4360_v11  ;;  %v4485_v61 = vsel %vm1449_vm2, %v9612_v4, 0.0 }
 0x870   : > { %v4325_v22 = vpop.xlane.xlu1 %4324  ;;  %4486 = vadd.xlane.f32.xlu1 %v4485_v61  ;;  %v4488_v7 = vsel %vm1449_vm2, %v9614_v45, 0.0  ;;  %v4328_v56 = vpop.xlane.xlu0 %4327 }
 0x871   : > { %7350 = vpow2.f32 %v4418_v49  ;;  %v4361_v20 = vsub.f32 %v9496_v33, %v4325_v22  ;;  %4489 = vadd.xlane.f32.xlu0 %v4488_v7  ;;  %v4362_v29 = vsub.f32 %v9491_v39, %v4328_v56 }
 0x872   : > { %v9622_v28 = vpop.eup %7338  ;;  %7352 = vpow2.f32 %v4420_v5 }
 0x873   : > { %v9624_v54 = vpop.eup %7340  ;;  %v4422_v2 = vmul.f32 1.442695, %v4361_v20  ;;  %v4424_v47 = vmul.f32 1.442695, %v4362_v29  ;;  %v4491_v62 = vsel %vm1449_vm2, %v9622_v28, 0.0 }
 0x874   : > { %v4331_v63 = vpop.xlane.xlu1 %4330  ;;  %4492 = vadd.xlane.f32.xlu1 %v4491_v62  ;;  %v4494_v35 = vsel %vm1449_vm2, %v9624_v54, 0.0  ;;  %v6103_v62 = vpack.c.bf16 %v9249_v9, %v9249_v9  ;;  %v6110_v9 = vpack.c.bf16 %v9311_v32, %v9311_v32  ;;  %v6114_v32 = vpack.c.bf16 %v9365_v27, %v9365_v27 }
 0x875   : > { %7354 = vpow2.f32 %v4422_v2  ;;  %v4363_v33 = vsub.f32 %v9499_v14, %v4331_v63  ;;  %4495 = vadd.xlane.f32.xlu0 %v4494_v35  ;;  %v6102_v63 = vpack.c.bf16 %v9245_v57, %v9245_v57  ;;  %v6104_v35 = vpack.c.bf16 %v9243_v24, %v9243_v24 }
 0x876   : > { %v9631_v39 = vpop.eup %7342  ;;  %7356 = vpow2.f32 %v4424_v47  ;;  %v6107_v57 = vpack.c.bf16 %v9257_v52, %v9257_v52  ;;  %v6108_v24 = vpack.c.bf16 %v9251_v55, %v9251_v55  ;;  %v6112_v55 = vpack.c.bf16 %v9293_v41, %v9293_v41 }
 0x877   : > { %v9633_v43 = vpop.eup %7344  ;;  %v4426_v30 = vmul.f32 1.442695, %v4363_v33  ;;  %v4497_v0 = vsel %vm1449_vm2, %v9631_v39, 0.0  ;;  %v6105_v33 = vpack.c.bf16 %v9247_v23, %v9247_v23  ;;  %v6109_v23 = vpack.c.bf16 %v9255_v6, %v9255_v6 }
 0x878   : > { %4498 = vadd.xlane.f32.xlu1 %v4497_v0  ;;  %v4500_v21 = vsel %vm1449_vm2, %v9633_v43, 0.0  ;;  %v6113_v6 = vpack.c.bf16 %v9329_v51, %v9329_v51  ;;  %v6116_v51 = vpack.c.bf16 %v9359_v1, %v9359_v1  ;;  %v6119_v1 = vpack.c.bf16 %v9265_v8, %v9265_v8 }
 0x879   : > { %7358 = vpow2.f32 %v4426_v30  ;;  %4501 = vadd.xlane.f32.xlu0 %v4500_v21  ;;  %v6106_v30 = vpack.c.bf16 %v9253_v37, %v9253_v37  ;;  %v6111_v37 = vpack.c.bf16 %v9347_v17, %v9347_v17  ;;  %v6115_v21 = vpack.c.bf16 %v9369_v19, %v9369_v19 }
 0x87a   : > { %v9639_v18 = vpop.eup %7346  ;;  %v6118_v19 = vpack.c.bf16 %v9261_v13, %v9261_v13 }
 0x87b   : > { %v9641_v38 = vpop.eup %7348  ;;  %v4503_v14 = vsel %vm1449_vm2, %v9639_v18, 0.0 }
 0x87c   : > { %4504 = vadd.xlane.f32.xlu1 %v4503_v14  ;;  %v4506_v11 = vsel %vm1449_vm2, %v9641_v38, 0.0  ;;  %v6117_v14 = vpack.c.bf16 %v9367_v31, %v9367_v31 }
 0x87d   : > { %4507 = vadd.xlane.f32.xlu0 %v4506_v11 }
 0x87e   : > { %v9647_v49 = vpop.eup %7350 }
 0x87f   : > { %v9649_v5 = vpop.eup %7352  ;;  %v4509_v61 = vsel %vm1449_vm2, %v9647_v49, 0.0 }
 0x880   : > { %4510 = vadd.xlane.f32.xlu1 %v4509_v61  ;;  %v4512_v22 = vsel %vm1449_vm2, %v9649_v5, 0.0 }
 0x881   : > { %4513 = vadd.xlane.f32.xlu0 %v4512_v22 }
 0x882   : > { %v9655_v7 = vpop.eup %7354 }
 0x883   : > { %v9657_v56 = vpop.eup %7356  ;;  %v4515_v20 = vsel %vm1449_vm2, %v9655_v7, 0.0 }
 0x884   : > { %4516 = vadd.xlane.f32.xlu1 %v4515_v20  ;;  %v4518_v29 = vsel %vm1449_vm2, %v9657_v56, 0.0 }
 0x885   : > { %4519 = vadd.xlane.f32.xlu0 %v4518_v29  ;;  %v10275_v29 = vld [vmem:[#allocation12_spill] sm:$0xff] }
 0x886   : > { %v9663_v2 = vpop.eup %7358 }
 0x887   : > { %v4521_v47 = vsel %vm1449_vm2, %v9663_v2, 0.0 }
 0x888   : > { %4522 = vadd.xlane.f32.xlu1 %v4521_v47  ;;  %v6120_v47 = vpack.c.bf16 %v10275_v29, %v10275_v29 }
 0x899   : > { %3625 = vrot.lane.b32.xlu1 %v6103_v62, %s7433_s22 }
 0x89b   : > { %3623 = vrot.lane.b32.xlu0 %v6102_v63, %s7433_s22  ;;  %v10276_v63 = vld [vmem:[#allocation27_spill] sm:$0xff] }
 0x89d   : > { %3627 = vrot.lane.b32.xlu1 %v6104_v35, %s7433_s22  ;;  %v6121_v35 = vpack.c.bf16 %v10276_v63, %v10276_v63 }
 0x89f   : > { %3629 = vrot.lane.b32.xlu0 %v6105_v33, %s7433_s22 }
 0x8a1   : > { %3631 = vrot.lane.b32.xlu1 %v6106_v30, %s7433_s22 }
 0x8a3   : > { %3633 = vrot.lane.b32.xlu0 %v6107_v57, %s7433_s22  ;;  %v10277_v57 = vld [vmem:[#allocation23_spill] sm:$0xff] }
 0x8a5   : > { %3635 = vrot.lane.b32.xlu1 %v6108_v24, %s7433_s22  ;;  %v6122_v24 = vpack.c.bf16 %v10277_v57, %v10277_v57 }
 0x8a7   : > { %3637 = vrot.lane.b32.xlu0 %v6109_v23, %s7433_s22 }
 0x8a8   : > { %v4430_v52 = vpop.xlane.xlu0 %4429 }
 0x8a9   : > { %3639 = vrot.lane.b32.xlu1 %v6110_v9, %s7433_s22  ;;  %7360 = vrcp.f32 %v4430_v52 }
 0x8ab   : > { %3641 = vrot.lane.b32.xlu0 %v6111_v37, %s7433_s22 }
 0x8ac   : > { %v4433_v0 = vpop.xlane.xlu1 %4432 }
 0x8ad   : > { %3643 = vrot.lane.b32.xlu1 %v6112_v55, %s7433_s22  ;;  %7362 = vrcp.f32 %v4433_v0  ;;  %v10279_v55 = vld [vmem:[#allocation16_spill] sm:$0xff] }
 0x8af   : > { %3645 = vrot.lane.b32.xlu0 %v6113_v6, %s7433_s22  ;;  %v6124_v6 = vpack.c.bf16 %v10279_v55, %v10279_v55 }
 0x8b0   : > { %v4436_v17 = vpop.xlane.xlu0 %4435  ;;  %v4439_v41 = vpop.xlane.xlu1 %4438 }
 0x8b1   : > { %7364 = vrcp.f32 %v4436_v17  ;;  %3647 = vrot.lane.b32.xlu1 %v6114_v32, %s7433_s22  ;;  %v10281_v17 = vld [vmem:[#allocation43_spill] sm:$0xff] }
 0x8b2   : > { %7366 = vrcp.f32 %v4439_v41  ;;  %v10282_v41 = vld [vmem:[#allocation44_spill] sm:$0xff] }
 0x8b3   : > { %3649 = vrot.lane.b32.xlu0 %v6115_v21, %s7433_s22 }
 0x8b4   : > { %v4445_v27 = vpop.xlane.xlu1 %4444 }
 0x8b5   : > { %v4442_v11 = vpop.xlane.xlu0 %4441  ;;  %3651 = vrot.lane.b32.xlu1 %v6116_v51, %s7433_s22  ;;  %7368 = vrcp.f32 %v4445_v27 }
 0x8b6   : > { %7370 = vrcp.f32 %v4442_v11  ;;  %v7361_v61 = vpop.eup %7360 }
 0x8b7   : > { %3653 = vrot.lane.b32.xlu0 %v6117_v14, %s7433_s22  ;;  %v4556_v13 = vmul.f32 %v7361_v61, %v9515_v26  ;;  %v10278_v26 = vld [vmem:[#allocation22_spill] sm:$0xff] }
 0x8b8   : > { %v4451_v22 = vpop.xlane.xlu1 %4450 }
 0x8b9   : > { %v4448_v20 = vpop.xlane.xlu0 %4447  ;;  %3655 = vrot.lane.b32.xlu1 %v6118_v19, %s7433_s22  ;;  %7372 = vrcp.f32 %v4451_v22  ;;  %v10283_v19 = vld [vmem:[#allocation41_spill] sm:$0xff] }
 0x8ba   : > { %v7363_v31 = vpop.eup %7362  ;;  %7374 = vrcp.f32 %v4448_v20 }
 0x8bb   : > { %3657 = vrot.lane.b32.xlu0 %v6119_v1, %s7433_s22  ;;  %v4557_v62 = vmul.f32 %v7363_v31, %v9519_v42  ;;  %v6123_v42 = vpack.c.bf16 %v10278_v26, %v10278_v26 }
 0x8bd   : > { %3659 = vrot.lane.b32.xlu1 %v6120_v47, %s7433_s22  ;;  %v4588_v33 = vpack.c.bf16 %v4557_v62, %v4556_v13 }
 0x8be   : > { %v7365_v8 = vpop.eup %7364 }
 0x8bf   : > { %v7367_v30 = vpop.eup %7366  ;;  %v4558_v23 = vmul.f32 %v7365_v8, %v9525_v60  ;;  %3661 = vrot.lane.b32.xlu0 %v6121_v35, %s7433_s22  ;;  %6806 = vmatprep.mubr.msk.bf16.mxu0 %vm1449_vm2, %v4588_v33 }
 0x8c0   : > { %v4559_v9 = vmul.f32 %v7367_v30, %v9523_v44  ;;  %v10280_v44 = vld [vmem:[#allocation24_spill] sm:$0xff] }
 0x8c1   : > { %3663 = vrot.lane.b32.xlu1 %v6122_v24, %s7433_s22  ;;  %v6125_v32 = vpack.c.bf16 %v10280_v44, %v10280_v44 }
 0x8c2   : > { %v4589_v37 = vpack.c.bf16 %v4559_v9, %v4558_v23  ;;  %v7369_v52 = vpop.eup %7368 }
 0x8c3   : > { %3665 = vrot.lane.b32.xlu0 %v6123_v42, %s7433_s22  ;;  %v7371_v0 = vpop.eup %7370  ;;  %v4561_v60 = vmul.f32 %v7369_v52, %v9531_v15 }
 0x8c4   : > { %6807 = vmatmul.mubr.msk.bf16.vlgmr.msra.gmra.mxu0 %vm1449_vm2, %v4589_v37  ;;  %v4560_v21 = vmul.f32 %v7371_v0, %v9533_v36  ;;  %v10284_v36 = vld [vmem:[#allocation42_spill] sm:$0xff] }
 0x8c5   : > { %6831 = vmatpush3.bf16.msra.mxu0 %v10281_v17  ;;  %3667 = vrot.lane.b32.xlu1 %v6124_v6, %s7433_s22 }
 0x8c6   : > { %6832 = vmatprep.subr.bf16.mxu0 %v10282_v41  ;;  %v7373_v51 = vpop.eup %7372  ;;  %v4590_v14 = vpack.c.bf16 %v4561_v60, %v4560_v21  ;;  %v10286_v60 = vld [vmem:[#allocation48_spill] sm:$0xff] }
 0x8c7   : > { %3669 = vrot.lane.b32.xlu0 %v6125_v32, %s7433_s22  ;;  %v7375_v27 = vpop.eup %7374  ;;  %v4563_v11 = vmul.f32 %v7373_v51, %v9539_v10  ;;  %v10287_v51 = vld [vmem:[#allocation45_spill] sm:$0xff] }
 0x8c8   : > { %6810 = vmatprep.mubr.msk.bf16.mxu0 %vm1449_vm2, %v4590_v14  ;;  %v4562_v15 = vmul.f32 %v7375_v27, %v9541_v53 }
 0x8c9   : > { %6833 = vmatpush3.bf16.msra.mxu0 %v10282_v41 }
 0x8ca   : > { %6834 = vmatprep.subr.bf16.mxu0 %v10283_v19  ;;  %v4591_v61 = vpack.c.bf16 %v4563_v11, %v4562_v15 }
 0x8cc   : > { %6811 = vmatmul.mubr.msk.bf16.gmra.mxu0 %vm1449_vm2, %v4591_v61  ;;  %v10288_v61 = vld [vmem:[#allocation46_spill] sm:$0xff] }
 0x8cd   : > { %6835 = vmatpush3.bf16.msra.mxu0 %v10283_v19 }
 0x8ce   : > { %6836 = vmatprep.subr.bf16.mxu0 %v10284_v36 }
 0x8d1   : > { %6837 = vmatpush3.bf16.msra.mxu0 %v10284_v36 }
 0x8e1   : > { %v4454_v1 = vpop.xlane.xlu0 %4453 }
 0x8e2   : > { %7376 = vrcp.f32 %v4454_v1 }
 0x8e5   : > { %v4457_v10 = vpop.xlane.xlu1 %4456 }
 0x8e6   : > { %7378 = vrcp.f32 %v4457_v10  ;;  %v4460_v22 = vpop.xlane.xlu0 %4459 }
 0x8e7   : > { %7380 = vrcp.f32 %v4460_v22 }
 0x8e9   : > { %v4463_v20 = vpop.xlane.xlu1 %4462 }
 0x8ea   : > { %7382 = vrcp.f32 %v4463_v20  ;;  %v4466_v53 = vpop.xlane.xlu0 %4465 }
 0x8eb   : > { %7384 = vrcp.f32 %v4466_v53 }
 0x8ed   : > { %v4469_v31 = vpop.xlane.xlu1 %4468 }
 0x8ee   : > { %7386 = vrcp.f32 %v4469_v31  ;;  %v4472_v29 = vpop.xlane.xlu0 %4471 }
 0x8ef   : > { %7388 = vrcp.f32 %v4472_v29  ;;  %v7377_v47 = vpop.eup %7376 }
 0x8f0   : > { %v4564_v35 = vmul.f32 %v7377_v47, %v9556_v16 }
 0x8f1   : > { %v4475_v13 = vpop.xlane.xlu1 %4474 }
 0x8f2   : > { %7390 = vrcp.f32 %v4475_v13  ;;  %v4478_v62 = vpop.xlane.xlu0 %4477 }
 0x8f3   : > { %v7379_v63 = vpop.eup %7378  ;;  %7392 = vrcp.f32 %v4478_v62 }
 0x8f4   : > { %v4565_v8 = vmul.f32 %v7379_v63, %v9562_v50  ;;  %v7381_v33 = vpop.eup %7380 }
 0x8f5   : > { %v4481_v30 = vpop.xlane.xlu1 %4480  ;;  %v4566_v9 = vmul.f32 %v7381_v33, %v9564_v34  ;;  %v10285_v34 = vld [vmem:[#allocation47_spill] sm:$0xff] }
 0x8f6   : > { %7394 = vrcp.f32 %v4481_v30  ;;  %v4484_v57 = vpop.xlane.xlu0 %4483  ;;  %v4592_v24 = vpack.c.bf16 %v4565_v8, %v4564_v35 }
 0x8f7   : > { %v7383_v23 = vpop.eup %7382  ;;  %7396 = vrcp.f32 %v4484_v57 }
 0x8f8   : > { %v4567_v26 = vmul.f32 %v7383_v23, %v9572_v12  ;;  %6822 = vmatprep.mubr.msk.bf16.mxu1 %vm1449_vm2, %v4592_v24  ;;  %v7385_v42 = vpop.eup %7384 }
 0x8f9   : > { %v4487_v37 = vpop.xlane.xlu1 %4486  ;;  %v4568_v50 = vmul.f32 %v7385_v42, %v9574_v3 }
 0x8fa   : > { %v4593_v52 = vpack.c.bf16 %v4567_v26, %v4566_v9  ;;  %7398 = vrcp.f32 %v4487_v37  ;;  %v4490_v16 = vpop.xlane.xlu0 %4489 }
 0x8fb   : > { %v7387_v55 = vpop.eup %7386  ;;  %7400 = vrcp.f32 %v4490_v16 }
 0x8fc   : > { %6823 = vmatmul.mubr.msk.bf16.vlgmr.msra.gmra.mxu1 %vm1449_vm2, %v4593_v52  ;;  %v4569_v6 = vmul.f32 %v7387_v55, %v9582_v59  ;;  %v7389_v0 = vpop.eup %7388 }
 0x8fd   : > { %6847 = vmatpush3.bf16.msra.mxu1 %v10285_v34  ;;  %v4493_v12 = vpop.xlane.xlu1 %4492  ;;  %v4570_v21 = vmul.f32 %v7389_v0, %v9584_v58 }
 0x8fe   : > { %7402 = vrcp.f32 %v4493_v12  ;;  %6848 = vmatprep.subr.bf16.mxu1 %v10286_v60  ;;  %v4496_v44 = vpop.xlane.xlu0 %4495  ;;  %v4594_v32 = vpack.c.bf16 %v4569_v6, %v4568_v50 }
 0x8ff   : > { %v7391_v17 = vpop.eup %7390  ;;  %7404 = vrcp.f32 %v4496_v44 }
 0x900   : > { %6826 = vmatprep.mubr.msk.bf16.mxu1 %vm1449_vm2, %v4594_v32  ;;  %v4571_v41 = vmul.f32 %v7391_v17, %v9592_v25  ;;  %v7393_v3 = vpop.eup %7392 }
 0x901   : > { %6849 = vmatpush3.bf16.msra.mxu1 %v10286_v60  ;;  %v4499_v59 = vpop.xlane.xlu1 %4498  ;;  %v4572_v15 = vmul.f32 %v7393_v3, %v9594_v48 }
 0x902   : > { %7406 = vrcp.f32 %v4499_v59  ;;  %6850 = vmatprep.subr.bf16.mxu1 %v10287_v51  ;;  %v4502_v14 = vpop.xlane.xlu0 %4501  ;;  %v4595_v27 = vpack.c.bf16 %v4571_v41, %v4570_v21 }
 0x903   : > { %v7395_v11 = vpop.eup %7394  ;;  %7408 = vrcp.f32 %v4502_v14 }
 0x904   : > { %6827 = vmatmul.mubr.msk.bf16.gmra.mxu1 %vm1449_vm2, %v4595_v27  ;;  %v4573_v19 = vmul.f32 %v7395_v11, %v9602_v40  ;;  %v7397_v58 = vpop.eup %7396 }
 0x905   : > { %6851 = vmatpush3.bf16.msra.mxu1 %v10287_v51  ;;  %v4505_v25 = vpop.xlane.xlu1 %4504  ;;  %v4574_v22 = vmul.f32 %v7397_v58, %v9604_v46 }
 0x906   : > { %7410 = vrcp.f32 %v4505_v25  ;;  %6852 = vmatprep.subr.bf16.mxu1 %v10288_v61  ;;  %v4508_v36 = vpop.xlane.xlu0 %4507  ;;  %v4596_v1 = vpack.c.bf16 %v4573_v19, %v4572_v15 }
 0x907   : > { %v7399_v10 = vpop.eup %7398  ;;  %7412 = vrcp.f32 %v4508_v36 }
 0x908   : > { %v4575_v20 = vmul.f32 %v7399_v10, %v9612_v4  ;;  %6838 = vmatprep.mubr.msk.bf16.mxu0 %vm1449_vm2, %v4596_v1  ;;  %v7401_v48 = vpop.eup %7400 }
 0x909   : > { %6853 = vmatpush3.bf16.msra.mxu1 %v10288_v61  ;;  %v4511_v40 = vpop.xlane.xlu1 %4510  ;;  %v4576_v47 = vmul.f32 %v7401_v48, %v9614_v45 }
 0x90a   : > { %v4597_v53 = vpack.c.bf16 %v4575_v20, %v4574_v22  ;;  %7414 = vrcp.f32 %v4511_v40  ;;  %v4514_v31 = vpop.xlane.xlu0 %4513  ;;  %v7018_v40 = vld [vmem:[%s10070_s4 + $0x28] sm:$0xff]  }
 0x90b   : > { %v7403_v29 = vpop.eup %7402  ;;  %7416 = vrcp.f32 %v4514_v31  ;;  %6862 = vmatprep.subr.bf16.mxu0 %v7018_v40  ;;  %v7020_v31 = vld [vmem:[%s10070_s4 + $0x18] sm:$0xff]  }
 0x90c   : > { %6839 = vmatmul.mubr.msk.bf16.vlgmr.msra.gmra.mxu0 %vm1449_vm2, %v4597_v53  ;;  %v4577_v46 = vmul.f32 %v7403_v29, %v9622_v28  ;;  %v7405_v13 = vpop.eup %7404  ;;  %v7019_v53 = vld [vmem:[%s10070_s4 + $0x20] sm:$0xff]   ;;  %v7021_v29 = vld [vmem:[%s10070_s4 + $0x10] sm:$0xff]  }
 0x90d   : > { %v4517_v4 = vpop.xlane.xlu1 %4516  ;;  %v4578_v8 = vmul.f32 %v7405_v13, %v9624_v54  ;;  %6863 = vmatpush3.bf16.msra.mxu0 %v7018_v40  ;;  %v7022_v13 = vld [vmem:[%s10070_s4 + $0x8] sm:$0xff]  }
 0x90e   : > { %7418 = vrcp.f32 %v4517_v4  ;;  %v4520_v62 = vpop.xlane.xlu0 %4519  ;;  %v4598_v63 = vpack.c.bf16 %v4577_v46, %v4576_v47  ;;  %6864 = vmatprep.subr.bf16.mxu0 %v7019_v53 }
 0x90f   : > { %v7407_v35 = vpop.eup %7406  ;;  %7420 = vrcp.f32 %v4520_v62 }
 0x910   : > { %6842 = vmatprep.mubr.msk.bf16.mxu0 %vm1449_vm2, %v4598_v63  ;;  %v4579_v33 = vmul.f32 %v7407_v35, %v9631_v39  ;;  %v7409_v30 = vpop.eup %7408 }
 0x911   : > { %v4523_v57 = vpop.xlane.xlu1 %4522  ;;  %v4580_v23 = vmul.f32 %v7409_v30, %v9633_v43  ;;  %6865 = vmatpush3.bf16.msra.mxu0 %v7019_v53  ;;  %v10293_v53 = vld [vmem:[#allocation9_spill] sm:$0xff] }
 0x912   : > { %7422 = vrcp.f32 %v4523_v57  ;;  %v3624_v45 = vpop.permute.xlu0 %3623  ;;  %v4599_v24 = vpack.c.bf16 %v4579_v33, %v4578_v8  ;;  %6866 = vmatprep.subr.bf16.mxu0 %v7020_v31  ;;  %v7023_v33 = vld [vmem:[%s10070_s4] sm:$0xff]  }
 0x913   : > { %v7411_v28 = vpop.eup %7410  ;;  %3720 = vst.msk [vmem:[#allocation2] sm:$0xf] %vm3719_vm4, %v3624_v45 }
 0x914   : > { %6843 = vmatmul.mubr.msk.bf16.gmra.mxu0 %vm1449_vm2, %v4599_v24  ;;  %v4581_v9 = vmul.f32 %v7411_v28, %v9639_v18  ;;  %v7413_v26 = vpop.eup %7412 }
 0x915   : > { %v3626_v42 = vpop.permute.xlu1 %3625  ;;  %v4582_v52 = vmul.f32 %v7413_v26, %v9641_v38  ;;  %6867 = vmatpush3.bf16.msra.mxu0 %v7020_v31  ;;  %v6130_v31 = vpack.c.bf16 %v10293_v53, %v10293_v53 }
 0x916   : > { %3721 = vst.msk [vmem:[#allocation2 + $0x4] sm:$0xf] %vm3719_vm4, %v3626_v42  ;;  %v3630_v54 = vpop.permute.xlu0 %3629  ;;  %v4600_v39 = vpack.c.bf16 %v4581_v9, %v4580_v23  ;;  %6868 = vmatprep.subr.bf16.mxu0 %v7021_v29 }
 0x917   : > { %v7415_v37 = vpop.eup %7414  ;;  %3723 = vst.msk [vmem:[#allocation2 + $0xc] sm:$0xf] %vm3719_vm4, %v3630_v54 }
 0x918   : > { %v4583_v16 = vmul.f32 %v7415_v37, %v9647_v49  ;;  %6854 = vmatprep.mubr.msk.bf16.mxu1 %vm1449_vm2, %v4600_v39  ;;  %v7417_v55 = vpop.eup %7416 }
 0x919   : > { %v3628_v50 = vpop.permute.xlu1 %3627  ;;  %v4584_v0 = vmul.f32 %v7417_v55, %v9649_v5  ;;  %6869 = vmatpush3.bf16.msra.mxu0 %v7021_v29 }
 0x91a   : > { %v4601_v43 = vpack.c.bf16 %v4583_v16, %v4582_v52  ;;  %3722 = vst.msk [vmem:[#allocation2 + $0x8] sm:$0xf] %vm3719_vm4, %v3628_v50  ;;  %v3634_v18 = vpop.permute.xlu0 %3633  ;;  %6870 = vmatprep.subr.bf16.mxu0 %v7022_v13 }
 0x91b   : > { %v7419_v6 = vpop.eup %7418  ;;  %3725 = vst.msk [vmem:[#allocation2 + $0x14] sm:$0xf] %vm3719_vm4, %v3634_v18 }
 0x91c   : > { %6855 = vmatmul.mubr.msk.bf16.vlgmr.msra.gmra.mxu1 %vm1449_vm2, %v4601_v43  ;;  %v4585_v34 = vmul.f32 %v7419_v6, %v9655_v7  ;;  %v7421_v38 = vpop.eup %7420  ;;  %v10289_v43 = vld [vmem:[#allocation18_spill] sm:$0xff] }
 0x91d   : > { %v3632_v12 = vpop.permute.xlu1 %3631  ;;  %v4586_v32 = vmul.f32 %v7421_v38, %v9657_v56  ;;  %6871 = vmatpush3.bf16.msra.mxu0 %v7022_v13  ;;  %v6126_v18 = vpack.c.bf16 %v10289_v43, %v10289_v43  ;;  %v10294_v13 = vld [vmem:[#allocation6_spill] sm:$0xff] }
 0x91e   : > { %3724 = vst.msk [vmem:[#allocation2 + $0x10] sm:$0xf] %vm3719_vm4, %v3632_v12  ;;  %v3638_v49 = vpop.permute.xlu0 %3637  ;;  %v4602_v60 = vpack.c.bf16 %v4585_v34, %v4584_v0  ;;  %6872 = vmatprep.subr.bf16.mxu0 %v7023_v33  ;;  %v10290_v34 = vld [vmem:[#allocation51_spill] sm:$0xff] }
 0x91f   : > { %v7423_v44 = vpop.eup %7422  ;;  %3727 = vst.msk [vmem:[#allocation2 + $0x1c] sm:$0xf] %vm3719_vm4, %v3638_v49  ;;  %v6127_v38 = vpack.c.bf16 %v10290_v34, %v10290_v34 }
 0x920   : > { %6858 = vmatprep.mubr.msk.bf16.mxu1 %vm1449_vm2, %v4602_v60  ;;  %v4587_v17 = vmul.f32 %v7423_v44, %v9663_v2  ;;  %v10291_v44 = vld [vmem:[#allocation14_spill] sm:$0xff] }
 0x921   : > { %v3636_v21 = vpop.permute.xlu1 %3635  ;;  %6873 = vmatpush3.bf16.msra.mxu0 %v7023_v33  ;;  %v10296_v33 = vld [vmem:[#allocation10_spill] sm:$0xff] }
 0x922   : > { %3726 = vst.msk [vmem:[#allocation2 + $0x18] sm:$0xf] %vm3719_vm4, %v3636_v21  ;;  %v3642_v5 = vpop.permute.xlu0 %3641  ;;  %v4603_v7 = vpack.c.bf16 %v4587_v17, %v4586_v32  ;;  %v6128_v32 = vpack.c.bf16 %v10291_v44, %v10291_v44  ;;  %v10292_v17 = vld [vmem:[#allocation21_spill] sm:$0xff] }
 0x923   : > { %3729 = vst.msk [vmem:[#allocation2 + $0x24] sm:$0xf] %vm3719_vm4, %v3642_v5  ;;  %v6129_v21 = vpack.c.bf16 %v10292_v17, %v10292_v17 }
 0x924   : > { %6859 = vmatmul.mubr.msk.bf16.gmra.mxu1 %vm1449_vm2, %v4603_v7 }
 0x925   : > { %v3640_v41 = vpop.permute.xlu1 %3639 }
 0x926   : > { %3728 = vst.msk [vmem:[#allocation2 + $0x20] sm:$0xf] %vm3719_vm4, %v3640_v41  ;;  %v3646_v3 = vpop.permute.xlu0 %3645 }
 0x927   : > { %3731 = vst.msk [vmem:[#allocation2 + $0x2c] sm:$0xf] %vm3719_vm4, %v3646_v3 }
 0x929   : > { %v3644_v59 = vpop.permute.xlu1 %3643 }
 0x92a   : > { %3730 = vst.msk [vmem:[#allocation2 + $0x28] sm:$0xf] %vm3719_vm4, %v3644_v59  ;;  %v3650_v56 = vpop.permute.xlu0 %3649 }
 0x92b   : > { %3733 = vst.msk [vmem:[#allocation2 + $0x34] sm:$0xf] %vm3719_vm4, %v3650_v56 }
 0x92d   : > { %v3648_v2 = vpop.permute.xlu1 %3647 }
 0x92e   : > { %3732 = vst.msk [vmem:[#allocation2 + $0x30] sm:$0xf] %vm3719_vm4, %v3648_v2  ;;  %v3654_v51 = vpop.permute.xlu0 %3653 }
 0x92f   : > { %3735 = vst.msk [vmem:[#allocation2 + $0x3c] sm:$0xf] %vm3719_vm4, %v3654_v51 }
 0x931   : > { %v3652_v14 = vpop.permute.xlu1 %3651 }
 0x932   : > { %3734 = vst.msk [vmem:[#allocation2 + $0x38] sm:$0xf] %vm3719_vm4, %v3652_v14  ;;  %v3658_v27 = vpop.permute.xlu0 %3657 }
 0x933   : > { %3737 = vst.msk [vmem:[#allocation2 + $0x44] sm:$0xf] %vm3719_vm4, %v3658_v27 }
 0x935   : > { %v3656_v11 = vpop.permute.xlu1 %3655 }
 0x936   : > { %3736 = vst.msk [vmem:[#allocation2 + $0x40] sm:$0xf] %vm3719_vm4, %v3656_v11  ;;  %v3662_v15 = vpop.permute.xlu0 %3661 }
 0x937   : > { %3739 = vst.msk [vmem:[#allocation2 + $0x4c] sm:$0xf] %vm3719_vm4, %v3662_v15 }
 0x939   : > { %v3660_v19 = vpop.permute.xlu1 %3659 }
 0x93a   : > { %3738 = vst.msk [vmem:[#allocation2 + $0x48] sm:$0xf] %vm3719_vm4, %v3660_v19  ;;  %v3666_v58 = vpop.permute.xlu0 %3665 }
 0x93b   : > { %3741 = vst.msk [vmem:[#allocation2 + $0x54] sm:$0xf] %vm3719_vm4, %v3666_v58 }
 0x93d   : > { %v3664_v25 = vpop.permute.xlu1 %3663 }
 0x93e   : > { %3740 = vst.msk [vmem:[#allocation2 + $0x50] sm:$0xf] %vm3719_vm4, %v3664_v25  ;;  %v3670_v61 = vpop.permute.xlu0 %3669 }
 0x93f   : > { %3743 = vst.msk [vmem:[#allocation2 + $0x5c] sm:$0xf] %vm3719_vm4, %v3670_v61 }
 0x941   : > { %v3668_v36 = vpop.permute.xlu1 %3667 }
 0x942   : > { %3742 = vst.msk [vmem:[#allocation2 + $0x58] sm:$0xf] %vm3719_vm4, %v3668_v36 }
 0x984   : > { %v6808_v1 = vpop.f32.mrf.mxu0 }
 0x985   : > { %v6136_v10 = vpack.c.bf16 %v6808_v1, %v6808_v1 }
 0x986   : > { %v4650_v22 = vpop.f32.mrf.mxu0 }
 0x987   : > { %5012 = vrot.lane.b32.xlu1 %v6136_v10, %s7434_s23  ;;  %v6134_v35 = vpack.c.bf16 %v4650_v22, %v4650_v22 }
 0x988   : > { %v6809_v20 = vpop.f32.mrf.mxu0 }
 0x989   : > { %v6137_v48 = vpack.c.bf16 %v6809_v20, %v6809_v20 }
 0x98a   : > { %v4653_v4 = vpop.f32.mrf.mxu0 }
 0x98b   : > { %5014 = vrot.lane.b32.xlu0 %v6137_v48, %s7434_s23  ;;  %v6135_v45 = vpack.c.bf16 %v4653_v4, %v4653_v4  ;;  %v6132_v4 = vpack.c.bf16 %v10294_v13, %v10294_v13 }
 0x98c   : > { %v6812_v30 = vpop.f32.mrf.mxu0 }
 0x98d   : > { %v6140_v9 = vpack.c.bf16 %v6812_v30, %v6812_v30  ;;  %v6133_v30 = vpack.c.bf16 %v10296_v33, %v10296_v33 }
 0x98e   : > { %v4666_v28 = vpop.f32.mrf.mxu0 }
 0x98f   : > { %v6138_v16 = vpack.c.bf16 %v4666_v28, %v4666_v28 }
 0x990   : > { %v6813_v42 = vpop.f32.mrf.mxu0 }
 0x991   : > { %v6141_v39 = vpack.c.bf16 %v6813_v42, %v6813_v42 }
 0x992   : > { %v4669_v50 = vpop.f32.mrf.mxu0 }
 0x993   : > { %v6139_v6 = vpack.c.bf16 %v4669_v50, %v4669_v50 }
 0x9bc   : > { %v6824_v47 = vpop.f32.mrf.mxu1 }
 0x9bd   : > { %v6144_v46 = vpack.c.bf16 %v6824_v47, %v6824_v47 }
 0x9be   : > { %v4727_v62 = vpop.f32.mrf.mxu1 }
 0x9bf   : > { %5028 = vrot.lane.b32.xlu1 %v6144_v46, %s7434_s23  ;;  %v6142_v24 = vpack.c.bf16 %v4727_v62, %v4727_v62  ;;  %v10295_v62 = vld [vmem:[#allocation3_spill] sm:$0xff] }
 0x9c0   : > { %v6825_v63 = vpop.f32.mrf.mxu1 }
 0x9c1   : > { %v6145_v8 = vpack.c.bf16 %v6825_v63, %v6825_v63  ;;  %v6131_v63 = vpack.c.bf16 %v10295_v62, %v10295_v62 }
 0x9c2   : > { %v4730_v57 = vpop.f32.mrf.mxu1 }
 0x9c3   : > { %5008 = vrot.lane.b32.xlu1 %v6134_v35, %s7434_s23  ;;  %5030 = vrot.lane.b32.xlu0 %v6145_v8, %s7434_s23  ;;  %v6143_v26 = vpack.c.bf16 %v4730_v57, %v4730_v57 }
 0x9c4   : > { %v6828_v23 = vpop.f32.mrf.mxu1 }
 0x9c5   : > { %v6148_v37 = vpack.c.bf16 %v6828_v23, %v6828_v23 }
 0x9c6   : > { %v4743_v54 = vpop.f32.mrf.mxu1 }
 0x9c7   : > { %5024 = vrot.lane.b32.xlu1 %v6142_v24, %s7434_s23  ;;  %5010 = vrot.lane.b32.xlu0 %v6135_v45, %s7434_s23  ;;  %v6146_v12 = vpack.c.bf16 %v4743_v54, %v4743_v54 }
 0x9c8   : > { %v6829_v52 = vpop.f32.mrf.mxu1 }
 0x9c9   : > { %v6149_v55 = vpack.c.bf16 %v6829_v52, %v6829_v52 }
 0x9ca   : > { %v4746_v60 = vpop.f32.mrf.mxu1 }
 0x9cb   : > { %5020 = vrot.lane.b32.xlu1 %v6140_v9, %s7434_s23  ;;  %5026 = vrot.lane.b32.xlu0 %v6143_v26, %s7434_s23  ;;  %v6147_v41 = vpack.c.bf16 %v4746_v60, %v4746_v60 }
 0x9cc   : > { %v6840_v0 = vpop.f32.mrf.mxu0 }
 0x9cd   : > { %v6152_v3 = vpack.c.bf16 %v6840_v0, %v6840_v0 }
 0x9ce   : > { %v4804_v49 = vpop.f32.mrf.mxu0 }
 0x9cf   : > { %5022 = vrot.lane.b32.xlu0 %v6141_v39, %s7434_s23  ;;  %5036 = vrot.lane.b32.xlu1 %v6148_v37, %s7434_s23  ;;  %v6150_v2 = vpack.c.bf16 %v4804_v49, %v4804_v49 }
 0x9d0   : > { %v6841_v5 = vpop.f32.mrf.mxu0 }
 0x9d1   : > { %v6153_v51 = vpack.c.bf16 %v6841_v5, %v6841_v5 }
 0x9d2   : > { %v4807_v59 = vpop.f32.mrf.mxu0 }
 0x9d3   : > { %5016 = vrot.lane.b32.xlu1 %v6138_v16, %s7434_s23  ;;  %5038 = vrot.lane.b32.xlu0 %v6149_v55, %s7434_s23  ;;  %v6151_v11 = vpack.c.bf16 %v4807_v59, %v4807_v59 }
 0x9d4   : > { %v6844_v14 = vpop.f32.mrf.mxu0 }
 0x9d5   : > { %v6156_v25 = vpack.c.bf16 %v6844_v14, %v6844_v14 }
 0x9d6   : > { %v4820_v19 = vpop.f32.mrf.mxu0 }
 0x9d7   : > { %3671 = vrot.lane.b32.xlu1 %v6126_v18, %s7433_s22  ;;  %5018 = vrot.lane.b32.xlu0 %v6139_v6, %s7434_s23  ;;  %v6154_v1 = vpack.c.bf16 %v4820_v19, %v4820_v19 }
 0x9d8   : > { %v6845_v36 = vpop.f32.mrf.mxu0 }
 0x9d9   : > { %v6157_v10 = vpack.c.bf16 %v6845_v36, %v6845_v36 }
 0x9da   : > { %v4823_v22 = vpop.f32.mrf.mxu0 }
 0x9db   : > { %5032 = vrot.lane.b32.xlu1 %v6146_v12, %s7434_s23  ;;  %3673 = vrot.lane.b32.xlu0 %v6127_v38, %s7433_s22  ;;  %v6155_v20 = vpack.c.bf16 %v4823_v22, %v4823_v22 }
 0x9dc   : > { %v6856_v7 = vpop.f32.mrf.mxu1 }
 0x9dd   : > { %v6160_v48 = vpack.c.bf16 %v6856_v7, %v6856_v7 }
 0x9de   : > { %v4881_v56 = vpop.f32.mrf.mxu1 }
 0x9df   : > { %3675 = vrot.lane.b32.xlu1 %v6128_v32, %s7433_s22  ;;  %3677 = vrot.lane.b32.xlu0 %v6129_v21, %s7433_s22  ;;  %v6158_v15 = vpack.c.bf16 %v4881_v56, %v4881_v56 }
 0x9e0   : > { %v6857_v27 = vpop.f32.mrf.mxu1 }
 0x9e1   : > { %v6161_v29 = vpack.c.bf16 %v6857_v27, %v6857_v27 }
 0x9e2   : > { %v4884_v58 = vpop.f32.mrf.mxu1 }
 0x9e3   : > { %5034 = vrot.lane.b32.xlu0 %v6147_v41, %s7434_s23  ;;  %5044 = vrot.lane.b32.xlu1 %v6152_v3, %s7434_s23  ;;  %v6159_v61 = vpack.c.bf16 %v4884_v58, %v4884_v58 }
 0x9e4   : > { %v6860_v40 = vpop.f32.mrf.mxu1 }
 0x9e5   : > { %v6164_v24 = vpack.c.bf16 %v6860_v40, %v6860_v40 }
 0x9e6   : > { %v4897_v46 = vpop.f32.mrf.mxu1 }
 0x9e7   : > { %5040 = vrot.lane.b32.xlu1 %v6150_v2, %s7434_s23  ;;  %5046 = vrot.lane.b32.xlu0 %v6153_v51, %s7434_s23  ;;  %v6162_v57 = vpack.c.bf16 %v4897_v46, %v4897_v46 }
 0x9e8   : > { %v6861_v8 = vpop.f32.mrf.mxu1 }
 0x9e9   : > { %v6165_v23 = vpack.c.bf16 %v6861_v8, %v6861_v8 }
 0x9ea   : > { %v4900_v45 = vpop.f32.mrf.mxu1 }
 0x9eb   : > { %5042 = vrot.lane.b32.xlu0 %v6151_v11, %s7434_s23  ;;  %5056 = vrot.lane.b32.xlu1 %v6158_v15, %s7434_s23  ;;  %v6163_v28 = vpack.c.bf16 %v4900_v45, %v4900_v45 }
 0x9ef   : > { %5052 = vrot.lane.b32.xlu1 %v6156_v25, %s7434_s23  ;;  %5058 = vrot.lane.b32.xlu0 %v6159_v61, %s7434_s23 }
 0x9f3   : > { %5048 = vrot.lane.b32.xlu1 %v6154_v1, %s7434_s23  ;;  %5054 = vrot.lane.b32.xlu0 %v6157_v10, %s7434_s23 }
 0x9f7   : > { %5060 = vrot.lane.b32.xlu1 %v6160_v48, %s7434_s23  ;;  %5050 = vrot.lane.b32.xlu0 %v6155_v20, %s7434_s23 }
 0x9f9   : > { %v5013_v47 = vpop.permute.xlu1 %5012 }
 0x9fa   : > { %5107 = vst.msk [vmem:[#allocation2 + $0x8] sm:$0xf] %vm5104_vm5, %v5013_v47 }
 0x9fb   : > { %3679 = vrot.lane.b32.xlu1 %v6130_v31, %s7433_s22  ;;  %5062 = vrot.lane.b32.xlu0 %v6161_v29, %s7434_s23 }
 0x9fd   : > { %v5015_v35 = vpop.permute.xlu0 %5014 }
 0x9fe   : > { %5108 = vst.msk [vmem:[#allocation2 + $0xc] sm:$0xf] %vm5104_vm5, %v5015_v35 }
 0x9ff   : > { %3683 = vrot.lane.b32.xlu1 %v6132_v4, %s7433_s22  ;;  %3681 = vrot.lane.b32.xlu0 %v6131_v63, %s7433_s22  ;;  %v9958_v63 = vld [vmem:[%s10071_s5] ss:$0 sm:$0xff] }
 0xa03   : > { %3685 = vrot.lane.b32.xlu0 %v6133_v30, %s7433_s22  ;;  %5064 = vrot.lane.b32.xlu1 %v6162_v57, %s7434_s23 }
 0xa05   : > { %v7025_v43 = vld [vmem:[#allocation2 + $0x8] sm:$0xff]  }
 0xa07   : > { %5068 = vrot.lane.b32.xlu1 %v6164_v24, %s7434_s23  ;;  %5066 = vrot.lane.b32.xlu0 %v6163_v28, %s7434_s23 }
 0xa0b   : > { %5070 = vrot.lane.b32.xlu0 %v6165_v23, %s7434_s23 }
 0xa31   : > { %v5029_v9 = vpop.permute.xlu1 %5028 }
 0xa32   : > { %5115 = vst.msk [vmem:[#allocation2 + $0x28] sm:$0xf] %vm5104_vm5, %v5029_v9 }
 0xa35   : > { %v5009_v26 = vpop.permute.xlu1 %5008  ;;  %v5031_v42 = vpop.permute.xlu0 %5030 }
 0xa36   : > { %5105 = vst.msk [vmem:[#allocation2] sm:$0xf] %vm5104_vm5, %v5009_v26  ;;  %5116 = vst.msk [vmem:[#allocation2 + $0x2c] sm:$0xf] %vm5104_vm5, %v5031_v42 }
 0xa39   : > { %v5025_v54 = vpop.permute.xlu1 %5024  ;;  %v5011_v39 = vpop.permute.xlu0 %5010 }
 0xa3a   : > { %5113 = vst.msk [vmem:[#allocation2 + $0x20] sm:$0xf] %vm5104_vm5, %v5025_v54  ;;  %5106 = vst.msk [vmem:[#allocation2 + $0x4] sm:$0xf] %vm5104_vm5, %v5011_v39 }
 0xa3d   : > { %v5021_v37 = vpop.permute.xlu1 %5020  ;;  %v5027_v52 = vpop.permute.xlu0 %5026  ;;  %v7029_v3 = vld [vmem:[#allocation2 + $0x28] sm:$0xff]  }
 0xa3e   : > { %5111 = vst.msk [vmem:[#allocation2 + $0x18] sm:$0xf] %vm5104_vm5, %v5021_v37  ;;  %5114 = vst.msk [vmem:[#allocation2 + $0x24] sm:$0xf] %vm5104_vm5, %v5027_v52 }
 0xa41   : > { %v5037_v16 = vpop.permute.xlu1 %5036  ;;  %v5023_v55 = vpop.permute.xlu0 %5022  ;;  %v7024_v50 = vld [vmem:[#allocation2] sm:$0xff]  }
 0xa42   : > { %5119 = vst.msk [vmem:[#allocation2 + $0x38] sm:$0xf] %vm5104_vm5, %v5037_v16  ;;  %5112 = vst.msk [vmem:[#allocation2 + $0x1c] sm:$0xf] %vm5104_vm5, %v5023_v55  ;;  %6874 = vmatprep.mubr.msk.bf16.mxu0 %vm505_vm0, %v7024_v50 }
 0xa43   : > { %6875 = vmatmul.mubr.msk.bf16.vlgmr.msra.gmra.mxu0 %vm505_vm0, %v7025_v43 }
 0xa45   : > { %v5017_v18 = vpop.permute.xlu1 %5016  ;;  %v5039_v6 = vpop.permute.xlu0 %5038  ;;  %v7028_v17 = vld [vmem:[#allocation2 + $0x20] sm:$0xff]  }
 0xa46   : > { %5109 = vst.msk [vmem:[#allocation2 + $0x10] sm:$0xf] %vm5104_vm5, %v5017_v18  ;;  %5120 = vst.msk [vmem:[#allocation2 + $0x3c] sm:$0xf] %vm5104_vm5, %v5039_v6 }
 0xa49   : > { %v3672_v0 = vpop.permute.xlu1 %3671  ;;  %v5019_v34 = vpop.permute.xlu0 %5018  ;;  %v7027_v32 = vld [vmem:[#allocation2 + $0x18] sm:$0xff]  }
 0xa4a   : > { %3744 = vst.msk [vmem:[#allocation2 + $0x60] sm:$0xf] %vm3719_vm4, %v3672_v0 }
 0xa4b   : > { %5110 = vst.msk [vmem:[#allocation2 + $0x14] sm:$0xf] %vm5104_vm5, %v5019_v34 }
 0xa4d   : > { %v5033_v38 = vpop.permute.xlu1 %5032  ;;  %v3674_v12 = vpop.permute.xlu0 %3673  ;;  %v7031_v27 = vld [vmem:[#allocation2 + $0x38] sm:$0xff]  }
 0xa4e   : > { %5117 = vst.msk [vmem:[#allocation2 + $0x30] sm:$0xf] %vm5104_vm5, %v5033_v38 }
 0xa4f   : > { %3745 = vst.msk [vmem:[#allocation2 + $0x64] sm:$0xf] %vm3719_vm4, %v3674_v12 }
 0xa51   : > { %v3676_v49 = vpop.permute.xlu1 %3675  ;;  %v3678_v60 = vpop.permute.xlu0 %3677 }
 0xa52   : > { %v7026_v44 = vld [vmem:[#allocation2 + $0x10] sm:$0xff]   ;;  %3746 = vst.msk [vmem:[#allocation2 + $0x68] sm:$0xf] %vm3719_vm4, %v3676_v49  ;;  %3747 = vst.msk [vmem:[#allocation2 + $0x6c] sm:$0xf] %vm3719_vm4, %v3678_v60 }
 0xa53   : > { %6878 = vmatprep.mubr.msk.bf16.mxu0 %vm505_vm0, %v7026_v44 }
 0xa54   : > { %6879 = vmatmul.mubr.msk.bf16.gmra.mxu0 %vm505_vm0, %v7027_v32 }
 0xa55   : > { %v5045_v21 = vpop.permute.xlu1 %5044  ;;  %v5035_v5 = vpop.permute.xlu0 %5034  ;;  %6882 = vmatprep.mubr.msk.bf16.mxu0 %vm505_vm0, %v7028_v17 }
 0xa56   : > { %5123 = vst.msk [vmem:[#allocation2 + $0x48] sm:$0xf] %vm5104_vm5, %v5045_v21  ;;  %5118 = vst.msk [vmem:[#allocation2 + $0x34] sm:$0xf] %vm5104_vm5, %v5035_v5 }
 0xa59   : > { %v5041_v7 = vpop.permute.xlu1 %5040  ;;  %v5047_v41 = vpop.permute.xlu0 %5046 }
 0xa5a   : > { %5121 = vst.msk [vmem:[#allocation2 + $0x40] sm:$0xf] %vm5104_vm5, %v5041_v7  ;;  %5124 = vst.msk [vmem:[#allocation2 + $0x4c] sm:$0xf] %vm5104_vm5, %v5047_v41 }
 0xa5c   : > { %6883 = vmatmul.mubr.msk.bf16.gmra.mxu0 %vm505_vm0, %v7029_v3 }
 0xa5d   : > { %v5057_v59 = vpop.permute.xlu1 %5056  ;;  %v5043_v56 = vpop.permute.xlu0 %5042  ;;  %v7030_v2 = vld [vmem:[#allocation2 + $0x30] sm:$0xff]  }
 0xa5e   : > { %5129 = vst.msk [vmem:[#allocation2 + $0x60] sm:$0xf] %vm5104_vm5, %v5057_v59  ;;  %5122 = vst.msk [vmem:[#allocation2 + $0x44] sm:$0xf] %vm5104_vm5, %v5043_v56  ;;  %6886 = vmatprep.mubr.msk.bf16.mxu0 %vm505_vm0, %v7030_v2 }
 0xa61   : > { %v5053_v51 = vpop.permute.xlu1 %5052  ;;  %v5059_v14 = vpop.permute.xlu0 %5058  ;;  %v7033_v61 = vld [vmem:[#allocation2 + $0x48] sm:$0xff]  }
 0xa62   : > { %5127 = vst.msk [vmem:[#allocation2 + $0x58] sm:$0xf] %vm5104_vm5, %v5053_v51  ;;  %5130 = vst.msk [vmem:[#allocation2 + $0x64] sm:$0xf] %vm5104_vm5, %v5059_v14 }
 0xa64   : > { %6887 = vmatmul.mubr.msk.bf16.gmra.mxu0 %vm505_vm0, %v7031_v27 }
 0xa65   : > { %v5049_v11 = vpop.permute.xlu1 %5048  ;;  %v5055_v15 = vpop.permute.xlu0 %5054  ;;  %v7032_v19 = vld [vmem:[#allocation2 + $0x40] sm:$0xff]  }
 0xa66   : > { %5125 = vst.msk [vmem:[#allocation2 + $0x50] sm:$0xf] %vm5104_vm5, %v5049_v11  ;;  %5128 = vst.msk [vmem:[#allocation2 + $0x5c] sm:$0xf] %vm5104_vm5, %v5055_v15  ;;  %6890 = vmatprep.mubr.msk.bf16.mxu0 %vm505_vm0, %v7032_v19 }
 0xa69   : > { %v5061_v58 = vpop.permute.xlu1 %5060  ;;  %v5051_v25 = vpop.permute.xlu0 %5050  ;;  %v7036_v40 = vld [vmem:[#allocation2 + $0x60] sm:$0xff]  }
 0xa6a   : > { %5131 = vst.msk [vmem:[#allocation2 + $0x68] sm:$0xf] %vm5104_vm5, %v5061_v58  ;;  %5126 = vst.msk [vmem:[#allocation2 + $0x54] sm:$0xf] %vm5104_vm5, %v5051_v25 }
 0xa6c   : > { %6891 = vmatmul.mubr.msk.bf16.gmra.mxu0 %vm505_vm0, %v7033_v61 }
 0xa6d   : > { %v3680_v36 = vpop.permute.xlu1 %3679  ;;  %v5063_v1 = vpop.permute.xlu0 %5062  ;;  %v7035_v48 = vld [vmem:[#allocation2 + $0x58] sm:$0xff]  }
 0xa6e   : > { %3748 = vst.msk [vmem:[#allocation2 + $0x70] sm:$0xf] %vm3719_vm4, %v3680_v36 }
 0xa6f   : > { %5132 = vst.msk [vmem:[#allocation2 + $0x6c] sm:$0xf] %vm5104_vm5, %v5063_v1 }
 0xa71   : > { %v3684_v10 = vpop.permute.xlu1 %3683  ;;  %v3682_v22 = vpop.permute.xlu0 %3681  ;;  %v7034_v20 = vld [vmem:[#allocation2 + $0x50] sm:$0xff]  }
 0xa72   : > { %3750 = vst.msk [vmem:[#allocation2 + $0x78] sm:$0xf] %vm3719_vm4, %v3684_v10  ;;  %3749 = vst.msk [vmem:[#allocation2 + $0x74] sm:$0xf] %vm3719_vm4, %v3682_v22  ;;  %6894 = vmatprep.mubr.msk.bf16.mxu0 %vm505_vm0, %v7034_v20 }
 0xa74   : > { %6895 = vmatmul.mubr.msk.bf16.gmra.mxu0 %vm505_vm0, %v7035_v48 }
 0xa75   : > { %v5065_v53 = vpop.permute.xlu1 %5064  ;;  %v3686_v31 = vpop.permute.xlu0 %3685  ;;  %6898 = vmatprep.mubr.msk.bf16.mxu0 %vm505_vm0, %v7036_v40 }
 0xa76   : > { %5133 = vst.msk [vmem:[#allocation2 + $0x70] sm:$0xf] %vm5104_vm5, %v5065_v53  ;;  %v7037_v46 = vld [vmem:[#allocation2 + $0x68] sm:$0xff]  }
 0xa77   : > { %3751 = vst.msk [vmem:[#allocation2 + $0x7c] sm:$0xf] %vm3719_vm4, %v3686_v31 }
 0xa79   : > { %v5069_v29 = vpop.permute.xlu1 %5068  ;;  %v5067_v47 = vpop.permute.xlu0 %5066 }
 0xa7a   : > { %5135 = vst.msk [vmem:[#allocation2 + $0x78] sm:$0xf] %vm5104_vm5, %v5069_v29  ;;  %5134 = vst.msk [vmem:[#allocation2 + $0x74] sm:$0xf] %vm5104_vm5, %v5067_v47 }
 0xa7c   : > { %6899 = vmatmul.mubr.msk.bf16.gmra.mxu0 %vm505_vm0, %v7037_v46 }
 0xa7d   : > { %v5071_v13 = vpop.permute.xlu0 %5070 }
 0xa7e   : > { %5136 = vst.msk [vmem:[#allocation2 + $0x7c] sm:$0xf] %vm5104_vm5, %v5071_v13 }
 0xa81   : > { %v7038_v4 = vld [vmem:[#allocation2 + $0x70] sm:$0xff]  }
 0xa82   : > { %6902 = vmatprep.mubr.msk.bf16.mxu0 %vm505_vm0, %v7038_v4 }
 0xa85   : > { %v7039_v62 = vld [vmem:[#allocation2 + $0x78] sm:$0xff]  }
 0xa86   : > { %6903 = vmatmul.mubr.msk.bf16.gmra.mxu0 %vm505_vm0, %v7039_v62 }
 0xb03   : > { %v6876_v35 = vpop.f32.mrf.mxu0 }
 0xb04   : > { %v5395_v8 = vadd.f32 %v6876_v35, %v9958_v63 }
 0xb05   : > { %v5386_v33 = vpop.f32.mrf.mxu0 }
 0xb06   : > { %v6168_v30 = vpack.c.bf16 %v5395_v8, %v5395_v8  ;;  %v5387_v57 = vadd.f32 %v9958_v63, %v5386_v33 }
 0xb07   : > { %v6877_v45 = vpop.f32.mrf.mxu0 }
 0xb08   : > { %5644 = vst.msk [vmem:[%s9966_s7 + $0x8] sm:$0xf] %vm5641_vm6, %v6168_v30  ;;  %v6166_v24 = vpack.c.bf16 %v5387_v57, %v5387_v57  ;;  %v5398_v28 = vadd.f32 %v6877_v45, %v9958_v63 }
 0xb09   : > { %v5389_v23 = vpop.f32.mrf.mxu0 }
 0xb0a   : > { %5642 = vst.msk [vmem:[%s9966_s7] sm:$0xf] %vm5641_vm6, %v6166_v24  ;;  %v6169_v9 = vpack.c.bf16 %v5398_v28, %v5398_v28  ;;  %v5390_v26 = vadd.f32 %v9958_v63, %v5389_v23 }
 0xb0c   : > { %5645 = vst.msk [vmem:[%s9966_s7 + $0xc] sm:$0xf] %vm5641_vm6, %v6169_v9  ;;  %v6167_v42 = vpack.c.bf16 %v5390_v26, %v5390_v26 }
 0xb0e   : > { %5643 = vst.msk [vmem:[%s9966_s7 + $0x4] sm:$0xf] %vm5641_vm6, %v6167_v42 }
 0xb14   : > { %v6880_v54 = vpop.f32.mrf.mxu0 }
 0xb15   : > { %v5411_v39 = vadd.f32 %v6880_v54, %v9958_v63 }
 0xb16   : > { %v5402_v37 = vpop.f32.mrf.mxu0 }
 0xb17   : > { %v6172_v52 = vpack.c.bf16 %v5411_v39, %v5411_v39  ;;  %v5403_v16 = vadd.f32 %v9958_v63, %v5402_v37 }
 0xb18   : > { %v6881_v55 = vpop.f32.mrf.mxu0 }
 0xb19   : > { %5648 = vst.msk [vmem:[%s9966_s7 + $0x18] sm:$0xf] %vm5641_vm6, %v6172_v52  ;;  %v6170_v50 = vpack.c.bf16 %v5403_v16, %v5403_v16  ;;  %v5414_v43 = vadd.f32 %v6881_v55, %v9958_v63 }
 0xb1a   : > { %v5405_v18 = vpop.f32.mrf.mxu0 }
 0xb1b   : > { %5646 = vst.msk [vmem:[%s9966_s7 + $0x10] sm:$0xf] %vm5641_vm6, %v6170_v50  ;;  %v6173_v6 = vpack.c.bf16 %v5414_v43, %v5414_v43  ;;  %v5406_v0 = vadd.f32 %v9958_v63, %v5405_v18 }
 0xb1c   : > { %v6884_v34 = vpop.f32.mrf.mxu0 }
 0xb1d   : > { %5649 = vst.msk [vmem:[%s9966_s7 + $0x1c] sm:$0xf] %vm5641_vm6, %v6173_v6  ;;  %v6171_v38 = vpack.c.bf16 %v5406_v0, %v5406_v0  ;;  %v5427_v12 = vadd.f32 %v6884_v34, %v9958_v63 }
 0xb1e   : > { %v5418_v49 = vpop.f32.mrf.mxu0 }
 0xb1f   : > { %5647 = vst.msk [vmem:[%s9966_s7 + $0x14] sm:$0xf] %vm5641_vm6, %v6171_v38  ;;  %v6176_v60 = vpack.c.bf16 %v5427_v12, %v5427_v12  ;;  %v5419_v44 = vadd.f32 %v9958_v63, %v5418_v49 }
 0xb20   : > { %v6885_v32 = vpop.f32.mrf.mxu0 }
 0xb21   : > { %5652 = vst.msk [vmem:[%s9966_s7 + $0x28] sm:$0xf] %vm5641_vm6, %v6176_v60  ;;  %v6174_v17 = vpack.c.bf16 %v5419_v44, %v5419_v44  ;;  %v5430_v21 = vadd.f32 %v6885_v32, %v9958_v63 }
 0xb22   : > { %v5421_v5 = vpop.f32.mrf.mxu0 }
 0xb23   : > { %5650 = vst.msk [vmem:[%s9966_s7 + $0x20] sm:$0xf] %vm5641_vm6, %v6174_v17  ;;  %v6177_v7 = vpack.c.bf16 %v5430_v21, %v5430_v21  ;;  %v5422_v41 = vadd.f32 %v9958_v63, %v5421_v5 }
 0xb24   : > { %v6888_v3 = vpop.f32.mrf.mxu0 }
 0xb25   : > { %5653 = vst.msk [vmem:[%s9966_s7 + $0x2c] sm:$0xf] %vm5641_vm6, %v6177_v7  ;;  %v6175_v59 = vpack.c.bf16 %v5422_v41, %v5422_v41  ;;  %v5443_v56 = vadd.f32 %v6888_v3, %v9958_v63 }
 0xb26   : > { %v5434_v2 = vpop.f32.mrf.mxu0 }
 0xb27   : > { %5651 = vst.msk [vmem:[%s9966_s7 + $0x24] sm:$0xf] %vm5641_vm6, %v6175_v59  ;;  %v6180_v51 = vpack.c.bf16 %v5443_v56, %v5443_v56  ;;  %v5435_v14 = vadd.f32 %v9958_v63, %v5434_v2 }
 0xb28   : > { %v6889_v27 = vpop.f32.mrf.mxu0 }
 0xb29   : > { %5656 = vst.msk [vmem:[%s9966_s7 + $0x38] sm:$0xf] %vm5641_vm6, %v6180_v51  ;;  %v6178_v11 = vpack.c.bf16 %v5435_v14, %v5435_v14  ;;  %v5446_v15 = vadd.f32 %v6889_v27, %v9958_v63 }
 0xb2a   : > { %v5437_v19 = vpop.f32.mrf.mxu0 }
 0xb2b   : > { %5654 = vst.msk [vmem:[%s9966_s7 + $0x30] sm:$0xf] %vm5641_vm6, %v6178_v11  ;;  %v6181_v58 = vpack.c.bf16 %v5446_v15, %v5446_v15  ;;  %v5438_v25 = vadd.f32 %v9958_v63, %v5437_v19 }
 0xb2c   : > { %v6892_v61 = vpop.f32.mrf.mxu0 }
 0xb2d   : > { %5657 = vst.msk [vmem:[%s9966_s7 + $0x3c] sm:$0xf] %vm5641_vm6, %v6181_v58  ;;  %v6179_v36 = vpack.c.bf16 %v5438_v25, %v5438_v25  ;;  %v5459_v1 = vadd.f32 %v6892_v61, %v9958_v63 }
 0xb2e   : > { %v5450_v10 = vpop.f32.mrf.mxu0 }
 0xb2f   : > { %5655 = vst.msk [vmem:[%s9966_s7 + $0x34] sm:$0xf] %vm5641_vm6, %v6179_v36  ;;  %v6184_v22 = vpack.c.bf16 %v5459_v1, %v5459_v1  ;;  %v5451_v20 = vadd.f32 %v9958_v63, %v5450_v10 }
 0xb30   : > { %v6893_v48 = vpop.f32.mrf.mxu0 }
 0xb31   : > { %5660 = vst.msk [vmem:[%s9966_s7 + $0x48] sm:$0xf] %vm5641_vm6, %v6184_v22  ;;  %v6182_v40 = vpack.c.bf16 %v5451_v20, %v5451_v20  ;;  %v5462_v53 = vadd.f32 %v6893_v48, %v9958_v63 }
 0xb32   : > { %v5453_v31 = vpop.f32.mrf.mxu0 }
 0xb33   : > { %5658 = vst.msk [vmem:[%s9966_s7 + $0x40] sm:$0xf] %vm5641_vm6, %v6182_v40  ;;  %v6185_v29 = vpack.c.bf16 %v5462_v53, %v5462_v53  ;;  %v5454_v47 = vadd.f32 %v9958_v63, %v5453_v31 }
 0xb34   : > { %v6896_v46 = vpop.f32.mrf.mxu0 }
 0xb35   : > { %5661 = vst.msk [vmem:[%s9966_s7 + $0x4c] sm:$0xf] %vm5641_vm6, %v6185_v29  ;;  %v6183_v13 = vpack.c.bf16 %v5454_v47, %v5454_v47  ;;  %v5475_v4 = vadd.f32 %v6896_v46, %v9958_v63 }
 0xb36   : > { %v5466_v62 = vpop.f32.mrf.mxu0 }
 0xb37   : > { %5659 = vst.msk [vmem:[%s9966_s7 + $0x44] sm:$0xf] %vm5641_vm6, %v6183_v13  ;;  %v6188_v35 = vpack.c.bf16 %v5475_v4, %v5475_v4  ;;  %v5467_v8 = vadd.f32 %v9958_v63, %v5466_v62 }
 0xb38   : > { %v6897_v33 = vpop.f32.mrf.mxu0 }
 0xb39   : > { %5664 = vst.msk [vmem:[%s9966_s7 + $0x58] sm:$0xf] %vm5641_vm6, %v6188_v35  ;;  %v6186_v30 = vpack.c.bf16 %v5467_v8, %v5467_v8  ;;  %v5478_v57 = vadd.f32 %v6897_v33, %v9958_v63 }
 0xb3a   : > { %v5469_v45 = vpop.f32.mrf.mxu0 }
 0xb3b   : > { %5662 = vst.msk [vmem:[%s9966_s7 + $0x50] sm:$0xf] %vm5641_vm6, %v6186_v30  ;;  %v6189_v24 = vpack.c.bf16 %v5478_v57, %v5478_v57  ;;  %v5470_v28 = vadd.f32 %v9958_v63, %v5469_v45 }
 0xb3c   : > { %v6900_v23 = vpop.f32.mrf.mxu0 }
 0xb3d   : > { %5665 = vst.msk [vmem:[%s9966_s7 + $0x5c] sm:$0xf] %vm5641_vm6, %v6189_v24  ;;  %v6187_v9 = vpack.c.bf16 %v5470_v28, %v5470_v28  ;;  %v5491_v26 = vadd.f32 %v6900_v23, %v9958_v63 }
 0xb3e   : > { %v5482_v42 = vpop.f32.mrf.mxu0 }
 0xb3f   : > { %5663 = vst.msk [vmem:[%s9966_s7 + $0x54] sm:$0xf] %vm5641_vm6, %v6187_v9  ;;  %v6192_v54 = vpack.c.bf16 %v5491_v26, %v5491_v26  ;;  %v5483_v39 = vadd.f32 %v9958_v63, %v5482_v42 }
 0xb40   : > { %v6901_v37 = vpop.f32.mrf.mxu0 }
 0xb41   : > { %5668 = vst.msk [vmem:[%s9966_s7 + $0x68] sm:$0xf] %vm5641_vm6, %v6192_v54  ;;  %v6190_v52 = vpack.c.bf16 %v5483_v39, %v5483_v39  ;;  %v5494_v16 = vadd.f32 %v6901_v37, %v9958_v63 }
 0xb42   : > { %v5485_v55 = vpop.f32.mrf.mxu0 }
 0xb43   : > { %5666 = vst.msk [vmem:[%s9966_s7 + $0x60] sm:$0xf] %vm5641_vm6, %v6190_v52  ;;  %v6193_v50 = vpack.c.bf16 %v5494_v16, %v5494_v16  ;;  %v5486_v43 = vadd.f32 %v9958_v63, %v5485_v55 }
 0xb45   : > { %5669 = vst.msk [vmem:[%s9966_s7 + $0x6c] sm:$0xf] %vm5641_vm6, %v6193_v50  ;;  %v6191_v18 = vpack.c.bf16 %v5486_v43, %v5486_v43 }
 0xb46   : > { %v6904_v6 = vpop.f32.mrf.mxu0 }
 0xb47   : > { %5667 = vst.msk [vmem:[%s9966_s7 + $0x64] sm:$0xf] %vm5641_vm6, %v6191_v18  ;;  %v5507_v0 = vadd.f32 %v6904_v6, %v9958_v63 }
 0xb48   : > { %v5498_v34 = vpop.f32.mrf.mxu0 }
 0xb49   : > { %v6196_v38 = vpack.c.bf16 %v5507_v0, %v5507_v0  ;;  %v5499_v12 = vadd.f32 %v9958_v63, %v5498_v34 }
 0xb4a   : > { %v6905_v49 = vpop.f32.mrf.mxu0 }
 0xb4b   : > { %5672 = vst.msk [vmem:[%s9966_s7 + $0x78] sm:$0xf] %vm5641_vm6, %v6196_v38  ;;  %v6194_v60 = vpack.c.bf16 %v5499_v12, %v5499_v12  ;;  %v5510_v44 = vadd.f32 %v6905_v49, %v9958_v63 }
 0xb4c   : > { %v5501_v32 = vpop.f32.mrf.mxu0 }
 0xb4d   : > { %5670 = vst.msk [vmem:[%s9966_s7 + $0x70] sm:$0xf] %vm5641_vm6, %v6194_v60  ;;  %v6197_v17 = vpack.c.bf16 %v5510_v44, %v5510_v44  ;;  %v5502_v21 = vadd.f32 %v9958_v63, %v5501_v32 }
 0xb4f   : > { %5673 = vst.msk [vmem:[%s9966_s7 + $0x7c] sm:$0xf] %vm5641_vm6, %v6197_v17  ;;  %v6195_v5 = vpack.c.bf16 %v5502_v21, %v5502_v21 }
 0xb51   : > { %5671 = vst.msk [vmem:[%s9966_s7 + $0x74] sm:$0xf] %vm5641_vm6, %v6195_v5 }
 0xb52 PF: > { %s16_s21 = sadd.s32 1, %s7430_s21  }
 0xb53   : > { %p13_p4 = scmp.ge.s32.totalorder %s16_s21, 4  }
 0xb55   :  { %15 = sbr.rel (!%p13_p4) target bundleno = 1 (0x1), region = 74 }

</bundles_post_ra>
